<compile_context>
chip_gen: v6e
topology: v6e:2x2x1
jax: 0.10.0
libtpu: 0.0.40
codegen_flags: <defaults>
</compile_context>

<pallas_src>
import functools

import jax
import jax.numpy as jnp
from jax import lax
from jax.experimental import pallas as pl
from jax.experimental.pallas import tpu as pltpu

HIDDEN = 128
NUM_CLASSES = 3
PAD_CLASSES = 128          # lane-dense output width
NEG_PAD = -1e30            # drives padded logits to ~0 probability


# ----------------------------------------------------------------------------
# Fused kernel: interleaved 2-layer LSTM recurrence -> fc1+ReLU -> fc2+ReLU
#               -> fc3 -> log_softmax (over 128 padded lanes)
# ----------------------------------------------------------------------------
def _lid_fused_kernel(x_ref,
                      wih1_ref, whh1_ref, bl1_ref,
                      w2stk_ref, bl2_ref,
                      w1_ref, b1_ref, w2_ref, b2_ref, w3_ref, b3_ref,
                      out_ref,
                      proj_sc, h2_sc,
                      *, seq_len, batch, hidden):
    S, B, H = seq_len, batch, hidden

    # ---- hoisted layer-1 input projection: one (S*B, IN) @ (IN, 4H) matmul ----
    proj_sc[...] = (jnp.dot(x_ref[...], wih1_ref[...],
                            preferred_element_type=jnp.float32) + bl1_ref[...])

    # Hoist weight/bias loads out of the (unrolled) time loop.
    whh1 = whh1_ref[...]            # (H, 4H)
    w2stk = w2stk_ref[...]          # (2H, 4H)  = [W_ih2; W_hh2] stacked
    bl2 = bl2_ref[...]              # (1, 4H)

    def lstm_cell(gates, c_prev):
        # gate layout after init-time permutation: [ i | f | o | g ]
        sfo = jax.nn.sigmoid(gates[:, :3 * H])      # one contiguous (B,3H) slab
        i = sfo[:, 0 * H:1 * H]
        f = sfo[:, 1 * H:2 * H]
        o = sfo[:, 2 * H:3 * H]
        g = jnp.tanh(gates[:, 3 * H:4 * H])
        c_new = f * c_prev + i * g
        h_new = o * jnp.tanh(c_new)
        return h_new, c_new

    zeros = jnp.zeros((B, H), jnp.float32)

    def body(t, carry):
        h1, c1, h2, c2 = carry                       # each one f32 vreg (B,H)
        row = pl.multiple_of(t * B, B)

        # ---- layer-1 step t: hoisted projection + small recurrent matmul ----
        g1 = proj_sc[pl.ds(row, B), :] + jnp.dot(
            h1, whh1, preferred_element_type=jnp.float32)          # (B, 4H)
        h1n, c1n = lstm_cell(g1, c1)

        # ---- layer-2 step t: fused input+recurrent projection -------------
        x2 = jnp.concatenate([h1n, h2], axis=1)                    # (B, 2H)
        g2 = jnp.dot(x2, w2stk, preferred_element_type=jnp.float32) + bl2
        h2n, c2n = lstm_cell(g2, c2)

        h2_sc[pl.ds(row, B), :] = h2n                # only per-step store
        return (h1n, c1n, h2n, c2n)

    lax.fori_loop(0, S, body, (zeros, zeros, zeros, zeros), unroll=True)

    # ---- MLP head + lane-dense log-softmax ----
    h_seq = h2_sc[...]                                              # (N, H)
    y1 = jnp.maximum(
        jnp.dot(h_seq, w1_ref[...],
                preferred_element_type=jnp.float32) + b1_ref[...], 0.0)  # (N,256)
    y2 = jnp.maximum(
        jnp.dot(y1, w2_ref[...],
                preferred_element_type=jnp.float32) + b2_ref[...], 0.0)  # (N,256)
    logits = (jnp.dot(y2, w3_ref[...],
                      preferred_element_type=jnp.float32) + b3_ref[...])  # (N,128)
    m = jnp.max(logits, axis=-1, keepdims=True)       # padded lanes are -1e30
    z = logits - m
    lse = jnp.log(jnp.sum(jnp.exp(z), axis=-1, keepdims=True))
    out_ref[...] = z - lse


# ----------------------------------------------------------------------------
# Weight-layout prep (one-time transforms)
# ----------------------------------------------------------------------------
def _permute_gates(w):
    """Reorder the 4H gate axis from PyTorch's [i, f, g, o] to [i, f, o, g]."""
    i, f, g, o = jnp.split(w, 4, axis=-1)
    return jnp.concatenate([i, f, o, g], axis=-1)


# ----------------------------------------------------------------------------
# Wrapper
# ----------------------------------------------------------------------------
def lid_test_forward(feature, params):
    S, B, IN = feature.shape
    H = HIDDEN
    SB = S * B
    x2d = feature.reshape(SB, IN)

    l1, l2 = params["lstm"]

    # Layer-1 weights, gate-permuted.
    wih1 = _permute_gates(l1["w_ih_t"])                    # (IN, 4H)
    whh1 = _permute_gates(l1["w_hh_t"])                    # (H, 4H)
    bl1 = _permute_gates(l1["bias"])                       # (1, 4H)

    # Layer-2: stack [W_ih2; W_hh2] so the recurrence uses one matmul per step.
    w2stk = jnp.concatenate(
        [_permute_gates(l2["w_ih_t"]), _permute_gates(l2["w_hh_t"])], axis=0)  # (2H, 4H)
    bl2 = _permute_gates(l2["bias"])                       # (1, 4H)

    # Pad fc3 to a lane-dense (256, 128) output; padded bias lanes get -1e30 so
    # the log-softmax denominator is unaffected.
    w3p = jnp.zeros((256, PAD_CLASSES), jnp.float32).at[:, :NUM_CLASSES].set(params["w3"])
    b3p = jnp.full((1, PAD_CLASSES), NEG_PAD, jnp.float32).at[:, :NUM_CLASSES].set(params["b3"])

    kernel = functools.partial(_lid_fused_kernel, seq_len=S, batch=B, hidden=H)

    full = lambda shape: pl.BlockSpec(shape, lambda i: (0,) * len(shape))

    out = pl.pallas_call(
        kernel,
        out_shape=jax.ShapeDtypeStruct((SB, PAD_CLASSES), jnp.float32),
        grid_spec=pltpu.PrefetchScalarGridSpec(
            num_scalar_prefetch=0,
            grid=(1,),
            in_specs=[
                full((SB, IN)),             # x
                full((IN, 4 * H)),          # W_ih layer 1 (transposed, permuted)
                full((H, 4 * H)),           # W_hh layer 1 (transposed, permuted)
                full((1, 4 * H)),           # bias layer 1
                full((2 * H, 4 * H)),       # stacked [W_ih2; W_hh2]
                full((1, 4 * H)),           # bias layer 2
                full((H, 256)),             # fc1 W
                full((1, 256)),             # fc1 b
                full((256, 256)),           # fc2 W
                full((1, 256)),             # fc2 b
                full((256, PAD_CLASSES)),   # fc3 W (padded)
                full((1, PAD_CLASSES)),     # fc3 b (padded)
            ],
            out_specs=full((SB, PAD_CLASSES)),
            scratch_shapes=[
                pltpu.VMEM((SB, 4 * H), jnp.float32),   # hoisted layer-1 gate projections
                pltpu.VMEM((SB, H), jnp.float32),       # layer-2 hidden sequence
            ],
        ),
        compiler_params=pltpu.CompilerParams(
            dimension_semantics=("arbitrary",)),
    )(x2d,
      wih1, whh1, bl1,
      w2stk, bl2,
      params["w1"], params["b1"], params["w2"], params["b2"], w3p, b3p)

    return out[:, :NUM_CLASSES].reshape(S, B, NUM_CLASSES)


# ----------------------------------------------------------------------------
# Pure-JAX reference (for correctness check; standard PyTorch gate order)
# ----------------------------------------------------------------------------
def lid_test_reference(feature, params):
    h = feature
    for layer in params["lstm"]:
        w_ih_t, w_hh_t, bias = layer["w_ih_t"], layer["w_hh_t"], layer["bias"]
        B = h.shape[1]
        H = HIDDEN

        def step(carry, x_t):
            h_prev, c_prev = carry
            gates = x_t @ w_ih_t + h_prev @ w_hh_t + bias
            i = jax.nn.sigmoid(gates[:, 0 * H:1 * H])
            f = jax.nn.sigmoid(gates[:, 1 * H:2 * H])
            g = jnp.tanh(gates[:, 2 * H:3 * H])
            o = jax.nn.sigmoid(gates[:, 3 * H:4 * H])
            c_new = f * c_prev + i * g
            h_new = o * jnp.tanh(c_new)
            return (h_new, c_new), h_new

        init = (jnp.zeros((B, H), jnp.float32), jnp.zeros((B, H), jnp.float32))
        _, h = lax.scan(step, init, h)

    y1 = jnp.maximum(h @ params["w1"] + params["b1"], 0.0)
    y2 = jnp.maximum(y1 @ params["w2"] + params["b2"], 0.0)
    logits = y2 @ params["w3"] + params["b3"]
    return jax.nn.log_softmax(logits, axis=2)


# ----------------------------------------------------------------------------
# Deterministic parameter init (shapes match nn.LSTM(64,128,2) + FC stack)
# ----------------------------------------------------------------------------
def init_params(key, input_size=64, hidden=HIDDEN):
    def uni(k, shape, scale):
        return jax.random.uniform(k, shape, jnp.float32, -scale, scale)

    keys = jax.random.split(key, 16)
    s = 1.0 / jnp.sqrt(hidden)
    lstm = []
    in_sz = input_size
    ki = 0
    for _ in range(2):
        w_ih_t = uni(keys[ki + 0], (in_sz, 4 * hidden), s)      # (IN, 4H)
        w_hh_t = uni(keys[ki + 1], (hidden, 4 * hidden), s)     # (H, 4H)
        b_ih = uni(keys[ki + 2], (1, 4 * hidden), s)
        b_hh = uni(keys[ki + 3], (1, 4 * hidden), s)
        lstm.append({"w_ih_t": w_ih_t, "w_hh_t": w_hh_t, "bias": b_ih + b_hh})
        in_sz = hidden
        ki += 4

    params = {
        "lstm": lstm,
        "w1": uni(keys[8], (128, 256), 1.0 / jnp.sqrt(128.0)),
        "b1": uni(keys[9], (1, 256), 1.0 / jnp.sqrt(128.0)),
        "w2": uni(keys[10], (256, 256), 1.0 / jnp.sqrt(256.0)),
        "b2": uni(keys[11], (1, 256), 1.0 / jnp.sqrt(256.0)),
        "w3": uni(keys[12], (256, NUM_CLASSES), 1.0 / jnp.sqrt(256.0)),
        "b3": uni(keys[13], (1, NUM_CLASSES), 1.0 / jnp.sqrt(256.0)),
    }
    return params


if __name__ == "__main__":
    key = jax.random.PRNGKey(0)
    k_param, k_x = jax.random.split(key)

    S, B, IN = 8, 8, 64          # (seq_len, batch, input_size)
    params = init_params(k_param, input_size=IN, hidden=HIDDEN)
    feature = jax.random.normal(k_x, (S, B, IN), jnp.float32)

    out = lid_test_forward(feature, params)
    out = jax.block_until_ready(out)

    ref = jax.block_until_ready(lid_test_reference(feature, params))
    assert out.shape == (S, B, NUM_CLASSES)
    assert jnp.allclose(out, ref, atol=1e-4, rtol=1e-4), (
        f"max err {jnp.max(jnp.abs(out - ref))}")

    print("KERNEL_OK")
</pallas_src>

<mosaic_0001>
module attributes {stable_mosaic.version = 11 : i64} {
  func.func @_lid_fused_kernel(%arg0: i32, %arg1: memref<64x64xf32, #tpu.memory_space<vmem>>, %arg2: memref<64x512xf32, #tpu.memory_space<vmem>>, %arg3: memref<128x512xf32, #tpu.memory_space<vmem>>, %arg4: memref<1x512xf32, #tpu.memory_space<vmem>>, %arg5: memref<256x512xf32, #tpu.memory_space<vmem>>, %arg6: memref<1x512xf32, #tpu.memory_space<vmem>>, %arg7: memref<128x256xf32, #tpu.memory_space<vmem>>, %arg8: memref<1x256xf32, #tpu.memory_space<vmem>>, %arg9: memref<256x256xf32, #tpu.memory_space<vmem>>, %arg10: memref<1x256xf32, #tpu.memory_space<vmem>>, %arg11: memref<256x128xf32, #tpu.memory_space<vmem>>, %arg12: memref<1x128xf32, #tpu.memory_space<vmem>>, %arg13: memref<64x128xf32, #tpu.memory_space<vmem>>, %arg14: memref<64x512xf32, #tpu.memory_space<vmem>>, %arg15: memref<64x128xf32, #tpu.memory_space<vmem>>) attributes {dimension_semantics = [#tpu.dimension_semantics<arbitrary>], iteration_bounds = array<i64: 1>, scalar_prefetch = 0 : i64, scratch_operands = 2 : i64, tpu.core_type = #tpu.core_type<tc>, window_params = [{pipeline_mode = #tpu.pipeline_mode<synchronous>, transform_indices = @transform_0, window_bounds = array<i64: 64, 64>}, {pipeline_mode = #tpu.pipeline_mode<synchronous>, transform_indices = @transform_1, window_bounds = array<i64: 64, 512>}, {pipeline_mode = #tpu.pipeline_mode<synchronous>, transform_indices = @transform_2, window_bounds = array<i64: 128, 512>}, {pipeline_mode = #tpu.pipeline_mode<synchronous>, transform_indices = @transform_3, window_bounds = array<i64: 1, 512>}, {pipeline_mode = #tpu.pipeline_mode<synchronous>, transform_indices = @transform_4, window_bounds = array<i64: 256, 512>}, {pipeline_mode = #tpu.pipeline_mode<synchronous>, transform_indices = @transform_5, window_bounds = array<i64: 1, 512>}, {pipeline_mode = #tpu.pipeline_mode<synchronous>, transform_indices = @transform_6, window_bounds = array<i64: 128, 256>}, {pipeline_mode = #tpu.pipeline_mode<synchronous>, transform_indices = @transform_7, window_bounds = array<i64: 1, 256>}, {pipeline_mode = #tpu.pipeline_mode<synchronous>, transform_indices = @transform_8, window_bounds = array<i64: 256, 256>}, {pipeline_mode = #tpu.pipeline_mode<synchronous>, transform_indices = @transform_9, window_bounds = array<i64: 1, 256>}, {pipeline_mode = #tpu.pipeline_mode<synchronous>, transform_indices = @transform_10, window_bounds = array<i64: 256, 128>}, {pipeline_mode = #tpu.pipeline_mode<synchronous>, transform_indices = @transform_11, window_bounds = array<i64: 1, 128>}, {pipeline_mode = #tpu.pipeline_mode<synchronous>, transform_indices = @transform_12, window_bounds = array<i64: 64, 128>}]} {
    %c0 = arith.constant 0 : index
    %c0_0 = arith.constant 0 : index
    %0 = vector.load %arg1[%c0, %c0_0] : memref<64x64xf32, #tpu.memory_space<vmem>>, vector<64x64xf32>
    %c0_1 = arith.constant 0 : index
    %c0_2 = arith.constant 0 : index
    %1 = vector.load %arg2[%c0_1, %c0_2] : memref<64x512xf32, #tpu.memory_space<vmem>>, vector<64x512xf32>
    %cst = arith.constant dense<0.000000e+00> : vector<64x512xf32>
    %2 = tpu.matmul %0, %1, %cst {dimension_numbers = #tpu.dot_dimension_numbers<[1], [0], [0], [1], [0, 0, 1, 1], [], []>} : vector<64x64xf32>, vector<64x512xf32>, vector<64x512xf32> -> vector<64x512xf32>
    %c0_3 = arith.constant 0 : index
    %c0_4 = arith.constant 0 : index
    %3 = vector.load %arg4[%c0_3, %c0_4] : memref<1x512xf32, #tpu.memory_space<vmem>>, vector<1x512xf32>
    %4 = vector.broadcast %3 : vector<1x512xf32> to vector<64x512xf32>
    %5 = arith.addf %2, %4 : vector<64x512xf32>
    %c0_5 = arith.constant 0 : index
    %c0_6 = arith.constant 0 : index
    %6 = vector.load %arg14[%c0_5, %c0_6] : memref<64x512xf32, #tpu.memory_space<vmem>>, vector<64x512xf32>
    tpu.vector_store %arg14[%c0_5, %c0_6], %5 {strides = array<i32>} : memref<64x512xf32, #tpu.memory_space<vmem>>, vector<64x512xf32>,
    %c0_7 = arith.constant 0 : index
    %c0_8 = arith.constant 0 : index
    %7 = vector.load %arg3[%c0_7, %c0_8] : memref<128x512xf32, #tpu.memory_space<vmem>>, vector<128x512xf32>
    %c0_9 = arith.constant 0 : index
    %c0_10 = arith.constant 0 : index
    %8 = vector.load %arg5[%c0_9, %c0_10] : memref<256x512xf32, #tpu.memory_space<vmem>>, vector<256x512xf32>
    %c0_11 = arith.constant 0 : index
    %c0_12 = arith.constant 0 : index
    %9 = vector.load %arg6[%c0_11, %c0_12] : memref<1x512xf32, #tpu.memory_space<vmem>>, vector<1x512xf32>
    %cst_13 = arith.constant 0.000000e+00 : f32
    %10 = vector.broadcast %cst_13 : f32 to vector<8x128xf32>
    %c0_i32 = arith.constant 0 : i32
    %c8_i32 = arith.constant 8 : i32
    %11 = arith.muli %c0_i32, %c8_i32 : i32
    %12 = tpu.assume_multiple %11, 8 : i32
    %13 = arith.index_cast %12 : i32 to index
    %c0_14 = arith.constant 0 : index
    %14 = vector.load %arg14[%13, %c0_14] : memref<64x512xf32, #tpu.memory_space<vmem>>, vector<8x512xf32>
    %cst_15 = arith.constant dense<0.000000e+00> : vector<8x512xf32>
    %15 = tpu.matmul %10, %7, %cst_15 {dimension_numbers = #tpu.dot_dimension_numbers<[1], [0], [0], [1], [0, 0, 1, 1], [], []>} : vector<8x128xf32>, vector<128x512xf32>, vector<8x512xf32> -> vector<8x512xf32>
    %16 = arith.addf %14, %15 : vector<8x512xf32>
    %17 = vector.extract_strided_slice %16 {offsets = [0, 0], sizes = [8, 384], strides = [1, 1]} : vector<8x512xf32> to vector<8x384xf32>
    %18 = arith.negf %17 : vector<8x384xf32>
    %19 = math.exp %18 : vector<8x384xf32>
    %cst_16 = arith.constant 1.000000e+00 : f32
    %20 = vector.broadcast %cst_16 : f32 to vector<8x384xf32>
    %21 = arith.addf %20, %19 : vector<8x384xf32>
    %22 = arith.divf %20, %21 : vector<8x384xf32>
    %23 = vector.extract_strided_slice %22 {offsets = [0, 0], sizes = [8, 128], strides = [1, 1]} : vector<8x384xf32> to vector<8x128xf32>
    %24 = vector.extract_strided_slice %22 {offsets = [0, 128], sizes = [8, 128], strides = [1, 1]} : vector<8x384xf32> to vector<8x128xf32>
    %25 = vector.extract_strided_slice %22 {offsets = [0, 256], sizes = [8, 128], strides = [1, 1]} : vector<8x384xf32> to vector<8x128xf32>
    %26 = vector.extract_strided_slice %16 {offsets = [0, 384], sizes = [8, 128], strides = [1, 1]} : vector<8x512xf32> to vector<8x128xf32>
    %27 = math.tanh %26 : vector<8x128xf32>
    %28 = arith.mulf %24, %10 : vector<8x128xf32>
    %29 = arith.mulf %23, %27 : vector<8x128xf32>
    %30 = arith.addf %28, %29 : vector<8x128xf32>
    %31 = math.tanh %30 : vector<8x128xf32>
    %32 = arith.mulf %25, %31 : vector<8x128xf32>
    %33 = tpu.concatenate %32, %10 in 1 : vector<8x128xf32>, vector<8x128xf32> -> vector<8x256xf32>
    %cst_17 = arith.constant dense<0.000000e+00> : vector<8x512xf32>
    %34 = tpu.matmul %33, %8, %cst_17 {dimension_numbers = #tpu.dot_dimension_numbers<[1], [0], [0], [1], [0, 0, 1, 1], [], []>} : vector<8x256xf32>, vector<256x512xf32>, vector<8x512xf32> -> vector<8x512xf32>
    %35 = vector.broadcast %9 : vector<1x512xf32> to vector<8x512xf32>
    %36 = arith.addf %34, %35 : vector<8x512xf32>
    %37 = vector.extract_strided_slice %36 {offsets = [0, 0], sizes = [8, 384], strides = [1, 1]} : vector<8x512xf32> to vector<8x384xf32>
    %38 = arith.negf %37 : vector<8x384xf32>
    %39 = math.exp %38 : vector<8x384xf32>
    %cst_18 = arith.constant 1.000000e+00 : f32
    %40 = vector.broadcast %cst_18 : f32 to vector<8x384xf32>
    %41 = arith.addf %40, %39 : vector<8x384xf32>
    %42 = arith.divf %40, %41 : vector<8x384xf32>
    %43 = vector.extract_strided_slice %42 {offsets = [0, 0], sizes = [8, 128], strides = [1, 1]} : vector<8x384xf32> to vector<8x128xf32>
    %44 = vector.extract_strided_slice %42 {offsets = [0, 128], sizes = [8, 128], strides = [1, 1]} : vector<8x384xf32> to vector<8x128xf32>
    %45 = vector.extract_strided_slice %42 {offsets = [0, 256], sizes = [8, 128], strides = [1, 1]} : vector<8x384xf32> to vector<8x128xf32>
    %46 = vector.extract_strided_slice %36 {offsets = [0, 384], sizes = [8, 128], strides = [1, 1]} : vector<8x512xf32> to vector<8x128xf32>
    %47 = math.tanh %46 : vector<8x128xf32>
    %48 = arith.mulf %44, %10 : vector<8x128xf32>
    %49 = arith.mulf %43, %47 : vector<8x128xf32>
    %50 = arith.addf %48, %49 : vector<8x128xf32>
    %51 = math.tanh %50 : vector<8x128xf32>
    %52 = arith.mulf %45, %51 : vector<8x128xf32>
    %53 = arith.index_cast %12 : i32 to index
    %c0_19 = arith.constant 0 : index
    %54 = vector.load %arg15[%53, %c0_19] : memref<64x128xf32, #tpu.memory_space<vmem>>, vector<8x128xf32>
    tpu.vector_store %arg15[%53, %c0_19], %52 {strides = array<i32>} : memref<64x128xf32, #tpu.memory_space<vmem>>, vector<8x128xf32>,
    %c1_i32 = arith.constant 1 : i32
    %c8_i32_20 = arith.constant 8 : i32
    %55 = arith.muli %c1_i32, %c8_i32_20 : i32
    %56 = tpu.assume_multiple %55, 8 : i32
    %57 = arith.index_cast %56 : i32 to index
    %c0_21 = arith.constant 0 : index
    %58 = vector.load %arg14[%57, %c0_21] : memref<64x512xf32, #tpu.memory_space<vmem>>, vector<8x512xf32>
    %cst_22 = arith.constant dense<0.000000e+00> : vector<8x512xf32>
    %59 = tpu.matmul %32, %7, %cst_22 {dimension_numbers = #tpu.dot_dimension_numbers<[1], [0], [0], [1], [0, 0, 1, 1], [], []>} : vector<8x128xf32>, vector<128x512xf32>, vector<8x512xf32> -> vector<8x512xf32>
    %60 = arith.addf %58, %59 : vector<8x512xf32>
    %61 = vector.extract_strided_slice %60 {offsets = [0, 0], sizes = [8, 384], strides = [1, 1]} : vector<8x512xf32> to vector<8x384xf32>
    %62 = arith.negf %61 : vector<8x384xf32>
    %63 = math.exp %62 : vector<8x384xf32>
    %cst_23 = arith.constant 1.000000e+00 : f32
    %64 = vector.broadcast %cst_23 : f32 to vector<8x384xf32>
    %65 = arith.addf %64, %63 : vector<8x384xf32>
    %66 = arith.divf %64, %65 : vector<8x384xf32>
    %67 = vector.extract_strided_slice %66 {offsets = [0, 0], sizes = [8, 128], strides = [1, 1]} : vector<8x384xf32> to vector<8x128xf32>
    %68 = vector.extract_strided_slice %66 {offsets = [0, 128], sizes = [8, 128], strides = [1, 1]} : vector<8x384xf32> to vector<8x128xf32>
    %69 = vector.extract_strided_slice %66 {offsets = [0, 256], sizes = [8, 128], strides = [1, 1]} : vector<8x384xf32> to vector<8x128xf32>
    %70 = vector.extract_strided_slice %60 {offsets = [0, 384], sizes = [8, 128], strides = [1, 1]} : vector<8x512xf32> to vector<8x128xf32>
    %71 = math.tanh %70 : vector<8x128xf32>
    %72 = arith.mulf %68, %30 : vector<8x128xf32>
    %73 = arith.mulf %67, %71 : vector<8x128xf32>
    %74 = arith.addf %72, %73 : vector<8x128xf32>
    %75 = math.tanh %74 : vector<8x128xf32>
    %76 = arith.mulf %69, %75 : vector<8x128xf32>
    %77 = tpu.concatenate %76, %52 in 1 : vector<8x128xf32>, vector<8x128xf32> -> vector<8x256xf32>
    %cst_24 = arith.constant dense<0.000000e+00> : vector<8x512xf32>
    %78 = tpu.matmul %77, %8, %cst_24 {dimension_numbers = #tpu.dot_dimension_numbers<[1], [0], [0], [1], [0, 0, 1, 1], [], []>} : vector<8x256xf32>, vector<256x512xf32>, vector<8x512xf32> -> vector<8x512xf32>
    %79 = vector.broadcast %9 : vector<1x512xf32> to vector<8x512xf32>
    %80 = arith.addf %78, %79 : vector<8x512xf32>
    %81 = vector.extract_strided_slice %80 {offsets = [0, 0], sizes = [8, 384], strides = [1, 1]} : vector<8x512xf32> to vector<8x384xf32>
    %82 = arith.negf %81 : vector<8x384xf32>
    %83 = math.exp %82 : vector<8x384xf32>
    %cst_25 = arith.constant 1.000000e+00 : f32
    %84 = vector.broadcast %cst_25 : f32 to vector<8x384xf32>
    %85 = arith.addf %84, %83 : vector<8x384xf32>
    %86 = arith.divf %84, %85 : vector<8x384xf32>
    %87 = vector.extract_strided_slice %86 {offsets = [0, 0], sizes = [8, 128], strides = [1, 1]} : vector<8x384xf32> to vector<8x128xf32>
    %88 = vector.extract_strided_slice %86 {offsets = [0, 128], sizes = [8, 128], strides = [1, 1]} : vector<8x384xf32> to vector<8x128xf32>
    %89 = vector.extract_strided_slice %86 {offsets = [0, 256], sizes = [8, 128], strides = [1, 1]} : vector<8x384xf32> to vector<8x128xf32>
    %90 = vector.extract_strided_slice %80 {offsets = [0, 384], sizes = [8, 128], strides = [1, 1]} : vector<8x512xf32> to vector<8x128xf32>
    %91 = math.tanh %90 : vector<8x128xf32>
    %92 = arith.mulf %88, %50 : vector<8x128xf32>
    %93 = arith.mulf %87, %91 : vector<8x128xf32>
    %94 = arith.addf %92, %93 : vector<8x128xf32>
    %95 = math.tanh %94 : vector<8x128xf32>
    %96 = arith.mulf %89, %95 : vector<8x128xf32>
    %97 = arith.index_cast %56 : i32 to index
    %c0_26 = arith.constant 0 : index
    %98 = vector.load %arg15[%97, %c0_26] : memref<64x128xf32, #tpu.memory_space<vmem>>, vector<8x128xf32>
    tpu.vector_store %arg15[%97, %c0_26], %96 {strides = array<i32>} : memref<64x128xf32, #tpu.memory_space<vmem>>, vector<8x128xf32>,
    %c2_i32 = arith.constant 2 : i32
    %c8_i32_27 = arith.constant 8 : i32
    %99 = arith.muli %c2_i32, %c8_i32_27 : i32
    %100 = tpu.assume_multiple %99, 8 : i32
    %101 = arith.index_cast %100 : i32 to index
    %c0_28 = arith.constant 0 : index
    %102 = vector.load %arg14[%101, %c0_28] : memref<64x512xf32, #tpu.memory_space<vmem>>, vector<8x512xf32>
    %cst_29 = arith.constant dense<0.000000e+00> : vector<8x512xf32>
    %103 = tpu.matmul %76, %7, %cst_29 {dimension_numbers = #tpu.dot_dimension_numbers<[1], [0], [0], [1], [0, 0, 1, 1], [], []>} : vector<8x128xf32>, vector<128x512xf32>, vector<8x512xf32> -> vector<8x512xf32>
    %104 = arith.addf %102, %103 : vector<8x512xf32>
    %105 = vector.extract_strided_slice %104 {offsets = [0, 0], sizes = [8, 384], strides = [1, 1]} : vector<8x512xf32> to vector<8x384xf32>
    %106 = arith.negf %105 : vector<8x384xf32>
    %107 = math.exp %106 : vector<8x384xf32>
    %cst_30 = arith.constant 1.000000e+00 : f32
    %108 = vector.broadcast %cst_30 : f32 to vector<8x384xf32>
    %109 = arith.addf %108, %107 : vector<8x384xf32>
    %110 = arith.divf %108, %109 : vector<8x384xf32>
    %111 = vector.extract_strided_slice %110 {offsets = [0, 0], sizes = [8, 128], strides = [1, 1]} : vector<8x384xf32> to vector<8x128xf32>
    %112 = vector.extract_strided_slice %110 {offsets = [0, 128], sizes = [8, 128], strides = [1, 1]} : vector<8x384xf32> to vector<8x128xf32>
    %113 = vector.extract_strided_slice %110 {offsets = [0, 256], sizes = [8, 128], strides = [1, 1]} : vector<8x384xf32> to vector<8x128xf32>
    %114 = vector.extract_strided_slice %104 {offsets = [0, 384], sizes = [8, 128], strides = [1, 1]} : vector<8x512xf32> to vector<8x128xf32>
    %115 = math.tanh %114 : vector<8x128xf32>
    %116 = arith.mulf %112, %74 : vector<8x128xf32>
    %117 = arith.mulf %111, %115 : vector<8x128xf32>
    %118 = arith.addf %116, %117 : vector<8x128xf32>
    %119 = math.tanh %118 : vector<8x128xf32>
    %120 = arith.mulf %113, %119 : vector<8x128xf32>
    %121 = tpu.concatenate %120, %96 in 1 : vector<8x128xf32>, vector<8x128xf32> -> vector<8x256xf32>
    %cst_31 = arith.constant dense<0.000000e+00> : vector<8x512xf32>
    %122 = tpu.matmul %121, %8, %cst_31 {dimension_numbers = #tpu.dot_dimension_numbers<[1], [0], [0], [1], [0, 0, 1, 1], [], []>} : vector<8x256xf32>, vector<256x512xf32>, vector<8x512xf32> -> vector<8x512xf32>
    %123 = vector.broadcast %9 : vector<1x512xf32> to vector<8x512xf32>
    %124 = arith.addf %122, %123 : vector<8x512xf32>
    %125 = vector.extract_strided_slice %124 {offsets = [0, 0], sizes = [8, 384], strides = [1, 1]} : vector<8x512xf32> to vector<8x384xf32>
    %126 = arith.negf %125 : vector<8x384xf32>
    %127 = math.exp %126 : vector<8x384xf32>
    %cst_32 = arith.constant 1.000000e+00 : f32
    %128 = vector.broadcast %cst_32 : f32 to vector<8x384xf32>
    %129 = arith.addf %128, %127 : vector<8x384xf32>
    %130 = arith.divf %128, %129 : vector<8x384xf32>
    %131 = vector.extract_strided_slice %130 {offsets = [0, 0], sizes = [8, 128], strides = [1, 1]} : vector<8x384xf32> to vector<8x128xf32>
    %132 = vector.extract_strided_slice %130 {offsets = [0, 128], sizes = [8, 128], strides = [1, 1]} : vector<8x384xf32> to vector<8x128xf32>
    %133 = vector.extract_strided_slice %130 {offsets = [0, 256], sizes = [8, 128], strides = [1, 1]} : vector<8x384xf32> to vector<8x128xf32>
    %134 = vector.extract_strided_slice %124 {offsets = [0, 384], sizes = [8, 128], strides = [1, 1]} : vector<8x512xf32> to vector<8x128xf32>
    %135 = math.tanh %134 : vector<8x128xf32>
    %136 = arith.mulf %132, %94 : vector<8x128xf32>
    %137 = arith.mulf %131, %135 : vector<8x128xf32>
    %138 = arith.addf %136, %137 : vector<8x128xf32>
    %139 = math.tanh %138 : vector<8x128xf32>
    %140 = arith.mulf %133, %139 : vector<8x128xf32>
    %141 = arith.index_cast %100 : i32 to index
    %c0_33 = arith.constant 0 : index
    %142 = vector.load %arg15[%141, %c0_33] : memref<64x128xf32, #tpu.memory_space<vmem>>, vector<8x128xf32>
    tpu.vector_store %arg15[%141, %c0_33], %140 {strides = array<i32>} : memref<64x128xf32, #tpu.memory_space<vmem>>, vector<8x128xf32>,
    %c3_i32 = arith.constant 3 : i32
    %c8_i32_34 = arith.constant 8 : i32
    %143 = arith.muli %c3_i32, %c8_i32_34 : i32
    %144 = tpu.assume_multiple %143, 8 : i32
    %145 = arith.index_cast %144 : i32 to index
    %c0_35 = arith.constant 0 : index
    %146 = vector.load %arg14[%145, %c0_35] : memref<64x512xf32, #tpu.memory_space<vmem>>, vector<8x512xf32>
    %cst_36 = arith.constant dense<0.000000e+00> : vector<8x512xf32>
    %147 = tpu.matmul %120, %7, %cst_36 {dimension_numbers = #tpu.dot_dimension_numbers<[1], [0], [0], [1], [0, 0, 1, 1], [], []>} : vector<8x128xf32>, vector<128x512xf32>, vector<8x512xf32> -> vector<8x512xf32>
    %148 = arith.addf %146, %147 : vector<8x512xf32>
    %149 = vector.extract_strided_slice %148 {offsets = [0, 0], sizes = [8, 384], strides = [1, 1]} : vector<8x512xf32> to vector<8x384xf32>
    %150 = arith.negf %149 : vector<8x384xf32>
    %151 = math.exp %150 : vector<8x384xf32>
    %cst_37 = arith.constant 1.000000e+00 : f32
    %152 = vector.broadcast %cst_37 : f32 to vector<8x384xf32>
    %153 = arith.addf %152, %151 : vector<8x384xf32>
    %154 = arith.divf %152, %153 : vector<8x384xf32>
    %155 = vector.extract_strided_slice %154 {offsets = [0, 0], sizes = [8, 128], strides = [1, 1]} : vector<8x384xf32> to vector<8x128xf32>
    %156 = vector.extract_strided_slice %154 {offsets = [0, 128], sizes = [8, 128], strides = [1, 1]} : vector<8x384xf32> to vector<8x128xf32>
    %157 = vector.extract_strided_slice %154 {offsets = [0, 256], sizes = [8, 128], strides = [1, 1]} : vector<8x384xf32> to vector<8x128xf32>
    %158 = vector.extract_strided_slice %148 {offsets = [0, 384], sizes = [8, 128], strides = [1, 1]} : vector<8x512xf32> to vector<8x128xf32>
    %159 = math.tanh %158 : vector<8x128xf32>
    %160 = arith.mulf %156, %118 : vector<8x128xf32>
    %161 = arith.mulf %155, %159 : vector<8x128xf32>
    %162 = arith.addf %160, %161 : vector<8x128xf32>
    %163 = math.tanh %162 : vector<8x128xf32>
    %164 = arith.mulf %157, %163 : vector<8x128xf32>
    %165 = tpu.concatenate %164, %140 in 1 : vector<8x128xf32>, vector<8x128xf32> -> vector<8x256xf32>
    %cst_38 = arith.constant dense<0.000000e+00> : vector<8x512xf32>
    %166 = tpu.matmul %165, %8, %cst_38 {dimension_numbers = #tpu.dot_dimension_numbers<[1], [0], [0], [1], [0, 0, 1, 1], [], []>} : vector<8x256xf32>, vector<256x512xf32>, vector<8x512xf32> -> vector<8x512xf32>
    %167 = vector.broadcast %9 : vector<1x512xf32> to vector<8x512xf32>
    %168 = arith.addf %166, %167 : vector<8x512xf32>
    %169 = vector.extract_strided_slice %168 {offsets = [0, 0], sizes = [8, 384], strides = [1, 1]} : vector<8x512xf32> to vector<8x384xf32>
    %170 = arith.negf %169 : vector<8x384xf32>
    %171 = math.exp %170 : vector<8x384xf32>
    %cst_39 = arith.constant 1.000000e+00 : f32
    %172 = vector.broadcast %cst_39 : f32 to vector<8x384xf32>
    %173 = arith.addf %172, %171 : vector<8x384xf32>
    %174 = arith.divf %172, %173 : vector<8x384xf32>
    %175 = vector.extract_strided_slice %174 {offsets = [0, 0], sizes = [8, 128], strides = [1, 1]} : vector<8x384xf32> to vector<8x128xf32>
    %176 = vector.extract_strided_slice %174 {offsets = [0, 128], sizes = [8, 128], strides = [1, 1]} : vector<8x384xf32> to vector<8x128xf32>
    %177 = vector.extract_strided_slice %174 {offsets = [0, 256], sizes = [8, 128], strides = [1, 1]} : vector<8x384xf32> to vector<8x128xf32>
    %178 = vector.extract_strided_slice %168 {offsets = [0, 384], sizes = [8, 128], strides = [1, 1]} : vector<8x512xf32> to vector<8x128xf32>
    %179 = math.tanh %178 : vector<8x128xf32>
    %180 = arith.mulf %176, %138 : vector<8x128xf32>
    %181 = arith.mulf %175, %179 : vector<8x128xf32>
    %182 = arith.addf %180, %181 : vector<8x128xf32>
    %183 = math.tanh %182 : vector<8x128xf32>
    %184 = arith.mulf %177, %183 : vector<8x128xf32>
    %185 = arith.index_cast %144 : i32 to index
    %c0_40 = arith.constant 0 : index
    %186 = vector.load %arg15[%185, %c0_40] : memref<64x128xf32, #tpu.memory_space<vmem>>, vector<8x128xf32>
    tpu.vector_store %arg15[%185, %c0_40], %184 {strides = array<i32>} : memref<64x128xf32, #tpu.memory_space<vmem>>, vector<8x128xf32>,
    %c4_i32 = arith.constant 4 : i32
    %c8_i32_41 = arith.constant 8 : i32
    %187 = arith.muli %c4_i32, %c8_i32_41 : i32
    %188 = tpu.assume_multiple %187, 8 : i32
    %189 = arith.index_cast %188 : i32 to index
    %c0_42 = arith.constant 0 : index
    %190 = vector.load %arg14[%189, %c0_42] : memref<64x512xf32, #tpu.memory_space<vmem>>, vector<8x512xf32>
    %cst_43 = arith.constant dense<0.000000e+00> : vector<8x512xf32>
    %191 = tpu.matmul %164, %7, %cst_43 {dimension_numbers = #tpu.dot_dimension_numbers<[1], [0], [0], [1], [0, 0, 1, 1], [], []>} : vector<8x128xf32>, vector<128x512xf32>, vector<8x512xf32> -> vector<8x512xf32>
    %192 = arith.addf %190, %191 : vector<8x512xf32>
    %193 = vector.extract_strided_slice %192 {offsets = [0, 0], sizes = [8, 384], strides = [1, 1]} : vector<8x512xf32> to vector<8x384xf32>
    %194 = arith.negf %193 : vector<8x384xf32>
    %195 = math.exp %194 : vector<8x384xf32>
    %cst_44 = arith.constant 1.000000e+00 : f32
    %196 = vector.broadcast %cst_44 : f32 to vector<8x384xf32>
    %197 = arith.addf %196, %195 : vector<8x384xf32>
    %198 = arith.divf %196, %197 : vector<8x384xf32>
    %199 = vector.extract_strided_slice %198 {offsets = [0, 0], sizes = [8, 128], strides = [1, 1]} : vector<8x384xf32> to vector<8x128xf32>
    %200 = vector.extract_strided_slice %198 {offsets = [0, 128], sizes = [8, 128], strides = [1, 1]} : vector<8x384xf32> to vector<8x128xf32>
    %201 = vector.extract_strided_slice %198 {offsets = [0, 256], sizes = [8, 128], strides = [1, 1]} : vector<8x384xf32> to vector<8x128xf32>
    %202 = vector.extract_strided_slice %192 {offsets = [0, 384], sizes = [8, 128], strides = [1, 1]} : vector<8x512xf32> to vector<8x128xf32>
    %203 = math.tanh %202 : vector<8x128xf32>
    %204 = arith.mulf %200, %162 : vector<8x128xf32>
    %205 = arith.mulf %199, %203 : vector<8x128xf32>
    %206 = arith.addf %204, %205 : vector<8x128xf32>
    %207 = math.tanh %206 : vector<8x128xf32>
    %208 = arith.mulf %201, %207 : vector<8x128xf32>
    %209 = tpu.concatenate %208, %184 in 1 : vector<8x128xf32>, vector<8x128xf32> -> vector<8x256xf32>
    %cst_45 = arith.constant dense<0.000000e+00> : vector<8x512xf32>
    %210 = tpu.matmul %209, %8, %cst_45 {dimension_numbers = #tpu.dot_dimension_numbers<[1], [0], [0], [1], [0, 0, 1, 1], [], []>} : vector<8x256xf32>, vector<256x512xf32>, vector<8x512xf32> -> vector<8x512xf32>
    %211 = vector.broadcast %9 : vector<1x512xf32> to vector<8x512xf32>
    %212 = arith.addf %210, %211 : vector<8x512xf32>
    %213 = vector.extract_strided_slice %212 {offsets = [0, 0], sizes = [8, 384], strides = [1, 1]} : vector<8x512xf32> to vector<8x384xf32>
    %214 = arith.negf %213 : vector<8x384xf32>
    %215 = math.exp %214 : vector<8x384xf32>
    %cst_46 = arith.constant 1.000000e+00 : f32
    %216 = vector.broadcast %cst_46 : f32 to vector<8x384xf32>
    %217 = arith.addf %216, %215 : vector<8x384xf32>
    %218 = arith.divf %216, %217 : vector<8x384xf32>
    %219 = vector.extract_strided_slice %218 {offsets = [0, 0], sizes = [8, 128], strides = [1, 1]} : vector<8x384xf32> to vector<8x128xf32>
    %220 = vector.extract_strided_slice %218 {offsets = [0, 128], sizes = [8, 128], strides = [1, 1]} : vector<8x384xf32> to vector<8x128xf32>
    %221 = vector.extract_strided_slice %218 {offsets = [0, 256], sizes = [8, 128], strides = [1, 1]} : vector<8x384xf32> to vector<8x128xf32>
    %222 = vector.extract_strided_slice %212 {offsets = [0, 384], sizes = [8, 128], strides = [1, 1]} : vector<8x512xf32> to vector<8x128xf32>
    %223 = math.tanh %222 : vector<8x128xf32>
    %224 = arith.mulf %220, %182 : vector<8x128xf32>
    %225 = arith.mulf %219, %223 : vector<8x128xf32>
    %226 = arith.addf %224, %225 : vector<8x128xf32>
    %227 = math.tanh %226 : vector<8x128xf32>
    %228 = arith.mulf %221, %227 : vector<8x128xf32>
    %229 = arith.index_cast %188 : i32 to index
    %c0_47 = arith.constant 0 : index
    %230 = vector.load %arg15[%229, %c0_47] : memref<64x128xf32, #tpu.memory_space<vmem>>, vector<8x128xf32>
    tpu.vector_store %arg15[%229, %c0_47], %228 {strides = array<i32>} : memref<64x128xf32, #tpu.memory_space<vmem>>, vector<8x128xf32>,
    %c5_i32 = arith.constant 5 : i32
    %c8_i32_48 = arith.constant 8 : i32
    %231 = arith.muli %c5_i32, %c8_i32_48 : i32
    %232 = tpu.assume_multiple %231, 8 : i32
    %233 = arith.index_cast %232 : i32 to index
    %c0_49 = arith.constant 0 : index
    %234 = vector.load %arg14[%233, %c0_49] : memref<64x512xf32, #tpu.memory_space<vmem>>, vector<8x512xf32>
    %cst_50 = arith.constant dense<0.000000e+00> : vector<8x512xf32>
    %235 = tpu.matmul %208, %7, %cst_50 {dimension_numbers = #tpu.dot_dimension_numbers<[1], [0], [0], [1], [0, 0, 1, 1], [], []>} : vector<8x128xf32>, vector<128x512xf32>, vector<8x512xf32> -> vector<8x512xf32>
    %236 = arith.addf %234, %235 : vector<8x512xf32>
    %237 = vector.extract_strided_slice %236 {offsets = [0, 0], sizes = [8, 384], strides = [1, 1]} : vector<8x512xf32> to vector<8x384xf32>
    %238 = arith.negf %237 : vector<8x384xf32>
    %239 = math.exp %238 : vector<8x384xf32>
    %cst_51 = arith.constant 1.000000e+00 : f32
    %240 = vector.broadcast %cst_51 : f32 to vector<8x384xf32>
    %241 = arith.addf %240, %239 : vector<8x384xf32>
    %242 = arith.divf %240, %241 : vector<8x384xf32>
    %243 = vector.extract_strided_slice %242 {offsets = [0, 0], sizes = [8, 128], strides = [1, 1]} : vector<8x384xf32> to vector<8x128xf32>
    %244 = vector.extract_strided_slice %242 {offsets = [0, 128], sizes = [8, 128], strides = [1, 1]} : vector<8x384xf32> to vector<8x128xf32>
    %245 = vector.extract_strided_slice %242 {offsets = [0, 256], sizes = [8, 128], strides = [1, 1]} : vector<8x384xf32> to vector<8x128xf32>
    %246 = vector.extract_strided_slice %236 {offsets = [0, 384], sizes = [8, 128], strides = [1, 1]} : vector<8x512xf32> to vector<8x128xf32>
    %247 = math.tanh %246 : vector<8x128xf32>
    %248 = arith.mulf %244, %206 : vector<8x128xf32>
    %249 = arith.mulf %243, %247 : vector<8x128xf32>
    %250 = arith.addf %248, %249 : vector<8x128xf32>
    %251 = math.tanh %250 : vector<8x128xf32>
    %252 = arith.mulf %245, %251 : vector<8x128xf32>
    %253 = tpu.concatenate %252, %228 in 1 : vector<8x128xf32>, vector<8x128xf32> -> vector<8x256xf32>
    %cst_52 = arith.constant dense<0.000000e+00> : vector<8x512xf32>
    %254 = tpu.matmul %253, %8, %cst_52 {dimension_numbers = #tpu.dot_dimension_numbers<[1], [0], [0], [1], [0, 0, 1, 1], [], []>} : vector<8x256xf32>, vector<256x512xf32>, vector<8x512xf32> -> vector<8x512xf32>
    %255 = vector.broadcast %9 : vector<1x512xf32> to vector<8x512xf32>
    %256 = arith.addf %254, %255 : vector<8x512xf32>
    %257 = vector.extract_strided_slice %256 {offsets = [0, 0], sizes = [8, 384], strides = [1, 1]} : vector<8x512xf32> to vector<8x384xf32>
    %258 = arith.negf %257 : vector<8x384xf32>
    %259 = math.exp %258 : vector<8x384xf32>
    %cst_53 = arith.constant 1.000000e+00 : f32
    %260 = vector.broadcast %cst_53 : f32 to vector<8x384xf32>
    %261 = arith.addf %260, %259 : vector<8x384xf32>
    %262 = arith.divf %260, %261 : vector<8x384xf32>
    %263 = vector.extract_strided_slice %262 {offsets = [0, 0], sizes = [8, 128], strides = [1, 1]} : vector<8x384xf32> to vector<8x128xf32>
    %264 = vector.extract_strided_slice %262 {offsets = [0, 128], sizes = [8, 128], strides = [1, 1]} : vector<8x384xf32> to vector<8x128xf32>
    %265 = vector.extract_strided_slice %262 {offsets = [0, 256], sizes = [8, 128], strides = [1, 1]} : vector<8x384xf32> to vector<8x128xf32>
    %266 = vector.extract_strided_slice %256 {offsets = [0, 384], sizes = [8, 128], strides = [1, 1]} : vector<8x512xf32> to vector<8x128xf32>
    %267 = math.tanh %266 : vector<8x128xf32>
    %268 = arith.mulf %264, %226 : vector<8x128xf32>
    %269 = arith.mulf %263, %267 : vector<8x128xf32>
    %270 = arith.addf %268, %269 : vector<8x128xf32>
    %271 = math.tanh %270 : vector<8x128xf32>
    %272 = arith.mulf %265, %271 : vector<8x128xf32>
    %273 = arith.index_cast %232 : i32 to index
    %c0_54 = arith.constant 0 : index
    %274 = vector.load %arg15[%273, %c0_54] : memref<64x128xf32, #tpu.memory_space<vmem>>, vector<8x128xf32>
    tpu.vector_store %arg15[%273, %c0_54], %272 {strides = array<i32>} : memref<64x128xf32, #tpu.memory_space<vmem>>, vector<8x128xf32>,
    %c6_i32 = arith.constant 6 : i32
    %c8_i32_55 = arith.constant 8 : i32
    %275 = arith.muli %c6_i32, %c8_i32_55 : i32
    %276 = tpu.assume_multiple %275, 8 : i32
    %277 = arith.index_cast %276 : i32 to index
    %c0_56 = arith.constant 0 : index
    %278 = vector.load %arg14[%277, %c0_56] : memref<64x512xf32, #tpu.memory_space<vmem>>, vector<8x512xf32>
    %cst_57 = arith.constant dense<0.000000e+00> : vector<8x512xf32>
    %279 = tpu.matmul %252, %7, %cst_57 {dimension_numbers = #tpu.dot_dimension_numbers<[1], [0], [0], [1], [0, 0, 1, 1], [], []>} : vector<8x128xf32>, vector<128x512xf32>, vector<8x512xf32> -> vector<8x512xf32>
    %280 = arith.addf %278, %279 : vector<8x512xf32>
    %281 = vector.extract_strided_slice %280 {offsets = [0, 0], sizes = [8, 384], strides = [1, 1]} : vector<8x512xf32> to vector<8x384xf32>
    %282 = arith.negf %281 : vector<8x384xf32>
    %283 = math.exp %282 : vector<8x384xf32>
    %cst_58 = arith.constant 1.000000e+00 : f32
    %284 = vector.broadcast %cst_58 : f32 to vector<8x384xf32>
    %285 = arith.addf %284, %283 : vector<8x384xf32>
    %286 = arith.divf %284, %285 : vector<8x384xf32>
    %287 = vector.extract_strided_slice %286 {offsets = [0, 0], sizes = [8, 128], strides = [1, 1]} : vector<8x384xf32> to vector<8x128xf32>
    %288 = vector.extract_strided_slice %286 {offsets = [0, 128], sizes = [8, 128], strides = [1, 1]} : vector<8x384xf32> to vector<8x128xf32>
    %289 = vector.extract_strided_slice %286 {offsets = [0, 256], sizes = [8, 128], strides = [1, 1]} : vector<8x384xf32> to vector<8x128xf32>
    %290 = vector.extract_strided_slice %280 {offsets = [0, 384], sizes = [8, 128], strides = [1, 1]} : vector<8x512xf32> to vector<8x128xf32>
    %291 = math.tanh %290 : vector<8x128xf32>
    %292 = arith.mulf %288, %250 : vector<8x128xf32>
    %293 = arith.mulf %287, %291 : vector<8x128xf32>
    %294 = arith.addf %292, %293 : vector<8x128xf32>
    %295 = math.tanh %294 : vector<8x128xf32>
    %296 = arith.mulf %289, %295 : vector<8x128xf32>
    %297 = tpu.concatenate %296, %272 in 1 : vector<8x128xf32>, vector<8x128xf32> -> vector<8x256xf32>
    %cst_59 = arith.constant dense<0.000000e+00> : vector<8x512xf32>
    %298 = tpu.matmul %297, %8, %cst_59 {dimension_numbers = #tpu.dot_dimension_numbers<[1], [0], [0], [1], [0, 0, 1, 1], [], []>} : vector<8x256xf32>, vector<256x512xf32>, vector<8x512xf32> -> vector<8x512xf32>
    %299 = vector.broadcast %9 : vector<1x512xf32> to vector<8x512xf32>
    %300 = arith.addf %298, %299 : vector<8x512xf32>
    %301 = vector.extract_strided_slice %300 {offsets = [0, 0], sizes = [8, 384], strides = [1, 1]} : vector<8x512xf32> to vector<8x384xf32>
    %302 = arith.negf %301 : vector<8x384xf32>
    %303 = math.exp %302 : vector<8x384xf32>
    %cst_60 = arith.constant 1.000000e+00 : f32
    %304 = vector.broadcast %cst_60 : f32 to vector<8x384xf32>
    %305 = arith.addf %304, %303 : vector<8x384xf32>
    %306 = arith.divf %304, %305 : vector<8x384xf32>
    %307 = vector.extract_strided_slice %306 {offsets = [0, 0], sizes = [8, 128], strides = [1, 1]} : vector<8x384xf32> to vector<8x128xf32>
    %308 = vector.extract_strided_slice %306 {offsets = [0, 128], sizes = [8, 128], strides = [1, 1]} : vector<8x384xf32> to vector<8x128xf32>
    %309 = vector.extract_strided_slice %306 {offsets = [0, 256], sizes = [8, 128], strides = [1, 1]} : vector<8x384xf32> to vector<8x128xf32>
    %310 = vector.extract_strided_slice %300 {offsets = [0, 384], sizes = [8, 128], strides = [1, 1]} : vector<8x512xf32> to vector<8x128xf32>
    %311 = math.tanh %310 : vector<8x128xf32>
    %312 = arith.mulf %308, %270 : vector<8x128xf32>
    %313 = arith.mulf %307, %311 : vector<8x128xf32>
    %314 = arith.addf %312, %313 : vector<8x128xf32>
    %315 = math.tanh %314 : vector<8x128xf32>
    %316 = arith.mulf %309, %315 : vector<8x128xf32>
    %317 = arith.index_cast %276 : i32 to index
    %c0_61 = arith.constant 0 : index
    %318 = vector.load %arg15[%317, %c0_61] : memref<64x128xf32, #tpu.memory_space<vmem>>, vector<8x128xf32>
    tpu.vector_store %arg15[%317, %c0_61], %316 {strides = array<i32>} : memref<64x128xf32, #tpu.memory_space<vmem>>, vector<8x128xf32>,
    %c7_i32 = arith.constant 7 : i32
    %c8_i32_62 = arith.constant 8 : i32
    %319 = arith.muli %c7_i32, %c8_i32_62 : i32
    %320 = tpu.assume_multiple %319, 8 : i32
    %321 = arith.index_cast %320 : i32 to index
    %c0_63 = arith.constant 0 : index
    %322 = vector.load %arg14[%321, %c0_63] : memref<64x512xf32, #tpu.memory_space<vmem>>, vector<8x512xf32>
    %cst_64 = arith.constant dense<0.000000e+00> : vector<8x512xf32>
    %323 = tpu.matmul %296, %7, %cst_64 {dimension_numbers = #tpu.dot_dimension_numbers<[1], [0], [0], [1], [0, 0, 1, 1], [], []>} : vector<8x128xf32>, vector<128x512xf32>, vector<8x512xf32> -> vector<8x512xf32>
    %324 = arith.addf %322, %323 : vector<8x512xf32>
    %325 = vector.extract_strided_slice %324 {offsets = [0, 0], sizes = [8, 384], strides = [1, 1]} : vector<8x512xf32> to vector<8x384xf32>
    %326 = arith.negf %325 : vector<8x384xf32>
    %327 = math.exp %326 : vector<8x384xf32>
    %cst_65 = arith.constant 1.000000e+00 : f32
    %328 = vector.broadcast %cst_65 : f32 to vector<8x384xf32>
    %329 = arith.addf %328, %327 : vector<8x384xf32>
    %330 = arith.divf %328, %329 : vector<8x384xf32>
    %331 = vector.extract_strided_slice %330 {offsets = [0, 0], sizes = [8, 128], strides = [1, 1]} : vector<8x384xf32> to vector<8x128xf32>
    %332 = vector.extract_strided_slice %330 {offsets = [0, 128], sizes = [8, 128], strides = [1, 1]} : vector<8x384xf32> to vector<8x128xf32>
    %333 = vector.extract_strided_slice %330 {offsets = [0, 256], sizes = [8, 128], strides = [1, 1]} : vector<8x384xf32> to vector<8x128xf32>
    %334 = vector.extract_strided_slice %324 {offsets = [0, 384], sizes = [8, 128], strides = [1, 1]} : vector<8x512xf32> to vector<8x128xf32>
    %335 = math.tanh %334 : vector<8x128xf32>
    %336 = arith.mulf %332, %294 : vector<8x128xf32>
    %337 = arith.mulf %331, %335 : vector<8x128xf32>
    %338 = arith.addf %336, %337 : vector<8x128xf32>
    %339 = math.tanh %338 : vector<8x128xf32>
    %340 = arith.mulf %333, %339 : vector<8x128xf32>
    %341 = tpu.concatenate %340, %316 in 1 : vector<8x128xf32>, vector<8x128xf32> -> vector<8x256xf32>
    %cst_66 = arith.constant dense<0.000000e+00> : vector<8x512xf32>
    %342 = tpu.matmul %341, %8, %cst_66 {dimension_numbers = #tpu.dot_dimension_numbers<[1], [0], [0], [1], [0, 0, 1, 1], [], []>} : vector<8x256xf32>, vector<256x512xf32>, vector<8x512xf32> -> vector<8x512xf32>
    %343 = vector.broadcast %9 : vector<1x512xf32> to vector<8x512xf32>
    %344 = arith.addf %342, %343 : vector<8x512xf32>
    %345 = vector.extract_strided_slice %344 {offsets = [0, 0], sizes = [8, 384], strides = [1, 1]} : vector<8x512xf32> to vector<8x384xf32>
    %346 = arith.negf %345 : vector<8x384xf32>
    %347 = math.exp %346 : vector<8x384xf32>
    %cst_67 = arith.constant 1.000000e+00 : f32
    %348 = vector.broadcast %cst_67 : f32 to vector<8x384xf32>
    %349 = arith.addf %348, %347 : vector<8x384xf32>
    %350 = arith.divf %348, %349 : vector<8x384xf32>
    %351 = vector.extract_strided_slice %350 {offsets = [0, 0], sizes = [8, 128], strides = [1, 1]} : vector<8x384xf32> to vector<8x128xf32>
    %352 = vector.extract_strided_slice %350 {offsets = [0, 128], sizes = [8, 128], strides = [1, 1]} : vector<8x384xf32> to vector<8x128xf32>
    %353 = vector.extract_strided_slice %350 {offsets = [0, 256], sizes = [8, 128], strides = [1, 1]} : vector<8x384xf32> to vector<8x128xf32>
    %354 = vector.extract_strided_slice %344 {offsets = [0, 384], sizes = [8, 128], strides = [1, 1]} : vector<8x512xf32> to vector<8x128xf32>
    %355 = math.tanh %354 : vector<8x128xf32>
    %356 = arith.mulf %352, %314 : vector<8x128xf32>
    %357 = arith.mulf %351, %355 : vector<8x128xf32>
    %358 = arith.addf %356, %357 : vector<8x128xf32>
    %359 = math.tanh %358 : vector<8x128xf32>
    %360 = arith.mulf %353, %359 : vector<8x128xf32>
    %361 = arith.index_cast %320 : i32 to index
    %c0_68 = arith.constant 0 : index
    %362 = vector.load %arg15[%361, %c0_68] : memref<64x128xf32, #tpu.memory_space<vmem>>, vector<8x128xf32>
    tpu.vector_store %arg15[%361, %c0_68], %360 {strides = array<i32>} : memref<64x128xf32, #tpu.memory_space<vmem>>, vector<8x128xf32>,
    %c8_i32_69 = arith.constant 8 : i32
    %c0_70 = arith.constant 0 : index
    %c0_71 = arith.constant 0 : index
    %363 = vector.load %arg15[%c0_70, %c0_71] : memref<64x128xf32, #tpu.memory_space<vmem>>, vector<64x128xf32>
    %c0_72 = arith.constant 0 : index
    %c0_73 = arith.constant 0 : index
    %364 = vector.load %arg7[%c0_72, %c0_73] : memref<128x256xf32, #tpu.memory_space<vmem>>, vector<128x256xf32>
    %cst_74 = arith.constant dense<0.000000e+00> : vector<64x256xf32>
    %365 = tpu.matmul %363, %364, %cst_74 {dimension_numbers = #tpu.dot_dimension_numbers<[1], [0], [0], [1], [0, 0, 1, 1], [], []>} : vector<64x128xf32>, vector<128x256xf32>, vector<64x256xf32> -> vector<64x256xf32>
    %c0_75 = arith.constant 0 : index
    %c0_76 = arith.constant 0 : index
    %366 = vector.load %arg8[%c0_75, %c0_76] : memref<1x256xf32, #tpu.memory_space<vmem>>, vector<1x256xf32>
    %367 = vector.broadcast %366 : vector<1x256xf32> to vector<64x256xf32>
    %368 = arith.addf %365, %367 : vector<64x256xf32>
    %cst_77 = arith.constant 0.000000e+00 : f32
    %369 = vector.broadcast %cst_77 : f32 to vector<64x256xf32>
    %370 = arith.maximumf %368, %369 : vector<64x256xf32>
    %c0_78 = arith.constant 0 : index
    %c0_79 = arith.constant 0 : index
    %371 = vector.load %arg9[%c0_78, %c0_79] : memref<256x256xf32, #tpu.memory_space<vmem>>, vector<256x256xf32>
    %cst_80 = arith.constant dense<0.000000e+00> : vector<64x256xf32>
    %372 = tpu.matmul %370, %371, %cst_80 {dimension_numbers = #tpu.dot_dimension_numbers<[1], [0], [0], [1], [0, 0, 1, 1], [], []>} : vector<64x256xf32>, vector<256x256xf32>, vector<64x256xf32> -> vector<64x256xf32>
    %c0_81 = arith.constant 0 : index
    %c0_82 = arith.constant 0 : index
    %373 = vector.load %arg10[%c0_81, %c0_82] : memref<1x256xf32, #tpu.memory_space<vmem>>, vector<1x256xf32>
    %374 = vector.broadcast %373 : vector<1x256xf32> to vector<64x256xf32>
    %375 = arith.addf %372, %374 : vector<64x256xf32>
    %cst_83 = arith.constant 0.000000e+00 : f32
    %376 = vector.broadcast %cst_83 : f32 to vector<64x256xf32>
    %377 = arith.maximumf %375, %376 : vector<64x256xf32>
    %c0_84 = arith.constant 0 : index
    %c0_85 = arith.constant 0 : index
    %378 = vector.load %arg11[%c0_84, %c0_85] : memref<256x128xf32, #tpu.memory_space<vmem>>, vector<256x128xf32>
    %cst_86 = arith.constant dense<0.000000e+00> : vector<64x128xf32>
    %379 = tpu.matmul %377, %378, %cst_86 {dimension_numbers = #tpu.dot_dimension_numbers<[1], [0], [0], [1], [0, 0, 1, 1], [], []>} : vector<64x256xf32>, vector<256x128xf32>, vector<64x128xf32> -> vector<64x128xf32>
    %c0_87 = arith.constant 0 : index
    %c0_88 = arith.constant 0 : index
    %380 = vector.load %arg12[%c0_87, %c0_88] : memref<1x128xf32, #tpu.memory_space<vmem>>, vector<1x128xf32>
    %381 = vector.broadcast %380 : vector<1x128xf32> to vector<64x128xf32>
    %382 = arith.addf %379, %381 : vector<64x128xf32>
    %cst_89 = arith.constant dense<0xFF800000> : vector<64xf32>
    %383 = vector.multi_reduction <maximumf>, %382, %cst_89 [1] : vector<64x128xf32> to vector<64xf32>
    %384 = vector.shape_cast %383 : vector<64xf32> to vector<64x1xf32>
    %385 = vector.broadcast %384 : vector<64x1xf32> to vector<64x128xf32>
    %386 = arith.subf %382, %385 : vector<64x128xf32>
    %387 = math.exp %386 : vector<64x128xf32>
    %cst_90 = arith.constant dense<0.000000e+00> : vector<64xf32>
    %388 = vector.multi_reduction <add>, %387, %cst_90 [1] : vector<64x128xf32> to vector<64xf32>
    %389 = vector.shape_cast %388 : vector<64xf32> to vector<64x1xf32>
    %390 = math.log %389 : vector<64x1xf32>
    %391 = vector.broadcast %390 : vector<64x1xf32> to vector<64x128xf32>
    %392 = arith.subf %386, %391 : vector<64x128xf32>
    %c0_91 = arith.constant 0 : index
    %c0_92 = arith.constant 0 : index
    %393 = vector.load %arg13[%c0_91, %c0_92] : memref<64x128xf32, #tpu.memory_space<vmem>>, vector<64x128xf32>
    tpu.vector_store %arg13[%c0_91, %c0_92], %392 {strides = array<i32>} : memref<64x128xf32, #tpu.memory_space<vmem>>, vector<64x128xf32>,
    return
  }
  func.func @transform_0(%arg0: i32) -> (i32, i32) {
    %c0_i32 = arith.constant 0 : i32
    %c0_i32_0 = arith.constant 0 : i32
    %c0_i32_1 = arith.constant 0 : i32
    return %c0_i32, %c0_i32_0 : i32, i32
  }
  func.func @transform_1(%arg0: i32) -> (i32, i32) {
    %c0_i32 = arith.constant 0 : i32
    %c0_i32_0 = arith.constant 0 : i32
    %c0_i32_1 = arith.constant 0 : i32
    return %c0_i32, %c0_i32_0 : i32, i32
  }
  func.func @transform_2(%arg0: i32) -> (i32, i32) {
    %c0_i32 = arith.constant 0 : i32
    %c0_i32_0 = arith.constant 0 : i32
    %c0_i32_1 = arith.constant 0 : i32
    return %c0_i32, %c0_i32_0 : i32, i32
  }
  func.func @transform_3(%arg0: i32) -> (i32, i32) {
    %c0_i32 = arith.constant 0 : i32
    %c0_i32_0 = arith.constant 0 : i32
    %c0_i32_1 = arith.constant 0 : i32
    return %c0_i32, %c0_i32_0 : i32, i32
  }
  func.func @transform_4(%arg0: i32) -> (i32, i32) {
    %c0_i32 = arith.constant 0 : i32
    %c0_i32_0 = arith.constant 0 : i32
    %c0_i32_1 = arith.constant 0 : i32
    return %c0_i32, %c0_i32_0 : i32, i32
  }
  func.func @transform_5(%arg0: i32) -> (i32, i32) {
    %c0_i32 = arith.constant 0 : i32
    %c0_i32_0 = arith.constant 0 : i32
    %c0_i32_1 = arith.constant 0 : i32
    return %c0_i32, %c0_i32_0 : i32, i32
  }
  func.func @transform_6(%arg0: i32) -> (i32, i32) {
    %c0_i32 = arith.constant 0 : i32
    %c0_i32_0 = arith.constant 0 : i32
    %c0_i32_1 = arith.constant 0 : i32
    return %c0_i32, %c0_i32_0 : i32, i32
  }
  func.func @transform_7(%arg0: i32) -> (i32, i32) {
    %c0_i32 = arith.constant 0 : i32
    %c0_i32_0 = arith.constant 0 : i32
    %c0_i32_1 = arith.constant 0 : i32
    return %c0_i32, %c0_i32_0 : i32, i32
  }
  func.func @transform_8(%arg0: i32) -> (i32, i32) {
    %c0_i32 = arith.constant 0 : i32
    %c0_i32_0 = arith.constant 0 : i32
    %c0_i32_1 = arith.constant 0 : i32
    return %c0_i32, %c0_i32_0 : i32, i32
  }
  func.func @transform_9(%arg0: i32) -> (i32, i32) {
    %c0_i32 = arith.constant 0 : i32
    %c0_i32_0 = arith.constant 0 : i32
    %c0_i32_1 = arith.constant 0 : i32
    return %c0_i32, %c0_i32_0 : i32, i32
  }
  func.func @transform_10(%arg0: i32) -> (i32, i32) {
    %c0_i32 = arith.constant 0 : i32
    %c0_i32_0 = arith.constant 0 : i32
    %c0_i32_1 = arith.constant 0 : i32
    return %c0_i32, %c0_i32_0 : i32, i32
  }
  func.func @transform_11(%arg0: i32) -> (i32, i32) {
    %c0_i32 = arith.constant 0 : i32
    %c0_i32_0 = arith.constant 0 : i32
    %c0_i32_1 = arith.constant 0 : i32
    return %c0_i32, %c0_i32_0 : i32, i32
  }
  func.func @transform_12(%arg0: i32) -> (i32, i32) {
    %c0_i32 = arith.constant 0 : i32
    %c0_i32_0 = arith.constant 0 : i32
    %c0_i32_1 = arith.constant 0 : i32
    return %c0_i32, %c0_i32_0 : i32, i32
  }
}

</mosaic_0001>

<bundles_post_ra>
// kernel: tpu_custom_call.1
= control target key start
LH: loop header
LB: loop body
LE: loop exit
PB: predicated region body
PF: predicated region fallthrough
CT: control target
= control target key end

     0   :  { %17 = vsyncpa [#allocation5], 0  ;;  %s8864_s0 = inlined_call_operand.hbm [shape: f32[64,64], index: 0, kind: input, shape index: {}]   ;;  %s8865_s1 = inlined_call_operand.hbm [shape: f32[64,512], index: 1, kind: input, shape index: {}]   ;;  %s8866_s2 = inlined_call_operand.hbm [shape: f32[128,512], index: 2, kind: input, shape index: {}]   ;;  %s8867_s3 = inlined_call_operand.vmem [shape: f32[1,512], index: 3, kind: input, shape index: {}]   ;;  %s8868_s4 = inlined_call_operand.hbm [shape: f32[256,512], index: 4, kind: input, shape index: {}]   ;;  %s8869_s5 = inlined_call_operand.vmem [shape: f32[1,512], index: 5, kind: input, shape index: {}]   ;;  %s8870_s6 = inlined_call_operand.hbm [shape: f32[128,256], index: 6, kind: input, shape index: {}]   ;;  %s8871_s7 = inlined_call_operand.vmem [shape: f32[1,256], index: 7, kind: input, shape index: {}]   ;;  %s8872_s8 = inlined_call_operand.hbm [shape: f32[256,256], index: 8, kind: input, shape index: {}]   ;;  %s8873_s9 = inlined_call_operand.vmem [shape: f32[1,256], index: 9, kind: input, shape index: {}]   ;;  %s8874_s10 = inlined_call_operand.hbm [shape: f32[256,128], index: 10, kind: input, shape index: {}]   ;;  %s8875_s11 = inlined_call_operand.vmem [shape: f32[1,128], index: 11, kind: input, shape index: {}]   ;;  %s8876_s12 = inlined_call_operand.hbm [shape: f32[64,128], index: 12, kind: output, shape index: {}]  }
   0x1   :  { %18 = vsyncpa [#allocation8], 0 }
   0x2   :  { %19 = vsyncpa [#allocation11], 0 }
   0x3   :  { %20 = vsyncpa [#allocation14], 0 }
   0x4   :  { %21 = vsyncpa [#allocation6], 0  ;;  %s5288_s21 = smov [#allocation7]  }
   0x5   :  { %s39_s22 = sshll.u32 %s5288_s21, 4  ;;  %s40_s22 = int_to_ptr.vmem [resolvable:$true] %s39_s22 }
   0x6   :  { %s5126_s23 = scalar_lea.vmem %s40_s22, 4096  ;;  %p5131_p1 = scmp.lt.s32.totalorder %s40_s22, %s40_s22 }
   0x7   :  { %p5127_p0 = scmp.ne.s32.totalorder %s40_s22, %s5126_s23  ;;  %p5132_p2 = scmp.lt.s32.totalorder %s5126_s23, %s5126_s23 }
   0x9   :  { %p5133_p3 = por %p5132_p2, %p5131_p1 }
   0xb   :  { %p5134_p4 = pnand %p5133_p3, %p5127_p0 }
   0xd   :  { %5137 = shalt.err (!%p5134_p4)
}
   0xe   :  { %s5289_s24 = smov 512   ;;  %s5290_s25 = smov 32  }
   0xf   :  { %45 = dma.hbm_to_vmem [thread:$0]  %s8865_s1, 4096, %s40_s22, [#allocation8], %s5289_s24, %s5289_s24, %s5290_s25  }
  0x10   :  { %s5291_s28 = smov [#allocation10]  }
  0x11   :  { %s65_s29 = sshll.u32 %s5291_s28, 4  ;;  %s66_s29 = int_to_ptr.vmem [resolvable:$true] %s65_s29 }
  0x12   :  { %s5146_s30 = scalar_lea.vmem %s66_s29, 16384  ;;  %p5151_p6 = scmp.lt.s32.totalorder %s66_s29, %s66_s29 }
  0x13   :  { %p5147_p5 = scmp.ne.s32.totalorder %s66_s29, %s5146_s30  ;;  %p5152_p7 = scmp.lt.s32.totalorder %s5146_s30, %s5146_s30 }
  0x15   :  { %p5153_p8 = por %p5152_p7, %p5151_p6 }
  0x17   :  { %p5154_p9 = pnand %p5153_p8, %p5147_p5 }
  0x19   :  { %5157 = shalt.err (!%p5154_p9)
}
  0x1a   :  { %71 = dma.hbm_to_vmem [thread:$0]  %s8868_s4, 16384, %s66_s29, [#allocation11], %s5289_s24, %s5289_s24, %s5290_s25  }
  0x1b   :  { %s5292_s15 = smov [#allocation13]   ;;  %s5293_s1 = smov [#allocation4]  }
  0x1c   :  { %s93_s16 = sshll.u32 %s5292_s15, 4  ;;  %s27_s17 = sshll.u32 %s5293_s1, 4  ;;  %s94_s16 = int_to_ptr.vmem [resolvable:$true] %s93_s16  ;;  %s28_s17 = int_to_ptr.vmem [resolvable:$true] %s27_s17 }
  0x1d   :  { %s5166_s18 = scalar_lea.vmem %s94_s16, 8192  ;;  %p5171_p11 = scmp.lt.s32.totalorder %s94_s16, %s94_s16 }
  0x1e   :  { %p5167_p10 = scmp.ne.s32.totalorder %s94_s16, %s5166_s18  ;;  %p5172_p12 = scmp.lt.s32.totalorder %s5166_s18, %s5166_s18 }
  0x20   :  { %p5173_p13 = por %p5172_p12, %p5171_p11 }
  0x22   :  { %p5174_p0 = pnand %p5173_p13, %p5167_p10 }
  0x24   :  { %5177 = shalt.err (!%p5174_p0)
}
  0x25   :  { %s5294_s19 = smov 256   ;;  %s5295_s20 = smov 16  }
  0x26   :  { %99 = dma.hbm_to_vmem [thread:$0]  %s8872_s8, 8192, %s94_s16, [#allocation14], %s5294_s19, %s5294_s19, %s5295_s20  }
  0x27   :  { %s5186_s22 = scalar_lea.vmem %s28_s17, 1024  ;;  %p5191_p2 = scmp.lt.s32.totalorder %s28_s17, %s28_s17 }
  0x28   :  { %p5187_p1 = scmp.ne.s32.totalorder %s28_s17, %s5186_s22  ;;  %p5192_p3 = scmp.lt.s32.totalorder %s5186_s22, %s5186_s22 }
  0x2a   :  { %p5193_p4 = por %p5192_p3, %p5191_p2 }
  0x2c   :  { %p5194_p5 = pnand %p5193_p4, %p5187_p1 }
  0x2e   :  { %5197 = shalt.err (!%p5194_p5)
}
  0x2f   :  { %s5296_s23 = smov 128   ;;  %s5297_s26 = smov 8  }
  0x30   :  { %33 = dma.hbm_to_vmem [thread:$0]  %s8864_s0, 1024, %s28_s17, [#allocation5], %s5296_s23, %s5296_s23, %s5297_s26  }
  0x31   :  { %s5298_s29 = smov [#allocation9]   ;;  %s5299_s13 = smov [#allocation12]  }
  0x32   :  { %s51_s30 = sshll.u32 %s5298_s29, 4  ;;  %s79_s8 = sshll.u32 %s5299_s13, 4  ;;  %s52_s30 = int_to_ptr.vmem [resolvable:$true] %s51_s30  ;;  %s80_s8 = int_to_ptr.vmem [resolvable:$true] %s79_s8 }
  0x33   :  { %s5206_s14 = scalar_lea.vmem %s52_s30, 8192  ;;  %p5211_p7 = scmp.lt.s32.totalorder %s52_s30, %s52_s30 }
  0x34   :  { %p5207_p6 = scmp.ne.s32.totalorder %s52_s30, %s5206_s14  ;;  %p5212_p8 = scmp.lt.s32.totalorder %s5206_s14, %s5206_s14 }
  0x36   :  { %p5213_p9 = por %p5212_p8, %p5211_p7 }
  0x38   :  { %p5214_p10 = pnand %p5213_p9, %p5207_p6 }
  0x3a   :  { %5217 = shalt.err (!%p5214_p10)
}
  0x3b   :  { %57 = dma.hbm_to_vmem [thread:$0]  %s8866_s2, 8192, %s52_s30, [#allocation8], %s5289_s24, %s5289_s24, %s5290_s25  }
  0x3c   :  { %s5226_s0 = scalar_lea.vmem %s80_s8, 4096  ;;  %p5231_p12 = scmp.lt.s32.totalorder %s80_s8, %s80_s8 }
  0x3d   :  { %p5227_p11 = scmp.ne.s32.totalorder %s80_s8, %s5226_s0  ;;  %p5232_p13 = scmp.lt.s32.totalorder %s5226_s0, %s5226_s0 }
  0x3f   :  { %p5233_p0 = por %p5232_p13, %p5231_p12 }
  0x41   :  { %p5234_p1 = pnand %p5233_p0, %p5227_p11 }
  0x43   :  { %5237 = shalt.err (!%p5234_p1)
}
  0x44   :  { %85 = dma.hbm_to_vmem [thread:$0]  %s8870_s6, 4096, %s80_s8, [#allocation11], %s5294_s19, %s5294_s19, %s5295_s20  }
  0x45   :  { %s5300_s18 = smov [#allocation15]  }
  0x46   :  { %s107_s21 = sshll.u32 %s5300_s18, 4  ;;  %s108_s21 = int_to_ptr.vmem [resolvable:$true] %s107_s21 }
  0x47   :  { %s5246_s4 = scalar_lea.vmem %s108_s21, 4096  ;;  %p5251_p3 = scmp.lt.s32.totalorder %s108_s21, %s108_s21 }
  0x48   :  { %p5247_p2 = scmp.ne.s32.totalorder %s108_s21, %s5246_s4  ;;  %p5252_p4 = scmp.lt.s32.totalorder %s5246_s4, %s5246_s4 }
  0x4a   :  { %p5253_p5 = por %p5252_p4, %p5251_p3 }
  0x4c   :  { %p5254_p6 = pnand %p5253_p5, %p5247_p2 }
  0x4e   :  { %5257 = shalt.err (!%p5254_p6)
}
  0x4f   :  { %113 = dma.hbm_to_vmem [thread:$0]  %s8874_s10, 4096, %s108_s21, [#allocation14], %s5296_s23, %s5296_s23, %s5297_s26  }
  0x50   :  { %5278 = dma.done.wait [#allocation5], 1024  }
  0x51   :  { %5279 = vsyncadd [#allocation5], 4294966272 }
  0x52   :  { %5280 = dma.done.wait [#allocation8], 12288  }
  0x53   :  { %5281 = vsyncadd [#allocation8], 4294955008 }
  0x54   :  { %5282 = dma.done.wait [#allocation11], 20480  }
  0x55   :  { %5283 = vsyncadd [#allocation11], 4294946816 }
  0x56   :  { %5284 = dma.done.wait [#allocation14], 12288  }
  0x57   :  { %5285 = vsyncadd [#allocation14], 4294955008  ;;  %v8877_v0 = vmov 0.0   ;;  %v174_v1 = vld [vmem:[#allocation7 + $0xe8] sm:$0xff]  ;;  %v176_v2 = vld [vmem:[#allocation7 + $0xf8] sm:$0xff]  ;;  %vm199_vm0 = vcmask 523264  }
  0x58   :  { %288 = vmatprep.mubr.f32.mxu0 %v8877_v0  ;;  %401 = vmatprep.mubr.f32.mxu1 %v8877_v0  ;;  %v173_v3 = vld [vmem:[#allocation7 + $0xe0] sm:$0xff]  ;;  %v175_v4 = vld [vmem:[#allocation7 + $0xf0] sm:$0xff]  ;;  %v170_v5 = vld [vmem:[#allocation7 + $0xc8] sm:$0xff] }
  0x59   :  { %240 = vmatprep.subr.mxu0 %v174_v1  ;;  %353 = vmatprep.subr.mxu1 %v176_v2  ;;  %v172_v6 = vld [vmem:[#allocation7 + $0xd8] sm:$0xff]  ;;  %v169_v7 = vld [vmem:[#allocation7 + $0xc0] sm:$0xff]  ;;  %v171_v8 = vld [vmem:[#allocation7 + $0xd0] sm:$0xff] }
  0x5a   :  { %241 = vmatpush1.msra.mxu0 %v173_v3  ;;  %354 = vmatpush1.msra.mxu1 %v175_v4  ;;  %v166_v9 = vld [vmem:[#allocation7 + $0xa8] sm:$0xff]  ;;  %v168_v10 = vld [vmem:[#allocation7 + $0xb8] sm:$0xff]  ;;  %v165_v11 = vld [vmem:[#allocation7 + $0xa0] sm:$0xff] }
  0x5b   :  { %242 = vmatprep.subr.mxu0 %v170_v5  ;;  %355 = vmatprep.subr.mxu1 %v172_v6  ;;  %v167_v12 = vld [vmem:[#allocation7 + $0xb0] sm:$0xff]  ;;  %v162_v13 = vld [vmem:[#allocation7 + $0x88] sm:$0xff]  ;;  %v164_v14 = vld [vmem:[#allocation7 + $0x98] sm:$0xff] }
  0x5c   :  { %243 = vmatpush1.msra.mxu0 %v169_v7  ;;  %356 = vmatpush1.msra.mxu1 %v171_v8  ;;  %v161_v15 = vld [vmem:[#allocation7 + $0x80] sm:$0xff]  ;;  %v163_v16 = vld [vmem:[#allocation7 + $0x90] sm:$0xff]  ;;  %v158_v17 = vld [vmem:[#allocation7 + $0x68] sm:$0xff] }
  0x5d   :  { %244 = vmatprep.subr.mxu0 %v166_v9  ;;  %357 = vmatprep.subr.mxu1 %v168_v10  ;;  %v160_v18 = vld [vmem:[#allocation7 + $0x78] sm:$0xff]  ;;  %v157_v19 = vld [vmem:[#allocation7 + $0x60] sm:$0xff]  ;;  %v159_v20 = vld [vmem:[#allocation7 + $0x70] sm:$0xff] }
  0x5e   :  { %245 = vmatpush1.msra.mxu0 %v165_v11  ;;  %358 = vmatpush1.msra.mxu1 %v167_v12  ;;  %v154_v21 = vld [vmem:[#allocation7 + $0x48] sm:$0xff]  ;;  %v156_v22 = vld [vmem:[#allocation7 + $0x58] sm:$0xff]  ;;  %v153_v23 = vld [vmem:[#allocation7 + $0x40] sm:$0xff] }
  0x5f   :  { %246 = vmatprep.subr.mxu0 %v162_v13  ;;  %359 = vmatprep.subr.mxu1 %v164_v14  ;;  %v155_v24 = vld [vmem:[#allocation7 + $0x50] sm:$0xff]  ;;  %v150_v25 = vld [vmem:[#allocation7 + $0x28] sm:$0xff]  ;;  %v152_v26 = vld [vmem:[#allocation7 + $0x38] sm:$0xff] }
  0x60   :  { %247 = vmatpush1.msra.mxu0 %v161_v15  ;;  %360 = vmatpush1.msra.mxu1 %v163_v16  ;;  %v149_v27 = vld [vmem:[#allocation7 + $0x20] sm:$0xff]  ;;  %v151_v28 = vld [vmem:[#allocation7 + $0x30] sm:$0xff]  ;;  %v146_v29 = vld [vmem:[#allocation7 + $0x8] sm:$0xff] }
  0x61   :  { %248 = vmatprep.subr.mxu0 %v158_v17  ;;  %361 = vmatprep.subr.mxu1 %v160_v18  ;;  %v148_v30 = vld [vmem:[#allocation7 + $0x18] sm:$0xff]  ;;  %v145_v31 = vld [vmem:[#allocation7] sm:$0xff]  ;;  %v147_v32 = vld [vmem:[#allocation7 + $0x10] sm:$0xff] }
  0x62   :  { %249 = vmatpush1.msra.mxu0 %v157_v19  ;;  %362 = vmatpush1.msra.mxu1 %v159_v20  ;;  %v137_v33 = vld [vmem:[#allocation4] sm:$0xff]  ;;  %v5412_v34 = vld [vmem:[#allocation9 + $0x1e8] sm:$0xff]  ;;  %v5414_v35 = vld [vmem:[#allocation9 + $0x1f8] sm:$0xff] }
  0x63   :  { %250 = vmatprep.subr.mxu0 %v154_v21  ;;  %363 = vmatprep.subr.mxu1 %v156_v22  ;;  %v542_v36 = vld [vmem:[#allocation9 + $0x1e0] sm:$0xff]  ;;  %v544_v37 = vld [vmem:[#allocation9 + $0x1f0] sm:$0xff]  ;;  %v539_v38 = vld [vmem:[#allocation9 + $0x1c8] sm:$0xff] }
  0x64   :  { %251 = vmatpush1.msra.mxu0 %v153_v23  ;;  %364 = vmatpush1.msra.mxu1 %v155_v24  ;;  %v541_v39 = vld [vmem:[#allocation9 + $0x1d8] sm:$0xff]  ;;  %v538_v40 = vld [vmem:[#allocation9 + $0x1c0] sm:$0xff]  ;;  %v540_v41 = vld [vmem:[#allocation9 + $0x1d0] sm:$0xff] }
  0x65   :  { %252 = vmatprep.subr.mxu0 %v150_v25  ;;  %365 = vmatprep.subr.mxu1 %v152_v26  ;;  %v138_v42 = vld [vmem:[#allocation4 + $0x8] sm:$0xff]  ;;  %v537_v44 = vld [vmem:[#allocation9 + $0x1b8] sm:$0xff]  ;;  %v534_v45 = vld [vmem:[#allocation9 + $0x1a0] sm:$0xff] }
  0x66   :  { %253 = vmatpush1.msra.mxu0 %v149_v27  ;;  %366 = vmatpush1.msra.mxu1 %v151_v28  ;;  %v535_v43 = vld [vmem:[#allocation9 + $0x1a8] sm:$0xff]  ;;  %v536_v46 = vld [vmem:[#allocation9 + $0x1b0] sm:$0xff]  ;;  %v533_v48 = vld [vmem:[#allocation9 + $0x198] sm:$0xff] }
  0x67   :  { %254 = vmatprep.subr.mxu0 %v146_v29  ;;  %367 = vmatprep.subr.mxu1 %v148_v30  ;;  %v531_v47 = vld [vmem:[#allocation9 + $0x188] sm:$0xff]  ;;  %v530_v49 = vld [vmem:[#allocation9 + $0x180] sm:$0xff]  ;;  %v532_v50 = vld [vmem:[#allocation9 + $0x190] sm:$0xff] }
  0x68   :  { %255 = vmatpush1.msra.mxu0 %v145_v31  ;;  %368 = vmatpush1.msra.mxu1 %v147_v32  ;;  %v139_v51 = vld [vmem:[#allocation4 + $0x10] sm:$0xff]  ;;  %v527_v52 = vld [vmem:[#allocation9 + $0x168] sm:$0xff]  ;;  %v529_v53 = vld [vmem:[#allocation9 + $0x178] sm:$0xff] }
  0x69   :  { %4100 = vmatmul.mubr.msk.f32.vlgmr.msra.gmra.mxu0 %vm199_vm0, %v137_v33  ;;  %4108 = vmatmul.mubr.msk.f32.vlgmr.msra.gmra.mxu1 %vm199_vm0, %v137_v33  ;;  %v526_v54 = vld [vmem:[#allocation9 + $0x160] sm:$0xff]  ;;  %v528_v55 = vld [vmem:[#allocation9 + $0x170] sm:$0xff]  ;;  %v5428_v56 = vld [vmem:[#allocation9 + $0x148] sm:$0xff] }
  0x6a   :  { %682 = vmatprep.subr.mxu0 %v5412_v34  ;;  %753 = vmatprep.subr.mxu1 %v5414_v35  ;;  %v5430_v57 = vld [vmem:[#allocation9 + $0x158] sm:$0xff]  ;;  %v5432_v58 = vld [vmem:[#allocation9 + $0x140] sm:$0xff]  ;;  %v5434_v59 = vld [vmem:[#allocation9 + $0x150] sm:$0xff] }
  0x6b   :  { %683 = vmatpush1.msra.mxu0 %v542_v36  ;;  %754 = vmatpush1.msra.mxu1 %v544_v37  ;;  %v140_v60 = vld [vmem:[#allocation4 + $0x18] sm:$0xff]  ;;  %v5440_v61 = vld [vmem:[#allocation9 + $0x128] sm:$0xff]  ;;  %v5446_v63 = vld [vmem:[#allocation9 + $0x120] sm:$0xff] }
  0x6c   :  { %684 = vmatprep.subr.mxu0 %v539_v38  ;;  %755 = vmatprep.subr.mxu1 %v541_v39  ;;  %v5442_v62 = vld [vmem:[#allocation9 + $0x138] sm:$0xff]  ;;  %v5448_v1 = vld [vmem:[#allocation9 + $0x130] sm:$0xff]  ;;  %v5452_v2 = vld [vmem:[#allocation9 + $0x108] sm:$0xff] }
  0x6d   :  { %294 = vmatprep.mubr.f32.mxu0 %v8877_v0  ;;  %407 = vmatprep.mubr.f32.mxu1 %v8877_v0  ;;  %v5454_v3 = vld [vmem:[#allocation9 + $0x118] sm:$0xff]  ;;  %v5460_v4 = vld [vmem:[#allocation9 + $0x100] sm:$0xff]  ;;  %v5462_v5 = vld [vmem:[#allocation9 + $0x110] sm:$0xff] }
  0x6e   :  { %685 = vmatpush1.msra.mxu0 %v538_v40  ;;  %756 = vmatpush1.msra.mxu1 %v540_v41  ;;  %v141_v6 = vld [vmem:[#allocation4 + $0x20] sm:$0xff]  ;;  %v5468_v7 = vld [vmem:[#allocation9 + $0xe8] sm:$0xff]  ;;  %v5470_v8 = vld [vmem:[#allocation9 + $0xf8] sm:$0xff] }
  0x6f   :  { %4101 = vmatmul.mubr.msk.f32.gmra.mxu0 %vm199_vm0, %v138_v42  ;;  %4109 = vmatmul.mubr.msk.f32.gmra.mxu1 %vm199_vm0, %v138_v42  ;;  %v5474_v9 = vld [vmem:[#allocation9 + $0xe0] sm:$0xff]  ;;  %v5476_v10 = vld [vmem:[#allocation9 + $0xf0] sm:$0xff]  ;;  %v5480_v11 = vld [vmem:[#allocation9 + $0xc8] sm:$0xff] }
  0x70   :  { %686 = vmatprep.subr.mxu0 %v535_v43  ;;  %757 = vmatprep.subr.mxu1 %v537_v44  ;;  %v5482_v12 = vld [vmem:[#allocation9 + $0xd8] sm:$0xff]  ;;  %v5488_v13 = vld [vmem:[#allocation9 + $0xc0] sm:$0xff]  ;;  %v5490_v14 = vld [vmem:[#allocation9 + $0xd0] sm:$0xff] }
  0x71   :  { %687 = vmatpush1.msra.mxu0 %v534_v45  ;;  %758 = vmatpush1.msra.mxu1 %v536_v46  ;;  %v142_v15 = vld [vmem:[#allocation4 + $0x28] sm:$0xff]  ;;  %v5498_v17 = vld [vmem:[#allocation9 + $0xb8] sm:$0xff]  ;;  %v5502_v18 = vld [vmem:[#allocation9 + $0xa0] sm:$0xff] }
  0x72   :  { %688 = vmatprep.subr.mxu0 %v531_v47  ;;  %759 = vmatprep.subr.mxu1 %v533_v48  ;;  %v5496_v16 = vld [vmem:[#allocation9 + $0xa8] sm:$0xff]  ;;  %v5504_v19 = vld [vmem:[#allocation9 + $0xb0] sm:$0xff]  ;;  %v5510_v21 = vld [vmem:[#allocation9 + $0x98] sm:$0xff] }
  0x73   :  { %300 = vmatprep.mubr.f32.mxu0 %v8877_v0  ;;  %413 = vmatprep.mubr.f32.mxu1 %v8877_v0  ;;  %v5508_v20 = vld [vmem:[#allocation9 + $0x88] sm:$0xff]  ;;  %v5516_v22 = vld [vmem:[#allocation9 + $0x80] sm:$0xff]  ;;  %v5518_v23 = vld [vmem:[#allocation9 + $0x90] sm:$0xff] }
  0x74   :  { %689 = vmatpush1.msra.mxu0 %v530_v49  ;;  %760 = vmatpush1.msra.mxu1 %v532_v50  ;;  %v143_v24 = vld [vmem:[#allocation4 + $0x30] sm:$0xff]  ;;  %v5524_v25 = vld [vmem:[#allocation9 + $0x68] sm:$0xff]  ;;  %v5526_v26 = vld [vmem:[#allocation9 + $0x78] sm:$0xff] }
  0x75   :  { %4102 = vmatmul.mubr.msk.f32.gmra.mxu0 %vm199_vm0, %v139_v51  ;;  %4110 = vmatmul.mubr.msk.f32.gmra.mxu1 %vm199_vm0, %v139_v51  ;;  %v5530_v27 = vld [vmem:[#allocation9 + $0x60] sm:$0xff]  ;;  %v5532_v28 = vld [vmem:[#allocation9 + $0x70] sm:$0xff]  ;;  %v5536_v29 = vld [vmem:[#allocation9 + $0x48] sm:$0xff] }
  0x76   :  { %690 = vmatprep.subr.mxu0 %v527_v52  ;;  %761 = vmatprep.subr.mxu1 %v529_v53  ;;  %v5538_v30 = vld [vmem:[#allocation9 + $0x58] sm:$0xff]  ;;  %v5544_v31 = vld [vmem:[#allocation9 + $0x40] sm:$0xff]  ;;  %v5546_v32 = vld [vmem:[#allocation9 + $0x50] sm:$0xff] }
  0x77   :  { %691 = vmatpush1.msra.mxu0 %v526_v54  ;;  %762 = vmatpush1.msra.mxu1 %v528_v55  ;;  %v144_v33 = vld [vmem:[#allocation4 + $0x38] sm:$0xff]  ;;  %v5552_v36 = vld [vmem:[#allocation9 + $0x28] sm:$0xff]  ;;  %v5558_v38 = vld [vmem:[#allocation9 + $0x20] sm:$0xff] }
  0x78   :  { %692 = vmatprep.subr.mxu0 %v5428_v56  ;;  %763 = vmatprep.subr.mxu1 %v5430_v57  ;;  %v5554_v37 = vld [vmem:[#allocation9 + $0x38] sm:$0xff]  ;;  %v5560_v39 = vld [vmem:[#allocation9 + $0x30] sm:$0xff]  ;;  %v5564_v40 = vld [vmem:[#allocation9 + $0x8] sm:$0xff] }
  0x79   :  { %306 = vmatprep.mubr.f32.mxu0 %v8877_v0  ;;  %419 = vmatprep.mubr.f32.mxu1 %v8877_v0  ;;  %v5566_v41 = vld [vmem:[#allocation9 + $0x18] sm:$0xff]  ;;  %v5570_v42 = vld [vmem:[#allocation9] sm:$0xff]  ;;  %v5574_v43 = vld [vmem:[#allocation9 + $0x10] sm:$0xff] }
  0x7a   :  { %693 = vmatpush1.msra.mxu0 %v5432_v58  ;;  %764 = vmatpush1.msra.mxu1 %v5434_v59  ;;  %9432 = vst [vmem:[#allocation22_spill] sm:$0xff] %v5566_v41  ;;  %9433 = vst [vmem:[#allocation23_spill] sm:$0xff] %v5570_v42  ;;  %v5586_v44 = vld [vmem:[#allocation10 + $0x1e8] sm:$0xff]  ;;  %v5588_v45 = vld [vmem:[#allocation10 + $0x1f8] sm:$0xff] }
  0x7b   :  { %4103 = vmatmul.mubr.msk.f32.gmra.mxu0 %vm199_vm0, %v140_v60  ;;  %4111 = vmatmul.mubr.msk.f32.gmra.mxu1 %vm199_vm0, %v140_v60  ;;  %9434 = vst [vmem:[#allocation24_spill] sm:$0xff] %v5574_v43  ;;  %9435 = vst [vmem:[#allocation25_spill] sm:$0xff] %v5586_v44  ;;  %v5590_v46 = vld [vmem:[#allocation10 + $0x1e0] sm:$0xff]  ;;  %v5594_v47 = vld [vmem:[#allocation10 + $0x1f0] sm:$0xff] }
  0x7c   :  { %694 = vmatprep.subr.mxu0 %v5440_v61  ;;  %765 = vmatprep.subr.mxu1 %v5442_v62  ;;  %9436 = vst [vmem:[#allocation26_spill] sm:$0xff] %v5588_v45  ;;  %9437 = vst [vmem:[#allocation27_spill] sm:$0xff] %v5590_v46  ;;  %v5598_v48 = vld [vmem:[#allocation10 + $0x1c8] sm:$0xff]  ;;  %v5600_v49 = vld [vmem:[#allocation10 + $0x1d8] sm:$0xff] }
  0x7d   :  { %695 = vmatpush1.msra.mxu0 %v5446_v63  ;;  %766 = vmatpush1.msra.mxu1 %v5448_v1  ;;  %9438 = vst [vmem:[#allocation28_spill] sm:$0xff] %v5594_v47  ;;  %9439 = vst [vmem:[#allocation29_spill] sm:$0xff] %v5598_v48  ;;  %v5602_v50 = vld [vmem:[#allocation10 + $0x1c0] sm:$0xff]  ;;  %v5606_v51 = vld [vmem:[#allocation10 + $0x1d0] sm:$0xff] }
  0x7e   :  { %696 = vmatprep.subr.mxu0 %v5452_v2  ;;  %767 = vmatprep.subr.mxu1 %v5454_v3  ;;  %9440 = vst [vmem:[#allocation30_spill] sm:$0xff] %v5600_v49  ;;  %9441 = vst [vmem:[#allocation31_spill] sm:$0xff] %v5602_v50  ;;  %v5610_v52 = vld [vmem:[#allocation10 + $0x1a8] sm:$0xff]  ;;  %v5612_v53 = vld [vmem:[#allocation10 + $0x1b8] sm:$0xff] }
  0x7f   :  { %312 = vmatprep.mubr.f32.mxu0 %v8877_v0  ;;  %425 = vmatprep.mubr.f32.mxu1 %v8877_v0  ;;  %9442 = vst [vmem:[#allocation32_spill] sm:$0xff] %v5606_v51  ;;  %9443 = vst [vmem:[#allocation33_spill] sm:$0xff] %v5610_v52  ;;  %v5614_v54 = vld [vmem:[#allocation10 + $0x1a0] sm:$0xff]  ;;  %v5618_v55 = vld [vmem:[#allocation10 + $0x1b0] sm:$0xff] }
  0x80   :  { %697 = vmatpush1.msra.mxu0 %v5460_v4  ;;  %768 = vmatpush1.msra.mxu1 %v5462_v5  ;;  %9444 = vst [vmem:[#allocation34_spill] sm:$0xff] %v5612_v53  ;;  %9445 = vst [vmem:[#allocation35_spill] sm:$0xff] %v5614_v54  ;;  %v5622_v60 = vld [vmem:[#allocation10 + $0x188] sm:$0xff] }
  0x81   :  { %4104 = vmatmul.mubr.msk.f32.gmra.mxu0 %vm199_vm0, %v141_v6  ;;  %4112 = vmatmul.mubr.msk.f32.gmra.mxu1 %vm199_vm0, %v141_v6  ;;  %9446 = vst [vmem:[#allocation36_spill] sm:$0xff] %v5618_v55  ;;  %9447 = vst [vmem:[#allocation37_spill] sm:$0xff] %v5622_v60  ;;  %v5624_v6 = vld [vmem:[#allocation10 + $0x198] sm:$0xff] }
  0x82   :  { %698 = vmatprep.subr.mxu0 %v5468_v7  ;;  %769 = vmatprep.subr.mxu1 %v5470_v8  ;;  %9448 = vst [vmem:[#allocation38_spill] sm:$0xff] %v5624_v6 }
  0x83   :  { %699 = vmatpush1.msra.mxu0 %v5474_v9  ;;  %770 = vmatpush1.msra.mxu1 %v5476_v10 }
  0x84   :  { %700 = vmatprep.subr.mxu0 %v5480_v11  ;;  %771 = vmatprep.subr.mxu1 %v5482_v12 }
  0x85   :  { %318 = vmatprep.mubr.f32.mxu0 %v8877_v0  ;;  %431 = vmatprep.mubr.f32.mxu1 %v8877_v0 }
  0x86   :  { %701 = vmatpush1.msra.mxu0 %v5488_v13  ;;  %772 = vmatpush1.msra.mxu1 %v5490_v14 }
  0x87   :  { %4105 = vmatmul.mubr.msk.f32.gmra.mxu0 %vm199_vm0, %v142_v15  ;;  %4113 = vmatmul.mubr.msk.f32.gmra.mxu1 %vm199_vm0, %v142_v15  ;;  %v5626_v15 = vld [vmem:[#allocation10 + $0x180] sm:$0xff] }
  0x88   :  { %702 = vmatprep.subr.mxu0 %v5496_v16  ;;  %773 = vmatprep.subr.mxu1 %v5498_v17  ;;  %9449 = vst [vmem:[#allocation39_spill] sm:$0xff] %v5626_v15 }
  0x89   :  { %703 = vmatpush1.msra.mxu0 %v5502_v18  ;;  %774 = vmatpush1.msra.mxu1 %v5504_v19 }
  0x8a   :  { %704 = vmatprep.subr.mxu0 %v5508_v20  ;;  %775 = vmatprep.subr.mxu1 %v5510_v21 }
  0x8b   :  { %324 = vmatprep.mubr.f32.mxu0 %v8877_v0  ;;  %437 = vmatprep.mubr.f32.mxu1 %v8877_v0 }
  0x8c   :  { %705 = vmatpush1.msra.mxu0 %v5516_v22  ;;  %776 = vmatpush1.msra.mxu1 %v5518_v23 }
  0x8d   :  { %4106 = vmatmul.mubr.msk.f32.gmra.mxu0 %vm199_vm0, %v143_v24  ;;  %4114 = vmatmul.mubr.msk.f32.gmra.mxu1 %vm199_vm0, %v143_v24  ;;  %v5630_v24 = vld [vmem:[#allocation10 + $0x190] sm:$0xff] }
  0x8e   :  { %706 = vmatprep.subr.mxu0 %v5524_v25  ;;  %777 = vmatprep.subr.mxu1 %v5526_v26  ;;  %9450 = vst [vmem:[#allocation40_spill] sm:$0xff] %v5630_v24 }
  0x8f   :  { %707 = vmatpush1.msra.mxu0 %v5530_v27  ;;  %778 = vmatpush1.msra.mxu1 %v5532_v28 }
  0x90   :  { %708 = vmatprep.subr.mxu0 %v5536_v29  ;;  %779 = vmatprep.subr.mxu1 %v5538_v30 }
  0x91   :  { %330 = vmatprep.mubr.f32.mxu0 %v8877_v0  ;;  %443 = vmatprep.mubr.f32.mxu1 %v8877_v0 }
  0x92   :  { %709 = vmatpush1.msra.mxu0 %v5544_v31  ;;  %780 = vmatpush1.msra.mxu1 %v5546_v32 }
  0x93   :  { %4107 = vmatmul.mubr.msk.f32.gmra.mxu0 %vm199_vm0, %v144_v33  ;;  %4115 = vmatmul.mubr.msk.f32.gmra.mxu1 %vm199_vm0, %v144_v33  ;;  %v5634_v33 = vld [vmem:[#allocation10 + $0x168] sm:$0xff] }
  0x94   :  { %710 = vmatprep.subr.mxu0 %v5552_v36  ;;  %781 = vmatprep.subr.mxu1 %v5554_v37  ;;  %9451 = vst [vmem:[#allocation41_spill] sm:$0xff] %v5634_v33 }
  0x95   :  { %711 = vmatpush1.msra.mxu0 %v5558_v38  ;;  %782 = vmatpush1.msra.mxu1 %v5560_v39 }
  0x96   :  { %712 = vmatprep.subr.mxu0 %v5564_v40  ;;  %783 = vmatprep.subr.mxu1 %v5566_v41 }
  0x97   :  { %713 = vmatpush1.msra.mxu0 %v5570_v42  ;;  %746 = vmatprep.mubr.f32.mxu0 %v8877_v0 }
  0x98   :  { %784 = vmatpush1.msra.mxu1 %v5574_v43  ;;  %817 = vmatprep.mubr.f32.mxu1 %v8877_v0 }
  0x99   :  { %747 = vmatmul.mubr.f32.vlgmr.msra.gmra.mxu0 %v8877_v0  ;;  %818 = vmatmul.mubr.f32.vlgmr.msra.gmra.mxu1 %v8877_v0 }
  0x9a   :  { %937 = vmatprep.mubr.f32.mxu0 %v8877_v0  ;;  %1008 = vmatprep.mubr.f32.mxu1 %v8877_v0  ;;  %v5636_v0 = vld [vmem:[#allocation10 + $0x178] sm:$0xff] }
  0x9b   :  { %873 = vmatprep.subr.mxu0 %v5586_v44  ;;  %944 = vmatprep.subr.mxu1 %v5588_v45  ;;  %9452 = vst [vmem:[#allocation42_spill] sm:$0xff] %v5636_v0 }
  0x9c   :  { %874 = vmatpush1.msra.mxu0 %v5590_v46  ;;  %945 = vmatpush1.msra.mxu1 %v5594_v47 }
  0x9d   :  { %875 = vmatprep.subr.mxu0 %v5598_v48  ;;  %946 = vmatprep.subr.mxu1 %v5600_v49 }
  0x9e   :  { %876 = vmatpush1.msra.mxu0 %v5602_v50  ;;  %947 = vmatpush1.msra.mxu1 %v5606_v51  ;;  %v5912_v51 = vld [vmem:[#allocation10 + $0x280] sm:$0xff] }
  0x9f   :  { %877 = vmatprep.subr.mxu0 %v5610_v52  ;;  %948 = vmatprep.subr.mxu1 %v5612_v53  ;;  %v5888_v53 = vld [vmem:[#allocation10 + $0x2c0] sm:$0xff]  ;;  %v5896_v52 = vld [vmem:[#allocation10 + $0x2b8] sm:$0xff]  ;;  %9545 = vst [vmem:[#allocation135_spill] sm:$0xff] %v5912_v51 }
  0xa0   :  { %878 = vmatpush1.msra.mxu0 %v5614_v54  ;;  %949 = vmatpush1.msra.mxu1 %v5618_v55  ;;  %v5640_v55 = vld [vmem:[#allocation10 + $0x160] sm:$0xff]  ;;  %v5642_v54 = vld [vmem:[#allocation10 + $0x170] sm:$0xff]  ;;  %9537 = vst [vmem:[#allocation127_spill] sm:$0xff] %v5888_v53  ;;  %9540 = vst [vmem:[#allocation130_spill] sm:$0xff] %v5896_v52 }
  0xa1   :  { %879 = vmatprep.subr.mxu0 %v5622_v60  ;;  %950 = vmatprep.subr.mxu1 %v5624_v6  ;;  %9453 = vst [vmem:[#allocation43_spill] sm:$0xff] %v5640_v55  ;;  %9454 = vst [vmem:[#allocation44_spill] sm:$0xff] %v5642_v54  ;;  %v5646_v6 = vld [vmem:[#allocation10 + $0x148] sm:$0xff]  ;;  %v5880_v60 = vld [vmem:[#allocation10 + $0x2f0] sm:$0xff] }
  0xa2   :  { %880 = vmatpush1.msra.mxu0 %v5626_v15  ;;  %951 = vmatpush1.msra.mxu1 %v5630_v24  ;;  %9455 = vst [vmem:[#allocation45_spill] sm:$0xff] %v5646_v6  ;;  %v5648_v15 = vld [vmem:[#allocation10 + $0x158] sm:$0xff]  ;;  %v5652_v24 = vld [vmem:[#allocation10 + $0x140] sm:$0xff]  ;;  %9534 = vst [vmem:[#allocation124_spill] sm:$0xff] %v5880_v60 }
  0xa3   :  { %881 = vmatprep.subr.mxu0 %v5634_v33  ;;  %952 = vmatprep.subr.mxu1 %v5636_v0  ;;  %9456 = vst [vmem:[#allocation46_spill] sm:$0xff] %v5648_v15  ;;  %9457 = vst [vmem:[#allocation47_spill] sm:$0xff] %v5652_v24  ;;  %v5654_v33 = vld [vmem:[#allocation10 + $0x150] sm:$0xff]  ;;  %v5658_v0 = vld [vmem:[#allocation10 + $0x128] sm:$0xff] }
  0xa4   :  { %882 = vmatpush1.msra.mxu0 %v5640_v55  ;;  %953 = vmatpush1.msra.mxu1 %v5642_v54  ;;  %9458 = vst [vmem:[#allocation48_spill] sm:$0xff] %v5654_v33  ;;  %9459 = vst [vmem:[#allocation49_spill] sm:$0xff] %v5658_v0  ;;  %v5660_v55 = vld [vmem:[#allocation10 + $0x138] sm:$0xff]  ;;  %v5664_v54 = vld [vmem:[#allocation10 + $0x120] sm:$0xff] }
  0xa5   :  { %883 = vmatprep.subr.mxu0 %v5646_v6  ;;  %954 = vmatprep.subr.mxu1 %v5648_v15  ;;  %9460 = vst [vmem:[#allocation50_spill] sm:$0xff] %v5660_v55  ;;  %9461 = vst [vmem:[#allocation51_spill] sm:$0xff] %v5664_v54  ;;  %v5666_v6 = vld [vmem:[#allocation10 + $0x130] sm:$0xff]  ;;  %v5670_v15 = vld [vmem:[#allocation10 + $0x108] sm:$0xff] }
  0xa6   :  { %884 = vmatpush1.msra.mxu0 %v5652_v24  ;;  %955 = vmatpush1.msra.mxu1 %v5654_v33  ;;  %9462 = vst [vmem:[#allocation52_spill] sm:$0xff] %v5666_v6  ;;  %9463 = vst [vmem:[#allocation53_spill] sm:$0xff] %v5670_v15  ;;  %v5672_v24 = vld [vmem:[#allocation10 + $0x118] sm:$0xff]  ;;  %v5676_v33 = vld [vmem:[#allocation10 + $0x100] sm:$0xff] }
  0xa7   :  { %885 = vmatprep.subr.mxu0 %v5658_v0  ;;  %956 = vmatprep.subr.mxu1 %v5660_v55  ;;  %9464 = vst [vmem:[#allocation54_spill] sm:$0xff] %v5672_v24  ;;  %9465 = vst [vmem:[#allocation55_spill] sm:$0xff] %v5676_v33  ;;  %v5678_v0 = vld [vmem:[#allocation10 + $0x110] sm:$0xff]  ;;  %v5682_v55 = vld [vmem:[#allocation10 + $0xe8] sm:$0xff] }
  0xa8   :  { %886 = vmatpush1.msra.mxu0 %v5664_v54  ;;  %957 = vmatpush1.msra.mxu1 %v5666_v6  ;;  %9466 = vst [vmem:[#allocation56_spill] sm:$0xff] %v5678_v0  ;;  %9467 = vst [vmem:[#allocation57_spill] sm:$0xff] %v5682_v55  ;;  %v5684_v54 = vld [vmem:[#allocation10 + $0xf8] sm:$0xff]  ;;  %v5688_v6 = vld [vmem:[#allocation10 + $0xe0] sm:$0xff] }
  0xa9   :  { %887 = vmatprep.subr.mxu0 %v5670_v15  ;;  %958 = vmatprep.subr.mxu1 %v5672_v24  ;;  %9468 = vst [vmem:[#allocation58_spill] sm:$0xff] %v5684_v54  ;;  %9469 = vst [vmem:[#allocation59_spill] sm:$0xff] %v5688_v6  ;;  %v5690_v15 = vld [vmem:[#allocation10 + $0xf0] sm:$0xff]  ;;  %v5694_v24 = vld [vmem:[#allocation10 + $0xc8] sm:$0xff] }
  0xaa   :  { %888 = vmatpush1.msra.mxu0 %v5676_v33  ;;  %959 = vmatpush1.msra.mxu1 %v5678_v0  ;;  %9470 = vst [vmem:[#allocation60_spill] sm:$0xff] %v5690_v15  ;;  %9471 = vst [vmem:[#allocation61_spill] sm:$0xff] %v5694_v24  ;;  %v5696_v33 = vld [vmem:[#allocation10 + $0xd8] sm:$0xff]  ;;  %v5700_v0 = vld [vmem:[#allocation10 + $0xc0] sm:$0xff] }
  0xab   :  { %889 = vmatprep.subr.mxu0 %v5682_v55  ;;  %960 = vmatprep.subr.mxu1 %v5684_v54  ;;  %9472 = vst [vmem:[#allocation62_spill] sm:$0xff] %v5696_v33  ;;  %9473 = vst [vmem:[#allocation63_spill] sm:$0xff] %v5700_v0  ;;  %v5702_v55 = vld [vmem:[#allocation10 + $0xd0] sm:$0xff]  ;;  %v5706_v54 = vld [vmem:[#allocation10 + $0xa8] sm:$0xff] }
  0xac   :  { %890 = vmatpush1.msra.mxu0 %v5688_v6  ;;  %961 = vmatpush1.msra.mxu1 %v5690_v15  ;;  %9474 = vst [vmem:[#allocation64_spill] sm:$0xff] %v5702_v55  ;;  %9475 = vst [vmem:[#allocation65_spill] sm:$0xff] %v5706_v54  ;;  %v5708_v6 = vld [vmem:[#allocation10 + $0xb8] sm:$0xff]  ;;  %v5712_v15 = vld [vmem:[#allocation10 + $0xa0] sm:$0xff] }
  0xad   :  { %891 = vmatprep.subr.mxu0 %v5694_v24  ;;  %962 = vmatprep.subr.mxu1 %v5696_v33  ;;  %9476 = vst [vmem:[#allocation66_spill] sm:$0xff] %v5708_v6  ;;  %9477 = vst [vmem:[#allocation67_spill] sm:$0xff] %v5712_v15  ;;  %v5714_v24 = vld [vmem:[#allocation10 + $0xb0] sm:$0xff]  ;;  %v5718_v33 = vld [vmem:[#allocation10 + $0x88] sm:$0xff] }
  0xae   :  { %892 = vmatpush1.msra.mxu0 %v5700_v0  ;;  %963 = vmatpush1.msra.mxu1 %v5702_v55  ;;  %9478 = vst [vmem:[#allocation68_spill] sm:$0xff] %v5714_v24  ;;  %9479 = vst [vmem:[#allocation69_spill] sm:$0xff] %v5718_v33  ;;  %v5720_v0 = vld [vmem:[#allocation10 + $0x98] sm:$0xff]  ;;  %v5724_v55 = vld [vmem:[#allocation10 + $0x80] sm:$0xff] }
  0xaf   :  { %893 = vmatprep.subr.mxu0 %v5706_v54  ;;  %964 = vmatprep.subr.mxu1 %v5708_v6  ;;  %9480 = vst [vmem:[#allocation70_spill] sm:$0xff] %v5720_v0  ;;  %9481 = vst [vmem:[#allocation71_spill] sm:$0xff] %v5724_v55  ;;  %v5726_v54 = vld [vmem:[#allocation10 + $0x90] sm:$0xff]  ;;  %v5730_v6 = vld [vmem:[#allocation10 + $0x68] sm:$0xff] }
  0xb0   :  { %894 = vmatpush1.msra.mxu0 %v5712_v15  ;;  %965 = vmatpush1.msra.mxu1 %v5714_v24  ;;  %9482 = vst [vmem:[#allocation72_spill] sm:$0xff] %v5726_v54  ;;  %9483 = vst [vmem:[#allocation73_spill] sm:$0xff] %v5730_v6  ;;  %v5732_v15 = vld [vmem:[#allocation10 + $0x78] sm:$0xff]  ;;  %v5736_v24 = vld [vmem:[#allocation10 + $0x60] sm:$0xff] }
  0xb1   :  { %895 = vmatprep.subr.mxu0 %v5718_v33  ;;  %966 = vmatprep.subr.mxu1 %v5720_v0  ;;  %9484 = vst [vmem:[#allocation74_spill] sm:$0xff] %v5732_v15  ;;  %9485 = vst [vmem:[#allocation75_spill] sm:$0xff] %v5736_v24  ;;  %v5738_v33 = vld [vmem:[#allocation10 + $0x70] sm:$0xff]  ;;  %v5742_v0 = vld [vmem:[#allocation10 + $0x48] sm:$0xff] }
  0xb2   :  { %896 = vmatpush1.msra.mxu0 %v5724_v55  ;;  %967 = vmatpush1.msra.mxu1 %v5726_v54  ;;  %9486 = vst [vmem:[#allocation76_spill] sm:$0xff] %v5738_v33  ;;  %9487 = vst [vmem:[#allocation77_spill] sm:$0xff] %v5742_v0  ;;  %v5744_v55 = vld [vmem:[#allocation10 + $0x58] sm:$0xff]  ;;  %v5748_v54 = vld [vmem:[#allocation10 + $0x40] sm:$0xff] }
  0xb3   :  { %897 = vmatprep.subr.mxu0 %v5730_v6  ;;  %968 = vmatprep.subr.mxu1 %v5732_v15  ;;  %9488 = vst [vmem:[#allocation78_spill] sm:$0xff] %v5744_v55  ;;  %9489 = vst [vmem:[#allocation79_spill] sm:$0xff] %v5748_v54  ;;  %v5750_v6 = vld [vmem:[#allocation10 + $0x50] sm:$0xff]  ;;  %v5754_v15 = vld [vmem:[#allocation10 + $0x28] sm:$0xff] }
  0xb4   :  { %898 = vmatpush1.msra.mxu0 %v5736_v24  ;;  %969 = vmatpush1.msra.mxu1 %v5738_v33  ;;  %9490 = vst [vmem:[#allocation80_spill] sm:$0xff] %v5750_v6  ;;  %9491 = vst [vmem:[#allocation81_spill] sm:$0xff] %v5754_v15  ;;  %v5756_v24 = vld [vmem:[#allocation10 + $0x38] sm:$0xff]  ;;  %v5760_v33 = vld [vmem:[#allocation10 + $0x20] sm:$0xff] }
  0xb5   :  { %899 = vmatprep.subr.mxu0 %v5742_v0  ;;  %970 = vmatprep.subr.mxu1 %v5744_v55  ;;  %9492 = vst [vmem:[#allocation82_spill] sm:$0xff] %v5756_v24  ;;  %9493 = vst [vmem:[#allocation83_spill] sm:$0xff] %v5760_v33  ;;  %v5762_v0 = vld [vmem:[#allocation10 + $0x30] sm:$0xff]  ;;  %v5766_v55 = vld [vmem:[#allocation10 + $0x8] sm:$0xff] }
  0xb6   :  { %900 = vmatpush1.msra.mxu0 %v5748_v54  ;;  %971 = vmatpush1.msra.mxu1 %v5750_v6  ;;  %9494 = vst [vmem:[#allocation84_spill] sm:$0xff] %v5762_v0  ;;  %9495 = vst [vmem:[#allocation85_spill] sm:$0xff] %v5766_v55  ;;  %v5768_v54 = vld [vmem:[#allocation10 + $0x18] sm:$0xff]  ;;  %v5772_v6 = vld [vmem:[#allocation10] sm:$0xff] }
  0xb7   :  { %901 = vmatprep.subr.mxu0 %v5754_v15  ;;  %972 = vmatprep.subr.mxu1 %v5756_v24  ;;  %9496 = vst [vmem:[#allocation86_spill] sm:$0xff] %v5768_v54  ;;  %9497 = vst [vmem:[#allocation87_spill] sm:$0xff] %v5772_v6  ;;  %v5774_v15 = vld [vmem:[#allocation10 + $0x10] sm:$0xff]  ;;  %v5778_v24 = vld [vmem:[#allocation10 + $0x3e8] sm:$0xff] }
  0xb8   :  { %902 = vmatpush1.msra.mxu0 %v5760_v33  ;;  %973 = vmatpush1.msra.mxu1 %v5762_v0  ;;  %9498 = vst [vmem:[#allocation88_spill] sm:$0xff] %v5774_v15  ;;  %9499 = vst [vmem:[#allocation89_spill] sm:$0xff] %v5778_v24  ;;  %v5780_v33 = vld [vmem:[#allocation10 + $0x3f8] sm:$0xff]  ;;  %v5784_v0 = vld [vmem:[#allocation10 + $0x3e0] sm:$0xff] }
  0xb9   :  { %903 = vmatprep.subr.mxu0 %v5766_v55  ;;  %974 = vmatprep.subr.mxu1 %v5768_v54  ;;  %9500 = vst [vmem:[#allocation90_spill] sm:$0xff] %v5780_v33  ;;  %9501 = vst [vmem:[#allocation91_spill] sm:$0xff] %v5784_v0  ;;  %v5786_v55 = vld [vmem:[#allocation10 + $0x3f0] sm:$0xff]  ;;  %v5790_v54 = vld [vmem:[#allocation10 + $0x3c8] sm:$0xff] }
  0xba   :  { %904 = vmatpush1.msra.mxu0 %v5772_v6  ;;  %975 = vmatpush1.msra.mxu1 %v5774_v15  ;;  %9502 = vst [vmem:[#allocation92_spill] sm:$0xff] %v5786_v55  ;;  %9503 = vst [vmem:[#allocation93_spill] sm:$0xff] %v5790_v54  ;;  %v5792_v6 = vld [vmem:[#allocation10 + $0x3d8] sm:$0xff]  ;;  %v5796_v15 = vld [vmem:[#allocation10 + $0x3c0] sm:$0xff] }
  0xbb   :  { %905 = vmatprep.subr.mxu0 %v5778_v24  ;;  %976 = vmatprep.subr.mxu1 %v5780_v33  ;;  %9504 = vst [vmem:[#allocation94_spill] sm:$0xff] %v5792_v6  ;;  %9505 = vst [vmem:[#allocation95_spill] sm:$0xff] %v5796_v15  ;;  %v5798_v24 = vld [vmem:[#allocation10 + $0x3d0] sm:$0xff]  ;;  %v5802_v33 = vld [vmem:[#allocation10 + $0x3a8] sm:$0xff] }
  0xbc   :  { %906 = vmatpush2.msra.mxu0 %v5784_v0  ;;  %977 = vmatpush2.msra.mxu1 %v5786_v55  ;;  %9506 = vst [vmem:[#allocation96_spill] sm:$0xff] %v5798_v24  ;;  %9507 = vst [vmem:[#allocation97_spill] sm:$0xff] %v5802_v33  ;;  %v5804_v0 = vld [vmem:[#allocation10 + $0x3b8] sm:$0xff]  ;;  %v5808_v55 = vld [vmem:[#allocation10 + $0x3a0] sm:$0xff] }
  0xbd   :  { %907 = vmatprep.subr.mxu0 %v5790_v54  ;;  %978 = vmatprep.subr.mxu1 %v5792_v6  ;;  %9508 = vst [vmem:[#allocation98_spill] sm:$0xff] %v5804_v0  ;;  %9509 = vst [vmem:[#allocation99_spill] sm:$0xff] %v5808_v55  ;;  %v5810_v54 = vld [vmem:[#allocation10 + $0x3b0] sm:$0xff]  ;;  %v5814_v6 = vld [vmem:[#allocation10 + $0x388] sm:$0xff] }
  0xbe   :  { %908 = vmatpush2.msra.mxu0 %v5796_v15  ;;  %979 = vmatpush2.msra.mxu1 %v5798_v24  ;;  %9510 = vst [vmem:[#allocation100_spill] sm:$0xff] %v5810_v54  ;;  %9511 = vst [vmem:[#allocation101_spill] sm:$0xff] %v5814_v6  ;;  %v5816_v15 = vld [vmem:[#allocation10 + $0x398] sm:$0xff]  ;;  %v5820_v24 = vld [vmem:[#allocation10 + $0x380] sm:$0xff] }
  0xbf   :  { %909 = vmatprep.subr.mxu0 %v5802_v33  ;;  %980 = vmatprep.subr.mxu1 %v5804_v0  ;;  %9512 = vst [vmem:[#allocation102_spill] sm:$0xff] %v5816_v15  ;;  %9513 = vst [vmem:[#allocation103_spill] sm:$0xff] %v5820_v24  ;;  %v5822_v33 = vld [vmem:[#allocation10 + $0x390] sm:$0xff]  ;;  %v5826_v0 = vld [vmem:[#allocation10 + $0x368] sm:$0xff] }
  0xc0   :  { %910 = vmatpush2.msra.mxu0 %v5808_v55  ;;  %981 = vmatpush2.msra.mxu1 %v5810_v54  ;;  %9514 = vst [vmem:[#allocation104_spill] sm:$0xff] %v5822_v33  ;;  %9515 = vst [vmem:[#allocation105_spill] sm:$0xff] %v5826_v0  ;;  %v5828_v55 = vld [vmem:[#allocation10 + $0x378] sm:$0xff]  ;;  %v5832_v54 = vld [vmem:[#allocation10 + $0x360] sm:$0xff] }
  0xc1   :  { %911 = vmatprep.subr.mxu0 %v5814_v6  ;;  %982 = vmatprep.subr.mxu1 %v5816_v15  ;;  %9516 = vst [vmem:[#allocation106_spill] sm:$0xff] %v5828_v55  ;;  %9517 = vst [vmem:[#allocation107_spill] sm:$0xff] %v5832_v54  ;;  %v5834_v6 = vld [vmem:[#allocation10 + $0x370] sm:$0xff]  ;;  %v5838_v15 = vld [vmem:[#allocation10 + $0x348] sm:$0xff] }
  0xc2   :  { %912 = vmatpush2.msra.mxu0 %v5820_v24  ;;  %983 = vmatpush2.msra.mxu1 %v5822_v33  ;;  %9518 = vst [vmem:[#allocation108_spill] sm:$0xff] %v5834_v6  ;;  %9519 = vst [vmem:[#allocation109_spill] sm:$0xff] %v5838_v15  ;;  %v5840_v24 = vld [vmem:[#allocation10 + $0x358] sm:$0xff]  ;;  %v5844_v33 = vld [vmem:[#allocation10 + $0x340] sm:$0xff] }
  0xc3   :  { %913 = vmatprep.subr.mxu0 %v5826_v0  ;;  %984 = vmatprep.subr.mxu1 %v5828_v55  ;;  %9520 = vst [vmem:[#allocation110_spill] sm:$0xff] %v5840_v24  ;;  %9521 = vst [vmem:[#allocation111_spill] sm:$0xff] %v5844_v33  ;;  %v5846_v0 = vld [vmem:[#allocation10 + $0x350] sm:$0xff]  ;;  %v5850_v55 = vld [vmem:[#allocation10 + $0x328] sm:$0xff] }
  0xc4   :  { %914 = vmatpush2.msra.mxu0 %v5832_v54  ;;  %985 = vmatpush2.msra.mxu1 %v5834_v6  ;;  %9522 = vst [vmem:[#allocation112_spill] sm:$0xff] %v5846_v0  ;;  %9523 = vst [vmem:[#allocation113_spill] sm:$0xff] %v5850_v55  ;;  %v5852_v54 = vld [vmem:[#allocation10 + $0x338] sm:$0xff]  ;;  %v5856_v6 = vld [vmem:[#allocation10 + $0x320] sm:$0xff] }
  0xc5   :  { %915 = vmatprep.subr.mxu0 %v5838_v15  ;;  %986 = vmatprep.subr.mxu1 %v5840_v24  ;;  %9524 = vst [vmem:[#allocation114_spill] sm:$0xff] %v5852_v54  ;;  %9525 = vst [vmem:[#allocation115_spill] sm:$0xff] %v5856_v6  ;;  %v5858_v15 = vld [vmem:[#allocation10 + $0x330] sm:$0xff]  ;;  %v5862_v24 = vld [vmem:[#allocation10 + $0x308] sm:$0xff] }
  0xc6   :  { %916 = vmatpush2.msra.mxu0 %v5844_v33  ;;  %987 = vmatpush2.msra.mxu1 %v5846_v0  ;;  %9526 = vst [vmem:[#allocation116_spill] sm:$0xff] %v5858_v15  ;;  %9527 = vst [vmem:[#allocation117_spill] sm:$0xff] %v5862_v24  ;;  %v5864_v33 = vld [vmem:[#allocation10 + $0x318] sm:$0xff]  ;;  %v5868_v0 = vld [vmem:[#allocation10 + $0x300] sm:$0xff] }
  0xc7   :  { %917 = vmatprep.subr.mxu0 %v5850_v55  ;;  %988 = vmatprep.subr.mxu1 %v5852_v54  ;;  %9528 = vst [vmem:[#allocation118_spill] sm:$0xff] %v5864_v33  ;;  %9529 = vst [vmem:[#allocation119_spill] sm:$0xff] %v5868_v0  ;;  %v5870_v55 = vld [vmem:[#allocation10 + $0x310] sm:$0xff]  ;;  %v5872_v54 = vld [vmem:[#allocation10 + $0x2e8] sm:$0xff] }
  0xc8   :  { %918 = vmatpush2.msra.mxu0 %v5856_v6  ;;  %989 = vmatpush2.msra.mxu1 %v5858_v15  ;;  %9530 = vst [vmem:[#allocation120_spill] sm:$0xff] %v5870_v55  ;;  %9531 = vst [vmem:[#allocation121_spill] sm:$0xff] %v5872_v54  ;;  %v5876_v6 = vld [vmem:[#allocation10 + $0x2f8] sm:$0xff]  ;;  %v5878_v15 = vld [vmem:[#allocation10 + $0x2e0] sm:$0xff] }
  0xc9   :  { %919 = vmatprep.subr.mxu0 %v5862_v24  ;;  %990 = vmatprep.subr.mxu1 %v5864_v33  ;;  %9532 = vst [vmem:[#allocation122_spill] sm:$0xff] %v5876_v6  ;;  %9533 = vst [vmem:[#allocation123_spill] sm:$0xff] %v5878_v15  ;;  %v5884_v33 = vld [vmem:[#allocation10 + $0x2c8] sm:$0xff]  ;;  %v5886_v24 = vld [vmem:[#allocation10 + $0x2d8] sm:$0xff] }
  0xca   :  { %920 = vmatpush2.msra.mxu0 %v5868_v0  ;;  %991 = vmatpush2.msra.mxu1 %v5870_v55  ;;  %9535 = vst [vmem:[#allocation125_spill] sm:$0xff] %v5884_v33  ;;  %9536 = vst [vmem:[#allocation126_spill] sm:$0xff] %v5886_v24  ;;  %v5892_v55 = vld [vmem:[#allocation10 + $0x2d0] sm:$0xff]  ;;  %v5894_v0 = vld [vmem:[#allocation10 + $0x2a8] sm:$0xff] }
  0xcb   :  { %921 = vmatprep.subr.mxu0 %v5872_v54  ;;  %992 = vmatprep.subr.mxu1 %v5876_v6  ;;  %9538 = vst [vmem:[#allocation128_spill] sm:$0xff] %v5892_v55  ;;  %9539 = vst [vmem:[#allocation129_spill] sm:$0xff] %v5894_v0  ;;  %v5900_v6 = vld [vmem:[#allocation10 + $0x2a0] sm:$0xff]  ;;  %v5902_v54 = vld [vmem:[#allocation10 + $0x2b0] sm:$0xff] }
  0xcc   :  { %922 = vmatpush2.msra.mxu0 %v5878_v15  ;;  %993 = vmatpush2.msra.mxu1 %v5880_v60  ;;  %9541 = vst [vmem:[#allocation131_spill] sm:$0xff] %v5900_v6  ;;  %9542 = vst [vmem:[#allocation132_spill] sm:$0xff] %v5902_v54  ;;  %v5906_v15 = vld [vmem:[#allocation10 + $0x288] sm:$0xff]  ;;  %v5908_v60 = vld [vmem:[#allocation10 + $0x298] sm:$0xff] }
  0xcd   :  { %923 = vmatprep.subr.mxu0 %v5884_v33  ;;  %994 = vmatprep.subr.mxu1 %v5886_v24  ;;  %9543 = vst [vmem:[#allocation133_spill] sm:$0xff] %v5906_v15  ;;  %9544 = vst [vmem:[#allocation134_spill] sm:$0xff] %v5908_v60  ;;  %v5914_v33 = vld [vmem:[#allocation10 + $0x290] sm:$0xff]  ;;  %v5918_v24 = vld [vmem:[#allocation10 + $0x268] sm:$0xff] }
  0xce   :  { %924 = vmatpush2.msra.mxu0 %v5888_v53  ;;  %995 = vmatpush2.msra.mxu1 %v5892_v55  ;;  %9546 = vst [vmem:[#allocation136_spill] sm:$0xff] %v5914_v33  ;;  %9547 = vst [vmem:[#allocation137_spill] sm:$0xff] %v5918_v24  ;;  %v5920_v53 = vld [vmem:[#allocation10 + $0x278] sm:$0xff]  ;;  %v5924_v55 = vld [vmem:[#allocation10 + $0x260] sm:$0xff] }
  0xcf   :  { %925 = vmatprep.subr.mxu0 %v5894_v0  ;;  %996 = vmatprep.subr.mxu1 %v5896_v52  ;;  %9548 = vst [vmem:[#allocation138_spill] sm:$0xff] %v5920_v53  ;;  %9549 = vst [vmem:[#allocation139_spill] sm:$0xff] %v5924_v55  ;;  %v5926_v0 = vld [vmem:[#allocation10 + $0x270] sm:$0xff]  ;;  %v5930_v52 = vld [vmem:[#allocation10 + $0x248] sm:$0xff] }
  0xd0   :  { %926 = vmatpush2.msra.mxu0 %v5900_v6  ;;  %997 = vmatpush2.msra.mxu1 %v5902_v54  ;;  %9550 = vst [vmem:[#allocation140_spill] sm:$0xff] %v5926_v0  ;;  %9551 = vst [vmem:[#allocation141_spill] sm:$0xff] %v5930_v52  ;;  %v5932_v6 = vld [vmem:[#allocation10 + $0x258] sm:$0xff]  ;;  %v5936_v54 = vld [vmem:[#allocation10 + $0x240] sm:$0xff] }
  0xd1   :  { %927 = vmatprep.subr.mxu0 %v5906_v15  ;;  %998 = vmatprep.subr.mxu1 %v5908_v60  ;;  %9552 = vst [vmem:[#allocation142_spill] sm:$0xff] %v5932_v6  ;;  %9553 = vst [vmem:[#allocation143_spill] sm:$0xff] %v5936_v54  ;;  %v5938_v15 = vld [vmem:[#allocation10 + $0x250] sm:$0xff]  ;;  %v5942_v60 = vld [vmem:[#allocation10 + $0x228] sm:$0xff] }
  0xd2   :  { %928 = vmatpush2.msra.mxu0 %v5912_v51  ;;  %999 = vmatpush2.msra.mxu1 %v5914_v33  ;;  %9554 = vst [vmem:[#allocation144_spill] sm:$0xff] %v5938_v15  ;;  %9555 = vst [vmem:[#allocation145_spill] sm:$0xff] %v5942_v60  ;;  %v5944_v51 = vld [vmem:[#allocation10 + $0x238] sm:$0xff]  ;;  %v5948_v33 = vld [vmem:[#allocation10 + $0x220] sm:$0xff] }
  0xd3   :  { %929 = vmatprep.subr.mxu0 %v5918_v24  ;;  %1000 = vmatprep.subr.mxu1 %v5920_v53  ;;  %9556 = vst [vmem:[#allocation146_spill] sm:$0xff] %v5944_v51  ;;  %9557 = vst [vmem:[#allocation147_spill] sm:$0xff] %v5948_v33  ;;  %v5950_v24 = vld [vmem:[#allocation10 + $0x230] sm:$0xff]  ;;  %v5954_v53 = vld [vmem:[#allocation10 + $0x208] sm:$0xff] }
  0xd4   :  { %930 = vmatpush2.msra.mxu0 %v5924_v55  ;;  %1001 = vmatpush2.msra.mxu1 %v5926_v0  ;;  %9558 = vst [vmem:[#allocation148_spill] sm:$0xff] %v5950_v24  ;;  %9559 = vst [vmem:[#allocation149_spill] sm:$0xff] %v5954_v53  ;;  %v5956_v55 = vld [vmem:[#allocation10 + $0x218] sm:$0xff]  ;;  %v5960_v0 = vld [vmem:[#allocation10 + $0x200] sm:$0xff] }
  0xd5   :  { %931 = vmatprep.subr.mxu0 %v5930_v52  ;;  %1002 = vmatprep.subr.mxu1 %v5932_v6  ;;  %9560 = vst [vmem:[#allocation150_spill] sm:$0xff] %v5956_v55  ;;  %9561 = vst [vmem:[#allocation151_spill] sm:$0xff] %v5960_v0  ;;  %v5962_v52 = vld [vmem:[#allocation10 + $0x210] sm:$0xff] }
  0xd6   :  { %932 = vmatpush2.msra.mxu0 %v5936_v54  ;;  %1003 = vmatpush2.msra.mxu1 %v5938_v15  ;;  %9562 = vst [vmem:[#allocation152_spill] sm:$0xff] %v5962_v52 }
  0xd7   :  { %933 = vmatprep.subr.mxu0 %v5942_v60  ;;  %1004 = vmatprep.subr.mxu1 %v5944_v51  ;;  %v179_v51 = vlaneseq }
  0xd8   :  { %934 = vmatpush2.msra.mxu0 %v5948_v33  ;;  %1005 = vmatpush2.msra.mxu1 %v5950_v24 }
  0xd9   :  { %935 = vmatprep.subr.mxu0 %v5954_v53  ;;  %1006 = vmatprep.subr.mxu1 %v5956_v55  ;;  %v5972_v60 = vshrl.u32 %v179_v51, 7 }
  0xda   :  { %936 = vmatpush2.msra.mxu0 %v5960_v0  ;;  %1007 = vmatpush2.msra.mxu1 %v5962_v52  ;;  %v177_v52 = vld [vmem:[%s8867_s3] sm:$0xf] }
  0xdb   :  { %1047 = vmatprep.subr.mxu0 %v5412_v34  ;;  %1118 = vmatprep.subr.mxu1 %v5414_v35  ;;  %9563 = vst [vmem:[#allocation153_spill] sm:$0xff] %v5972_v60  ;;  %v5979_v24 = vsub.s32 0, %v5972_v60  ;;  %v9009_v55 = vsub.s32 2, %v5972_v60  ;;  %v5990_v35 = vsub.s32 1, %v5972_v60  ;;  %v9015_v51 = vsub.s32 3, %v5972_v60 }
  0xdd   :  { %9564 = vst [vmem:[#allocation154_spill] sm:$0xff] %v5979_v24  ;;  %9565 = vst [vmem:[#allocation155_spill] sm:$0xff] %v5990_v35  ;;  %v182_v53 = vrot.slane %v177_v52, %v5979_v24  ;;  %v5996_v54 = vrot.slane %v177_v52, %v9009_v55  ;;  %v186_v49 = vrot.slane %v177_v52, %v5990_v35 }
  0xde   :  { %v6001_v48 = vrot.slane %v177_v52, %v9015_v51 }
 0x129   :  { %v5974_v15 = vpop.f32.mrf.mxu0  ;;  %v5976_v33 = vpop.f32.mrf.mxu1 }
 0x12b   :  { %v5985_v0 = vpop.f32.mrf.mxu0  ;;  %v5987_v34 = vpop.f32.mrf.mxu1 }
 0x12f   :  { %v296_v6 = vpop.f32.mrf.mxu0  ;;  %v409_v50 = vpop.f32.mrf.mxu1 }
 0x130   :  { %v6003_v47 = vadd.f32 %v296_v6, %v182_v53  ;;  %v6006_v46 = vadd.f32 %v409_v50, %v5996_v54 }
 0x131   :  { %v298_v45 = vpop.f32.mrf.mxu0  ;;  %v411_v44 = vpop.f32.mrf.mxu1 }
 0x132   :  { %9566 = vst [vmem:[#allocation156_spill] sm:$0xff] %v6003_v47  ;;  %9567 = vst [vmem:[#allocation157_spill] sm:$0xff] %v6006_v46  ;;  %v6008_v24 = vadd.f32 %v298_v45, %v186_v49  ;;  %v6011_v55 = vadd.f32 %v411_v44, %v6001_v48 }
 0x134   :  { %9568 = vst [vmem:[#allocation158_spill] sm:$0xff] %v6008_v24  ;;  %9569 = vst [vmem:[#allocation159_spill] sm:$0xff] %v6011_v55 }
 0x135   :  { %v302_v43 = vpop.f32.mrf.mxu0  ;;  %v415_v42 = vpop.f32.mrf.mxu1 }
 0x136   :  { %v6013_v41 = vadd.f32 %v302_v43, %v182_v53  ;;  %v6016_v60 = vadd.f32 %v415_v42, %v5996_v54 }
 0x137   :  { %v304_v52 = vpop.f32.mrf.mxu0  ;;  %v417_v6 = vpop.f32.mrf.mxu1 }
 0x138   :  { %9570 = vst [vmem:[#allocation160_spill] sm:$0xff] %v6013_v41  ;;  %9571 = vst [vmem:[#allocation161_spill] sm:$0xff] %v6016_v60  ;;  %v6018_v51 = vadd.f32 %v304_v52, %v186_v49  ;;  %v6021_v50 = vadd.f32 %v417_v6, %v6001_v48 }
 0x13a   :  { %9572 = vst [vmem:[#allocation162_spill] sm:$0xff] %v6018_v51  ;;  %9573 = vst [vmem:[#allocation163_spill] sm:$0xff] %v6021_v50 }
 0x13b   :  { %v308_v46 = vpop.f32.mrf.mxu0  ;;  %v421_v45 = vpop.f32.mrf.mxu1 }
 0x13c   :  { %v6023_v24 = vadd.f32 %v308_v46, %v182_v53  ;;  %v6026_v44 = vadd.f32 %v421_v45, %v5996_v54 }
 0x13d   :  { %v310_v55 = vpop.f32.mrf.mxu0  ;;  %v423_v43 = vpop.f32.mrf.mxu1 }
 0x13e   :  { %9574 = vst [vmem:[#allocation164_spill] sm:$0xff] %v6023_v24  ;;  %9575 = vst [vmem:[#allocation165_spill] sm:$0xff] %v6026_v44  ;;  %v6028_v41 = vadd.f32 %v310_v55, %v186_v49  ;;  %v6031_v42 = vadd.f32 %v423_v43, %v6001_v48 }
 0x140   :  { %9576 = vst [vmem:[#allocation166_spill] sm:$0xff] %v6028_v41  ;;  %9577 = vst [vmem:[#allocation167_spill] sm:$0xff] %v6031_v42 }
 0x141   :  { %v314_v60 = vpop.f32.mrf.mxu0  ;;  %v427_v52 = vpop.f32.mrf.mxu1 }
 0x142   :  { %v6033_v51 = vadd.f32 %v314_v60, %v182_v53  ;;  %v6036_v6 = vadd.f32 %v427_v52, %v5996_v54 }
 0x143   :  { %v316_v50 = vpop.f32.mrf.mxu0  ;;  %v429_v46 = vpop.f32.mrf.mxu1 }
 0x144   :  { %9578 = vst [vmem:[#allocation168_spill] sm:$0xff] %v6033_v51  ;;  %9579 = vst [vmem:[#allocation169_spill] sm:$0xff] %v6036_v6  ;;  %v6038_v24 = vadd.f32 %v316_v50, %v186_v49  ;;  %v6041_v45 = vadd.f32 %v429_v46, %v6001_v48 }
 0x146   :  { %9580 = vst [vmem:[#allocation170_spill] sm:$0xff] %v6038_v24  ;;  %9581 = vst [vmem:[#allocation171_spill] sm:$0xff] %v6041_v45 }
 0x147   :  { %v320_v44 = vpop.f32.mrf.mxu0  ;;  %v433_v55 = vpop.f32.mrf.mxu1 }
 0x148   :  { %v6043_v41 = vadd.f32 %v320_v44, %v182_v53  ;;  %v6046_v43 = vadd.f32 %v433_v55, %v5996_v54 }
 0x149   :  { %v322_v42 = vpop.f32.mrf.mxu0  ;;  %v435_v60 = vpop.f32.mrf.mxu1 }
 0x14a   :  { %9582 = vst [vmem:[#allocation172_spill] sm:$0xff] %v6043_v41  ;;  %9583 = vst [vmem:[#allocation173_spill] sm:$0xff] %v6046_v43  ;;  %v6048_v51 = vadd.f32 %v322_v42, %v186_v49  ;;  %v6051_v52 = vadd.f32 %v435_v60, %v6001_v48 }
 0x14c   :  { %9584 = vst [vmem:[#allocation174_spill] sm:$0xff] %v6048_v51  ;;  %9585 = vst [vmem:[#allocation175_spill] sm:$0xff] %v6051_v52 }
 0x14d   :  { %v326_v6 = vpop.f32.mrf.mxu0  ;;  %v439_v50 = vpop.f32.mrf.mxu1 }
 0x14e   :  { %v6053_v24 = vadd.f32 %v326_v6, %v182_v53  ;;  %v6056_v46 = vadd.f32 %v439_v50, %v5996_v54 }
 0x14f   :  { %v328_v45 = vpop.f32.mrf.mxu0  ;;  %v441_v44 = vpop.f32.mrf.mxu1 }
 0x150   :  { %9586 = vst [vmem:[#allocation176_spill] sm:$0xff] %v6053_v24  ;;  %9587 = vst [vmem:[#allocation177_spill] sm:$0xff] %v6056_v46  ;;  %v6058_v41 = vadd.f32 %v328_v45, %v186_v49  ;;  %v6061_v55 = vadd.f32 %v441_v44, %v6001_v48  ;;  %v291_v45 = vadd.f32 %v5974_v15, %v182_v53 }
 0x151   :  { %v293_v44 = vadd.f32 %v5985_v0, %v186_v49 }
 0x152   :  { %9588 = vst [vmem:[#allocation178_spill] sm:$0xff] %v6058_v41  ;;  %9589 = vst [vmem:[#allocation179_spill] sm:$0xff] %v6061_v55 }
 0x153   :  { %v332_v43 = vpop.f32.mrf.mxu0  ;;  %v445_v42 = vpop.f32.mrf.mxu1 }
 0x154   :  { %v6063_v51 = vadd.f32 %v332_v43, %v182_v53  ;;  %v6066_v60 = vadd.f32 %v445_v42, %v5996_v54 }
 0x155   :  { %v334_v52 = vpop.f32.mrf.mxu0  ;;  %v447_v6 = vpop.f32.mrf.mxu1 }
 0x156   :  { %9590 = vst [vmem:[#allocation180_spill] sm:$0xff] %v6063_v51  ;;  %9591 = vst [vmem:[#allocation181_spill] sm:$0xff] %v6066_v60  ;;  %v6068_v24 = vadd.f32 %v334_v52, %v186_v49  ;;  %v6071_v50 = vadd.f32 %v447_v6, %v6001_v48  ;;  %v404_v52 = vadd.f32 %v5976_v33, %v5996_v54 }
 0x157   :  { %v406_v6 = vadd.f32 %v5987_v34, %v6001_v48 }
 0x158   :  { %9592 = vst [vmem:[#allocation182_spill] sm:$0xff] %v6068_v24  ;;  %9593 = vst [vmem:[#allocation183_spill] sm:$0xff] %v6071_v50 }
 0x159   :  { %v748_v46 = vpop.f32.mrf.mxu0  ;;  %v819_v42 = vpop.f32.mrf.mxu1 }
 0x15a   :  { %v824_v55 = vadd.f32 %v748_v46, %v291_v45  ;;  %v826_v60 = vadd.f32 %v819_v42, %v404_v52  ;;  %v6095_v42 = vld [vmem:[#allocation9 + $0x1d8] sm:$0xff]  ;;  %v6098_v52 = vld [vmem:[#allocation9 + $0x1c0] sm:$0xff] }
 0x15b   :  { %v750_v41 = vpop.f32.mrf.mxu0  ;;  %v821_v24 = vpop.f32.mrf.mxu1 }
 0x15c   :  { %v4116_v47 = vmul.f32 -1.442695, %v824_v55  ;;  %v825_v43 = vadd.f32 %v750_v41, %v293_v44  ;;  %v4118_v53 = vmul.f32 -1.442695, %v826_v60  ;;  %v827_v50 = vadd.f32 %v821_v24, %v406_v6  ;;  %v6086_v60 = vld [vmem:[#allocation9 + $0x1e0] sm:$0xff]  ;;  %v6101_v6 = vld [vmem:[#allocation9 + $0x1d0] sm:$0xff] }
 0x15e   :  { %4236 = vpow2.f32 %v4116_v47  ;;  %v4117_v51 = vmul.f32 -1.442695, %v825_v43  ;;  %v6092_v43 = vld [vmem:[#allocation9 + $0x1c8] sm:$0xff] }
 0x160   :  { %4238 = vpow2.f32 %v4117_v51 }
 0x161   :  { %4240 = vpow2.f32 %v4118_v53  ;;  %v6104_v53 = vld [vmem:[#allocation9 + $0x1a8] sm:$0xff] }
 0x16b   :  { %v4237_v15 = vpop.eup %4236 }
 0x16c   :  { %v837_v0 = vadd.f32 1.0, %v4237_v15  ;;  %v6107_v15 = vld [vmem:[#allocation9 + $0x1b8] sm:$0xff] }
 0x16d   :  { %v4239_v49 = vpop.eup %4238 }
 0x16e   :  { %4242 = vrcp.f32 %v837_v0  ;;  %v838_v41 = vadd.f32 1.0, %v4239_v49  ;;  %v4241_v47 = vpop.eup %4240  ;;  %v6110_v0 = vld [vmem:[#allocation9 + $0x1a0] sm:$0xff]  ;;  %v6113_v49 = vld [vmem:[#allocation9 + $0x1b0] sm:$0xff] }
 0x16f   :  { %4244 = vtanh.f32 %v827_v50  ;;  %v839_v54 = vadd.f32 1.0, %v4241_v47  ;;  %v6089_v50 = vld [vmem:[#allocation9 + $0x1f0] sm:$0xff]  ;;  %v6119_v47 = vld [vmem:[#allocation9 + $0x198] sm:$0xff] }
 0x170   :  { %4246 = vrcp.f32 %v838_v41  ;;  %v6116_v41 = vld [vmem:[#allocation9 + $0x188] sm:$0xff] }
 0x171   :  { %4248 = vrcp.f32 %v839_v54  ;;  %v6131_v54 = vld [vmem:[#allocation9 + $0x178] sm:$0xff] }
 0x17b   :  { %v4243_v51 = vpop.eup %4242 }
 0x17c   :  { %v4245_v46 = vpop.eup %4244 }
 0x17d   :  { %v4247_v55 = vpop.eup %4246  ;;  %v848_v45 = vmul.f32 %v4245_v46, %v4243_v51  ;;  %v6122_v51 = vld [vmem:[#allocation9 + $0x180] sm:$0xff]  ;;  %v6125_v46 = vld [vmem:[#allocation9 + $0x190] sm:$0xff] }
 0x17e   :  { %v847_v33 = vmul.f32 0.0, %v4247_v55  ;;  %v4249_v48 = vpop.eup %4248  ;;  %v6128_v55 = vld [vmem:[#allocation9 + $0x168] sm:$0xff] }
 0x180   :  { %v6079_v44 = vadd.f32 %v848_v45, %v847_v33  ;;  %v6134_v33 = vld [vmem:[#allocation9 + $0x160] sm:$0xff]  ;;  %v6137_v45 = vld [vmem:[#allocation9 + $0x170] sm:$0xff] }
 0x182   :  { %4250 = vtanh.f32 %v6079_v44 }
 0x18f   :  { %v4251_v24 = vpop.eup %4250 }
 0x190   :  { %v6082_v34 = vmul.f32 %v4251_v24, %v4249_v48  ;;  %v9635_v48 = vld [vmem:[#allocation62_spill] sm:$0xff]  ;;  %v9636_v24 = vld [vmem:[#allocation63_spill] sm:$0xff] }
 0x192   :  { %938 = vmatmul.mubr.f32.vlgmr.msra.gmra.mxu0 %v6082_v34  ;;  %1009 = vmatmul.mubr.f32.vlgmr.msra.gmra.mxu1 %v6082_v34 }
 0x193   :  { %1048 = vmatpush1.msra.mxu0 %v6086_v60  ;;  %1119 = vmatpush1.msra.mxu1 %v6089_v50 }
 0x194   :  { %1049 = vmatprep.subr.mxu0 %v6092_v43  ;;  %1120 = vmatprep.subr.mxu1 %v6095_v42 }
 0x195   :  { %1050 = vmatpush1.msra.mxu0 %v6098_v52  ;;  %1121 = vmatpush1.msra.mxu1 %v6101_v6 }
 0x196   :  { %1051 = vmatprep.subr.mxu0 %v6104_v53  ;;  %1122 = vmatprep.subr.mxu1 %v6107_v15 }
 0x197   :  { %1052 = vmatpush1.msra.mxu0 %v6110_v0  ;;  %1123 = vmatpush1.msra.mxu1 %v6113_v49 }
 0x198   :  { %1053 = vmatprep.subr.mxu0 %v6116_v41  ;;  %1124 = vmatprep.subr.mxu1 %v6119_v47 }
 0x199   :  { %1054 = vmatpush1.msra.mxu0 %v6122_v51  ;;  %1125 = vmatpush1.msra.mxu1 %v6125_v46 }
 0x19a   :  { %1055 = vmatprep.subr.mxu0 %v6128_v55  ;;  %1126 = vmatprep.subr.mxu1 %v6131_v54 }
 0x19b   :  { %1056 = vmatpush1.msra.mxu0 %v6134_v33  ;;  %1127 = vmatpush1.msra.mxu1 %v6137_v45 }
 0x19c   :  { %1057 = vmatprep.subr.mxu0 %v5428_v56  ;;  %1128 = vmatprep.subr.mxu1 %v5430_v57  ;;  %v9594_v56 = vld [vmem:[#allocation22_spill] sm:$0xff]  ;;  %v9595_v57 = vld [vmem:[#allocation23_spill] sm:$0xff] }
 0x19d   :  { %1058 = vmatpush1.msra.mxu0 %v5432_v58  ;;  %1129 = vmatpush1.msra.mxu1 %v5434_v59  ;;  %v9596_v58 = vmov 0.0   ;;  %v9597_v59 = vld [vmem:[#allocation24_spill] sm:$0xff] }
 0x19e   :  { %1059 = vmatprep.subr.mxu0 %v5440_v61  ;;  %1130 = vmatprep.subr.mxu1 %v5442_v62  ;;  %v9598_v61 = vld [vmem:[#allocation25_spill] sm:$0xff]  ;;  %v9599_v62 = vld [vmem:[#allocation26_spill] sm:$0xff] }
 0x19f   :  { %1060 = vmatpush1.msra.mxu0 %v5446_v63  ;;  %1131 = vmatpush1.msra.mxu1 %v5448_v1  ;;  %v9600_v63 = vld [vmem:[#allocation27_spill] sm:$0xff]  ;;  %v9601_v1 = vld [vmem:[#allocation28_spill] sm:$0xff] }
 0x1a0   :  { %1061 = vmatprep.subr.mxu0 %v5452_v2  ;;  %1132 = vmatprep.subr.mxu1 %v5454_v3  ;;  %v9602_v2 = vld [vmem:[#allocation29_spill] sm:$0xff]  ;;  %v9603_v3 = vld [vmem:[#allocation30_spill] sm:$0xff] }
 0x1a1   :  { %1062 = vmatpush1.msra.mxu0 %v5460_v4  ;;  %1133 = vmatpush1.msra.mxu1 %v5462_v5  ;;  %v9604_v4 = vld [vmem:[#allocation31_spill] sm:$0xff]  ;;  %v9605_v5 = vld [vmem:[#allocation32_spill] sm:$0xff] }
 0x1a2   :  { %1063 = vmatprep.subr.mxu0 %v5468_v7  ;;  %1134 = vmatprep.subr.mxu1 %v5470_v8  ;;  %v9606_v7 = vld [vmem:[#allocation33_spill] sm:$0xff]  ;;  %v9607_v8 = vld [vmem:[#allocation34_spill] sm:$0xff] }
 0x1a3   :  { %1064 = vmatpush1.msra.mxu0 %v5474_v9  ;;  %1135 = vmatpush1.msra.mxu1 %v5476_v10  ;;  %v9608_v9 = vld [vmem:[#allocation35_spill] sm:$0xff]  ;;  %v9609_v10 = vld [vmem:[#allocation36_spill] sm:$0xff] }
 0x1a4   :  { %1065 = vmatprep.subr.mxu0 %v5480_v11  ;;  %1136 = vmatprep.subr.mxu1 %v5482_v12  ;;  %v9610_v11 = vld [vmem:[#allocation37_spill] sm:$0xff]  ;;  %v9611_v12 = vld [vmem:[#allocation38_spill] sm:$0xff] }
 0x1a5   :  { %1066 = vmatpush1.msra.mxu0 %v5488_v13  ;;  %1137 = vmatpush1.msra.mxu1 %v5490_v14  ;;  %v9612_v13 = vld [vmem:[#allocation39_spill] sm:$0xff]  ;;  %v9613_v14 = vld [vmem:[#allocation40_spill] sm:$0xff] }
 0x1a6   :  { %1067 = vmatprep.subr.mxu0 %v5496_v16  ;;  %1138 = vmatprep.subr.mxu1 %v5498_v17  ;;  %v9614_v16 = vld [vmem:[#allocation41_spill] sm:$0xff]  ;;  %v9615_v17 = vld [vmem:[#allocation42_spill] sm:$0xff] }
 0x1a7   :  { %1068 = vmatpush1.msra.mxu0 %v5502_v18  ;;  %1139 = vmatpush1.msra.mxu1 %v5504_v19  ;;  %v9616_v18 = vld [vmem:[#allocation43_spill] sm:$0xff]  ;;  %v9617_v19 = vld [vmem:[#allocation44_spill] sm:$0xff] }
 0x1a8   :  { %1069 = vmatprep.subr.mxu0 %v5508_v20  ;;  %1140 = vmatprep.subr.mxu1 %v5510_v21  ;;  %v9618_v20 = vld [vmem:[#allocation45_spill] sm:$0xff]  ;;  %v9619_v21 = vld [vmem:[#allocation46_spill] sm:$0xff] }
 0x1a9   :  { %1070 = vmatpush1.msra.mxu0 %v5516_v22  ;;  %1141 = vmatpush1.msra.mxu1 %v5518_v23  ;;  %v9620_v22 = vld [vmem:[#allocation47_spill] sm:$0xff]  ;;  %v9621_v23 = vld [vmem:[#allocation48_spill] sm:$0xff] }
 0x1aa   :  { %1071 = vmatprep.subr.mxu0 %v5524_v25  ;;  %1142 = vmatprep.subr.mxu1 %v5526_v26  ;;  %v9622_v25 = vld [vmem:[#allocation49_spill] sm:$0xff]  ;;  %v9623_v26 = vld [vmem:[#allocation50_spill] sm:$0xff] }
 0x1ab   :  { %1072 = vmatpush1.msra.mxu0 %v5530_v27  ;;  %1143 = vmatpush1.msra.mxu1 %v5532_v28  ;;  %v9624_v27 = vld [vmem:[#allocation51_spill] sm:$0xff]  ;;  %v9625_v28 = vld [vmem:[#allocation52_spill] sm:$0xff] }
 0x1ac   :  { %1073 = vmatprep.subr.mxu0 %v5536_v29  ;;  %1144 = vmatprep.subr.mxu1 %v5538_v30  ;;  %v9626_v29 = vld [vmem:[#allocation53_spill] sm:$0xff]  ;;  %v9627_v30 = vld [vmem:[#allocation54_spill] sm:$0xff] }
 0x1ad   :  { %1074 = vmatpush1.msra.mxu0 %v5544_v31  ;;  %1145 = vmatpush1.msra.mxu1 %v5546_v32  ;;  %v9628_v31 = vld [vmem:[#allocation55_spill] sm:$0xff]  ;;  %v9629_v32 = vld [vmem:[#allocation56_spill] sm:$0xff] }
 0x1ae   :  { %1075 = vmatprep.subr.mxu0 %v5552_v36  ;;  %1146 = vmatprep.subr.mxu1 %v5554_v37  ;;  %v9630_v36 = vld [vmem:[#allocation57_spill] sm:$0xff]  ;;  %v9631_v37 = vld [vmem:[#allocation58_spill] sm:$0xff] }
 0x1af   :  { %1076 = vmatpush1.msra.mxu0 %v5558_v38  ;;  %1147 = vmatpush1.msra.mxu1 %v5560_v39  ;;  %v9632_v38 = vld [vmem:[#allocation59_spill] sm:$0xff]  ;;  %v9633_v39 = vld [vmem:[#allocation60_spill] sm:$0xff] }
 0x1b0   :  { %1077 = vmatprep.subr.mxu0 %v5564_v40  ;;  %1148 = vmatprep.subr.mxu1 %v9594_v56  ;;  %v9634_v40 = vld [vmem:[#allocation61_spill] sm:$0xff] }
 0x1b1   :  { %1078 = vmatpush1.msra.mxu0 %v9595_v57  ;;  %1111 = vmatprep.mubr.f32.mxu0 %v9596_v58  ;;  %v9638_v56 = vld [vmem:[#allocation65_spill] sm:$0xff]  ;;  %v9639_v57 = vld [vmem:[#allocation66_spill] sm:$0xff] }
 0x1b2   :  { %1149 = vmatpush1.msra.mxu1 %v9597_v59  ;;  %1182 = vmatprep.mubr.f32.mxu1 %v9596_v58  ;;  %v9640_v59 = vld [vmem:[#allocation67_spill] sm:$0xff] }
 0x1b3   :  { %1112 = vmatmul.mubr.f32.vlgmr.msra.gmra.mxu0 %v6082_v34  ;;  %1183 = vmatmul.mubr.f32.vlgmr.msra.gmra.mxu1 %v6082_v34  ;;  %v9637_v34 = vld [vmem:[#allocation64_spill] sm:$0xff] }
 0x1b4   :  { %1217 = vmatprep.subr.mxu0 %v9598_v61  ;;  %1288 = vmatprep.subr.mxu1 %v9599_v62  ;;  %v9641_v61 = vld [vmem:[#allocation68_spill] sm:$0xff]  ;;  %v9642_v62 = vld [vmem:[#allocation69_spill] sm:$0xff] }
 0x1b5   :  { %1218 = vmatpush1.msra.mxu0 %v9600_v63  ;;  %1289 = vmatpush1.msra.mxu1 %v9601_v1  ;;  %v9643_v63 = vld [vmem:[#allocation70_spill] sm:$0xff]  ;;  %v9644_v1 = vld [vmem:[#allocation71_spill] sm:$0xff] }
 0x1b6   :  { %1219 = vmatprep.subr.mxu0 %v9602_v2  ;;  %1290 = vmatprep.subr.mxu1 %v9603_v3  ;;  %v9645_v2 = vld [vmem:[#allocation72_spill] sm:$0xff]  ;;  %v9646_v3 = vld [vmem:[#allocation73_spill] sm:$0xff] }
 0x1b7   :  { %1220 = vmatpush1.msra.mxu0 %v9604_v4  ;;  %1291 = vmatpush1.msra.mxu1 %v9605_v5  ;;  %v9647_v4 = vld [vmem:[#allocation74_spill] sm:$0xff]  ;;  %v9648_v5 = vld [vmem:[#allocation75_spill] sm:$0xff] }
 0x1b8   :  { %1221 = vmatprep.subr.mxu0 %v9606_v7  ;;  %1292 = vmatprep.subr.mxu1 %v9607_v8  ;;  %v9649_v7 = vld [vmem:[#allocation76_spill] sm:$0xff]  ;;  %v9650_v8 = vld [vmem:[#allocation77_spill] sm:$0xff] }
 0x1b9   :  { %1222 = vmatpush1.msra.mxu0 %v9608_v9  ;;  %1293 = vmatpush1.msra.mxu1 %v9609_v10  ;;  %v9651_v9 = vld [vmem:[#allocation78_spill] sm:$0xff]  ;;  %v9652_v10 = vld [vmem:[#allocation79_spill] sm:$0xff] }
 0x1ba   :  { %1223 = vmatprep.subr.mxu0 %v9610_v11  ;;  %1294 = vmatprep.subr.mxu1 %v9611_v12  ;;  %v9653_v11 = vld [vmem:[#allocation80_spill] sm:$0xff]  ;;  %v9654_v12 = vld [vmem:[#allocation81_spill] sm:$0xff] }
 0x1bb   :  { %1224 = vmatpush1.msra.mxu0 %v9612_v13  ;;  %1295 = vmatpush1.msra.mxu1 %v9613_v14  ;;  %v9655_v13 = vld [vmem:[#allocation82_spill] sm:$0xff]  ;;  %v9656_v14 = vld [vmem:[#allocation83_spill] sm:$0xff] }
 0x1bc   :  { %1225 = vmatprep.subr.mxu0 %v9614_v16  ;;  %1296 = vmatprep.subr.mxu1 %v9615_v17  ;;  %v9657_v16 = vld [vmem:[#allocation84_spill] sm:$0xff]  ;;  %v9658_v17 = vld [vmem:[#allocation85_spill] sm:$0xff] }
 0x1bd   :  { %1226 = vmatpush1.msra.mxu0 %v9616_v18  ;;  %1297 = vmatpush1.msra.mxu1 %v9617_v19  ;;  %v9659_v18 = vld [vmem:[#allocation86_spill] sm:$0xff]  ;;  %v9660_v19 = vld [vmem:[#allocation87_spill] sm:$0xff] }
 0x1be   :  { %1227 = vmatprep.subr.mxu0 %v9618_v20  ;;  %1298 = vmatprep.subr.mxu1 %v9619_v21  ;;  %v9661_v20 = vld [vmem:[#allocation88_spill] sm:$0xff]  ;;  %v9662_v21 = vld [vmem:[#allocation89_spill] sm:$0xff] }
 0x1bf   :  { %1228 = vmatpush1.msra.mxu0 %v9620_v22  ;;  %1299 = vmatpush1.msra.mxu1 %v9621_v23  ;;  %v9663_v22 = vld [vmem:[#allocation90_spill] sm:$0xff]  ;;  %v9664_v23 = vld [vmem:[#allocation91_spill] sm:$0xff] }
 0x1c0   :  { %1229 = vmatprep.subr.mxu0 %v9622_v25  ;;  %1300 = vmatprep.subr.mxu1 %v9623_v26  ;;  %v9665_v25 = vld [vmem:[#allocation92_spill] sm:$0xff]  ;;  %v9666_v26 = vld [vmem:[#allocation93_spill] sm:$0xff] }
 0x1c1   :  { %1230 = vmatpush1.msra.mxu0 %v9624_v27  ;;  %1301 = vmatpush1.msra.mxu1 %v9625_v28  ;;  %v9667_v27 = vld [vmem:[#allocation94_spill] sm:$0xff]  ;;  %v9668_v28 = vld [vmem:[#allocation95_spill] sm:$0xff] }
 0x1c2   :  { %1231 = vmatprep.subr.mxu0 %v9626_v29  ;;  %1302 = vmatprep.subr.mxu1 %v9627_v30  ;;  %v9669_v29 = vld [vmem:[#allocation96_spill] sm:$0xff]  ;;  %v9670_v30 = vld [vmem:[#allocation97_spill] sm:$0xff] }
 0x1c3   :  { %1232 = vmatpush1.msra.mxu0 %v9628_v31  ;;  %1303 = vmatpush1.msra.mxu1 %v9629_v32  ;;  %v9671_v31 = vld [vmem:[#allocation98_spill] sm:$0xff]  ;;  %v9672_v32 = vld [vmem:[#allocation99_spill] sm:$0xff] }
 0x1c4   :  { %1233 = vmatprep.subr.mxu0 %v9630_v36  ;;  %1304 = vmatprep.subr.mxu1 %v9631_v37  ;;  %v9673_v36 = vld [vmem:[#allocation100_spill] sm:$0xff]  ;;  %v9674_v37 = vld [vmem:[#allocation101_spill] sm:$0xff] }
 0x1c5   :  { %1234 = vmatpush1.msra.mxu0 %v9632_v38  ;;  %1305 = vmatpush1.msra.mxu1 %v9633_v39  ;;  %v9675_v38 = vld [vmem:[#allocation102_spill] sm:$0xff]  ;;  %v9676_v39 = vld [vmem:[#allocation103_spill] sm:$0xff] }
 0x1c6   :  { %1235 = vmatprep.subr.mxu0 %v9634_v40  ;;  %1306 = vmatprep.subr.mxu1 %v9635_v48  ;;  %v9677_v40 = vld [vmem:[#allocation104_spill] sm:$0xff]  ;;  %v9678_v48 = vld [vmem:[#allocation105_spill] sm:$0xff] }
 0x1c7   :  { %1236 = vmatpush1.msra.mxu0 %v9636_v24  ;;  %1307 = vmatpush1.msra.mxu1 %v9637_v34  ;;  %v9679_v24 = vld [vmem:[#allocation106_spill] sm:$0xff]  ;;  %v9680_v34 = vld [vmem:[#allocation107_spill] sm:$0xff] }
 0x1c8   :  { %1237 = vmatprep.subr.mxu0 %v9638_v56  ;;  %1308 = vmatprep.subr.mxu1 %v9639_v57  ;;  %v9681_v56 = vld [vmem:[#allocation108_spill] sm:$0xff]  ;;  %v9682_v57 = vld [vmem:[#allocation109_spill] sm:$0xff] }
 0x1c9   :  { %1238 = vmatpush1.msra.mxu0 %v9640_v59  ;;  %1309 = vmatpush1.msra.mxu1 %v9641_v61  ;;  %v9683_v59 = vld [vmem:[#allocation110_spill] sm:$0xff]  ;;  %v9684_v61 = vld [vmem:[#allocation111_spill] sm:$0xff] }
 0x1ca   :  { %1239 = vmatprep.subr.mxu0 %v9642_v62  ;;  %1310 = vmatprep.subr.mxu1 %v9643_v63  ;;  %v9685_v62 = vld [vmem:[#allocation112_spill] sm:$0xff]  ;;  %v9686_v63 = vld [vmem:[#allocation113_spill] sm:$0xff] }
 0x1cb   :  { %1240 = vmatpush1.msra.mxu0 %v9644_v1  ;;  %1311 = vmatpush1.msra.mxu1 %v9645_v2  ;;  %v9687_v1 = vld [vmem:[#allocation114_spill] sm:$0xff]  ;;  %v9688_v2 = vld [vmem:[#allocation115_spill] sm:$0xff] }
 0x1cc   :  { %1241 = vmatprep.subr.mxu0 %v9646_v3  ;;  %1312 = vmatprep.subr.mxu1 %v9647_v4  ;;  %v9689_v3 = vld [vmem:[#allocation116_spill] sm:$0xff]  ;;  %v9690_v4 = vld [vmem:[#allocation117_spill] sm:$0xff] }
 0x1cd   :  { %1242 = vmatpush1.msra.mxu0 %v9648_v5  ;;  %1313 = vmatpush1.msra.mxu1 %v9649_v7  ;;  %v9691_v5 = vld [vmem:[#allocation118_spill] sm:$0xff]  ;;  %v9692_v7 = vld [vmem:[#allocation119_spill] sm:$0xff] }
 0x1ce   :  { %1243 = vmatprep.subr.mxu0 %v9650_v8  ;;  %1314 = vmatprep.subr.mxu1 %v9651_v9  ;;  %v9693_v8 = vld [vmem:[#allocation120_spill] sm:$0xff]  ;;  %v9694_v9 = vld [vmem:[#allocation121_spill] sm:$0xff] }
 0x1cf   :  { %1244 = vmatpush1.msra.mxu0 %v9652_v10  ;;  %1315 = vmatpush1.msra.mxu1 %v9653_v11  ;;  %v9695_v10 = vld [vmem:[#allocation122_spill] sm:$0xff]  ;;  %v9696_v11 = vld [vmem:[#allocation123_spill] sm:$0xff] }
 0x1d0   :  { %1245 = vmatprep.subr.mxu0 %v9654_v12  ;;  %1316 = vmatprep.subr.mxu1 %v9655_v13  ;;  %v9697_v12 = vld [vmem:[#allocation124_spill] sm:$0xff]  ;;  %v9698_v13 = vld [vmem:[#allocation125_spill] sm:$0xff] }
 0x1d1   :  { %1246 = vmatpush1.msra.mxu0 %v9656_v14  ;;  %1317 = vmatpush1.msra.mxu1 %v9657_v16  ;;  %v9699_v14 = vld [vmem:[#allocation126_spill] sm:$0xff]  ;;  %v9700_v16 = vld [vmem:[#allocation127_spill] sm:$0xff] }
 0x1d2   :  { %1247 = vmatprep.subr.mxu0 %v9658_v17  ;;  %1318 = vmatprep.subr.mxu1 %v9659_v18  ;;  %v9701_v17 = vld [vmem:[#allocation128_spill] sm:$0xff]  ;;  %v9702_v18 = vld [vmem:[#allocation129_spill] sm:$0xff] }
 0x1d3   :  { %1248 = vmatpush1.msra.mxu0 %v9660_v19  ;;  %1319 = vmatpush1.msra.mxu1 %v9661_v20  ;;  %v9703_v19 = vld [vmem:[#allocation130_spill] sm:$0xff]  ;;  %v9704_v20 = vld [vmem:[#allocation131_spill] sm:$0xff] }
 0x1d4   :  { %1249 = vmatprep.subr.mxu0 %v9662_v21  ;;  %1320 = vmatprep.subr.mxu1 %v9663_v22  ;;  %v9705_v21 = vld [vmem:[#allocation132_spill] sm:$0xff]  ;;  %v9706_v22 = vld [vmem:[#allocation133_spill] sm:$0xff] }
 0x1d5   :  { %1250 = vmatpush2.msra.mxu0 %v9664_v23  ;;  %1321 = vmatpush2.msra.mxu1 %v9665_v25  ;;  %v9707_v23 = vld [vmem:[#allocation134_spill] sm:$0xff]  ;;  %v9708_v25 = vld [vmem:[#allocation135_spill] sm:$0xff] }
 0x1d6   :  { %1251 = vmatprep.subr.mxu0 %v9666_v26  ;;  %1322 = vmatprep.subr.mxu1 %v9667_v27  ;;  %v9709_v26 = vld [vmem:[#allocation136_spill] sm:$0xff]  ;;  %v9710_v27 = vld [vmem:[#allocation137_spill] sm:$0xff] }
 0x1d7   :  { %1252 = vmatpush2.msra.mxu0 %v9668_v28  ;;  %1323 = vmatpush2.msra.mxu1 %v9669_v29  ;;  %v9711_v28 = vld [vmem:[#allocation138_spill] sm:$0xff]  ;;  %v9712_v29 = vld [vmem:[#allocation139_spill] sm:$0xff] }
 0x1d8   :  { %1253 = vmatprep.subr.mxu0 %v9670_v30  ;;  %1324 = vmatprep.subr.mxu1 %v9671_v31  ;;  %v9713_v30 = vld [vmem:[#allocation140_spill] sm:$0xff]  ;;  %v9714_v31 = vld [vmem:[#allocation141_spill] sm:$0xff] }
 0x1d9   :  { %1254 = vmatpush2.msra.mxu0 %v9672_v32  ;;  %1325 = vmatpush2.msra.mxu1 %v9673_v36  ;;  %v9715_v32 = vld [vmem:[#allocation142_spill] sm:$0xff]  ;;  %v9716_v36 = vld [vmem:[#allocation143_spill] sm:$0xff] }
 0x1da   :  { %1255 = vmatprep.subr.mxu0 %v9674_v37  ;;  %1326 = vmatprep.subr.mxu1 %v9675_v38  ;;  %v9717_v37 = vld [vmem:[#allocation144_spill] sm:$0xff]  ;;  %v9718_v38 = vld [vmem:[#allocation145_spill] sm:$0xff] }
 0x1db   :  { %1256 = vmatpush2.msra.mxu0 %v9676_v39  ;;  %1327 = vmatpush2.msra.mxu1 %v9677_v40  ;;  %v9719_v39 = vld [vmem:[#allocation146_spill] sm:$0xff]  ;;  %v9720_v40 = vld [vmem:[#allocation147_spill] sm:$0xff] }
 0x1dc   :  { %1257 = vmatprep.subr.mxu0 %v9678_v48  ;;  %1328 = vmatprep.subr.mxu1 %v9679_v24  ;;  %v9721_v48 = vld [vmem:[#allocation148_spill] sm:$0xff]  ;;  %v9722_v24 = vld [vmem:[#allocation149_spill] sm:$0xff] }
 0x1dd   :  { %1258 = vmatpush2.msra.mxu0 %v9680_v34  ;;  %1329 = vmatpush2.msra.mxu1 %v9681_v56  ;;  %v9723_v34 = vld [vmem:[#allocation150_spill] sm:$0xff]  ;;  %v9724_v56 = vld [vmem:[#allocation151_spill] sm:$0xff] }
 0x1de   :  { %1259 = vmatprep.subr.mxu0 %v9682_v57  ;;  %1330 = vmatprep.subr.mxu1 %v9683_v59  ;;  %v9725_v57 = vld [vmem:[#allocation152_spill] sm:$0xff]  ;;  %v6316_v59 = vld [vmem:[#allocation9 + $0x1e8] sm:$0xff] }
 0x1df   :  { %1260 = vmatpush2.msra.mxu0 %v9684_v61  ;;  %1331 = vmatpush2.msra.mxu1 %v9685_v62  ;;  %v6319_v61 = vld [vmem:[#allocation9 + $0x1f8] sm:$0xff]  ;;  %v674_v62 = vld [vmem:[%s8869_s5] sm:$0xf] }
 0x1e0   :  { %1261 = vmatprep.subr.mxu0 %v9686_v63  ;;  %1332 = vmatprep.subr.mxu1 %v9687_v1  ;;  %v9726_v63 = vld [vmem:[#allocation154_spill] sm:$0xff] }
 0x1e1   :  { %1262 = vmatpush2.msra.mxu0 %v9688_v2  ;;  %1333 = vmatpush2.msra.mxu1 %v9689_v3  ;;  %v6326_v1 = vrot.slane %v674_v62, %v9726_v63  ;;  %v6329_v2 = vrot.slane %v674_v62, %v5990_v35  ;;  %v6540_v35 = vld [vmem:[#allocation10 + $0x1a8] sm:$0xff]  ;;  %v6543_v63 = vld [vmem:[#allocation10 + $0x1b8] sm:$0xff] }
 0x1e2   :  { %1263 = vmatprep.subr.mxu0 %v9690_v4  ;;  %1334 = vmatprep.subr.mxu1 %v9691_v5  ;;  %9749 = vst [vmem:[#allocation37_spill] sm:$0xff] %v6540_v35  ;;  %9750 = vst [vmem:[#allocation38_spill] sm:$0xff] %v6543_v63 }
 0x1e3   :  { %1264 = vmatpush2.msra.mxu0 %v9692_v7  ;;  %1335 = vmatpush2.msra.mxu1 %v9693_v8  ;;  %9727 = vst [vmem:[#allocation22_spill] sm:$0xff] %v6326_v1  ;;  %9728 = vst [vmem:[#allocation23_spill] sm:$0xff] %v6329_v2 }
 0x1e4   :  { %1265 = vmatprep.subr.mxu0 %v9694_v9  ;;  %1336 = vmatprep.subr.mxu1 %v9695_v10  ;;  %v9729_v10 = vld [vmem:[#allocation153_spill] sm:$0xff] }
 0x1e5   :  { %1266 = vmatpush2.msra.mxu0 %v9696_v11  ;;  %1337 = vmatpush2.msra.mxu1 %v9697_v12  ;;  %v9730_v11 = vsub.s32 2, %v9729_v10 }
 0x1e6   :  { %1267 = vmatprep.subr.mxu0 %v9698_v13  ;;  %1338 = vmatprep.subr.mxu1 %v9699_v14 }
 0x1e7   :  { %1268 = vmatpush2.msra.mxu0 %v9700_v16  ;;  %1339 = vmatpush2.msra.mxu1 %v9701_v17  ;;  %v6335_v12 = vrot.slane %v674_v62, %v9730_v11  ;;  %v9732_v16 = vsub.s32 3, %v9729_v10 }
 0x1e8   :  { %1269 = vmatprep.subr.mxu0 %v9702_v18  ;;  %1340 = vmatprep.subr.mxu1 %v9703_v19 }
 0x1e9   :  { %1270 = vmatpush2.msra.mxu0 %v9704_v20  ;;  %1341 = vmatpush2.msra.mxu1 %v9705_v21  ;;  %9731 = vst [vmem:[#allocation24_spill] sm:$0xff] %v6335_v12  ;;  %v6340_v17 = vrot.slane %v674_v62, %v9732_v16  ;;  %v9736_v62 = vld [vmem:[#allocation157_spill] sm:$0xff] }
 0x1ea   :  { %1271 = vmatprep.subr.mxu0 %v9706_v22  ;;  %1342 = vmatprep.subr.mxu1 %v9707_v23 }
 0x1eb   :  { %1272 = vmatpush2.msra.mxu0 %v9708_v25  ;;  %1343 = vmatpush2.msra.mxu1 %v9709_v26  ;;  %9733 = vst [vmem:[#allocation25_spill] sm:$0xff] %v6340_v17 }
 0x1ec   :  { %1273 = vmatprep.subr.mxu0 %v9710_v27  ;;  %1344 = vmatprep.subr.mxu1 %v9711_v28 }
 0x1ed   :  { %1274 = vmatpush2.msra.mxu0 %v9712_v29  ;;  %1345 = vmatpush2.msra.mxu1 %v9713_v30  ;;  %v9734_v29 = vld [vmem:[#allocation156_spill] sm:$0xff] }
 0x1ee   :  { %1275 = vmatprep.subr.mxu0 %v9714_v31  ;;  %1346 = vmatprep.subr.mxu1 %v9715_v32 }
 0x1ef   :  { %1276 = vmatpush2.msra.mxu0 %v9716_v36  ;;  %1347 = vmatpush2.msra.mxu1 %v9717_v37 }
 0x1f0   :  { %1277 = vmatprep.subr.mxu0 %v9718_v38  ;;  %1348 = vmatprep.subr.mxu1 %v9719_v39  ;;  %v9735_v38 = vld [vmem:[#allocation158_spill] sm:$0xff] }
 0x1f1   :  { %1278 = vmatpush2.msra.mxu0 %v9720_v40  ;;  %1349 = vmatpush2.msra.mxu1 %v9721_v48 }
 0x1f2   :  { %1279 = vmatprep.subr.mxu0 %v9722_v24  ;;  %1350 = vmatprep.subr.mxu1 %v9723_v34 }
 0x1f3   :  { %1280 = vmatpush2.msra.mxu0 %v9724_v56  ;;  %1351 = vmatpush2.msra.mxu1 %v9725_v57 }
 0x1f4   :  { %1392 = vmatprep.subr.mxu0 %v6316_v59  ;;  %1463 = vmatprep.subr.mxu1 %v6319_v61 }
 0x252   :  { %v939_v3 = vpop.f32.mrf.mxu0  ;;  %v1010_v13 = vpop.f32.mrf.mxu1 }
 0x253   :  { %v940_v4 = vadd.f32 %v939_v3, %v6326_v1  ;;  %v1011_v14 = vadd.f32 %v1010_v13, %v6335_v12 }
 0x254   :  { %v941_v5 = vpop.f32.mrf.mxu0  ;;  %v1012_v18 = vpop.f32.mrf.mxu1 }
 0x255   :  { %v4119_v7 = vmul.f32 -1.442695, %v940_v4  ;;  %v942_v8 = vadd.f32 %v941_v5, %v6329_v2  ;;  %v4121_v19 = vmul.f32 -1.442695, %v1011_v14  ;;  %v1013_v21 = vadd.f32 %v1012_v18, %v6340_v17 }
 0x257   :  { %4252 = vpow2.f32 %v4119_v7  ;;  %v4120_v9 = vmul.f32 -1.442695, %v942_v8  ;;  %v9737_v7 = vld [vmem:[#allocation159_spill] sm:$0xff] }
 0x259   :  { %4254 = vpow2.f32 %v4120_v9 }
 0x25a   :  { %4256 = vpow2.f32 %v4121_v19 }
 0x264   :  { %v4253_v20 = vpop.eup %4252 }
 0x265   :  { %v1024_v22 = vadd.f32 1.0, %v4253_v20 }
 0x266   :  { %v4255_v23 = vpop.eup %4254 }
 0x267   :  { %4258 = vrcp.f32 %v1024_v22  ;;  %v1025_v25 = vadd.f32 1.0, %v4255_v23  ;;  %v4257_v26 = vpop.eup %4256 }
 0x268   :  { %4260 = vtanh.f32 %v1013_v21  ;;  %v1026_v40 = vadd.f32 1.0, %v4257_v26 }
 0x269   :  { %4262 = vrcp.f32 %v1025_v25 }
 0x273   :  { %v1113_v27 = vpop.f32.mrf.mxu0  ;;  %v1184_v57 = vpop.f32.mrf.mxu1 }
 0x274   :  { %v4259_v28 = vpop.eup %4258  ;;  %v1189_v30 = vadd.f32 %v1113_v27, %v9734_v29  ;;  %v1191_v3 = vadd.f32 %v1184_v57, %v9736_v62  ;;  %v6467_v57 = vld [vmem:[#allocation9 + $0x78] sm:$0xff]  ;;  %v6470_v62 = vld [vmem:[#allocation9 + $0x60] sm:$0xff] }
 0x275   :  { %v4261_v31 = vpop.eup %4260  ;;  %v1115_v32 = vpop.f32.mrf.mxu0 }
 0x276   :  { %v4263_v36 = vpop.eup %4262  ;;  %v4122_v37 = vmul.f32 -1.442695, %v1189_v30  ;;  %v1190_v39 = vadd.f32 %v1115_v32, %v9735_v38  ;;  %v1035_v24 = vmul.f32 %v4261_v31, %v4259_v28  ;;  %v1186_v4 = vpop.f32.mrf.mxu1  ;;  %v4124_v5 = vmul.f32 -1.442695, %v1191_v3  ;;  %v6437_v31 = vld [vmem:[#allocation9 + $0xd0] sm:$0xff]  ;;  %v6440_v32 = vld [vmem:[#allocation9 + $0xa8] sm:$0xff] }
 0x277   :  { %v1034_v48 = vmul.f32 0.0, %v4263_v36  ;;  %v1192_v8 = vadd.f32 %v1186_v4, %v9737_v7  ;;  %v6443_v36 = vld [vmem:[#allocation9 + $0xb8] sm:$0xff]  ;;  %v6449_v38 = vld [vmem:[#allocation9 + $0xb0] sm:$0xff]  ;;  %v6476_v4 = vld [vmem:[#allocation9 + $0x48] sm:$0xff] }
 0x278   :  { %4264 = vpow2.f32 %v4122_v37  ;;  %v4123_v34 = vmul.f32 -1.442695, %v1190_v39  ;;  %v6446_v37 = vld [vmem:[#allocation9 + $0xa0] sm:$0xff]  ;;  %v6452_v39 = vld [vmem:[#allocation9 + $0x88] sm:$0xff]  ;;  %v6473_v3 = vld [vmem:[#allocation9 + $0x70] sm:$0xff] }
 0x279   :  { %v6345_v56 = vadd.f32 %v1035_v24, %v1034_v48  ;;  %v6458_v48 = vld [vmem:[#allocation9 + $0x80] sm:$0xff]  ;;  %v6461_v24 = vld [vmem:[#allocation9 + $0x90] sm:$0xff] }
 0x27a   :  { %4266 = vpow2.f32 %v4123_v34  ;;  %v6464_v34 = vld [vmem:[#allocation9 + $0x68] sm:$0xff]  ;;  %v6482_v7 = vld [vmem:[#allocation9 + $0x40] sm:$0xff] }
 0x27b   :  { %4268 = vrcp.f32 %v1026_v40  ;;  %v6455_v40 = vld [vmem:[#allocation9 + $0x98] sm:$0xff] }
 0x27c   :  { %4270 = vtanh.f32 %v6345_v56 }
 0x27d   :  { %4272 = vpow2.f32 %v4124_v5  ;;  %v6479_v5 = vld [vmem:[#allocation9 + $0x58] sm:$0xff] }
 0x27e   :  { %4274 = vtanh.f32 %v1192_v8  ;;  %v6485_v8 = vld [vmem:[#allocation9 + $0x50] sm:$0xff] }
 0x285   :  { %v4265_v9 = vpop.eup %4264 }
 0x286   :  { %v1202_v10 = vadd.f32 1.0, %v4265_v9  ;;  %v6488_v9 = vld [vmem:[#allocation9 + $0x28] sm:$0xff] }
 0x287   :  { %v4267_v11 = vpop.eup %4266 }
 0x288   :  { %v4269_v13 = vpop.eup %4268  ;;  %4276 = vrcp.f32 %v1202_v10  ;;  %v1203_v14 = vadd.f32 1.0, %v4267_v11  ;;  %v6491_v10 = vld [vmem:[#allocation9 + $0x38] sm:$0xff]  ;;  %v6494_v11 = vld [vmem:[#allocation9 + $0x20] sm:$0xff] }
 0x289   :  { %v4271_v16 = vpop.eup %4270 }
 0x28a   :  { %4278 = vrcp.f32 %v1203_v14  ;;  %v6350_v18 = vmul.f32 %v4271_v16, %v4269_v13  ;;  %v4273_v19 = vpop.eup %4272  ;;  %v6497_v13 = vld [vmem:[#allocation9 + $0x30] sm:$0xff]  ;;  %v6500_v14 = vld [vmem:[#allocation9 + $0x8] sm:$0xff]  ;;  %v6503_v16 = vld [vmem:[#allocation9 + $0x18] sm:$0xff] }
 0x28b   :  { %v4275_v20 = vpop.eup %4274  ;;  %v1204_v25 = vadd.f32 1.0, %v4273_v19  ;;  %v6506_v19 = vld [vmem:[#allocation9] sm:$0xff] }
 0x28c   :  { %9738 = vst [vmem:[#allocation26_spill] sm:$0xff] %v6350_v18  ;;  %1281 = vmatprep.mubr.f32.mxu0 %v6350_v18  ;;  %1352 = vmatprep.mubr.f32.mxu1 %v6350_v18  ;;  %9739 = vst [vmem:[#allocation27_spill] sm:$0xff] %v6506_v19  ;;  %v6546_v18 = vld [vmem:[#allocation10 + $0x1a0] sm:$0xff] }
 0x28d   :  { %4280 = vrcp.f32 %v1204_v25  ;;  %v6525_v25 = vld [vmem:[#allocation10 + $0x1f0] sm:$0xff]  ;;  %9751 = vst [vmem:[#allocation39_spill] sm:$0xff] %v6546_v18 }
 0x28e   :  { %9744 = vst [vmem:[#allocation32_spill] sm:$0xff] %v6525_v25 }
 0x295   :  { %v4277_v21 = vpop.eup %4276 }
 0x296   :  { %v1213_v22 = vmul.f32 %v4277_v21, %v4275_v20  ;;  %v6510_v20 = vld [vmem:[#allocation9 + $0x10] sm:$0xff]  ;;  %v6516_v21 = vld [vmem:[#allocation10 + $0x1e8] sm:$0xff] }
 0x297   :  { %v4279_v23 = vpop.eup %4278  ;;  %9740 = vst [vmem:[#allocation28_spill] sm:$0xff] %v6510_v20  ;;  %9741 = vst [vmem:[#allocation29_spill] sm:$0xff] %v6516_v21 }
 0x298   :  { %v1212_v26 = vmul.f32 %v4279_v23, %v6079_v44  ;;  %v6380_v44 = vld [vmem:[#allocation9 + $0x148] sm:$0xff]  ;;  %v6522_v23 = vld [vmem:[#allocation10 + $0x1e0] sm:$0xff] }
 0x299   :  { %9743 = vst [vmem:[#allocation31_spill] sm:$0xff] %v6522_v23 }
 0x29a   :  { %v6355_v27 = vadd.f32 %v1213_v22, %v1212_v26  ;;  %v4281_v28 = vpop.eup %4280  ;;  %v6519_v22 = vld [vmem:[#allocation10 + $0x1f8] sm:$0xff]  ;;  %v6528_v26 = vld [vmem:[#allocation10 + $0x1c8] sm:$0xff] }
 0x29b   :  { %9742 = vst [vmem:[#allocation30_spill] sm:$0xff] %v6519_v22  ;;  %9745 = vst [vmem:[#allocation33_spill] sm:$0xff] %v6528_v26 }
 0x29c   :  { %4282 = vtanh.f32 %v6355_v27 }
 0x2a9   :  { %v4283_v29 = vpop.eup %4282 }
 0x2aa   :  { %v6358_v30 = vmul.f32 %v4283_v29, %v4281_v28  ;;  %v6531_v28 = vld [vmem:[#allocation10 + $0x1d8] sm:$0xff]  ;;  %v6534_v29 = vld [vmem:[#allocation10 + $0x1c0] sm:$0xff] }
 0x2ab   :  { %9746 = vst [vmem:[#allocation34_spill] sm:$0xff] %v6531_v28  ;;  %9747 = vst [vmem:[#allocation35_spill] sm:$0xff] %v6534_v29 }
 0x2ac   :  { %1282 = vmatmul.mubr.f32.vlgmr.msra.gmra.mxu0 %v6358_v30  ;;  %1353 = vmatmul.mubr.f32.vlgmr.msra.gmra.mxu1 %v6358_v30 }
 0x2ad   :  { %1393 = vmatpush1.msra.mxu0 %v6086_v60  ;;  %1464 = vmatpush1.msra.mxu1 %v6089_v50  ;;  %v6383_v60 = vld [vmem:[#allocation9 + $0x158] sm:$0xff]  ;;  %v6386_v50 = vld [vmem:[#allocation9 + $0x140] sm:$0xff] }
 0x2ae   :  { %1394 = vmatprep.subr.mxu0 %v6092_v43  ;;  %1465 = vmatprep.subr.mxu1 %v6095_v42  ;;  %v6389_v43 = vld [vmem:[#allocation9 + $0x150] sm:$0xff]  ;;  %v6392_v42 = vld [vmem:[#allocation9 + $0x128] sm:$0xff] }
 0x2af   :  { %1395 = vmatpush1.msra.mxu0 %v6098_v52  ;;  %1466 = vmatpush1.msra.mxu1 %v6101_v6  ;;  %v6395_v52 = vld [vmem:[#allocation9 + $0x138] sm:$0xff]  ;;  %v6398_v6 = vld [vmem:[#allocation9 + $0x120] sm:$0xff] }
 0x2b0   :  { %1396 = vmatprep.subr.mxu0 %v6104_v53  ;;  %1467 = vmatprep.subr.mxu1 %v6107_v15  ;;  %v6401_v53 = vld [vmem:[#allocation9 + $0x130] sm:$0xff]  ;;  %v6404_v15 = vld [vmem:[#allocation9 + $0x108] sm:$0xff] }
 0x2b1   :  { %1397 = vmatpush1.msra.mxu0 %v6110_v0  ;;  %1468 = vmatpush1.msra.mxu1 %v6113_v49  ;;  %v6407_v0 = vld [vmem:[#allocation9 + $0x118] sm:$0xff]  ;;  %v6410_v49 = vld [vmem:[#allocation9 + $0x100] sm:$0xff] }
 0x2b2   :  { %1398 = vmatprep.subr.mxu0 %v6116_v41  ;;  %1469 = vmatprep.subr.mxu1 %v6119_v47  ;;  %v6413_v41 = vld [vmem:[#allocation9 + $0x110] sm:$0xff]  ;;  %v6416_v47 = vld [vmem:[#allocation9 + $0xe8] sm:$0xff] }
 0x2b3   :  { %1399 = vmatpush1.msra.mxu0 %v6122_v51  ;;  %1470 = vmatpush1.msra.mxu1 %v6125_v46  ;;  %v6419_v51 = vld [vmem:[#allocation9 + $0xf8] sm:$0xff]  ;;  %v6422_v46 = vld [vmem:[#allocation9 + $0xe0] sm:$0xff] }
 0x2b4   :  { %1400 = vmatprep.subr.mxu0 %v6128_v55  ;;  %1471 = vmatprep.subr.mxu1 %v6131_v54  ;;  %v6425_v55 = vld [vmem:[#allocation9 + $0xf0] sm:$0xff]  ;;  %v6428_v54 = vld [vmem:[#allocation9 + $0xc8] sm:$0xff] }
 0x2b5   :  { %1401 = vmatpush1.msra.mxu0 %v6134_v33  ;;  %1472 = vmatpush1.msra.mxu1 %v6137_v45  ;;  %v6431_v33 = vld [vmem:[#allocation9 + $0xd8] sm:$0xff]  ;;  %v6434_v45 = vld [vmem:[#allocation9 + $0xc0] sm:$0xff] }
 0x2b6   :  { %1402 = vmatprep.subr.mxu0 %v6380_v44  ;;  %1473 = vmatprep.subr.mxu1 %v6383_v60 }
 0x2b7   :  { %1403 = vmatpush1.msra.mxu0 %v6386_v50  ;;  %1474 = vmatpush1.msra.mxu1 %v6389_v43 }
 0x2b8   :  { %1404 = vmatprep.subr.mxu0 %v6392_v42  ;;  %1475 = vmatprep.subr.mxu1 %v6395_v52 }
 0x2b9   :  { %1405 = vmatpush1.msra.mxu0 %v6398_v6  ;;  %1476 = vmatpush1.msra.mxu1 %v6401_v53 }
 0x2ba   :  { %1406 = vmatprep.subr.mxu0 %v6404_v15  ;;  %1477 = vmatprep.subr.mxu1 %v6407_v0 }
 0x2bb   :  { %1407 = vmatpush1.msra.mxu0 %v6410_v49  ;;  %1478 = vmatpush1.msra.mxu1 %v6413_v41 }
 0x2bc   :  { %1408 = vmatprep.subr.mxu0 %v6416_v47  ;;  %1479 = vmatprep.subr.mxu1 %v6419_v51 }
 0x2bd   :  { %1409 = vmatpush1.msra.mxu0 %v6422_v46  ;;  %1480 = vmatpush1.msra.mxu1 %v6425_v55 }
 0x2be   :  { %1410 = vmatprep.subr.mxu0 %v6428_v54  ;;  %1481 = vmatprep.subr.mxu1 %v6431_v33 }
 0x2bf   :  { %1411 = vmatpush1.msra.mxu0 %v6434_v45  ;;  %1482 = vmatpush1.msra.mxu1 %v6437_v31 }
 0x2c0   :  { %1412 = vmatprep.subr.mxu0 %v6440_v32  ;;  %1483 = vmatprep.subr.mxu1 %v6443_v36 }
 0x2c1   :  { %1413 = vmatpush1.msra.mxu0 %v6446_v37  ;;  %1484 = vmatpush1.msra.mxu1 %v6449_v38 }
 0x2c2   :  { %1414 = vmatprep.subr.mxu0 %v6452_v39  ;;  %1485 = vmatprep.subr.mxu1 %v6455_v40 }
 0x2c3   :  { %1415 = vmatpush1.msra.mxu0 %v6458_v48  ;;  %1486 = vmatpush1.msra.mxu1 %v6461_v24 }
 0x2c4   :  { %1416 = vmatprep.subr.mxu0 %v6464_v34  ;;  %1487 = vmatprep.subr.mxu1 %v6467_v57 }
 0x2c5   :  { %1417 = vmatpush1.msra.mxu0 %v6470_v62  ;;  %1488 = vmatpush1.msra.mxu1 %v6473_v3 }
 0x2c6   :  { %1418 = vmatprep.subr.mxu0 %v6476_v4  ;;  %1489 = vmatprep.subr.mxu1 %v6479_v5 }
 0x2c7   :  { %1419 = vmatpush1.msra.mxu0 %v6482_v7  ;;  %1490 = vmatpush1.msra.mxu1 %v6485_v8 }
 0x2c8   :  { %1420 = vmatprep.subr.mxu0 %v6488_v9  ;;  %1491 = vmatprep.subr.mxu1 %v6491_v10 }
 0x2c9   :  { %1421 = vmatpush1.msra.mxu0 %v6494_v11  ;;  %1492 = vmatpush1.msra.mxu1 %v6497_v13 }
 0x2ca   :  { %1422 = vmatprep.subr.mxu0 %v6500_v14  ;;  %1493 = vmatprep.subr.mxu1 %v6503_v16 }
 0x2cb   :  { %1423 = vmatpush1.msra.mxu0 %v6506_v19  ;;  %1456 = vmatprep.mubr.f32.mxu0 %v9596_v58 }
 0x2cc   :  { %1494 = vmatpush1.msra.mxu1 %v6510_v20  ;;  %1527 = vmatprep.mubr.f32.mxu1 %v9596_v58 }
 0x2cd   :  { %1457 = vmatmul.mubr.f32.vlgmr.msra.gmra.mxu0 %v6358_v30  ;;  %1528 = vmatmul.mubr.f32.vlgmr.msra.gmra.mxu1 %v6358_v30  ;;  %v6537_v30 = vld [vmem:[#allocation10 + $0x1d0] sm:$0xff] }
 0x2ce   :  { %1562 = vmatprep.subr.mxu0 %v6516_v21  ;;  %1633 = vmatprep.subr.mxu1 %v6519_v22  ;;  %9748 = vst [vmem:[#allocation36_spill] sm:$0xff] %v6537_v30 }
 0x2cf   :  { %1563 = vmatpush1.msra.mxu0 %v6522_v23  ;;  %1634 = vmatpush1.msra.mxu1 %v6525_v25 }
 0x2d0   :  { %1564 = vmatprep.subr.mxu0 %v6528_v26  ;;  %1635 = vmatprep.subr.mxu1 %v6531_v28  ;;  %v6549_v28 = vld [vmem:[#allocation10 + $0x1b0] sm:$0xff] }
 0x2d1   :  { %1565 = vmatpush1.msra.mxu0 %v6534_v29  ;;  %1636 = vmatpush1.msra.mxu1 %v6537_v30  ;;  %9752 = vst [vmem:[#allocation40_spill] sm:$0xff] %v6549_v28  ;;  %v6552_v29 = vld [vmem:[#allocation10 + $0x188] sm:$0xff]  ;;  %v6555_v30 = vld [vmem:[#allocation10 + $0x198] sm:$0xff] }
 0x2d2   :  { %1566 = vmatprep.subr.mxu0 %v6540_v35  ;;  %1637 = vmatprep.subr.mxu1 %v6543_v63  ;;  %9753 = vst [vmem:[#allocation41_spill] sm:$0xff] %v6552_v29  ;;  %9754 = vst [vmem:[#allocation42_spill] sm:$0xff] %v6555_v30  ;;  %v6558_v35 = vld [vmem:[#allocation10 + $0x180] sm:$0xff]  ;;  %v6561_v63 = vld [vmem:[#allocation10 + $0x190] sm:$0xff] }
 0x2d3   :  { %1567 = vmatpush1.msra.mxu0 %v6546_v18  ;;  %1638 = vmatpush1.msra.mxu1 %v6549_v28  ;;  %9755 = vst [vmem:[#allocation43_spill] sm:$0xff] %v6558_v35  ;;  %9756 = vst [vmem:[#allocation44_spill] sm:$0xff] %v6561_v63  ;;  %v6564_v18 = vld [vmem:[#allocation10 + $0x168] sm:$0xff]  ;;  %v6567_v28 = vld [vmem:[#allocation10 + $0x178] sm:$0xff] }
 0x2d4   :  { %1568 = vmatprep.subr.mxu0 %v6552_v29  ;;  %1639 = vmatprep.subr.mxu1 %v6555_v30  ;;  %9757 = vst [vmem:[#allocation45_spill] sm:$0xff] %v6564_v18  ;;  %9758 = vst [vmem:[#allocation46_spill] sm:$0xff] %v6567_v28  ;;  %v6570_v29 = vld [vmem:[#allocation10 + $0x160] sm:$0xff]  ;;  %v6573_v30 = vld [vmem:[#allocation10 + $0x170] sm:$0xff] }
 0x2d5   :  { %1569 = vmatpush1.msra.mxu0 %v6558_v35  ;;  %1640 = vmatpush1.msra.mxu1 %v6561_v63  ;;  %9759 = vst [vmem:[#allocation47_spill] sm:$0xff] %v6570_v29  ;;  %9760 = vst [vmem:[#allocation48_spill] sm:$0xff] %v6573_v30  ;;  %v6576_v35 = vld [vmem:[#allocation10 + $0x148] sm:$0xff]  ;;  %v6579_v63 = vld [vmem:[#allocation10 + $0x158] sm:$0xff] }
 0x2d6   :  { %1570 = vmatprep.subr.mxu0 %v6564_v18  ;;  %1641 = vmatprep.subr.mxu1 %v6567_v28  ;;  %9761 = vst [vmem:[#allocation49_spill] sm:$0xff] %v6576_v35  ;;  %9762 = vst [vmem:[#allocation50_spill] sm:$0xff] %v6579_v63  ;;  %v6582_v18 = vld [vmem:[#allocation10 + $0x140] sm:$0xff]  ;;  %v6585_v28 = vld [vmem:[#allocation10 + $0x150] sm:$0xff] }
 0x2d7   :  { %1571 = vmatpush1.msra.mxu0 %v6570_v29  ;;  %1642 = vmatpush1.msra.mxu1 %v6573_v30  ;;  %9763 = vst [vmem:[#allocation51_spill] sm:$0xff] %v6582_v18  ;;  %9764 = vst [vmem:[#allocation52_spill] sm:$0xff] %v6585_v28  ;;  %v6588_v29 = vld [vmem:[#allocation10 + $0x128] sm:$0xff]  ;;  %v6591_v30 = vld [vmem:[#allocation10 + $0x138] sm:$0xff] }
 0x2d8   :  { %1572 = vmatprep.subr.mxu0 %v6576_v35  ;;  %1643 = vmatprep.subr.mxu1 %v6579_v63  ;;  %9765 = vst [vmem:[#allocation53_spill] sm:$0xff] %v6588_v29  ;;  %9766 = vst [vmem:[#allocation54_spill] sm:$0xff] %v6591_v30  ;;  %v6594_v35 = vld [vmem:[#allocation10 + $0x120] sm:$0xff]  ;;  %v6597_v63 = vld [vmem:[#allocation10 + $0x130] sm:$0xff] }
 0x2d9   :  { %1573 = vmatpush1.msra.mxu0 %v6582_v18  ;;  %1644 = vmatpush1.msra.mxu1 %v6585_v28  ;;  %9767 = vst [vmem:[#allocation55_spill] sm:$0xff] %v6594_v35  ;;  %9768 = vst [vmem:[#allocation56_spill] sm:$0xff] %v6597_v63  ;;  %v6600_v18 = vld [vmem:[#allocation10 + $0x108] sm:$0xff]  ;;  %v6603_v28 = vld [vmem:[#allocation10 + $0x118] sm:$0xff] }
 0x2da   :  { %1574 = vmatprep.subr.mxu0 %v6588_v29  ;;  %1645 = vmatprep.subr.mxu1 %v6591_v30  ;;  %9769 = vst [vmem:[#allocation57_spill] sm:$0xff] %v6600_v18  ;;  %9770 = vst [vmem:[#allocation58_spill] sm:$0xff] %v6603_v28  ;;  %v6606_v29 = vld [vmem:[#allocation10 + $0x100] sm:$0xff]  ;;  %v6609_v30 = vld [vmem:[#allocation10 + $0x110] sm:$0xff] }
 0x2db   :  { %1575 = vmatpush1.msra.mxu0 %v6594_v35  ;;  %1646 = vmatpush1.msra.mxu1 %v6597_v63  ;;  %9771 = vst [vmem:[#allocation59_spill] sm:$0xff] %v6606_v29  ;;  %9772 = vst [vmem:[#allocation60_spill] sm:$0xff] %v6609_v30  ;;  %v6612_v35 = vld [vmem:[#allocation10 + $0xe8] sm:$0xff]  ;;  %v6615_v63 = vld [vmem:[#allocation10 + $0xf8] sm:$0xff] }
 0x2dc   :  { %1576 = vmatprep.subr.mxu0 %v6600_v18  ;;  %1647 = vmatprep.subr.mxu1 %v6603_v28  ;;  %9773 = vst [vmem:[#allocation61_spill] sm:$0xff] %v6612_v35  ;;  %9774 = vst [vmem:[#allocation62_spill] sm:$0xff] %v6615_v63  ;;  %v6618_v18 = vld [vmem:[#allocation10 + $0xe0] sm:$0xff]  ;;  %v6621_v28 = vld [vmem:[#allocation10 + $0xf0] sm:$0xff] }
 0x2dd   :  { %1577 = vmatpush1.msra.mxu0 %v6606_v29  ;;  %1648 = vmatpush1.msra.mxu1 %v6609_v30  ;;  %9775 = vst [vmem:[#allocation63_spill] sm:$0xff] %v6618_v18  ;;  %9776 = vst [vmem:[#allocation64_spill] sm:$0xff] %v6621_v28  ;;  %v6624_v29 = vld [vmem:[#allocation10 + $0xc8] sm:$0xff]  ;;  %v6627_v30 = vld [vmem:[#allocation10 + $0xd8] sm:$0xff] }
 0x2de   :  { %1578 = vmatprep.subr.mxu0 %v6612_v35  ;;  %1649 = vmatprep.subr.mxu1 %v6615_v63  ;;  %9777 = vst [vmem:[#allocation65_spill] sm:$0xff] %v6624_v29  ;;  %9778 = vst [vmem:[#allocation66_spill] sm:$0xff] %v6627_v30  ;;  %v6630_v35 = vld [vmem:[#allocation10 + $0xc0] sm:$0xff]  ;;  %v6633_v63 = vld [vmem:[#allocation10 + $0xd0] sm:$0xff] }
 0x2df   :  { %1579 = vmatpush1.msra.mxu0 %v6618_v18  ;;  %1650 = vmatpush1.msra.mxu1 %v6621_v28  ;;  %9779 = vst [vmem:[#allocation67_spill] sm:$0xff] %v6630_v35  ;;  %9780 = vst [vmem:[#allocation68_spill] sm:$0xff] %v6633_v63  ;;  %v6636_v18 = vld [vmem:[#allocation10 + $0xa8] sm:$0xff]  ;;  %v6639_v28 = vld [vmem:[#allocation10 + $0xb8] sm:$0xff] }
 0x2e0   :  { %1580 = vmatprep.subr.mxu0 %v6624_v29  ;;  %1651 = vmatprep.subr.mxu1 %v6627_v30  ;;  %9781 = vst [vmem:[#allocation69_spill] sm:$0xff] %v6636_v18  ;;  %9782 = vst [vmem:[#allocation70_spill] sm:$0xff] %v6639_v28  ;;  %v6642_v29 = vld [vmem:[#allocation10 + $0xa0] sm:$0xff]  ;;  %v6645_v30 = vld [vmem:[#allocation10 + $0xb0] sm:$0xff] }
 0x2e1   :  { %1581 = vmatpush1.msra.mxu0 %v6630_v35  ;;  %1652 = vmatpush1.msra.mxu1 %v6633_v63  ;;  %9783 = vst [vmem:[#allocation71_spill] sm:$0xff] %v6642_v29  ;;  %9784 = vst [vmem:[#allocation72_spill] sm:$0xff] %v6645_v30  ;;  %v6648_v35 = vld [vmem:[#allocation10 + $0x88] sm:$0xff]  ;;  %v6651_v63 = vld [vmem:[#allocation10 + $0x98] sm:$0xff] }
 0x2e2   :  { %1582 = vmatprep.subr.mxu0 %v6636_v18  ;;  %1653 = vmatprep.subr.mxu1 %v6639_v28  ;;  %9785 = vst [vmem:[#allocation73_spill] sm:$0xff] %v6648_v35  ;;  %9786 = vst [vmem:[#allocation74_spill] sm:$0xff] %v6651_v63  ;;  %v6654_v18 = vld [vmem:[#allocation10 + $0x80] sm:$0xff]  ;;  %v6657_v28 = vld [vmem:[#allocation10 + $0x90] sm:$0xff] }
 0x2e3   :  { %1583 = vmatpush1.msra.mxu0 %v6642_v29  ;;  %1654 = vmatpush1.msra.mxu1 %v6645_v30  ;;  %9787 = vst [vmem:[#allocation75_spill] sm:$0xff] %v6654_v18  ;;  %9788 = vst [vmem:[#allocation76_spill] sm:$0xff] %v6657_v28  ;;  %v6660_v29 = vld [vmem:[#allocation10 + $0x68] sm:$0xff]  ;;  %v6663_v30 = vld [vmem:[#allocation10 + $0x78] sm:$0xff] }
 0x2e4   :  { %1584 = vmatprep.subr.mxu0 %v6648_v35  ;;  %1655 = vmatprep.subr.mxu1 %v6651_v63  ;;  %9789 = vst [vmem:[#allocation77_spill] sm:$0xff] %v6660_v29  ;;  %9790 = vst [vmem:[#allocation78_spill] sm:$0xff] %v6663_v30  ;;  %v6666_v35 = vld [vmem:[#allocation10 + $0x60] sm:$0xff]  ;;  %v6669_v63 = vld [vmem:[#allocation10 + $0x70] sm:$0xff] }
 0x2e5   :  { %1585 = vmatpush1.msra.mxu0 %v6654_v18  ;;  %1656 = vmatpush1.msra.mxu1 %v6657_v28  ;;  %9791 = vst [vmem:[#allocation79_spill] sm:$0xff] %v6666_v35  ;;  %9792 = vst [vmem:[#allocation80_spill] sm:$0xff] %v6669_v63  ;;  %v6672_v18 = vld [vmem:[#allocation10 + $0x48] sm:$0xff]  ;;  %v6675_v28 = vld [vmem:[#allocation10 + $0x58] sm:$0xff] }
 0x2e6   :  { %1586 = vmatprep.subr.mxu0 %v6660_v29  ;;  %1657 = vmatprep.subr.mxu1 %v6663_v30  ;;  %9793 = vst [vmem:[#allocation81_spill] sm:$0xff] %v6672_v18  ;;  %9794 = vst [vmem:[#allocation82_spill] sm:$0xff] %v6675_v28  ;;  %v6678_v29 = vld [vmem:[#allocation10 + $0x40] sm:$0xff]  ;;  %v6681_v30 = vld [vmem:[#allocation10 + $0x50] sm:$0xff] }
 0x2e7   :  { %1587 = vmatpush1.msra.mxu0 %v6666_v35  ;;  %1658 = vmatpush1.msra.mxu1 %v6669_v63  ;;  %9795 = vst [vmem:[#allocation83_spill] sm:$0xff] %v6678_v29  ;;  %9796 = vst [vmem:[#allocation84_spill] sm:$0xff] %v6681_v30  ;;  %v6684_v35 = vld [vmem:[#allocation10 + $0x28] sm:$0xff]  ;;  %v6687_v63 = vld [vmem:[#allocation10 + $0x38] sm:$0xff] }
 0x2e8   :  { %1588 = vmatprep.subr.mxu0 %v6672_v18  ;;  %1659 = vmatprep.subr.mxu1 %v6675_v28  ;;  %9797 = vst [vmem:[#allocation85_spill] sm:$0xff] %v6684_v35  ;;  %9798 = vst [vmem:[#allocation86_spill] sm:$0xff] %v6687_v63  ;;  %v6690_v18 = vld [vmem:[#allocation10 + $0x20] sm:$0xff]  ;;  %v6693_v28 = vld [vmem:[#allocation10 + $0x30] sm:$0xff] }
 0x2e9   :  { %1589 = vmatpush1.msra.mxu0 %v6678_v29  ;;  %1660 = vmatpush1.msra.mxu1 %v6681_v30  ;;  %9799 = vst [vmem:[#allocation87_spill] sm:$0xff] %v6690_v18  ;;  %9800 = vst [vmem:[#allocation88_spill] sm:$0xff] %v6693_v28  ;;  %v6696_v29 = vld [vmem:[#allocation10 + $0x8] sm:$0xff]  ;;  %v6699_v30 = vld [vmem:[#allocation10 + $0x18] sm:$0xff] }
 0x2ea   :  { %1590 = vmatprep.subr.mxu0 %v6684_v35  ;;  %1661 = vmatprep.subr.mxu1 %v6687_v63  ;;  %9801 = vst [vmem:[#allocation89_spill] sm:$0xff] %v6696_v29  ;;  %9802 = vst [vmem:[#allocation90_spill] sm:$0xff] %v6699_v30  ;;  %v6702_v35 = vld [vmem:[#allocation10] sm:$0xff]  ;;  %v6705_v63 = vld [vmem:[#allocation10 + $0x10] sm:$0xff] }
 0x2eb   :  { %1591 = vmatpush1.msra.mxu0 %v6690_v18  ;;  %1662 = vmatpush1.msra.mxu1 %v6693_v28  ;;  %9803 = vst [vmem:[#allocation91_spill] sm:$0xff] %v6702_v35  ;;  %9804 = vst [vmem:[#allocation92_spill] sm:$0xff] %v6705_v63  ;;  %v6708_v18 = vld [vmem:[#allocation10 + $0x3e8] sm:$0xff]  ;;  %v6711_v28 = vld [vmem:[#allocation10 + $0x3f8] sm:$0xff] }
 0x2ec   :  { %1592 = vmatprep.subr.mxu0 %v6696_v29  ;;  %1663 = vmatprep.subr.mxu1 %v6699_v30  ;;  %9805 = vst [vmem:[#allocation93_spill] sm:$0xff] %v6708_v18  ;;  %9806 = vst [vmem:[#allocation94_spill] sm:$0xff] %v6711_v28  ;;  %v6714_v29 = vld [vmem:[#allocation10 + $0x3e0] sm:$0xff]  ;;  %v6717_v30 = vld [vmem:[#allocation10 + $0x3f0] sm:$0xff] }
 0x2ed   :  { %1593 = vmatpush1.msra.mxu0 %v6702_v35  ;;  %1664 = vmatpush1.msra.mxu1 %v6705_v63  ;;  %9807 = vst [vmem:[#allocation95_spill] sm:$0xff] %v6714_v29  ;;  %9808 = vst [vmem:[#allocation96_spill] sm:$0xff] %v6717_v30  ;;  %v6720_v35 = vld [vmem:[#allocation10 + $0x3c8] sm:$0xff]  ;;  %v6723_v63 = vld [vmem:[#allocation10 + $0x3d8] sm:$0xff] }
 0x2ee   :  { %1594 = vmatprep.subr.mxu0 %v6708_v18  ;;  %1665 = vmatprep.subr.mxu1 %v6711_v28  ;;  %9809 = vst [vmem:[#allocation97_spill] sm:$0xff] %v6720_v35  ;;  %9810 = vst [vmem:[#allocation98_spill] sm:$0xff] %v6723_v63  ;;  %v6726_v18 = vld [vmem:[#allocation10 + $0x3c0] sm:$0xff]  ;;  %v6729_v28 = vld [vmem:[#allocation10 + $0x3d0] sm:$0xff] }
 0x2ef   :  { %1595 = vmatpush2.msra.mxu0 %v6714_v29  ;;  %1666 = vmatpush2.msra.mxu1 %v6717_v30  ;;  %9811 = vst [vmem:[#allocation99_spill] sm:$0xff] %v6726_v18  ;;  %9812 = vst [vmem:[#allocation100_spill] sm:$0xff] %v6729_v28  ;;  %v6732_v29 = vld [vmem:[#allocation10 + $0x3a8] sm:$0xff]  ;;  %v6735_v30 = vld [vmem:[#allocation10 + $0x3b8] sm:$0xff] }
 0x2f0   :  { %1596 = vmatprep.subr.mxu0 %v6720_v35  ;;  %1667 = vmatprep.subr.mxu1 %v6723_v63  ;;  %9813 = vst [vmem:[#allocation101_spill] sm:$0xff] %v6732_v29  ;;  %9814 = vst [vmem:[#allocation102_spill] sm:$0xff] %v6735_v30  ;;  %v6738_v35 = vld [vmem:[#allocation10 + $0x3a0] sm:$0xff]  ;;  %v6741_v63 = vld [vmem:[#allocation10 + $0x3b0] sm:$0xff] }
 0x2f1   :  { %1597 = vmatpush2.msra.mxu0 %v6726_v18  ;;  %1668 = vmatpush2.msra.mxu1 %v6729_v28  ;;  %9815 = vst [vmem:[#allocation103_spill] sm:$0xff] %v6738_v35  ;;  %9816 = vst [vmem:[#allocation104_spill] sm:$0xff] %v6741_v63  ;;  %v6744_v18 = vld [vmem:[#allocation10 + $0x388] sm:$0xff]  ;;  %v6747_v28 = vld [vmem:[#allocation10 + $0x398] sm:$0xff] }
 0x2f2   :  { %1598 = vmatprep.subr.mxu0 %v6732_v29  ;;  %1669 = vmatprep.subr.mxu1 %v6735_v30  ;;  %9817 = vst [vmem:[#allocation105_spill] sm:$0xff] %v6744_v18  ;;  %9818 = vst [vmem:[#allocation106_spill] sm:$0xff] %v6747_v28  ;;  %v6750_v29 = vld [vmem:[#allocation10 + $0x380] sm:$0xff]  ;;  %v6753_v30 = vld [vmem:[#allocation10 + $0x390] sm:$0xff] }
 0x2f3   :  { %1599 = vmatpush2.msra.mxu0 %v6738_v35  ;;  %1670 = vmatpush2.msra.mxu1 %v6741_v63  ;;  %9819 = vst [vmem:[#allocation107_spill] sm:$0xff] %v6750_v29  ;;  %9820 = vst [vmem:[#allocation108_spill] sm:$0xff] %v6753_v30  ;;  %v6756_v35 = vld [vmem:[#allocation10 + $0x368] sm:$0xff]  ;;  %v6759_v63 = vld [vmem:[#allocation10 + $0x378] sm:$0xff] }
 0x2f4   :  { %1600 = vmatprep.subr.mxu0 %v6744_v18  ;;  %1671 = vmatprep.subr.mxu1 %v6747_v28  ;;  %9821 = vst [vmem:[#allocation109_spill] sm:$0xff] %v6756_v35  ;;  %9822 = vst [vmem:[#allocation110_spill] sm:$0xff] %v6759_v63  ;;  %v6762_v18 = vld [vmem:[#allocation10 + $0x360] sm:$0xff]  ;;  %v6765_v28 = vld [vmem:[#allocation10 + $0x370] sm:$0xff] }
 0x2f5   :  { %1601 = vmatpush2.msra.mxu0 %v6750_v29  ;;  %1672 = vmatpush2.msra.mxu1 %v6753_v30  ;;  %9823 = vst [vmem:[#allocation111_spill] sm:$0xff] %v6762_v18  ;;  %9824 = vst [vmem:[#allocation112_spill] sm:$0xff] %v6765_v28  ;;  %v6768_v29 = vld [vmem:[#allocation10 + $0x348] sm:$0xff]  ;;  %v6771_v30 = vld [vmem:[#allocation10 + $0x358] sm:$0xff] }
 0x2f6   :  { %1602 = vmatprep.subr.mxu0 %v6756_v35  ;;  %1673 = vmatprep.subr.mxu1 %v6759_v63  ;;  %9825 = vst [vmem:[#allocation113_spill] sm:$0xff] %v6768_v29  ;;  %9826 = vst [vmem:[#allocation114_spill] sm:$0xff] %v6771_v30  ;;  %v6774_v35 = vld [vmem:[#allocation10 + $0x340] sm:$0xff]  ;;  %v6777_v63 = vld [vmem:[#allocation10 + $0x350] sm:$0xff] }
 0x2f7   :  { %1603 = vmatpush2.msra.mxu0 %v6762_v18  ;;  %1674 = vmatpush2.msra.mxu1 %v6765_v28  ;;  %9827 = vst [vmem:[#allocation115_spill] sm:$0xff] %v6774_v35  ;;  %9828 = vst [vmem:[#allocation116_spill] sm:$0xff] %v6777_v63  ;;  %v6780_v18 = vld [vmem:[#allocation10 + $0x328] sm:$0xff]  ;;  %v6783_v28 = vld [vmem:[#allocation10 + $0x338] sm:$0xff] }
 0x2f8   :  { %1604 = vmatprep.subr.mxu0 %v6768_v29  ;;  %1675 = vmatprep.subr.mxu1 %v6771_v30  ;;  %9829 = vst [vmem:[#allocation117_spill] sm:$0xff] %v6780_v18  ;;  %9830 = vst [vmem:[#allocation118_spill] sm:$0xff] %v6783_v28  ;;  %v6786_v29 = vld [vmem:[#allocation10 + $0x320] sm:$0xff]  ;;  %v6789_v30 = vld [vmem:[#allocation10 + $0x330] sm:$0xff] }
 0x2f9   :  { %1605 = vmatpush2.msra.mxu0 %v6774_v35  ;;  %1676 = vmatpush2.msra.mxu1 %v6777_v63  ;;  %9831 = vst [vmem:[#allocation119_spill] sm:$0xff] %v6786_v29  ;;  %9832 = vst [vmem:[#allocation120_spill] sm:$0xff] %v6789_v30  ;;  %v6792_v35 = vld [vmem:[#allocation10 + $0x308] sm:$0xff]  ;;  %v6795_v63 = vld [vmem:[#allocation10 + $0x318] sm:$0xff] }
 0x2fa   :  { %1606 = vmatprep.subr.mxu0 %v6780_v18  ;;  %1677 = vmatprep.subr.mxu1 %v6783_v28  ;;  %9833 = vst [vmem:[#allocation121_spill] sm:$0xff] %v6792_v35  ;;  %9834 = vst [vmem:[#allocation122_spill] sm:$0xff] %v6795_v63  ;;  %v6798_v18 = vld [vmem:[#allocation10 + $0x300] sm:$0xff]  ;;  %v6801_v28 = vld [vmem:[#allocation10 + $0x310] sm:$0xff] }
 0x2fb   :  { %1607 = vmatpush2.msra.mxu0 %v6786_v29  ;;  %1678 = vmatpush2.msra.mxu1 %v6789_v30  ;;  %9835 = vst [vmem:[#allocation123_spill] sm:$0xff] %v6798_v18  ;;  %9836 = vst [vmem:[#allocation124_spill] sm:$0xff] %v6801_v28  ;;  %v6804_v29 = vld [vmem:[#allocation10 + $0x2e8] sm:$0xff]  ;;  %v6807_v30 = vld [vmem:[#allocation10 + $0x2f8] sm:$0xff] }
 0x2fc   :  { %1608 = vmatprep.subr.mxu0 %v6792_v35  ;;  %1679 = vmatprep.subr.mxu1 %v6795_v63  ;;  %9837 = vst [vmem:[#allocation125_spill] sm:$0xff] %v6804_v29  ;;  %9838 = vst [vmem:[#allocation126_spill] sm:$0xff] %v6807_v30  ;;  %v6810_v35 = vld [vmem:[#allocation10 + $0x2e0] sm:$0xff]  ;;  %v6813_v63 = vld [vmem:[#allocation10 + $0x2f0] sm:$0xff] }
 0x2fd   :  { %1609 = vmatpush2.msra.mxu0 %v6798_v18  ;;  %1680 = vmatpush2.msra.mxu1 %v6801_v28  ;;  %9839 = vst [vmem:[#allocation127_spill] sm:$0xff] %v6810_v35  ;;  %9840 = vst [vmem:[#allocation128_spill] sm:$0xff] %v6813_v63  ;;  %v6816_v18 = vld [vmem:[#allocation10 + $0x2c8] sm:$0xff]  ;;  %v6819_v28 = vld [vmem:[#allocation10 + $0x2d8] sm:$0xff] }
 0x2fe   :  { %1610 = vmatprep.subr.mxu0 %v6804_v29  ;;  %1681 = vmatprep.subr.mxu1 %v6807_v30  ;;  %9841 = vst [vmem:[#allocation129_spill] sm:$0xff] %v6816_v18  ;;  %9842 = vst [vmem:[#allocation130_spill] sm:$0xff] %v6819_v28  ;;  %v6822_v29 = vld [vmem:[#allocation10 + $0x2c0] sm:$0xff]  ;;  %v6825_v30 = vld [vmem:[#allocation10 + $0x2d0] sm:$0xff] }
 0x2ff   :  { %1611 = vmatpush2.msra.mxu0 %v6810_v35  ;;  %1682 = vmatpush2.msra.mxu1 %v6813_v63  ;;  %9843 = vst [vmem:[#allocation131_spill] sm:$0xff] %v6822_v29  ;;  %9844 = vst [vmem:[#allocation132_spill] sm:$0xff] %v6825_v30  ;;  %v6828_v35 = vld [vmem:[#allocation10 + $0x2a8] sm:$0xff]  ;;  %v6831_v63 = vld [vmem:[#allocation10 + $0x2b8] sm:$0xff] }
 0x300   :  { %1612 = vmatprep.subr.mxu0 %v6816_v18  ;;  %1683 = vmatprep.subr.mxu1 %v6819_v28  ;;  %9845 = vst [vmem:[#allocation133_spill] sm:$0xff] %v6828_v35  ;;  %9846 = vst [vmem:[#allocation134_spill] sm:$0xff] %v6831_v63  ;;  %v6834_v18 = vld [vmem:[#allocation10 + $0x2a0] sm:$0xff]  ;;  %v6837_v28 = vld [vmem:[#allocation10 + $0x2b0] sm:$0xff] }
 0x301   :  { %1613 = vmatpush2.msra.mxu0 %v6822_v29  ;;  %1684 = vmatpush2.msra.mxu1 %v6825_v30  ;;  %9847 = vst [vmem:[#allocation135_spill] sm:$0xff] %v6834_v18  ;;  %9848 = vst [vmem:[#allocation136_spill] sm:$0xff] %v6837_v28  ;;  %v6840_v29 = vld [vmem:[#allocation10 + $0x288] sm:$0xff]  ;;  %v6843_v30 = vld [vmem:[#allocation10 + $0x298] sm:$0xff] }
 0x302   :  { %1614 = vmatprep.subr.mxu0 %v6828_v35  ;;  %1685 = vmatprep.subr.mxu1 %v6831_v63  ;;  %9849 = vst [vmem:[#allocation137_spill] sm:$0xff] %v6840_v29  ;;  %9850 = vst [vmem:[#allocation138_spill] sm:$0xff] %v6843_v30  ;;  %v6846_v35 = vld [vmem:[#allocation10 + $0x280] sm:$0xff]  ;;  %v6849_v63 = vld [vmem:[#allocation10 + $0x290] sm:$0xff] }
 0x303   :  { %1615 = vmatpush2.msra.mxu0 %v6834_v18  ;;  %1686 = vmatpush2.msra.mxu1 %v6837_v28  ;;  %9851 = vst [vmem:[#allocation139_spill] sm:$0xff] %v6846_v35  ;;  %9852 = vst [vmem:[#allocation140_spill] sm:$0xff] %v6849_v63  ;;  %v6852_v18 = vld [vmem:[#allocation10 + $0x268] sm:$0xff]  ;;  %v6855_v28 = vld [vmem:[#allocation10 + $0x278] sm:$0xff] }
 0x304   :  { %1616 = vmatprep.subr.mxu0 %v6840_v29  ;;  %1687 = vmatprep.subr.mxu1 %v6843_v30  ;;  %9853 = vst [vmem:[#allocation141_spill] sm:$0xff] %v6852_v18  ;;  %9854 = vst [vmem:[#allocation142_spill] sm:$0xff] %v6855_v28  ;;  %v6858_v29 = vld [vmem:[#allocation10 + $0x260] sm:$0xff]  ;;  %v6861_v30 = vld [vmem:[#allocation10 + $0x270] sm:$0xff] }
 0x305   :  { %1617 = vmatpush2.msra.mxu0 %v6846_v35  ;;  %1688 = vmatpush2.msra.mxu1 %v6849_v63  ;;  %9855 = vst [vmem:[#allocation143_spill] sm:$0xff] %v6858_v29  ;;  %9856 = vst [vmem:[#allocation144_spill] sm:$0xff] %v6861_v30  ;;  %v6864_v35 = vld [vmem:[#allocation10 + $0x248] sm:$0xff]  ;;  %v6867_v63 = vld [vmem:[#allocation10 + $0x258] sm:$0xff] }
 0x306   :  { %1618 = vmatprep.subr.mxu0 %v6852_v18  ;;  %1689 = vmatprep.subr.mxu1 %v6855_v28  ;;  %9857 = vst [vmem:[#allocation145_spill] sm:$0xff] %v6864_v35  ;;  %9858 = vst [vmem:[#allocation146_spill] sm:$0xff] %v6867_v63  ;;  %v6870_v18 = vld [vmem:[#allocation10 + $0x240] sm:$0xff]  ;;  %v6873_v28 = vld [vmem:[#allocation10 + $0x250] sm:$0xff] }
 0x307   :  { %1619 = vmatpush2.msra.mxu0 %v6858_v29  ;;  %1690 = vmatpush2.msra.mxu1 %v6861_v30  ;;  %9859 = vst [vmem:[#allocation147_spill] sm:$0xff] %v6870_v18  ;;  %9860 = vst [vmem:[#allocation148_spill] sm:$0xff] %v6873_v28  ;;  %v6876_v29 = vld [vmem:[#allocation10 + $0x228] sm:$0xff]  ;;  %v6879_v30 = vld [vmem:[#allocation10 + $0x238] sm:$0xff] }
 0x308   :  { %1620 = vmatprep.subr.mxu0 %v6864_v35  ;;  %1691 = vmatprep.subr.mxu1 %v6867_v63  ;;  %9861 = vst [vmem:[#allocation149_spill] sm:$0xff] %v6876_v29  ;;  %9862 = vst [vmem:[#allocation150_spill] sm:$0xff] %v6879_v30  ;;  %v6882_v35 = vld [vmem:[#allocation10 + $0x220] sm:$0xff]  ;;  %v6885_v63 = vld [vmem:[#allocation10 + $0x230] sm:$0xff] }
 0x309   :  { %1621 = vmatpush2.msra.mxu0 %v6870_v18  ;;  %1692 = vmatpush2.msra.mxu1 %v6873_v28  ;;  %9863 = vst [vmem:[#allocation151_spill] sm:$0xff] %v6882_v35  ;;  %9864 = vst [vmem:[#allocation152_spill] sm:$0xff] %v6885_v63  ;;  %v6888_v18 = vld [vmem:[#allocation10 + $0x208] sm:$0xff]  ;;  %v6891_v28 = vld [vmem:[#allocation10 + $0x218] sm:$0xff] }
 0x30a   :  { %1622 = vmatprep.subr.mxu0 %v6876_v29  ;;  %1693 = vmatprep.subr.mxu1 %v6879_v30  ;;  %9865 = vst [vmem:[#allocation153_spill] sm:$0xff] %v6888_v18  ;;  %9866 = vst [vmem:[#allocation156_spill] sm:$0xff] %v6891_v28  ;;  %v6894_v29 = vld [vmem:[#allocation10 + $0x200] sm:$0xff]  ;;  %v6897_v30 = vld [vmem:[#allocation10 + $0x210] sm:$0xff] }
 0x30b   :  { %1623 = vmatpush2.msra.mxu0 %v6882_v35  ;;  %1694 = vmatpush2.msra.mxu1 %v6885_v63  ;;  %9867 = vst [vmem:[#allocation158_spill] sm:$0xff] %v6894_v29  ;;  %9868 = vst [vmem:[#allocation157_spill] sm:$0xff] %v6897_v30 }
 0x30c   :  { %1624 = vmatprep.subr.mxu0 %v6888_v18  ;;  %1695 = vmatprep.subr.mxu1 %v6891_v28 }
 0x30d   :  { %1625 = vmatpush2.msra.mxu0 %v6894_v29  ;;  %1696 = vmatpush2.msra.mxu1 %v6897_v30 }
 0x30e   :  { %1737 = vmatprep.subr.mxu0 %v6316_v59  ;;  %1808 = vmatprep.subr.mxu1 %v6319_v61 }
 0x36c   :  { %v1283_v63 = vpop.f32.mrf.mxu0  ;;  %v1354_v23 = vpop.f32.mrf.mxu1 }
 0x36d   :  { %v1284_v35 = vadd.f32 %v1283_v63, %v6326_v1  ;;  %v1355_v29 = vadd.f32 %v1354_v23, %v6335_v12 }
 0x36e   :  { %v1285_v18 = vpop.f32.mrf.mxu0  ;;  %v1356_v22 = vpop.f32.mrf.mxu1 }
 0x36f   :  { %v4125_v26 = vmul.f32 -1.442695, %v1284_v35  ;;  %v1286_v25 = vadd.f32 %v1285_v18, %v6329_v2  ;;  %v4127_v21 = vmul.f32 -1.442695, %v1355_v29  ;;  %v1357_v59 = vadd.f32 %v1356_v22, %v6340_v17  ;;  %v9870_v29 = vld [vmem:[#allocation162_spill] sm:$0xff] }
 0x371   :  { %4284 = vpow2.f32 %v4125_v26  ;;  %v4126_v28 = vmul.f32 -1.442695, %v1286_v25  ;;  %v9869_v25 = vld [vmem:[#allocation160_spill] sm:$0xff] }
 0x373   :  { %4286 = vpow2.f32 %v4126_v28 }
 0x374   :  { %4288 = vpow2.f32 %v4127_v21 }
 0x37e   :  { %v4285_v30 = vpop.eup %4284 }
 0x37f   :  { %v1368_v20 = vadd.f32 1.0, %v4285_v30 }
 0x380   :  { %v4287_v61 = vpop.eup %4286 }
 0x381   :  { %4290 = vrcp.f32 %v1368_v20  ;;  %v1369_v63 = vadd.f32 1.0, %v4287_v61  ;;  %v4289_v35 = vpop.eup %4288  ;;  %v9871_v61 = vld [vmem:[#allocation161_spill] sm:$0xff] }
 0x382   :  { %4292 = vtanh.f32 %v1357_v59  ;;  %v1370_v19 = vadd.f32 1.0, %v4289_v35 }
 0x383   :  { %4294 = vrcp.f32 %v1369_v63 }
 0x38d   :  { %v1458_v18 = vpop.f32.mrf.mxu0  ;;  %v1529_v59 = vpop.f32.mrf.mxu1 }
 0x38e   :  { %v4291_v26 = vpop.eup %4290  ;;  %v1534_v28 = vadd.f32 %v1458_v18, %v9869_v25  ;;  %v1536_v63 = vadd.f32 %v1529_v59, %v9871_v61 }
 0x38f   :  { %v4293_v2 = vpop.eup %4292  ;;  %v1460_v1 = vpop.f32.mrf.mxu0 }
 0x390   :  { %v4295_v23 = vpop.eup %4294  ;;  %v4128_v12 = vmul.f32 -1.442695, %v1534_v28  ;;  %v1535_v58 = vadd.f32 %v1460_v1, %v9870_v29  ;;  %v1379_v30 = vmul.f32 %v4293_v2, %v4291_v26  ;;  %v1531_v18 = vpop.f32.mrf.mxu1  ;;  %v4130_v25 = vmul.f32 -1.442695, %v1536_v63  ;;  %v9872_v28 = vld [vmem:[#allocation163_spill] sm:$0xff] }
 0x391   :  { %v1378_v22 = vmul.f32 %v4295_v23, %v6345_v56  ;;  %v1537_v17 = vadd.f32 %v1531_v18, %v9872_v28  ;;  %v6929_v28 = vld [vmem:[#allocation9 + $0x1f0] sm:$0xff] }
 0x392   :  { %4296 = vpow2.f32 %v4128_v12  ;;  %v4129_v20 = vmul.f32 -1.442695, %v1535_v58 }
 0x393   :  { %v6909_v21 = vadd.f32 %v1379_v30, %v1378_v22 }
 0x394   :  { %4298 = vpow2.f32 %v4129_v20 }
 0x395   :  { %4300 = vrcp.f32 %v1370_v19 }
 0x396   :  { %4302 = vtanh.f32 %v6909_v21 }
 0x397   :  { %4304 = vpow2.f32 %v4130_v25  ;;  %v6926_v25 = vld [vmem:[#allocation9 + $0x1e0] sm:$0xff] }
 0x398   :  { %4306 = vtanh.f32 %v1537_v17 }
 0x39f   :  { %v4297_v1 = vpop.eup %4296 }
 0x3a0   :  { %v1547_v35 = vadd.f32 1.0, %v4297_v1  ;;  %v6935_v1 = vld [vmem:[#allocation9 + $0x1d8] sm:$0xff] }
 0x3a1   :  { %v4299_v56 = vpop.eup %4298 }
 0x3a2   :  { %v4301_v2 = vpop.eup %4300  ;;  %4308 = vrcp.f32 %v1547_v35  ;;  %v1548_v58 = vadd.f32 1.0, %v4299_v56  ;;  %v6938_v35 = vld [vmem:[#allocation9 + $0x1c0] sm:$0xff]  ;;  %v6941_v56 = vld [vmem:[#allocation9 + $0x1d0] sm:$0xff] }
 0x3a3   :  { %v4303_v12 = vpop.eup %4302 }
 0x3a4   :  { %4310 = vrcp.f32 %v1548_v58  ;;  %v6914_v19 = vmul.f32 %v4303_v12, %v4301_v2  ;;  %v4305_v26 = vpop.eup %4304  ;;  %v6944_v2 = vld [vmem:[#allocation9 + $0x1a8] sm:$0xff]  ;;  %v6947_v58 = vld [vmem:[#allocation9 + $0x1b8] sm:$0xff]  ;;  %v6950_v12 = vld [vmem:[#allocation9 + $0x1a0] sm:$0xff] }
 0x3a5   :  { %v4307_v23 = vpop.eup %4306  ;;  %v1549_v20 = vadd.f32 1.0, %v4305_v26  ;;  %v6953_v26 = vld [vmem:[#allocation9 + $0x1b0] sm:$0xff] }
 0x3a6   :  { %9873 = vst [vmem:[#allocation159_spill] sm:$0xff] %v6914_v19  ;;  %1626 = vmatprep.mubr.f32.mxu0 %v6914_v19  ;;  %1697 = vmatprep.mubr.f32.mxu1 %v6914_v19  ;;  %v7370_v19 = vld [vmem:[#allocation10 + $0x1a0] sm:$0xff] }
 0x3a7   :  { %4312 = vrcp.f32 %v1549_v20  ;;  %v6968_v20 = vld [vmem:[#allocation9 + $0x168] sm:$0xff] }
 0x3af   :  { %v4309_v29 = vpop.eup %4308 }
 0x3b0   :  { %v1558_v22 = vmul.f32 %v4309_v29, %v4307_v23  ;;  %v6956_v23 = vld [vmem:[#allocation9 + $0x188] sm:$0xff]  ;;  %v6959_v29 = vld [vmem:[#allocation9 + $0x198] sm:$0xff] }
 0x3b1   :  { %v4311_v30 = vpop.eup %4310 }
 0x3b2   :  { %v1557_v59 = vmul.f32 %v4311_v30, %v6355_v27  ;;  %v6932_v27 = vld [vmem:[#allocation9 + $0x1c8] sm:$0xff]  ;;  %v6965_v30 = vld [vmem:[#allocation9 + $0x190] sm:$0xff] }
 0x3b4   :  { %v6919_v17 = vadd.f32 %v1558_v22, %v1557_v59  ;;  %v4313_v61 = vpop.eup %4312  ;;  %v6962_v22 = vld [vmem:[#allocation9 + $0x180] sm:$0xff]  ;;  %v6971_v59 = vld [vmem:[#allocation9 + $0x178] sm:$0xff] }
 0x3b6   :  { %4314 = vtanh.f32 %v6919_v17 }
 0x3c3   :  { %v4315_v63 = vpop.eup %4314 }
 0x3c4   :  { %v6922_v18 = vmul.f32 %v4315_v63, %v4313_v61  ;;  %v6974_v61 = vld [vmem:[#allocation9 + $0x160] sm:$0xff]  ;;  %v6977_v63 = vld [vmem:[#allocation9 + $0x170] sm:$0xff] }
 0x3c6   :  { %1627 = vmatmul.mubr.f32.vlgmr.msra.gmra.mxu0 %v6922_v18  ;;  %1698 = vmatmul.mubr.f32.vlgmr.msra.gmra.mxu1 %v6922_v18 }
 0x3c7   :  { %1738 = vmatpush1.msra.mxu0 %v6926_v25  ;;  %1809 = vmatpush1.msra.mxu1 %v6929_v28 }
 0x3c8   :  { %1739 = vmatprep.subr.mxu0 %v6932_v27  ;;  %1810 = vmatprep.subr.mxu1 %v6935_v1 }
 0x3c9   :  { %1740 = vmatpush1.msra.mxu0 %v6938_v35  ;;  %1811 = vmatpush1.msra.mxu1 %v6941_v56 }
 0x3ca   :  { %1741 = vmatprep.subr.mxu0 %v6944_v2  ;;  %1812 = vmatprep.subr.mxu1 %v6947_v58 }
 0x3cb   :  { %1742 = vmatpush1.msra.mxu0 %v6950_v12  ;;  %1813 = vmatpush1.msra.mxu1 %v6953_v26 }
 0x3cc   :  { %1743 = vmatprep.subr.mxu0 %v6956_v23  ;;  %1814 = vmatprep.subr.mxu1 %v6959_v29 }
 0x3cd   :  { %1744 = vmatpush1.msra.mxu0 %v6962_v22  ;;  %1815 = vmatpush1.msra.mxu1 %v6965_v30 }
 0x3ce   :  { %1745 = vmatprep.subr.mxu0 %v6968_v20  ;;  %1816 = vmatprep.subr.mxu1 %v6971_v59 }
 0x3cf   :  { %1746 = vmatpush1.msra.mxu0 %v6974_v61  ;;  %1817 = vmatpush1.msra.mxu1 %v6977_v63 }
 0x3d0   :  { %1747 = vmatprep.subr.mxu0 %v6380_v44  ;;  %1818 = vmatprep.subr.mxu1 %v6383_v60  ;;  %v9874_v44 = vld [vmem:[#allocation27_spill] sm:$0xff]  ;;  %v9875_v60 = vmov 0.0  }
 0x3d1   :  { %1748 = vmatpush1.msra.mxu0 %v6386_v50  ;;  %1819 = vmatpush1.msra.mxu1 %v6389_v43  ;;  %v9876_v50 = vld [vmem:[#allocation28_spill] sm:$0xff]  ;;  %v9877_v43 = vld [vmem:[#allocation29_spill] sm:$0xff] }
 0x3d2   :  { %1749 = vmatprep.subr.mxu0 %v6392_v42  ;;  %1820 = vmatprep.subr.mxu1 %v6395_v52  ;;  %v9878_v42 = vld [vmem:[#allocation30_spill] sm:$0xff]  ;;  %v9879_v52 = vld [vmem:[#allocation31_spill] sm:$0xff] }
 0x3d3   :  { %1750 = vmatpush1.msra.mxu0 %v6398_v6  ;;  %1821 = vmatpush1.msra.mxu1 %v6401_v53  ;;  %v9880_v6 = vld [vmem:[#allocation32_spill] sm:$0xff]  ;;  %v9881_v53 = vld [vmem:[#allocation33_spill] sm:$0xff] }
 0x3d4   :  { %1751 = vmatprep.subr.mxu0 %v6404_v15  ;;  %1822 = vmatprep.subr.mxu1 %v6407_v0  ;;  %v9882_v15 = vld [vmem:[#allocation34_spill] sm:$0xff]  ;;  %v9883_v0 = vld [vmem:[#allocation35_spill] sm:$0xff] }
 0x3d5   :  { %1752 = vmatpush1.msra.mxu0 %v6410_v49  ;;  %1823 = vmatpush1.msra.mxu1 %v6413_v41  ;;  %v9884_v49 = vld [vmem:[#allocation36_spill] sm:$0xff]  ;;  %v9885_v41 = vld [vmem:[#allocation37_spill] sm:$0xff] }
 0x3d6   :  { %1753 = vmatprep.subr.mxu0 %v6416_v47  ;;  %1824 = vmatprep.subr.mxu1 %v6419_v51  ;;  %v9886_v47 = vld [vmem:[#allocation38_spill] sm:$0xff]  ;;  %v9887_v51 = vld [vmem:[#allocation39_spill] sm:$0xff]  ;;  %10026 = vst [vmem:[#allocation36_spill] sm:$0xff] %v7370_v19 }
 0x3d7   :  { %1754 = vmatpush1.msra.mxu0 %v6422_v46  ;;  %1825 = vmatpush1.msra.mxu1 %v6425_v55  ;;  %v9888_v46 = vld [vmem:[#allocation40_spill] sm:$0xff]  ;;  %v9889_v55 = vld [vmem:[#allocation41_spill] sm:$0xff] }
 0x3d8   :  { %1755 = vmatprep.subr.mxu0 %v6428_v54  ;;  %1826 = vmatprep.subr.mxu1 %v6431_v33  ;;  %v9890_v54 = vld [vmem:[#allocation42_spill] sm:$0xff]  ;;  %v9891_v33 = vld [vmem:[#allocation43_spill] sm:$0xff] }
 0x3d9   :  { %1756 = vmatpush1.msra.mxu0 %v6434_v45  ;;  %1827 = vmatpush1.msra.mxu1 %v6437_v31  ;;  %v9892_v45 = vld [vmem:[#allocation44_spill] sm:$0xff]  ;;  %v9893_v31 = vld [vmem:[#allocation45_spill] sm:$0xff] }
 0x3da   :  { %1757 = vmatprep.subr.mxu0 %v6440_v32  ;;  %1828 = vmatprep.subr.mxu1 %v6443_v36  ;;  %v9894_v32 = vld [vmem:[#allocation46_spill] sm:$0xff]  ;;  %v9895_v36 = vld [vmem:[#allocation47_spill] sm:$0xff] }
 0x3db   :  { %1758 = vmatpush1.msra.mxu0 %v6446_v37  ;;  %1829 = vmatpush1.msra.mxu1 %v6449_v38  ;;  %v9896_v37 = vld [vmem:[#allocation48_spill] sm:$0xff]  ;;  %v9897_v38 = vld [vmem:[#allocation49_spill] sm:$0xff] }
 0x3dc   :  { %1759 = vmatprep.subr.mxu0 %v6452_v39  ;;  %1830 = vmatprep.subr.mxu1 %v6455_v40  ;;  %v9898_v39 = vld [vmem:[#allocation50_spill] sm:$0xff]  ;;  %v9899_v40 = vld [vmem:[#allocation51_spill] sm:$0xff] }
 0x3dd   :  { %1760 = vmatpush1.msra.mxu0 %v6458_v48  ;;  %1831 = vmatpush1.msra.mxu1 %v6461_v24  ;;  %v9900_v48 = vld [vmem:[#allocation52_spill] sm:$0xff]  ;;  %v9901_v24 = vld [vmem:[#allocation53_spill] sm:$0xff] }
 0x3de   :  { %1761 = vmatprep.subr.mxu0 %v6464_v34  ;;  %1832 = vmatprep.subr.mxu1 %v6467_v57  ;;  %v9902_v34 = vld [vmem:[#allocation54_spill] sm:$0xff]  ;;  %v9903_v57 = vld [vmem:[#allocation55_spill] sm:$0xff] }
 0x3df   :  { %1762 = vmatpush1.msra.mxu0 %v6470_v62  ;;  %1833 = vmatpush1.msra.mxu1 %v6473_v3  ;;  %v9904_v62 = vld [vmem:[#allocation56_spill] sm:$0xff]  ;;  %v9905_v3 = vld [vmem:[#allocation57_spill] sm:$0xff] }
 0x3e0   :  { %1763 = vmatprep.subr.mxu0 %v6476_v4  ;;  %1834 = vmatprep.subr.mxu1 %v6479_v5  ;;  %v9906_v4 = vld [vmem:[#allocation58_spill] sm:$0xff]  ;;  %v9907_v5 = vld [vmem:[#allocation59_spill] sm:$0xff] }
 0x3e1   :  { %1764 = vmatpush1.msra.mxu0 %v6482_v7  ;;  %1835 = vmatpush1.msra.mxu1 %v6485_v8  ;;  %v9908_v7 = vld [vmem:[#allocation60_spill] sm:$0xff]  ;;  %v9909_v8 = vld [vmem:[#allocation61_spill] sm:$0xff] }
 0x3e2   :  { %1765 = vmatprep.subr.mxu0 %v6488_v9  ;;  %1836 = vmatprep.subr.mxu1 %v6491_v10  ;;  %v9910_v9 = vld [vmem:[#allocation62_spill] sm:$0xff]  ;;  %v9911_v10 = vld [vmem:[#allocation63_spill] sm:$0xff] }
 0x3e3   :  { %1766 = vmatpush1.msra.mxu0 %v6494_v11  ;;  %1837 = vmatpush1.msra.mxu1 %v6497_v13  ;;  %v9912_v11 = vld [vmem:[#allocation64_spill] sm:$0xff]  ;;  %v9913_v13 = vld [vmem:[#allocation65_spill] sm:$0xff] }
 0x3e4   :  { %1767 = vmatprep.subr.mxu0 %v6500_v14  ;;  %1838 = vmatprep.subr.mxu1 %v6503_v16  ;;  %v9914_v14 = vld [vmem:[#allocation66_spill] sm:$0xff]  ;;  %v9915_v16 = vld [vmem:[#allocation67_spill] sm:$0xff] }
 0x3e5   :  { %1768 = vmatpush1.msra.mxu0 %v9874_v44  ;;  %1801 = vmatprep.mubr.f32.mxu0 %v9875_v60  ;;  %v9917_v44 = vld [vmem:[#allocation69_spill] sm:$0xff] }
 0x3e6   :  { %1839 = vmatpush1.msra.mxu1 %v9876_v50  ;;  %1872 = vmatprep.mubr.f32.mxu1 %v9875_v60  ;;  %v9918_v50 = vld [vmem:[#allocation70_spill] sm:$0xff] }
 0x3e7   :  { %1802 = vmatmul.mubr.f32.vlgmr.msra.gmra.mxu0 %v6922_v18  ;;  %1873 = vmatmul.mubr.f32.vlgmr.msra.gmra.mxu1 %v6922_v18  ;;  %v9916_v18 = vld [vmem:[#allocation68_spill] sm:$0xff] }
 0x3e8   :  { %1907 = vmatprep.subr.mxu0 %v9877_v43  ;;  %1978 = vmatprep.subr.mxu1 %v9878_v42  ;;  %v9919_v43 = vld [vmem:[#allocation71_spill] sm:$0xff]  ;;  %v9920_v42 = vld [vmem:[#allocation72_spill] sm:$0xff] }
 0x3e9   :  { %1908 = vmatpush1.msra.mxu0 %v9879_v52  ;;  %1979 = vmatpush1.msra.mxu1 %v9880_v6  ;;  %v9921_v52 = vld [vmem:[#allocation73_spill] sm:$0xff]  ;;  %v9922_v6 = vld [vmem:[#allocation74_spill] sm:$0xff] }
 0x3ea   :  { %1909 = vmatprep.subr.mxu0 %v9881_v53  ;;  %1980 = vmatprep.subr.mxu1 %v9882_v15  ;;  %v9923_v53 = vld [vmem:[#allocation75_spill] sm:$0xff]  ;;  %v9924_v15 = vld [vmem:[#allocation76_spill] sm:$0xff] }
 0x3eb   :  { %1910 = vmatpush1.msra.mxu0 %v9883_v0  ;;  %1981 = vmatpush1.msra.mxu1 %v9884_v49  ;;  %v9925_v0 = vld [vmem:[#allocation77_spill] sm:$0xff]  ;;  %v9926_v49 = vld [vmem:[#allocation78_spill] sm:$0xff] }
 0x3ec   :  { %1911 = vmatprep.subr.mxu0 %v9885_v41  ;;  %1982 = vmatprep.subr.mxu1 %v9886_v47  ;;  %v9927_v41 = vld [vmem:[#allocation79_spill] sm:$0xff]  ;;  %v9928_v47 = vld [vmem:[#allocation80_spill] sm:$0xff] }
 0x3ed   :  { %1912 = vmatpush1.msra.mxu0 %v9887_v51  ;;  %1983 = vmatpush1.msra.mxu1 %v9888_v46  ;;  %v9929_v51 = vld [vmem:[#allocation81_spill] sm:$0xff]  ;;  %v9930_v46 = vld [vmem:[#allocation82_spill] sm:$0xff] }
 0x3ee   :  { %1913 = vmatprep.subr.mxu0 %v9889_v55  ;;  %1984 = vmatprep.subr.mxu1 %v9890_v54  ;;  %v9931_v55 = vld [vmem:[#allocation83_spill] sm:$0xff]  ;;  %v9932_v54 = vld [vmem:[#allocation84_spill] sm:$0xff] }
 0x3ef   :  { %1914 = vmatpush1.msra.mxu0 %v9891_v33  ;;  %1985 = vmatpush1.msra.mxu1 %v9892_v45  ;;  %v9933_v33 = vld [vmem:[#allocation85_spill] sm:$0xff]  ;;  %v9934_v45 = vld [vmem:[#allocation86_spill] sm:$0xff] }
 0x3f0   :  { %1915 = vmatprep.subr.mxu0 %v9893_v31  ;;  %1986 = vmatprep.subr.mxu1 %v9894_v32  ;;  %v9935_v31 = vld [vmem:[#allocation87_spill] sm:$0xff]  ;;  %v9936_v32 = vld [vmem:[#allocation88_spill] sm:$0xff] }
 0x3f1   :  { %1916 = vmatpush1.msra.mxu0 %v9895_v36  ;;  %1987 = vmatpush1.msra.mxu1 %v9896_v37  ;;  %v9937_v36 = vld [vmem:[#allocation89_spill] sm:$0xff]  ;;  %v9938_v37 = vld [vmem:[#allocation90_spill] sm:$0xff] }
 0x3f2   :  { %1917 = vmatprep.subr.mxu0 %v9897_v38  ;;  %1988 = vmatprep.subr.mxu1 %v9898_v39  ;;  %v9939_v38 = vld [vmem:[#allocation91_spill] sm:$0xff]  ;;  %v9940_v39 = vld [vmem:[#allocation92_spill] sm:$0xff] }
 0x3f3   :  { %1918 = vmatpush1.msra.mxu0 %v9899_v40  ;;  %1989 = vmatpush1.msra.mxu1 %v9900_v48  ;;  %v9941_v40 = vld [vmem:[#allocation93_spill] sm:$0xff]  ;;  %v9942_v48 = vld [vmem:[#allocation94_spill] sm:$0xff] }
 0x3f4   :  { %1919 = vmatprep.subr.mxu0 %v9901_v24  ;;  %1990 = vmatprep.subr.mxu1 %v9902_v34  ;;  %v9943_v24 = vld [vmem:[#allocation95_spill] sm:$0xff]  ;;  %v9944_v34 = vld [vmem:[#allocation96_spill] sm:$0xff] }
 0x3f5   :  { %1920 = vmatpush1.msra.mxu0 %v9903_v57  ;;  %1991 = vmatpush1.msra.mxu1 %v9904_v62  ;;  %v9945_v57 = vld [vmem:[#allocation97_spill] sm:$0xff]  ;;  %v9946_v62 = vld [vmem:[#allocation98_spill] sm:$0xff] }
 0x3f6   :  { %1921 = vmatprep.subr.mxu0 %v9905_v3  ;;  %1992 = vmatprep.subr.mxu1 %v9906_v4  ;;  %v9947_v3 = vld [vmem:[#allocation99_spill] sm:$0xff]  ;;  %v9948_v4 = vld [vmem:[#allocation100_spill] sm:$0xff] }
 0x3f7   :  { %1922 = vmatpush1.msra.mxu0 %v9907_v5  ;;  %1993 = vmatpush1.msra.mxu1 %v9908_v7  ;;  %v9949_v5 = vld [vmem:[#allocation101_spill] sm:$0xff]  ;;  %v9950_v7 = vld [vmem:[#allocation102_spill] sm:$0xff] }
 0x3f8   :  { %1923 = vmatprep.subr.mxu0 %v9909_v8  ;;  %1994 = vmatprep.subr.mxu1 %v9910_v9  ;;  %v9951_v8 = vld [vmem:[#allocation103_spill] sm:$0xff]  ;;  %v9952_v9 = vld [vmem:[#allocation104_spill] sm:$0xff] }
 0x3f9   :  { %1924 = vmatpush1.msra.mxu0 %v9911_v10  ;;  %1995 = vmatpush1.msra.mxu1 %v9912_v11  ;;  %v9953_v10 = vld [vmem:[#allocation105_spill] sm:$0xff]  ;;  %v9954_v11 = vld [vmem:[#allocation106_spill] sm:$0xff] }
 0x3fa   :  { %1925 = vmatprep.subr.mxu0 %v9913_v13  ;;  %1996 = vmatprep.subr.mxu1 %v9914_v14  ;;  %v9955_v13 = vld [vmem:[#allocation107_spill] sm:$0xff]  ;;  %v9956_v14 = vld [vmem:[#allocation108_spill] sm:$0xff] }
 0x3fb   :  { %1926 = vmatpush1.msra.mxu0 %v9915_v16  ;;  %1997 = vmatpush1.msra.mxu1 %v9916_v18  ;;  %v9957_v16 = vld [vmem:[#allocation109_spill] sm:$0xff]  ;;  %v9958_v18 = vld [vmem:[#allocation110_spill] sm:$0xff] }
 0x3fc   :  { %1927 = vmatprep.subr.mxu0 %v9917_v44  ;;  %1998 = vmatprep.subr.mxu1 %v9918_v50  ;;  %v9959_v44 = vld [vmem:[#allocation111_spill] sm:$0xff]  ;;  %v9960_v50 = vld [vmem:[#allocation112_spill] sm:$0xff] }
 0x3fd   :  { %1928 = vmatpush1.msra.mxu0 %v9919_v43  ;;  %1999 = vmatpush1.msra.mxu1 %v9920_v42  ;;  %v9961_v43 = vld [vmem:[#allocation113_spill] sm:$0xff]  ;;  %v9962_v42 = vld [vmem:[#allocation114_spill] sm:$0xff] }
 0x3fe   :  { %1929 = vmatprep.subr.mxu0 %v9921_v52  ;;  %2000 = vmatprep.subr.mxu1 %v9922_v6  ;;  %v9963_v52 = vld [vmem:[#allocation115_spill] sm:$0xff]  ;;  %v9964_v6 = vld [vmem:[#allocation116_spill] sm:$0xff] }
 0x3ff   :  { %1930 = vmatpush1.msra.mxu0 %v9923_v53  ;;  %2001 = vmatpush1.msra.mxu1 %v9924_v15  ;;  %v9965_v53 = vld [vmem:[#allocation117_spill] sm:$0xff]  ;;  %v9966_v15 = vld [vmem:[#allocation118_spill] sm:$0xff] }
 0x400   :  { %1931 = vmatprep.subr.mxu0 %v9925_v0  ;;  %2002 = vmatprep.subr.mxu1 %v9926_v49  ;;  %v9967_v0 = vld [vmem:[#allocation119_spill] sm:$0xff]  ;;  %v9968_v49 = vld [vmem:[#allocation120_spill] sm:$0xff] }
 0x401   :  { %1932 = vmatpush1.msra.mxu0 %v9927_v41  ;;  %2003 = vmatpush1.msra.mxu1 %v9928_v47  ;;  %v9969_v41 = vld [vmem:[#allocation121_spill] sm:$0xff]  ;;  %v9970_v47 = vld [vmem:[#allocation122_spill] sm:$0xff] }
 0x402   :  { %1933 = vmatprep.subr.mxu0 %v9929_v51  ;;  %2004 = vmatprep.subr.mxu1 %v9930_v46  ;;  %v9971_v51 = vld [vmem:[#allocation123_spill] sm:$0xff]  ;;  %v9972_v46 = vld [vmem:[#allocation124_spill] sm:$0xff] }
 0x403   :  { %1934 = vmatpush1.msra.mxu0 %v9931_v55  ;;  %2005 = vmatpush1.msra.mxu1 %v9932_v54  ;;  %v9973_v55 = vld [vmem:[#allocation125_spill] sm:$0xff]  ;;  %v9974_v54 = vld [vmem:[#allocation126_spill] sm:$0xff] }
 0x404   :  { %1935 = vmatprep.subr.mxu0 %v9933_v33  ;;  %2006 = vmatprep.subr.mxu1 %v9934_v45  ;;  %v9975_v33 = vld [vmem:[#allocation127_spill] sm:$0xff]  ;;  %v9976_v45 = vld [vmem:[#allocation128_spill] sm:$0xff] }
 0x405   :  { %1936 = vmatpush1.msra.mxu0 %v9935_v31  ;;  %2007 = vmatpush1.msra.mxu1 %v9936_v32  ;;  %v9977_v31 = vld [vmem:[#allocation129_spill] sm:$0xff]  ;;  %v9978_v32 = vld [vmem:[#allocation130_spill] sm:$0xff] }
 0x406   :  { %1937 = vmatprep.subr.mxu0 %v9937_v36  ;;  %2008 = vmatprep.subr.mxu1 %v9938_v37  ;;  %v9979_v36 = vld [vmem:[#allocation131_spill] sm:$0xff]  ;;  %v9980_v37 = vld [vmem:[#allocation132_spill] sm:$0xff] }
 0x407   :  { %1938 = vmatpush1.msra.mxu0 %v9939_v38  ;;  %2009 = vmatpush1.msra.mxu1 %v9940_v39  ;;  %v9981_v38 = vld [vmem:[#allocation133_spill] sm:$0xff]  ;;  %v9982_v39 = vld [vmem:[#allocation134_spill] sm:$0xff] }
 0x408   :  { %1939 = vmatprep.subr.mxu0 %v9941_v40  ;;  %2010 = vmatprep.subr.mxu1 %v9942_v48  ;;  %v9983_v40 = vld [vmem:[#allocation135_spill] sm:$0xff]  ;;  %v9984_v48 = vld [vmem:[#allocation136_spill] sm:$0xff] }
 0x409   :  { %1940 = vmatpush2.msra.mxu0 %v9943_v24  ;;  %2011 = vmatpush2.msra.mxu1 %v9944_v34  ;;  %v9985_v24 = vld [vmem:[#allocation137_spill] sm:$0xff]  ;;  %v9986_v34 = vld [vmem:[#allocation138_spill] sm:$0xff] }
 0x40a   :  { %1941 = vmatprep.subr.mxu0 %v9945_v57  ;;  %2012 = vmatprep.subr.mxu1 %v9946_v62  ;;  %v9987_v57 = vld [vmem:[#allocation139_spill] sm:$0xff]  ;;  %v9988_v62 = vld [vmem:[#allocation140_spill] sm:$0xff] }
 0x40b   :  { %1942 = vmatpush2.msra.mxu0 %v9947_v3  ;;  %2013 = vmatpush2.msra.mxu1 %v9948_v4  ;;  %v9989_v3 = vld [vmem:[#allocation141_spill] sm:$0xff]  ;;  %v9990_v4 = vld [vmem:[#allocation142_spill] sm:$0xff] }
 0x40c   :  { %1943 = vmatprep.subr.mxu0 %v9949_v5  ;;  %2014 = vmatprep.subr.mxu1 %v9950_v7  ;;  %v9991_v5 = vld [vmem:[#allocation143_spill] sm:$0xff]  ;;  %v9992_v7 = vld [vmem:[#allocation144_spill] sm:$0xff] }
 0x40d   :  { %1944 = vmatpush2.msra.mxu0 %v9951_v8  ;;  %2015 = vmatpush2.msra.mxu1 %v9952_v9  ;;  %v9993_v8 = vld [vmem:[#allocation145_spill] sm:$0xff]  ;;  %v9994_v9 = vld [vmem:[#allocation146_spill] sm:$0xff] }
 0x40e   :  { %1945 = vmatprep.subr.mxu0 %v9953_v10  ;;  %2016 = vmatprep.subr.mxu1 %v9954_v11  ;;  %v9995_v10 = vld [vmem:[#allocation147_spill] sm:$0xff]  ;;  %v9996_v11 = vld [vmem:[#allocation148_spill] sm:$0xff] }
 0x40f   :  { %1946 = vmatpush2.msra.mxu0 %v9955_v13  ;;  %2017 = vmatpush2.msra.mxu1 %v9956_v14  ;;  %v9997_v13 = vld [vmem:[#allocation149_spill] sm:$0xff]  ;;  %v9998_v14 = vld [vmem:[#allocation150_spill] sm:$0xff] }
 0x410   :  { %1947 = vmatprep.subr.mxu0 %v9957_v16  ;;  %2018 = vmatprep.subr.mxu1 %v9958_v18  ;;  %v9999_v16 = vld [vmem:[#allocation151_spill] sm:$0xff]  ;;  %v10000_v18 = vld [vmem:[#allocation152_spill] sm:$0xff] }
 0x411   :  { %1948 = vmatpush2.msra.mxu0 %v9959_v44  ;;  %2019 = vmatpush2.msra.mxu1 %v9960_v50  ;;  %v10001_v44 = vld [vmem:[#allocation153_spill] sm:$0xff]  ;;  %v10002_v50 = vld [vmem:[#allocation156_spill] sm:$0xff] }
 0x412   :  { %1949 = vmatprep.subr.mxu0 %v9961_v43  ;;  %2020 = vmatprep.subr.mxu1 %v9962_v42  ;;  %v10003_v43 = vld [vmem:[#allocation158_spill] sm:$0xff]  ;;  %v10004_v42 = vld [vmem:[#allocation157_spill] sm:$0xff] }
 0x413   :  { %1950 = vmatpush2.msra.mxu0 %v9963_v52  ;;  %2021 = vmatpush2.msra.mxu1 %v9964_v6  ;;  %v7156_v52 = vld [vmem:[#allocation9 + $0x1e8] sm:$0xff]  ;;  %v7159_v6 = vld [vmem:[#allocation9 + $0x1f8] sm:$0xff] }
 0x414   :  { %1951 = vmatprep.subr.mxu0 %v9965_v53  ;;  %2022 = vmatprep.subr.mxu1 %v9966_v15  ;;  %v10005_v15 = vld [vmem:[#allocation22_spill] sm:$0xff] }
 0x415   :  { %1952 = vmatpush2.msra.mxu0 %v9967_v0  ;;  %2023 = vmatpush2.msra.mxu1 %v9968_v49 }
 0x416   :  { %1953 = vmatprep.subr.mxu0 %v9969_v41  ;;  %2024 = vmatprep.subr.mxu1 %v9970_v47  ;;  %v10006_v47 = vld [vmem:[#allocation23_spill] sm:$0xff] }
 0x417   :  { %1954 = vmatpush2.msra.mxu0 %v9971_v51  ;;  %2025 = vmatpush2.msra.mxu1 %v9972_v46 }
 0x418   :  { %1955 = vmatprep.subr.mxu0 %v9973_v55  ;;  %2026 = vmatprep.subr.mxu1 %v9974_v54  ;;  %v10007_v54 = vld [vmem:[#allocation24_spill] sm:$0xff] }
 0x419   :  { %1956 = vmatpush2.msra.mxu0 %v9975_v33  ;;  %2027 = vmatpush2.msra.mxu1 %v9976_v45 }
 0x41a   :  { %1957 = vmatprep.subr.mxu0 %v9977_v31  ;;  %2028 = vmatprep.subr.mxu1 %v9978_v32 }
 0x41b   :  { %1958 = vmatpush2.msra.mxu0 %v9979_v36  ;;  %2029 = vmatpush2.msra.mxu1 %v9980_v37  ;;  %v10008_v36 = vld [vmem:[#allocation25_spill] sm:$0xff] }
 0x41c   :  { %1959 = vmatprep.subr.mxu0 %v9981_v38  ;;  %2030 = vmatprep.subr.mxu1 %v9982_v39 }
 0x41d   :  { %1960 = vmatpush2.msra.mxu0 %v9983_v40  ;;  %2031 = vmatpush2.msra.mxu1 %v9984_v48 }
 0x41e   :  { %1961 = vmatprep.subr.mxu0 %v9985_v24  ;;  %2032 = vmatprep.subr.mxu1 %v9986_v34 }
 0x41f   :  { %1962 = vmatpush2.msra.mxu0 %v9987_v57  ;;  %2033 = vmatpush2.msra.mxu1 %v9988_v62  ;;  %v10009_v57 = vld [vmem:[#allocation164_spill] sm:$0xff] }
 0x420   :  { %1963 = vmatprep.subr.mxu0 %v9989_v3  ;;  %2034 = vmatprep.subr.mxu1 %v9990_v4 }
 0x421   :  { %1964 = vmatpush2.msra.mxu0 %v9991_v5  ;;  %2035 = vmatpush2.msra.mxu1 %v9992_v7 }
 0x422   :  { %1965 = vmatprep.subr.mxu0 %v9993_v8  ;;  %2036 = vmatprep.subr.mxu1 %v9994_v9  ;;  %v10010_v8 = vld [vmem:[#allocation166_spill] sm:$0xff] }
 0x423   :  { %1966 = vmatpush2.msra.mxu0 %v9995_v10  ;;  %2037 = vmatpush2.msra.mxu1 %v9996_v11 }
 0x424   :  { %1967 = vmatprep.subr.mxu0 %v9997_v13  ;;  %2038 = vmatprep.subr.mxu1 %v9998_v14 }
 0x425   :  { %1968 = vmatpush2.msra.mxu0 %v9999_v16  ;;  %2039 = vmatpush2.msra.mxu1 %v10000_v18 }
 0x426   :  { %1969 = vmatprep.subr.mxu0 %v10001_v44  ;;  %2040 = vmatprep.subr.mxu1 %v10002_v50  ;;  %v10011_v44 = vld [vmem:[#allocation165_spill] sm:$0xff] }
 0x427   :  { %1970 = vmatpush2.msra.mxu0 %v10003_v43  ;;  %2041 = vmatpush2.msra.mxu1 %v10004_v42 }
 0x428   :  { %2082 = vmatprep.subr.mxu0 %v7156_v52  ;;  %2153 = vmatprep.subr.mxu1 %v7159_v6 }
 0x486   :  { %v1628_v53 = vpop.f32.mrf.mxu0  ;;  %v1699_v55 = vpop.f32.mrf.mxu1 }
 0x487   :  { %v1629_v0 = vadd.f32 %v1628_v53, %v10005_v15  ;;  %v1700_v33 = vadd.f32 %v1699_v55, %v10007_v54  ;;  %v10012_v53 = vld [vmem:[#allocation167_spill] sm:$0xff] }
 0x488   :  { %v1630_v49 = vpop.f32.mrf.mxu0  ;;  %v1701_v45 = vpop.f32.mrf.mxu1 }
 0x489   :  { %v4131_v41 = vmul.f32 -1.442695, %v1629_v0  ;;  %v1631_v51 = vadd.f32 %v1630_v49, %v10006_v47  ;;  %v4133_v31 = vmul.f32 -1.442695, %v1700_v33  ;;  %v1702_v37 = vadd.f32 %v1701_v45, %v10008_v36 }
 0x48b   :  { %4316 = vpow2.f32 %v4131_v41  ;;  %v4132_v46 = vmul.f32 -1.442695, %v1631_v51 }
 0x48d   :  { %4318 = vpow2.f32 %v4132_v46 }
 0x48e   :  { %4320 = vpow2.f32 %v4133_v31 }
 0x498   :  { %v4317_v32 = vpop.eup %4316 }
 0x499   :  { %v1713_v38 = vadd.f32 1.0, %v4317_v32 }
 0x49a   :  { %v4319_v39 = vpop.eup %4318 }
 0x49b   :  { %4322 = vrcp.f32 %v1713_v38  ;;  %v1714_v40 = vadd.f32 1.0, %v4319_v39  ;;  %v4321_v48 = vpop.eup %4320 }
 0x49c   :  { %4324 = vtanh.f32 %v1702_v37  ;;  %v1715_v10 = vadd.f32 1.0, %v4321_v48 }
 0x49d   :  { %4326 = vrcp.f32 %v1714_v40 }
 0x4a7   :  { %v1803_v24 = vpop.f32.mrf.mxu0  ;;  %v1874_v18 = vpop.f32.mrf.mxu1 }
 0x4a8   :  { %v4323_v34 = vpop.eup %4322  ;;  %v1879_v62 = vadd.f32 %v1803_v24, %v10009_v57  ;;  %v1881_v50 = vadd.f32 %v1874_v18, %v10011_v44  ;;  %v7294_v18 = vld [vmem:[#allocation9 + $0x60] sm:$0xff]  ;;  %v7297_v44 = vld [vmem:[#allocation9 + $0x70] sm:$0xff] }
 0x4a9   :  { %v4325_v3 = vpop.eup %4324  ;;  %v1805_v4 = vpop.f32.mrf.mxu0 }
 0x4aa   :  { %v4327_v5 = vpop.eup %4326  ;;  %v4134_v7 = vmul.f32 -1.442695, %v1879_v62  ;;  %v1880_v9 = vadd.f32 %v1805_v4, %v10010_v8  ;;  %v1724_v13 = vmul.f32 %v4325_v3, %v4323_v34  ;;  %v1876_v43 = vpop.f32.mrf.mxu1  ;;  %v4136_v42 = vmul.f32 -1.442695, %v1881_v50  ;;  %v7261_v62 = vld [vmem:[#allocation9 + $0xd0] sm:$0xff]  ;;  %v7264_v3 = vld [vmem:[#allocation9 + $0xa8] sm:$0xff] }
 0x4ab   :  { %v1723_v11 = vmul.f32 %v4327_v5, %v6909_v21  ;;  %v1882_v0 = vadd.f32 %v1876_v43, %v10012_v53  ;;  %v7267_v4 = vld [vmem:[#allocation9 + $0xb8] sm:$0xff]  ;;  %v7270_v5 = vld [vmem:[#allocation9 + $0xa0] sm:$0xff]  ;;  %v7276_v8 = vld [vmem:[#allocation9 + $0x88] sm:$0xff] }
 0x4ac   :  { %4328 = vpow2.f32 %v4134_v7  ;;  %v4135_v14 = vmul.f32 -1.442695, %v1880_v9  ;;  %v7273_v7 = vld [vmem:[#allocation9 + $0xb0] sm:$0xff]  ;;  %v7279_v9 = vld [vmem:[#allocation9 + $0x98] sm:$0xff]  ;;  %v7300_v50 = vld [vmem:[#allocation9 + $0x48] sm:$0xff] }
 0x4ad   :  { %v7169_v16 = vadd.f32 %v1724_v13, %v1723_v11  ;;  %v7285_v11 = vld [vmem:[#allocation9 + $0x90] sm:$0xff]  ;;  %v7288_v13 = vld [vmem:[#allocation9 + $0x68] sm:$0xff]  ;;  %v7303_v43 = vld [vmem:[#allocation9 + $0x58] sm:$0xff] }
 0x4ae   :  { %4330 = vpow2.f32 %v4135_v14  ;;  %v7291_v14 = vld [vmem:[#allocation9 + $0x78] sm:$0xff]  ;;  %v7309_v53 = vld [vmem:[#allocation9 + $0x50] sm:$0xff] }
 0x4af   :  { %4332 = vrcp.f32 %v1715_v10  ;;  %v7282_v10 = vld [vmem:[#allocation9 + $0x80] sm:$0xff] }
 0x4b0   :  { %4334 = vtanh.f32 %v7169_v16 }
 0x4b1   :  { %4336 = vpow2.f32 %v4136_v42  ;;  %v7306_v42 = vld [vmem:[#allocation9 + $0x40] sm:$0xff] }
 0x4b2   :  { %4338 = vtanh.f32 %v1882_v0  ;;  %v7312_v0 = vld [vmem:[#allocation9 + $0x28] sm:$0xff] }
 0x4b9   :  { %v4329_v49 = vpop.eup %4328 }
 0x4ba   :  { %v1892_v41 = vadd.f32 1.0, %v4329_v49  ;;  %v7315_v49 = vld [vmem:[#allocation9 + $0x38] sm:$0xff] }
 0x4bb   :  { %v4331_v21 = vpop.eup %4330 }
 0x4bc   :  { %v4333_v51 = vpop.eup %4332  ;;  %4340 = vrcp.f32 %v1892_v41  ;;  %v1893_v46 = vadd.f32 1.0, %v4331_v21  ;;  %v7318_v41 = vld [vmem:[#allocation9 + $0x20] sm:$0xff]  ;;  %v7321_v21 = vld [vmem:[#allocation9 + $0x30] sm:$0xff] }
 0x4bd   :  { %v4335_v55 = vpop.eup %4334 }
 0x4be   :  { %4342 = vrcp.f32 %v1893_v46  ;;  %v7174_v33 = vmul.f32 %v4335_v55, %v4333_v51  ;;  %v4337_v45 = vpop.eup %4336  ;;  %v7324_v51 = vld [vmem:[#allocation9 + $0x8] sm:$0xff]  ;;  %v7327_v46 = vld [vmem:[#allocation9 + $0x18] sm:$0xff]  ;;  %v7330_v55 = vld [vmem:[#allocation9] sm:$0xff] }
 0x4bf   :  { %v4339_v31 = vpop.eup %4338  ;;  %v1894_v39 = vadd.f32 1.0, %v4337_v45  ;;  %10014 = vst [vmem:[#allocation162_spill] sm:$0xff] %v7330_v55  ;;  %v7334_v45 = vld [vmem:[#allocation9 + $0x10] sm:$0xff] }
 0x4c0   :  { %10013 = vst [vmem:[#allocation160_spill] sm:$0xff] %v7174_v33  ;;  %1971 = vmatprep.mubr.f32.mxu0 %v7174_v33  ;;  %2042 = vmatprep.mubr.f32.mxu1 %v7174_v33  ;;  %10015 = vst [vmem:[#allocation161_spill] sm:$0xff] %v7334_v45  ;;  %v7367_v33 = vld [vmem:[#allocation10 + $0x1b8] sm:$0xff] }
 0x4c1   :  { %4344 = vrcp.f32 %v1894_v39  ;;  %v7352_v39 = vld [vmem:[#allocation10 + $0x1c8] sm:$0xff]  ;;  %10025 = vst [vmem:[#allocation35_spill] sm:$0xff] %v7367_v33 }
 0x4c2   :  { %10020 = vst [vmem:[#allocation30_spill] sm:$0xff] %v7352_v39 }
 0x4c9   :  { %v4341_v32 = vpop.eup %4340 }
 0x4ca   :  { %v1903_v37 = vmul.f32 %v4341_v32, %v4339_v31  ;;  %v7340_v31 = vld [vmem:[#allocation10 + $0x1e8] sm:$0xff]  ;;  %v7343_v32 = vld [vmem:[#allocation10 + $0x1f8] sm:$0xff] }
 0x4cb   :  { %v4343_v38 = vpop.eup %4342  ;;  %10016 = vst [vmem:[#allocation163_spill] sm:$0xff] %v7340_v31  ;;  %10017 = vst [vmem:[#allocation27_spill] sm:$0xff] %v7343_v32 }
 0x4cc   :  { %v1902_v40 = vmul.f32 %v4343_v38, %v6919_v17  ;;  %v7204_v17 = vld [vmem:[#allocation9 + $0x148] sm:$0xff]  ;;  %v7349_v38 = vld [vmem:[#allocation10 + $0x1f0] sm:$0xff] }
 0x4cd   :  { %10019 = vst [vmem:[#allocation29_spill] sm:$0xff] %v7349_v38 }
 0x4ce   :  { %v7179_v48 = vadd.f32 %v1903_v37, %v1902_v40  ;;  %v4345_v24 = vpop.eup %4344  ;;  %v7346_v37 = vld [vmem:[#allocation10 + $0x1e0] sm:$0xff]  ;;  %v7355_v40 = vld [vmem:[#allocation10 + $0x1d8] sm:$0xff] }
 0x4cf   :  { %10018 = vst [vmem:[#allocation28_spill] sm:$0xff] %v7346_v37  ;;  %10021 = vst [vmem:[#allocation31_spill] sm:$0xff] %v7355_v40 }
 0x4d0   :  { %4346 = vtanh.f32 %v7179_v48 }
 0x4dd   :  { %v4347_v34 = vpop.eup %4346 }
 0x4de   :  { %v7182_v57 = vmul.f32 %v4347_v34, %v4345_v24  ;;  %v7358_v24 = vld [vmem:[#allocation10 + $0x1c0] sm:$0xff]  ;;  %v7361_v34 = vld [vmem:[#allocation10 + $0x1d0] sm:$0xff] }
 0x4df   :  { %10022 = vst [vmem:[#allocation32_spill] sm:$0xff] %v7358_v24  ;;  %10023 = vst [vmem:[#allocation33_spill] sm:$0xff] %v7361_v34 }
 0x4e0   :  { %1972 = vmatmul.mubr.f32.vlgmr.msra.gmra.mxu0 %v7182_v57  ;;  %2043 = vmatmul.mubr.f32.vlgmr.msra.gmra.mxu1 %v7182_v57 }
 0x4e1   :  { %2083 = vmatpush1.msra.mxu0 %v6926_v25  ;;  %2154 = vmatpush1.msra.mxu1 %v6929_v28  ;;  %v7207_v25 = vld [vmem:[#allocation9 + $0x158] sm:$0xff]  ;;  %v7210_v28 = vld [vmem:[#allocation9 + $0x140] sm:$0xff] }
 0x4e2   :  { %2084 = vmatprep.subr.mxu0 %v6932_v27  ;;  %2155 = vmatprep.subr.mxu1 %v6935_v1  ;;  %v7213_v27 = vld [vmem:[#allocation9 + $0x150] sm:$0xff]  ;;  %v7216_v1 = vld [vmem:[#allocation9 + $0x128] sm:$0xff] }
 0x4e3   :  { %2085 = vmatpush1.msra.mxu0 %v6938_v35  ;;  %2156 = vmatpush1.msra.mxu1 %v6941_v56  ;;  %v7219_v35 = vld [vmem:[#allocation9 + $0x138] sm:$0xff]  ;;  %v7222_v56 = vld [vmem:[#allocation9 + $0x120] sm:$0xff] }
 0x4e4   :  { %2086 = vmatprep.subr.mxu0 %v6944_v2  ;;  %2157 = vmatprep.subr.mxu1 %v6947_v58  ;;  %v7225_v2 = vld [vmem:[#allocation9 + $0x130] sm:$0xff]  ;;  %v7228_v58 = vld [vmem:[#allocation9 + $0x108] sm:$0xff] }
 0x4e5   :  { %2087 = vmatpush1.msra.mxu0 %v6950_v12  ;;  %2158 = vmatpush1.msra.mxu1 %v6953_v26  ;;  %v7231_v12 = vld [vmem:[#allocation9 + $0x118] sm:$0xff]  ;;  %v7234_v26 = vld [vmem:[#allocation9 + $0x100] sm:$0xff] }
 0x4e6   :  { %2088 = vmatprep.subr.mxu0 %v6956_v23  ;;  %2159 = vmatprep.subr.mxu1 %v6959_v29  ;;  %v7237_v23 = vld [vmem:[#allocation9 + $0x110] sm:$0xff]  ;;  %v7240_v29 = vld [vmem:[#allocation9 + $0xe8] sm:$0xff] }
 0x4e7   :  { %2089 = vmatpush1.msra.mxu0 %v6962_v22  ;;  %2160 = vmatpush1.msra.mxu1 %v6965_v30  ;;  %v7243_v22 = vld [vmem:[#allocation9 + $0xf8] sm:$0xff]  ;;  %v7246_v30 = vld [vmem:[#allocation9 + $0xe0] sm:$0xff] }
 0x4e8   :  { %2090 = vmatprep.subr.mxu0 %v6968_v20  ;;  %2161 = vmatprep.subr.mxu1 %v6971_v59  ;;  %v7249_v20 = vld [vmem:[#allocation9 + $0xf0] sm:$0xff]  ;;  %v7252_v59 = vld [vmem:[#allocation9 + $0xc8] sm:$0xff] }
 0x4e9   :  { %2091 = vmatpush1.msra.mxu0 %v6974_v61  ;;  %2162 = vmatpush1.msra.mxu1 %v6977_v63  ;;  %v7255_v61 = vld [vmem:[#allocation9 + $0xd8] sm:$0xff]  ;;  %v7258_v63 = vld [vmem:[#allocation9 + $0xc0] sm:$0xff] }
 0x4ea   :  { %2092 = vmatprep.subr.mxu0 %v7204_v17  ;;  %2163 = vmatprep.subr.mxu1 %v7207_v25 }
 0x4eb   :  { %2093 = vmatpush1.msra.mxu0 %v7210_v28  ;;  %2164 = vmatpush1.msra.mxu1 %v7213_v27 }
 0x4ec   :  { %2094 = vmatprep.subr.mxu0 %v7216_v1  ;;  %2165 = vmatprep.subr.mxu1 %v7219_v35 }
 0x4ed   :  { %2095 = vmatpush1.msra.mxu0 %v7222_v56  ;;  %2166 = vmatpush1.msra.mxu1 %v7225_v2 }
 0x4ee   :  { %2096 = vmatprep.subr.mxu0 %v7228_v58  ;;  %2167 = vmatprep.subr.mxu1 %v7231_v12 }
 0x4ef   :  { %2097 = vmatpush1.msra.mxu0 %v7234_v26  ;;  %2168 = vmatpush1.msra.mxu1 %v7237_v23 }
 0x4f0   :  { %2098 = vmatprep.subr.mxu0 %v7240_v29  ;;  %2169 = vmatprep.subr.mxu1 %v7243_v22 }
 0x4f1   :  { %2099 = vmatpush1.msra.mxu0 %v7246_v30  ;;  %2170 = vmatpush1.msra.mxu1 %v7249_v20 }
 0x4f2   :  { %2100 = vmatprep.subr.mxu0 %v7252_v59  ;;  %2171 = vmatprep.subr.mxu1 %v7255_v61 }
 0x4f3   :  { %2101 = vmatpush1.msra.mxu0 %v7258_v63  ;;  %2172 = vmatpush1.msra.mxu1 %v7261_v62 }
 0x4f4   :  { %2102 = vmatprep.subr.mxu0 %v7264_v3  ;;  %2173 = vmatprep.subr.mxu1 %v7267_v4 }
 0x4f5   :  { %2103 = vmatpush1.msra.mxu0 %v7270_v5  ;;  %2174 = vmatpush1.msra.mxu1 %v7273_v7 }
 0x4f6   :  { %2104 = vmatprep.subr.mxu0 %v7276_v8  ;;  %2175 = vmatprep.subr.mxu1 %v7279_v9 }
 0x4f7   :  { %2105 = vmatpush1.msra.mxu0 %v7282_v10  ;;  %2176 = vmatpush1.msra.mxu1 %v7285_v11 }
 0x4f8   :  { %2106 = vmatprep.subr.mxu0 %v7288_v13  ;;  %2177 = vmatprep.subr.mxu1 %v7291_v14 }
 0x4f9   :  { %2107 = vmatpush1.msra.mxu0 %v7294_v18  ;;  %2178 = vmatpush1.msra.mxu1 %v7297_v44 }
 0x4fa   :  { %2108 = vmatprep.subr.mxu0 %v7300_v50  ;;  %2179 = vmatprep.subr.mxu1 %v7303_v43 }
 0x4fb   :  { %2109 = vmatpush1.msra.mxu0 %v7306_v42  ;;  %2180 = vmatpush1.msra.mxu1 %v7309_v53 }
 0x4fc   :  { %2110 = vmatprep.subr.mxu0 %v7312_v0  ;;  %2181 = vmatprep.subr.mxu1 %v7315_v49 }
 0x4fd   :  { %2111 = vmatpush1.msra.mxu0 %v7318_v41  ;;  %2182 = vmatpush1.msra.mxu1 %v7321_v21 }
 0x4fe   :  { %2112 = vmatprep.subr.mxu0 %v7324_v51  ;;  %2183 = vmatprep.subr.mxu1 %v7327_v46 }
 0x4ff   :  { %2113 = vmatpush1.msra.mxu0 %v7330_v55  ;;  %2146 = vmatprep.mubr.f32.mxu0 %v9875_v60 }
 0x500   :  { %2184 = vmatpush1.msra.mxu1 %v7334_v45  ;;  %2217 = vmatprep.mubr.f32.mxu1 %v9875_v60 }
 0x501   :  { %2147 = vmatmul.mubr.f32.vlgmr.msra.gmra.mxu0 %v7182_v57  ;;  %2218 = vmatmul.mubr.f32.vlgmr.msra.gmra.mxu1 %v7182_v57  ;;  %v7364_v57 = vld [vmem:[#allocation10 + $0x1a8] sm:$0xff] }
 0x502   :  { %2252 = vmatprep.subr.mxu0 %v7340_v31  ;;  %2323 = vmatprep.subr.mxu1 %v7343_v32  ;;  %10024 = vst [vmem:[#allocation34_spill] sm:$0xff] %v7364_v57 }
 0x503   :  { %2253 = vmatpush1.msra.mxu0 %v7346_v37  ;;  %2324 = vmatpush1.msra.mxu1 %v7349_v38 }
 0x504   :  { %2254 = vmatprep.subr.mxu0 %v7352_v39  ;;  %2325 = vmatprep.subr.mxu1 %v7355_v40  ;;  %v7373_v40 = vld [vmem:[#allocation10 + $0x1b0] sm:$0xff] }
 0x505   :  { %2255 = vmatpush1.msra.mxu0 %v7358_v24  ;;  %2326 = vmatpush1.msra.mxu1 %v7361_v34  ;;  %10027 = vst [vmem:[#allocation37_spill] sm:$0xff] %v7373_v40  ;;  %v7376_v24 = vld [vmem:[#allocation10 + $0x188] sm:$0xff]  ;;  %v7379_v34 = vld [vmem:[#allocation10 + $0x198] sm:$0xff] }
 0x506   :  { %2256 = vmatprep.subr.mxu0 %v7364_v57  ;;  %2327 = vmatprep.subr.mxu1 %v7367_v33  ;;  %10028 = vst [vmem:[#allocation38_spill] sm:$0xff] %v7376_v24  ;;  %10029 = vst [vmem:[#allocation39_spill] sm:$0xff] %v7379_v34  ;;  %v7382_v57 = vld [vmem:[#allocation10 + $0x180] sm:$0xff]  ;;  %v7385_v33 = vld [vmem:[#allocation10 + $0x190] sm:$0xff] }
 0x507   :  { %2257 = vmatpush1.msra.mxu0 %v7370_v19  ;;  %2328 = vmatpush1.msra.mxu1 %v7373_v40  ;;  %10030 = vst [vmem:[#allocation40_spill] sm:$0xff] %v7382_v57  ;;  %10031 = vst [vmem:[#allocation41_spill] sm:$0xff] %v7385_v33  ;;  %v7388_v19 = vld [vmem:[#allocation10 + $0x168] sm:$0xff]  ;;  %v7391_v40 = vld [vmem:[#allocation10 + $0x178] sm:$0xff] }
 0x508   :  { %2258 = vmatprep.subr.mxu0 %v7376_v24  ;;  %2329 = vmatprep.subr.mxu1 %v7379_v34  ;;  %10032 = vst [vmem:[#allocation42_spill] sm:$0xff] %v7388_v19  ;;  %10033 = vst [vmem:[#allocation43_spill] sm:$0xff] %v7391_v40  ;;  %v7394_v24 = vld [vmem:[#allocation10 + $0x160] sm:$0xff]  ;;  %v7397_v34 = vld [vmem:[#allocation10 + $0x170] sm:$0xff] }
 0x509   :  { %2259 = vmatpush1.msra.mxu0 %v7382_v57  ;;  %2330 = vmatpush1.msra.mxu1 %v7385_v33  ;;  %10034 = vst [vmem:[#allocation44_spill] sm:$0xff] %v7394_v24  ;;  %10035 = vst [vmem:[#allocation45_spill] sm:$0xff] %v7397_v34  ;;  %v7400_v57 = vld [vmem:[#allocation10 + $0x148] sm:$0xff]  ;;  %v7403_v33 = vld [vmem:[#allocation10 + $0x158] sm:$0xff] }
 0x50a   :  { %2260 = vmatprep.subr.mxu0 %v7388_v19  ;;  %2331 = vmatprep.subr.mxu1 %v7391_v40  ;;  %10036 = vst [vmem:[#allocation46_spill] sm:$0xff] %v7400_v57  ;;  %10037 = vst [vmem:[#allocation47_spill] sm:$0xff] %v7403_v33  ;;  %v7406_v19 = vld [vmem:[#allocation10 + $0x140] sm:$0xff]  ;;  %v7409_v40 = vld [vmem:[#allocation10 + $0x150] sm:$0xff] }
 0x50b   :  { %2261 = vmatpush1.msra.mxu0 %v7394_v24  ;;  %2332 = vmatpush1.msra.mxu1 %v7397_v34  ;;  %10038 = vst [vmem:[#allocation48_spill] sm:$0xff] %v7406_v19  ;;  %10039 = vst [vmem:[#allocation49_spill] sm:$0xff] %v7409_v40  ;;  %v7412_v24 = vld [vmem:[#allocation10 + $0x128] sm:$0xff]  ;;  %v7415_v34 = vld [vmem:[#allocation10 + $0x138] sm:$0xff] }
 0x50c   :  { %2262 = vmatprep.subr.mxu0 %v7400_v57  ;;  %2333 = vmatprep.subr.mxu1 %v7403_v33  ;;  %10040 = vst [vmem:[#allocation50_spill] sm:$0xff] %v7412_v24  ;;  %10041 = vst [vmem:[#allocation51_spill] sm:$0xff] %v7415_v34  ;;  %v7418_v57 = vld [vmem:[#allocation10 + $0x120] sm:$0xff]  ;;  %v7421_v33 = vld [vmem:[#allocation10 + $0x130] sm:$0xff] }
 0x50d   :  { %2263 = vmatpush1.msra.mxu0 %v7406_v19  ;;  %2334 = vmatpush1.msra.mxu1 %v7409_v40  ;;  %10042 = vst [vmem:[#allocation52_spill] sm:$0xff] %v7418_v57  ;;  %10043 = vst [vmem:[#allocation53_spill] sm:$0xff] %v7421_v33  ;;  %v7424_v19 = vld [vmem:[#allocation10 + $0x108] sm:$0xff]  ;;  %v7427_v40 = vld [vmem:[#allocation10 + $0x118] sm:$0xff] }
 0x50e   :  { %2264 = vmatprep.subr.mxu0 %v7412_v24  ;;  %2335 = vmatprep.subr.mxu1 %v7415_v34  ;;  %10044 = vst [vmem:[#allocation54_spill] sm:$0xff] %v7424_v19  ;;  %10045 = vst [vmem:[#allocation55_spill] sm:$0xff] %v7427_v40  ;;  %v7430_v24 = vld [vmem:[#allocation10 + $0x100] sm:$0xff]  ;;  %v7433_v34 = vld [vmem:[#allocation10 + $0x110] sm:$0xff] }
 0x50f   :  { %2265 = vmatpush1.msra.mxu0 %v7418_v57  ;;  %2336 = vmatpush1.msra.mxu1 %v7421_v33  ;;  %10046 = vst [vmem:[#allocation56_spill] sm:$0xff] %v7430_v24  ;;  %10047 = vst [vmem:[#allocation57_spill] sm:$0xff] %v7433_v34  ;;  %v7436_v57 = vld [vmem:[#allocation10 + $0xe8] sm:$0xff]  ;;  %v7439_v33 = vld [vmem:[#allocation10 + $0xf8] sm:$0xff] }
 0x510   :  { %2266 = vmatprep.subr.mxu0 %v7424_v19  ;;  %2337 = vmatprep.subr.mxu1 %v7427_v40  ;;  %10048 = vst [vmem:[#allocation58_spill] sm:$0xff] %v7436_v57  ;;  %10049 = vst [vmem:[#allocation59_spill] sm:$0xff] %v7439_v33  ;;  %v7442_v19 = vld [vmem:[#allocation10 + $0xe0] sm:$0xff]  ;;  %v7445_v40 = vld [vmem:[#allocation10 + $0xf0] sm:$0xff] }
 0x511   :  { %2267 = vmatpush1.msra.mxu0 %v7430_v24  ;;  %2338 = vmatpush1.msra.mxu1 %v7433_v34  ;;  %10050 = vst [vmem:[#allocation60_spill] sm:$0xff] %v7442_v19  ;;  %10051 = vst [vmem:[#allocation61_spill] sm:$0xff] %v7445_v40  ;;  %v7448_v24 = vld [vmem:[#allocation10 + $0xc8] sm:$0xff]  ;;  %v7451_v34 = vld [vmem:[#allocation10 + $0xd8] sm:$0xff] }
 0x512   :  { %2268 = vmatprep.subr.mxu0 %v7436_v57  ;;  %2339 = vmatprep.subr.mxu1 %v7439_v33  ;;  %10052 = vst [vmem:[#allocation62_spill] sm:$0xff] %v7448_v24  ;;  %10053 = vst [vmem:[#allocation63_spill] sm:$0xff] %v7451_v34  ;;  %v7454_v57 = vld [vmem:[#allocation10 + $0xc0] sm:$0xff]  ;;  %v7457_v33 = vld [vmem:[#allocation10 + $0xd0] sm:$0xff] }
 0x513   :  { %2269 = vmatpush1.msra.mxu0 %v7442_v19  ;;  %2340 = vmatpush1.msra.mxu1 %v7445_v40  ;;  %10054 = vst [vmem:[#allocation64_spill] sm:$0xff] %v7454_v57  ;;  %10055 = vst [vmem:[#allocation65_spill] sm:$0xff] %v7457_v33  ;;  %v7460_v19 = vld [vmem:[#allocation10 + $0xa8] sm:$0xff]  ;;  %v7463_v40 = vld [vmem:[#allocation10 + $0xb8] sm:$0xff] }
 0x514   :  { %2270 = vmatprep.subr.mxu0 %v7448_v24  ;;  %2341 = vmatprep.subr.mxu1 %v7451_v34  ;;  %10056 = vst [vmem:[#allocation66_spill] sm:$0xff] %v7460_v19  ;;  %10057 = vst [vmem:[#allocation67_spill] sm:$0xff] %v7463_v40  ;;  %v7466_v24 = vld [vmem:[#allocation10 + $0xa0] sm:$0xff]  ;;  %v7469_v34 = vld [vmem:[#allocation10 + $0xb0] sm:$0xff] }
 0x515   :  { %2271 = vmatpush1.msra.mxu0 %v7454_v57  ;;  %2342 = vmatpush1.msra.mxu1 %v7457_v33  ;;  %10058 = vst [vmem:[#allocation68_spill] sm:$0xff] %v7466_v24  ;;  %10059 = vst [vmem:[#allocation69_spill] sm:$0xff] %v7469_v34  ;;  %v7472_v57 = vld [vmem:[#allocation10 + $0x88] sm:$0xff]  ;;  %v7475_v33 = vld [vmem:[#allocation10 + $0x98] sm:$0xff] }
 0x516   :  { %2272 = vmatprep.subr.mxu0 %v7460_v19  ;;  %2343 = vmatprep.subr.mxu1 %v7463_v40  ;;  %10060 = vst [vmem:[#allocation70_spill] sm:$0xff] %v7472_v57  ;;  %10061 = vst [vmem:[#allocation71_spill] sm:$0xff] %v7475_v33  ;;  %v7478_v19 = vld [vmem:[#allocation10 + $0x80] sm:$0xff]  ;;  %v7481_v40 = vld [vmem:[#allocation10 + $0x90] sm:$0xff] }
 0x517   :  { %2273 = vmatpush1.msra.mxu0 %v7466_v24  ;;  %2344 = vmatpush1.msra.mxu1 %v7469_v34  ;;  %10062 = vst [vmem:[#allocation72_spill] sm:$0xff] %v7478_v19  ;;  %10063 = vst [vmem:[#allocation73_spill] sm:$0xff] %v7481_v40  ;;  %v7484_v24 = vld [vmem:[#allocation10 + $0x68] sm:$0xff]  ;;  %v7487_v34 = vld [vmem:[#allocation10 + $0x78] sm:$0xff] }
 0x518   :  { %2274 = vmatprep.subr.mxu0 %v7472_v57  ;;  %2345 = vmatprep.subr.mxu1 %v7475_v33  ;;  %10064 = vst [vmem:[#allocation74_spill] sm:$0xff] %v7484_v24  ;;  %10065 = vst [vmem:[#allocation75_spill] sm:$0xff] %v7487_v34  ;;  %v7490_v57 = vld [vmem:[#allocation10 + $0x60] sm:$0xff]  ;;  %v7493_v33 = vld [vmem:[#allocation10 + $0x70] sm:$0xff] }
 0x519   :  { %2275 = vmatpush1.msra.mxu0 %v7478_v19  ;;  %2346 = vmatpush1.msra.mxu1 %v7481_v40  ;;  %10066 = vst [vmem:[#allocation76_spill] sm:$0xff] %v7490_v57  ;;  %10067 = vst [vmem:[#allocation77_spill] sm:$0xff] %v7493_v33  ;;  %v7496_v19 = vld [vmem:[#allocation10 + $0x48] sm:$0xff]  ;;  %v7499_v40 = vld [vmem:[#allocation10 + $0x58] sm:$0xff] }
 0x51a   :  { %2276 = vmatprep.subr.mxu0 %v7484_v24  ;;  %2347 = vmatprep.subr.mxu1 %v7487_v34  ;;  %10068 = vst [vmem:[#allocation78_spill] sm:$0xff] %v7496_v19  ;;  %10069 = vst [vmem:[#allocation79_spill] sm:$0xff] %v7499_v40  ;;  %v7502_v24 = vld [vmem:[#allocation10 + $0x40] sm:$0xff]  ;;  %v7505_v34 = vld [vmem:[#allocation10 + $0x50] sm:$0xff] }
 0x51b   :  { %2277 = vmatpush1.msra.mxu0 %v7490_v57  ;;  %2348 = vmatpush1.msra.mxu1 %v7493_v33  ;;  %10070 = vst [vmem:[#allocation80_spill] sm:$0xff] %v7502_v24  ;;  %10071 = vst [vmem:[#allocation81_spill] sm:$0xff] %v7505_v34  ;;  %v7508_v57 = vld [vmem:[#allocation10 + $0x28] sm:$0xff]  ;;  %v7511_v33 = vld [vmem:[#allocation10 + $0x38] sm:$0xff] }
 0x51c   :  { %2278 = vmatprep.subr.mxu0 %v7496_v19  ;;  %2349 = vmatprep.subr.mxu1 %v7499_v40  ;;  %10072 = vst [vmem:[#allocation82_spill] sm:$0xff] %v7508_v57  ;;  %10073 = vst [vmem:[#allocation83_spill] sm:$0xff] %v7511_v33  ;;  %v7514_v19 = vld [vmem:[#allocation10 + $0x20] sm:$0xff]  ;;  %v7517_v40 = vld [vmem:[#allocation10 + $0x30] sm:$0xff] }
 0x51d   :  { %2279 = vmatpush1.msra.mxu0 %v7502_v24  ;;  %2350 = vmatpush1.msra.mxu1 %v7505_v34  ;;  %10074 = vst [vmem:[#allocation84_spill] sm:$0xff] %v7514_v19  ;;  %10075 = vst [vmem:[#allocation85_spill] sm:$0xff] %v7517_v40  ;;  %v7520_v24 = vld [vmem:[#allocation10 + $0x8] sm:$0xff]  ;;  %v7523_v34 = vld [vmem:[#allocation10 + $0x18] sm:$0xff] }
 0x51e   :  { %2280 = vmatprep.subr.mxu0 %v7508_v57  ;;  %2351 = vmatprep.subr.mxu1 %v7511_v33  ;;  %10076 = vst [vmem:[#allocation86_spill] sm:$0xff] %v7520_v24  ;;  %10077 = vst [vmem:[#allocation87_spill] sm:$0xff] %v7523_v34  ;;  %v7526_v57 = vld [vmem:[#allocation10] sm:$0xff]  ;;  %v7529_v33 = vld [vmem:[#allocation10 + $0x10] sm:$0xff] }
 0x51f   :  { %2281 = vmatpush1.msra.mxu0 %v7514_v19  ;;  %2352 = vmatpush1.msra.mxu1 %v7517_v40  ;;  %10078 = vst [vmem:[#allocation88_spill] sm:$0xff] %v7526_v57  ;;  %10079 = vst [vmem:[#allocation89_spill] sm:$0xff] %v7529_v33  ;;  %v7532_v19 = vld [vmem:[#allocation10 + $0x3e8] sm:$0xff]  ;;  %v7535_v40 = vld [vmem:[#allocation10 + $0x3f8] sm:$0xff] }
 0x520   :  { %2282 = vmatprep.subr.mxu0 %v7520_v24  ;;  %2353 = vmatprep.subr.mxu1 %v7523_v34  ;;  %10080 = vst [vmem:[#allocation90_spill] sm:$0xff] %v7532_v19  ;;  %10081 = vst [vmem:[#allocation91_spill] sm:$0xff] %v7535_v40  ;;  %v7538_v24 = vld [vmem:[#allocation10 + $0x3e0] sm:$0xff]  ;;  %v7541_v34 = vld [vmem:[#allocation10 + $0x3f0] sm:$0xff] }
 0x521   :  { %2283 = vmatpush1.msra.mxu0 %v7526_v57  ;;  %2354 = vmatpush1.msra.mxu1 %v7529_v33  ;;  %10082 = vst [vmem:[#allocation92_spill] sm:$0xff] %v7538_v24  ;;  %10083 = vst [vmem:[#allocation93_spill] sm:$0xff] %v7541_v34  ;;  %v7544_v57 = vld [vmem:[#allocation10 + $0x3c8] sm:$0xff]  ;;  %v7547_v33 = vld [vmem:[#allocation10 + $0x3d8] sm:$0xff] }
 0x522   :  { %2284 = vmatprep.subr.mxu0 %v7532_v19  ;;  %2355 = vmatprep.subr.mxu1 %v7535_v40  ;;  %10084 = vst [vmem:[#allocation94_spill] sm:$0xff] %v7544_v57  ;;  %10085 = vst [vmem:[#allocation95_spill] sm:$0xff] %v7547_v33  ;;  %v7550_v19 = vld [vmem:[#allocation10 + $0x3c0] sm:$0xff]  ;;  %v7553_v40 = vld [vmem:[#allocation10 + $0x3d0] sm:$0xff] }
 0x523   :  { %2285 = vmatpush2.msra.mxu0 %v7538_v24  ;;  %2356 = vmatpush2.msra.mxu1 %v7541_v34  ;;  %10086 = vst [vmem:[#allocation96_spill] sm:$0xff] %v7550_v19  ;;  %10087 = vst [vmem:[#allocation97_spill] sm:$0xff] %v7553_v40  ;;  %v7556_v24 = vld [vmem:[#allocation10 + $0x3a8] sm:$0xff]  ;;  %v7559_v34 = vld [vmem:[#allocation10 + $0x3b8] sm:$0xff] }
 0x524   :  { %2286 = vmatprep.subr.mxu0 %v7544_v57  ;;  %2357 = vmatprep.subr.mxu1 %v7547_v33  ;;  %10088 = vst [vmem:[#allocation98_spill] sm:$0xff] %v7556_v24  ;;  %10089 = vst [vmem:[#allocation99_spill] sm:$0xff] %v7559_v34  ;;  %v7562_v57 = vld [vmem:[#allocation10 + $0x3a0] sm:$0xff]  ;;  %v7565_v33 = vld [vmem:[#allocation10 + $0x3b0] sm:$0xff] }
 0x525   :  { %2287 = vmatpush2.msra.mxu0 %v7550_v19  ;;  %2358 = vmatpush2.msra.mxu1 %v7553_v40  ;;  %10090 = vst [vmem:[#allocation100_spill] sm:$0xff] %v7562_v57  ;;  %10091 = vst [vmem:[#allocation101_spill] sm:$0xff] %v7565_v33  ;;  %v7568_v19 = vld [vmem:[#allocation10 + $0x388] sm:$0xff]  ;;  %v7571_v40 = vld [vmem:[#allocation10 + $0x398] sm:$0xff] }
 0x526   :  { %2288 = vmatprep.subr.mxu0 %v7556_v24  ;;  %2359 = vmatprep.subr.mxu1 %v7559_v34  ;;  %10092 = vst [vmem:[#allocation102_spill] sm:$0xff] %v7568_v19  ;;  %10093 = vst [vmem:[#allocation103_spill] sm:$0xff] %v7571_v40  ;;  %v7574_v24 = vld [vmem:[#allocation10 + $0x380] sm:$0xff]  ;;  %v7577_v34 = vld [vmem:[#allocation10 + $0x390] sm:$0xff] }
 0x527   :  { %2289 = vmatpush2.msra.mxu0 %v7562_v57  ;;  %2360 = vmatpush2.msra.mxu1 %v7565_v33  ;;  %10094 = vst [vmem:[#allocation104_spill] sm:$0xff] %v7574_v24  ;;  %10095 = vst [vmem:[#allocation105_spill] sm:$0xff] %v7577_v34  ;;  %v7580_v57 = vld [vmem:[#allocation10 + $0x368] sm:$0xff]  ;;  %v7583_v33 = vld [vmem:[#allocation10 + $0x378] sm:$0xff] }
 0x528   :  { %2290 = vmatprep.subr.mxu0 %v7568_v19  ;;  %2361 = vmatprep.subr.mxu1 %v7571_v40  ;;  %10096 = vst [vmem:[#allocation106_spill] sm:$0xff] %v7580_v57  ;;  %10097 = vst [vmem:[#allocation107_spill] sm:$0xff] %v7583_v33  ;;  %v7586_v19 = vld [vmem:[#allocation10 + $0x360] sm:$0xff]  ;;  %v7589_v40 = vld [vmem:[#allocation10 + $0x370] sm:$0xff] }
 0x529   :  { %2291 = vmatpush2.msra.mxu0 %v7574_v24  ;;  %2362 = vmatpush2.msra.mxu1 %v7577_v34  ;;  %10098 = vst [vmem:[#allocation108_spill] sm:$0xff] %v7586_v19  ;;  %10099 = vst [vmem:[#allocation109_spill] sm:$0xff] %v7589_v40  ;;  %v7592_v24 = vld [vmem:[#allocation10 + $0x348] sm:$0xff]  ;;  %v7595_v34 = vld [vmem:[#allocation10 + $0x358] sm:$0xff] }
 0x52a   :  { %2292 = vmatprep.subr.mxu0 %v7580_v57  ;;  %2363 = vmatprep.subr.mxu1 %v7583_v33  ;;  %10100 = vst [vmem:[#allocation110_spill] sm:$0xff] %v7592_v24  ;;  %10101 = vst [vmem:[#allocation111_spill] sm:$0xff] %v7595_v34  ;;  %v7598_v57 = vld [vmem:[#allocation10 + $0x340] sm:$0xff]  ;;  %v7601_v33 = vld [vmem:[#allocation10 + $0x350] sm:$0xff] }
 0x52b   :  { %2293 = vmatpush2.msra.mxu0 %v7586_v19  ;;  %2364 = vmatpush2.msra.mxu1 %v7589_v40  ;;  %10102 = vst [vmem:[#allocation112_spill] sm:$0xff] %v7598_v57  ;;  %10103 = vst [vmem:[#allocation113_spill] sm:$0xff] %v7601_v33  ;;  %v7604_v19 = vld [vmem:[#allocation10 + $0x328] sm:$0xff]  ;;  %v7607_v40 = vld [vmem:[#allocation10 + $0x338] sm:$0xff] }
 0x52c   :  { %2294 = vmatprep.subr.mxu0 %v7592_v24  ;;  %2365 = vmatprep.subr.mxu1 %v7595_v34  ;;  %10104 = vst [vmem:[#allocation114_spill] sm:$0xff] %v7604_v19  ;;  %10105 = vst [vmem:[#allocation115_spill] sm:$0xff] %v7607_v40  ;;  %v7610_v24 = vld [vmem:[#allocation10 + $0x320] sm:$0xff]  ;;  %v7613_v34 = vld [vmem:[#allocation10 + $0x330] sm:$0xff] }
 0x52d   :  { %2295 = vmatpush2.msra.mxu0 %v7598_v57  ;;  %2366 = vmatpush2.msra.mxu1 %v7601_v33  ;;  %10106 = vst [vmem:[#allocation116_spill] sm:$0xff] %v7610_v24  ;;  %10107 = vst [vmem:[#allocation117_spill] sm:$0xff] %v7613_v34  ;;  %v7616_v57 = vld [vmem:[#allocation10 + $0x308] sm:$0xff]  ;;  %v7619_v33 = vld [vmem:[#allocation10 + $0x318] sm:$0xff] }
 0x52e   :  { %2296 = vmatprep.subr.mxu0 %v7604_v19  ;;  %2367 = vmatprep.subr.mxu1 %v7607_v40  ;;  %10108 = vst [vmem:[#allocation118_spill] sm:$0xff] %v7616_v57  ;;  %10109 = vst [vmem:[#allocation119_spill] sm:$0xff] %v7619_v33  ;;  %v7622_v19 = vld [vmem:[#allocation10 + $0x300] sm:$0xff]  ;;  %v7625_v40 = vld [vmem:[#allocation10 + $0x310] sm:$0xff] }
 0x52f   :  { %2297 = vmatpush2.msra.mxu0 %v7610_v24  ;;  %2368 = vmatpush2.msra.mxu1 %v7613_v34  ;;  %10110 = vst [vmem:[#allocation120_spill] sm:$0xff] %v7622_v19  ;;  %10111 = vst [vmem:[#allocation121_spill] sm:$0xff] %v7625_v40  ;;  %v7628_v24 = vld [vmem:[#allocation10 + $0x2e8] sm:$0xff]  ;;  %v7631_v34 = vld [vmem:[#allocation10 + $0x2f8] sm:$0xff] }
 0x530   :  { %2298 = vmatprep.subr.mxu0 %v7616_v57  ;;  %2369 = vmatprep.subr.mxu1 %v7619_v33  ;;  %10112 = vst [vmem:[#allocation122_spill] sm:$0xff] %v7628_v24  ;;  %10113 = vst [vmem:[#allocation123_spill] sm:$0xff] %v7631_v34  ;;  %v7634_v57 = vld [vmem:[#allocation10 + $0x2e0] sm:$0xff]  ;;  %v7637_v33 = vld [vmem:[#allocation10 + $0x2f0] sm:$0xff] }
 0x531   :  { %2299 = vmatpush2.msra.mxu0 %v7622_v19  ;;  %2370 = vmatpush2.msra.mxu1 %v7625_v40  ;;  %10114 = vst [vmem:[#allocation124_spill] sm:$0xff] %v7634_v57  ;;  %10115 = vst [vmem:[#allocation125_spill] sm:$0xff] %v7637_v33  ;;  %v7640_v19 = vld [vmem:[#allocation10 + $0x2c8] sm:$0xff]  ;;  %v7643_v40 = vld [vmem:[#allocation10 + $0x2d8] sm:$0xff] }
 0x532   :  { %2300 = vmatprep.subr.mxu0 %v7628_v24  ;;  %2371 = vmatprep.subr.mxu1 %v7631_v34  ;;  %10116 = vst [vmem:[#allocation126_spill] sm:$0xff] %v7640_v19  ;;  %10117 = vst [vmem:[#allocation127_spill] sm:$0xff] %v7643_v40  ;;  %v7646_v24 = vld [vmem:[#allocation10 + $0x2c0] sm:$0xff]  ;;  %v7649_v34 = vld [vmem:[#allocation10 + $0x2d0] sm:$0xff] }
 0x533   :  { %2301 = vmatpush2.msra.mxu0 %v7634_v57  ;;  %2372 = vmatpush2.msra.mxu1 %v7637_v33  ;;  %10118 = vst [vmem:[#allocation128_spill] sm:$0xff] %v7646_v24  ;;  %10119 = vst [vmem:[#allocation129_spill] sm:$0xff] %v7649_v34  ;;  %v7652_v57 = vld [vmem:[#allocation10 + $0x2a8] sm:$0xff]  ;;  %v7655_v33 = vld [vmem:[#allocation10 + $0x2b8] sm:$0xff] }
 0x534   :  { %2302 = vmatprep.subr.mxu0 %v7640_v19  ;;  %2373 = vmatprep.subr.mxu1 %v7643_v40  ;;  %10120 = vst [vmem:[#allocation130_spill] sm:$0xff] %v7652_v57  ;;  %10121 = vst [vmem:[#allocation131_spill] sm:$0xff] %v7655_v33  ;;  %v7658_v19 = vld [vmem:[#allocation10 + $0x2a0] sm:$0xff]  ;;  %v7661_v40 = vld [vmem:[#allocation10 + $0x2b0] sm:$0xff] }
 0x535   :  { %2303 = vmatpush2.msra.mxu0 %v7646_v24  ;;  %2374 = vmatpush2.msra.mxu1 %v7649_v34  ;;  %10122 = vst [vmem:[#allocation132_spill] sm:$0xff] %v7658_v19  ;;  %10123 = vst [vmem:[#allocation133_spill] sm:$0xff] %v7661_v40  ;;  %v7664_v24 = vld [vmem:[#allocation10 + $0x288] sm:$0xff]  ;;  %v7667_v34 = vld [vmem:[#allocation10 + $0x298] sm:$0xff] }
 0x536   :  { %2304 = vmatprep.subr.mxu0 %v7652_v57  ;;  %2375 = vmatprep.subr.mxu1 %v7655_v33  ;;  %10124 = vst [vmem:[#allocation134_spill] sm:$0xff] %v7664_v24  ;;  %10125 = vst [vmem:[#allocation135_spill] sm:$0xff] %v7667_v34  ;;  %v7670_v57 = vld [vmem:[#allocation10 + $0x280] sm:$0xff]  ;;  %v7673_v33 = vld [vmem:[#allocation10 + $0x290] sm:$0xff] }
 0x537   :  { %2305 = vmatpush2.msra.mxu0 %v7658_v19  ;;  %2376 = vmatpush2.msra.mxu1 %v7661_v40  ;;  %10126 = vst [vmem:[#allocation136_spill] sm:$0xff] %v7670_v57  ;;  %10127 = vst [vmem:[#allocation137_spill] sm:$0xff] %v7673_v33  ;;  %v7676_v19 = vld [vmem:[#allocation10 + $0x268] sm:$0xff]  ;;  %v7679_v40 = vld [vmem:[#allocation10 + $0x278] sm:$0xff] }
 0x538   :  { %2306 = vmatprep.subr.mxu0 %v7664_v24  ;;  %2377 = vmatprep.subr.mxu1 %v7667_v34  ;;  %10128 = vst [vmem:[#allocation138_spill] sm:$0xff] %v7676_v19  ;;  %10129 = vst [vmem:[#allocation139_spill] sm:$0xff] %v7679_v40  ;;  %v7682_v24 = vld [vmem:[#allocation10 + $0x260] sm:$0xff]  ;;  %v7685_v34 = vld [vmem:[#allocation10 + $0x270] sm:$0xff] }
 0x539   :  { %2307 = vmatpush2.msra.mxu0 %v7670_v57  ;;  %2378 = vmatpush2.msra.mxu1 %v7673_v33  ;;  %10130 = vst [vmem:[#allocation140_spill] sm:$0xff] %v7682_v24  ;;  %10131 = vst [vmem:[#allocation141_spill] sm:$0xff] %v7685_v34  ;;  %v7688_v57 = vld [vmem:[#allocation10 + $0x248] sm:$0xff]  ;;  %v7691_v33 = vld [vmem:[#allocation10 + $0x258] sm:$0xff] }
 0x53a   :  { %2308 = vmatprep.subr.mxu0 %v7676_v19  ;;  %2379 = vmatprep.subr.mxu1 %v7679_v40  ;;  %10132 = vst [vmem:[#allocation142_spill] sm:$0xff] %v7688_v57  ;;  %10133 = vst [vmem:[#allocation143_spill] sm:$0xff] %v7691_v33  ;;  %v7694_v19 = vld [vmem:[#allocation10 + $0x240] sm:$0xff]  ;;  %v7697_v40 = vld [vmem:[#allocation10 + $0x250] sm:$0xff] }
 0x53b   :  { %2309 = vmatpush2.msra.mxu0 %v7682_v24  ;;  %2380 = vmatpush2.msra.mxu1 %v7685_v34  ;;  %10134 = vst [vmem:[#allocation144_spill] sm:$0xff] %v7694_v19  ;;  %10135 = vst [vmem:[#allocation145_spill] sm:$0xff] %v7697_v40  ;;  %v7700_v24 = vld [vmem:[#allocation10 + $0x228] sm:$0xff]  ;;  %v7703_v34 = vld [vmem:[#allocation10 + $0x238] sm:$0xff] }
 0x53c   :  { %2310 = vmatprep.subr.mxu0 %v7688_v57  ;;  %2381 = vmatprep.subr.mxu1 %v7691_v33  ;;  %10136 = vst [vmem:[#allocation146_spill] sm:$0xff] %v7700_v24  ;;  %10137 = vst [vmem:[#allocation147_spill] sm:$0xff] %v7703_v34  ;;  %v7706_v57 = vld [vmem:[#allocation10 + $0x220] sm:$0xff]  ;;  %v7709_v33 = vld [vmem:[#allocation10 + $0x230] sm:$0xff] }
 0x53d   :  { %2311 = vmatpush2.msra.mxu0 %v7694_v19  ;;  %2382 = vmatpush2.msra.mxu1 %v7697_v40  ;;  %10138 = vst [vmem:[#allocation148_spill] sm:$0xff] %v7706_v57  ;;  %10139 = vst [vmem:[#allocation149_spill] sm:$0xff] %v7709_v33  ;;  %v7712_v19 = vld [vmem:[#allocation10 + $0x208] sm:$0xff]  ;;  %v7715_v40 = vld [vmem:[#allocation10 + $0x218] sm:$0xff] }
 0x53e   :  { %2312 = vmatprep.subr.mxu0 %v7700_v24  ;;  %2383 = vmatprep.subr.mxu1 %v7703_v34  ;;  %10140 = vst [vmem:[#allocation150_spill] sm:$0xff] %v7712_v19  ;;  %10141 = vst [vmem:[#allocation151_spill] sm:$0xff] %v7715_v40  ;;  %v7718_v24 = vld [vmem:[#allocation10 + $0x200] sm:$0xff]  ;;  %v7721_v34 = vld [vmem:[#allocation10 + $0x210] sm:$0xff] }
 0x53f   :  { %2313 = vmatpush2.msra.mxu0 %v7706_v57  ;;  %2384 = vmatpush2.msra.mxu1 %v7709_v33  ;;  %10142 = vst [vmem:[#allocation152_spill] sm:$0xff] %v7718_v24  ;;  %10143 = vst [vmem:[#allocation153_spill] sm:$0xff] %v7721_v34 }
 0x540   :  { %2314 = vmatprep.subr.mxu0 %v7712_v19  ;;  %2385 = vmatprep.subr.mxu1 %v7715_v40 }
 0x541   :  { %2315 = vmatpush2.msra.mxu0 %v7718_v24  ;;  %2386 = vmatpush2.msra.mxu1 %v7721_v34 }
 0x542   :  { %2427 = vmatprep.subr.mxu0 %v7156_v52  ;;  %2498 = vmatprep.subr.mxu1 %v7159_v6 }
 0x5a0   :  { %v1973_v33 = vpop.f32.mrf.mxu0  ;;  %v2044_v37 = vpop.f32.mrf.mxu1 }
 0x5a1   :  { %v1974_v57 = vadd.f32 %v1973_v33, %v10005_v15  ;;  %v2045_v24 = vadd.f32 %v2044_v37, %v10007_v54 }
 0x5a2   :  { %v1975_v19 = vpop.f32.mrf.mxu0  ;;  %v2046_v32 = vpop.f32.mrf.mxu1 }
 0x5a3   :  { %v4137_v39 = vmul.f32 -1.442695, %v1974_v57  ;;  %v1976_v38 = vadd.f32 %v1975_v19, %v10006_v47  ;;  %v4139_v31 = vmul.f32 -1.442695, %v2045_v24  ;;  %v2047_v52 = vadd.f32 %v2046_v32, %v10008_v36  ;;  %v10145_v24 = vld [vmem:[#allocation170_spill] sm:$0xff] }
 0x5a5   :  { %4348 = vpow2.f32 %v4137_v39  ;;  %v4138_v40 = vmul.f32 -1.442695, %v1976_v38  ;;  %v10144_v38 = vld [vmem:[#allocation168_spill] sm:$0xff] }
 0x5a7   :  { %4350 = vpow2.f32 %v4138_v40 }
 0x5a8   :  { %4352 = vpow2.f32 %v4139_v31 }
 0x5b2   :  { %v4349_v34 = vpop.eup %4348 }
 0x5b3   :  { %v2058_v45 = vadd.f32 1.0, %v4349_v34 }
 0x5b4   :  { %v4351_v6 = vpop.eup %4350 }
 0x5b5   :  { %4354 = vrcp.f32 %v2058_v45  ;;  %v2059_v33 = vadd.f32 1.0, %v4351_v6  ;;  %v4353_v57 = vpop.eup %4352  ;;  %v10146_v6 = vld [vmem:[#allocation169_spill] sm:$0xff] }
 0x5b6   :  { %4356 = vtanh.f32 %v2047_v52  ;;  %v2060_v55 = vadd.f32 1.0, %v4353_v57 }
 0x5b7   :  { %4358 = vrcp.f32 %v2059_v33 }
 0x5c1   :  { %v2148_v19 = vpop.f32.mrf.mxu0  ;;  %v2219_v52 = vpop.f32.mrf.mxu1 }
 0x5c2   :  { %v4355_v39 = vpop.eup %4354  ;;  %v2224_v40 = vadd.f32 %v2148_v19, %v10144_v38  ;;  %v2226_v33 = vadd.f32 %v2219_v52, %v10146_v6 }
 0x5c3   :  { %v4357_v47 = vpop.eup %4356  ;;  %v2150_v15 = vpop.f32.mrf.mxu0 }
 0x5c4   :  { %v4359_v37 = vpop.eup %4358  ;;  %v4140_v54 = vmul.f32 -1.442695, %v2224_v40  ;;  %v2225_v60 = vadd.f32 %v2150_v15, %v10145_v24  ;;  %v2069_v34 = vmul.f32 %v4357_v47, %v4355_v39  ;;  %v2221_v19 = vpop.f32.mrf.mxu1  ;;  %v4142_v38 = vmul.f32 -1.442695, %v2226_v33  ;;  %v10147_v40 = vld [vmem:[#allocation171_spill] sm:$0xff] }
 0x5c5   :  { %v2068_v32 = vmul.f32 %v4359_v37, %v7169_v16  ;;  %v2227_v36 = vadd.f32 %v2221_v19, %v10147_v40  ;;  %v7753_v40 = vld [vmem:[#allocation9 + $0x1f0] sm:$0xff] }
 0x5c6   :  { %4360 = vpow2.f32 %v4140_v54  ;;  %v4141_v45 = vmul.f32 -1.442695, %v2225_v60 }
 0x5c7   :  { %v7733_v31 = vadd.f32 %v2069_v34, %v2068_v32 }
 0x5c8   :  { %4362 = vpow2.f32 %v4141_v45 }
 0x5c9   :  { %4364 = vrcp.f32 %v2060_v55 }
 0x5ca   :  { %4366 = vtanh.f32 %v7733_v31 }
 0x5cb   :  { %4368 = vpow2.f32 %v4142_v38  ;;  %v7750_v38 = vld [vmem:[#allocation9 + $0x1e0] sm:$0xff] }
 0x5cc   :  { %4370 = vtanh.f32 %v2227_v36 }
 0x5d3   :  { %v4361_v15 = vpop.eup %4360 }
 0x5d4   :  { %v2237_v57 = vadd.f32 1.0, %v4361_v15  ;;  %v7759_v15 = vld [vmem:[#allocation9 + $0x1d8] sm:$0xff] }
 0x5d5   :  { %v4363_v16 = vpop.eup %4362 }
 0x5d6   :  { %v4365_v47 = vpop.eup %4364  ;;  %4372 = vrcp.f32 %v2237_v57  ;;  %v2238_v60 = vadd.f32 1.0, %v4363_v16  ;;  %v7762_v57 = vld [vmem:[#allocation9 + $0x1c0] sm:$0xff]  ;;  %v7765_v16 = vld [vmem:[#allocation9 + $0x1d0] sm:$0xff] }
 0x5d7   :  { %v4367_v54 = vpop.eup %4366 }
 0x5d8   :  { %4374 = vrcp.f32 %v2238_v60  ;;  %v7738_v55 = vmul.f32 %v4367_v54, %v4365_v47  ;;  %v4369_v39 = vpop.eup %4368  ;;  %v7768_v47 = vld [vmem:[#allocation9 + $0x1a8] sm:$0xff]  ;;  %v7771_v60 = vld [vmem:[#allocation9 + $0x1b8] sm:$0xff]  ;;  %v7774_v54 = vld [vmem:[#allocation9 + $0x1a0] sm:$0xff] }
 0x5d9   :  { %v4371_v37 = vpop.eup %4370  ;;  %v2239_v45 = vadd.f32 1.0, %v4369_v39  ;;  %v7777_v39 = vld [vmem:[#allocation9 + $0x1b0] sm:$0xff] }
 0x5da   :  { %10148 = vst [vmem:[#allocation156_spill] sm:$0xff] %v7738_v55  ;;  %2316 = vmatprep.mubr.f32.mxu0 %v7738_v55  ;;  %2387 = vmatprep.mubr.f32.mxu1 %v7738_v55  ;;  %v8194_v55 = vld [vmem:[#allocation10 + $0x1a0] sm:$0xff] }
 0x5db   :  { %4376 = vrcp.f32 %v2239_v45  ;;  %v7792_v45 = vld [vmem:[#allocation9 + $0x168] sm:$0xff] }
 0x5e3   :  { %v4373_v24 = vpop.eup %4372 }
 0x5e4   :  { %v2248_v32 = vmul.f32 %v4373_v24, %v4371_v37  ;;  %v7780_v37 = vld [vmem:[#allocation9 + $0x188] sm:$0xff]  ;;  %v7783_v24 = vld [vmem:[#allocation9 + $0x198] sm:$0xff] }
 0x5e5   :  { %v4375_v34 = vpop.eup %4374 }
 0x5e6   :  { %v2247_v52 = vmul.f32 %v4375_v34, %v7179_v48  ;;  %v7756_v48 = vld [vmem:[#allocation9 + $0x1c8] sm:$0xff]  ;;  %v7789_v34 = vld [vmem:[#allocation9 + $0x190] sm:$0xff] }
 0x5e8   :  { %v7743_v36 = vadd.f32 %v2248_v32, %v2247_v52  ;;  %v4377_v6 = vpop.eup %4376  ;;  %v7786_v32 = vld [vmem:[#allocation9 + $0x180] sm:$0xff]  ;;  %v7795_v52 = vld [vmem:[#allocation9 + $0x178] sm:$0xff] }
 0x5ea   :  { %4378 = vtanh.f32 %v7743_v36 }
 0x5f7   :  { %v4379_v33 = vpop.eup %4378 }
 0x5f8   :  { %v7746_v19 = vmul.f32 %v4379_v33, %v4377_v6  ;;  %v7798_v6 = vld [vmem:[#allocation9 + $0x160] sm:$0xff]  ;;  %v7801_v33 = vld [vmem:[#allocation9 + $0x170] sm:$0xff] }
 0x5fa   :  { %2317 = vmatmul.mubr.f32.vlgmr.msra.gmra.mxu0 %v7746_v19  ;;  %2388 = vmatmul.mubr.f32.vlgmr.msra.gmra.mxu1 %v7746_v19 }
 0x5fb   :  { %2428 = vmatpush1.msra.mxu0 %v7750_v38  ;;  %2499 = vmatpush1.msra.mxu1 %v7753_v40 }
 0x5fc   :  { %2429 = vmatprep.subr.mxu0 %v7756_v48  ;;  %2500 = vmatprep.subr.mxu1 %v7759_v15 }
 0x5fd   :  { %2430 = vmatpush1.msra.mxu0 %v7762_v57  ;;  %2501 = vmatpush1.msra.mxu1 %v7765_v16 }
 0x5fe   :  { %2431 = vmatprep.subr.mxu0 %v7768_v47  ;;  %2502 = vmatprep.subr.mxu1 %v7771_v60 }
 0x5ff   :  { %2432 = vmatpush1.msra.mxu0 %v7774_v54  ;;  %2503 = vmatpush1.msra.mxu1 %v7777_v39 }
 0x600   :  { %2433 = vmatprep.subr.mxu0 %v7780_v37  ;;  %2504 = vmatprep.subr.mxu1 %v7783_v24 }
 0x601   :  { %2434 = vmatpush1.msra.mxu0 %v7786_v32  ;;  %2505 = vmatpush1.msra.mxu1 %v7789_v34 }
 0x602   :  { %2435 = vmatprep.subr.mxu0 %v7792_v45  ;;  %2506 = vmatprep.subr.mxu1 %v7795_v52 }
 0x603   :  { %2436 = vmatpush1.msra.mxu0 %v7798_v6  ;;  %2507 = vmatpush1.msra.mxu1 %v7801_v33 }
 0x604   :  { %2437 = vmatprep.subr.mxu0 %v7204_v17  ;;  %2508 = vmatprep.subr.mxu1 %v7207_v25  ;;  %v10149_v17 = vld [vmem:[#allocation162_spill] sm:$0xff]  ;;  %v10150_v25 = vmov 0.0  }
 0x605   :  { %2438 = vmatpush1.msra.mxu0 %v7210_v28  ;;  %2509 = vmatpush1.msra.mxu1 %v7213_v27  ;;  %v10151_v28 = vld [vmem:[#allocation161_spill] sm:$0xff]  ;;  %v10152_v27 = vld [vmem:[#allocation163_spill] sm:$0xff] }
 0x606   :  { %2439 = vmatprep.subr.mxu0 %v7216_v1  ;;  %2510 = vmatprep.subr.mxu1 %v7219_v35  ;;  %v10153_v1 = vld [vmem:[#allocation27_spill] sm:$0xff]  ;;  %v10154_v35 = vld [vmem:[#allocation28_spill] sm:$0xff] }
 0x607   :  { %2440 = vmatpush1.msra.mxu0 %v7222_v56  ;;  %2511 = vmatpush1.msra.mxu1 %v7225_v2  ;;  %v10155_v56 = vld [vmem:[#allocation29_spill] sm:$0xff]  ;;  %v10156_v2 = vld [vmem:[#allocation30_spill] sm:$0xff]  ;;  %10301 = vst [vmem:[#allocation27_spill] sm:$0xff] %v8194_v55 }
 0x608   :  { %2441 = vmatprep.subr.mxu0 %v7228_v58  ;;  %2512 = vmatprep.subr.mxu1 %v7231_v12  ;;  %v10157_v58 = vld [vmem:[#allocation31_spill] sm:$0xff]  ;;  %v10158_v12 = vld [vmem:[#allocation32_spill] sm:$0xff] }
 0x609   :  { %2442 = vmatpush1.msra.mxu0 %v7234_v26  ;;  %2513 = vmatpush1.msra.mxu1 %v7237_v23  ;;  %v10159_v26 = vld [vmem:[#allocation33_spill] sm:$0xff]  ;;  %v10160_v23 = vld [vmem:[#allocation34_spill] sm:$0xff] }
 0x60a   :  { %2443 = vmatprep.subr.mxu0 %v7240_v29  ;;  %2514 = vmatprep.subr.mxu1 %v7243_v22  ;;  %v10161_v29 = vld [vmem:[#allocation35_spill] sm:$0xff]  ;;  %v10162_v22 = vld [vmem:[#allocation36_spill] sm:$0xff] }
 0x60b   :  { %2444 = vmatpush1.msra.mxu0 %v7246_v30  ;;  %2515 = vmatpush1.msra.mxu1 %v7249_v20  ;;  %v10163_v30 = vld [vmem:[#allocation37_spill] sm:$0xff]  ;;  %v10164_v20 = vld [vmem:[#allocation38_spill] sm:$0xff] }
 0x60c   :  { %2445 = vmatprep.subr.mxu0 %v7252_v59  ;;  %2516 = vmatprep.subr.mxu1 %v7255_v61  ;;  %v10165_v59 = vld [vmem:[#allocation39_spill] sm:$0xff]  ;;  %v10166_v61 = vld [vmem:[#allocation40_spill] sm:$0xff] }
 0x60d   :  { %2446 = vmatpush1.msra.mxu0 %v7258_v63  ;;  %2517 = vmatpush1.msra.mxu1 %v7261_v62  ;;  %v10167_v63 = vld [vmem:[#allocation41_spill] sm:$0xff]  ;;  %v10168_v62 = vld [vmem:[#allocation42_spill] sm:$0xff] }
 0x60e   :  { %2447 = vmatprep.subr.mxu0 %v7264_v3  ;;  %2518 = vmatprep.subr.mxu1 %v7267_v4  ;;  %v10169_v3 = vld [vmem:[#allocation43_spill] sm:$0xff]  ;;  %v10170_v4 = vld [vmem:[#allocation44_spill] sm:$0xff] }
 0x60f   :  { %2448 = vmatpush1.msra.mxu0 %v7270_v5  ;;  %2519 = vmatpush1.msra.mxu1 %v7273_v7  ;;  %v10171_v5 = vld [vmem:[#allocation45_spill] sm:$0xff]  ;;  %v10172_v7 = vld [vmem:[#allocation46_spill] sm:$0xff] }
 0x610   :  { %2449 = vmatprep.subr.mxu0 %v7276_v8  ;;  %2520 = vmatprep.subr.mxu1 %v7279_v9  ;;  %v10173_v8 = vld [vmem:[#allocation47_spill] sm:$0xff]  ;;  %v10174_v9 = vld [vmem:[#allocation48_spill] sm:$0xff] }
 0x611   :  { %2450 = vmatpush1.msra.mxu0 %v7282_v10  ;;  %2521 = vmatpush1.msra.mxu1 %v7285_v11  ;;  %v10175_v10 = vld [vmem:[#allocation49_spill] sm:$0xff]  ;;  %v10176_v11 = vld [vmem:[#allocation50_spill] sm:$0xff] }
 0x612   :  { %2451 = vmatprep.subr.mxu0 %v7288_v13  ;;  %2522 = vmatprep.subr.mxu1 %v7291_v14  ;;  %v10177_v13 = vld [vmem:[#allocation51_spill] sm:$0xff]  ;;  %v10178_v14 = vld [vmem:[#allocation52_spill] sm:$0xff] }
 0x613   :  { %2452 = vmatpush1.msra.mxu0 %v7294_v18  ;;  %2523 = vmatpush1.msra.mxu1 %v7297_v44  ;;  %v10179_v18 = vld [vmem:[#allocation53_spill] sm:$0xff]  ;;  %v10180_v44 = vld [vmem:[#allocation54_spill] sm:$0xff] }
 0x614   :  { %2453 = vmatprep.subr.mxu0 %v7300_v50  ;;  %2524 = vmatprep.subr.mxu1 %v7303_v43  ;;  %v10181_v50 = vld [vmem:[#allocation55_spill] sm:$0xff]  ;;  %v10182_v43 = vld [vmem:[#allocation56_spill] sm:$0xff] }
 0x615   :  { %2454 = vmatpush1.msra.mxu0 %v7306_v42  ;;  %2525 = vmatpush1.msra.mxu1 %v7309_v53  ;;  %v10183_v42 = vld [vmem:[#allocation57_spill] sm:$0xff]  ;;  %v10184_v53 = vld [vmem:[#allocation58_spill] sm:$0xff] }
 0x616   :  { %2455 = vmatprep.subr.mxu0 %v7312_v0  ;;  %2526 = vmatprep.subr.mxu1 %v7315_v49  ;;  %v10185_v0 = vld [vmem:[#allocation59_spill] sm:$0xff]  ;;  %v10186_v49 = vld [vmem:[#allocation60_spill] sm:$0xff] }
 0x617   :  { %2456 = vmatpush1.msra.mxu0 %v7318_v41  ;;  %2527 = vmatpush1.msra.mxu1 %v7321_v21  ;;  %v10187_v41 = vld [vmem:[#allocation61_spill] sm:$0xff]  ;;  %v10188_v21 = vld [vmem:[#allocation62_spill] sm:$0xff] }
 0x618   :  { %2457 = vmatprep.subr.mxu0 %v7324_v51  ;;  %2528 = vmatprep.subr.mxu1 %v7327_v46  ;;  %v10189_v51 = vld [vmem:[#allocation63_spill] sm:$0xff]  ;;  %v10190_v46 = vld [vmem:[#allocation64_spill] sm:$0xff] }
 0x619   :  { %2458 = vmatpush1.msra.mxu0 %v10149_v17  ;;  %2491 = vmatprep.mubr.f32.mxu0 %v10150_v25  ;;  %v10192_v17 = vld [vmem:[#allocation66_spill] sm:$0xff] }
 0x61a   :  { %2529 = vmatpush1.msra.mxu1 %v10151_v28  ;;  %2562 = vmatprep.mubr.f32.mxu1 %v10150_v25  ;;  %v10193_v28 = vld [vmem:[#allocation67_spill] sm:$0xff] }
 0x61b   :  { %2492 = vmatmul.mubr.f32.vlgmr.msra.gmra.mxu0 %v7746_v19  ;;  %2563 = vmatmul.mubr.f32.vlgmr.msra.gmra.mxu1 %v7746_v19  ;;  %v10191_v19 = vld [vmem:[#allocation65_spill] sm:$0xff] }
 0x61c   :  { %2597 = vmatprep.subr.mxu0 %v10152_v27  ;;  %2668 = vmatprep.subr.mxu1 %v10153_v1  ;;  %v10194_v27 = vld [vmem:[#allocation68_spill] sm:$0xff]  ;;  %v10195_v1 = vld [vmem:[#allocation69_spill] sm:$0xff] }
 0x61d   :  { %2598 = vmatpush1.msra.mxu0 %v10154_v35  ;;  %2669 = vmatpush1.msra.mxu1 %v10155_v56  ;;  %v10196_v35 = vld [vmem:[#allocation70_spill] sm:$0xff]  ;;  %v10197_v56 = vld [vmem:[#allocation71_spill] sm:$0xff] }
 0x61e   :  { %2599 = vmatprep.subr.mxu0 %v10156_v2  ;;  %2670 = vmatprep.subr.mxu1 %v10157_v58  ;;  %v10198_v2 = vld [vmem:[#allocation72_spill] sm:$0xff]  ;;  %v10199_v58 = vld [vmem:[#allocation73_spill] sm:$0xff] }
 0x61f   :  { %2600 = vmatpush1.msra.mxu0 %v10158_v12  ;;  %2671 = vmatpush1.msra.mxu1 %v10159_v26  ;;  %v10200_v12 = vld [vmem:[#allocation74_spill] sm:$0xff]  ;;  %v10201_v26 = vld [vmem:[#allocation75_spill] sm:$0xff] }
 0x620   :  { %2601 = vmatprep.subr.mxu0 %v10160_v23  ;;  %2672 = vmatprep.subr.mxu1 %v10161_v29  ;;  %v10202_v23 = vld [vmem:[#allocation76_spill] sm:$0xff]  ;;  %v10203_v29 = vld [vmem:[#allocation77_spill] sm:$0xff] }
 0x621   :  { %2602 = vmatpush1.msra.mxu0 %v10162_v22  ;;  %2673 = vmatpush1.msra.mxu1 %v10163_v30  ;;  %v10204_v22 = vld [vmem:[#allocation78_spill] sm:$0xff]  ;;  %v10205_v30 = vld [vmem:[#allocation79_spill] sm:$0xff] }
 0x622   :  { %2603 = vmatprep.subr.mxu0 %v10164_v20  ;;  %2674 = vmatprep.subr.mxu1 %v10165_v59  ;;  %v10206_v20 = vld [vmem:[#allocation80_spill] sm:$0xff]  ;;  %v10207_v59 = vld [vmem:[#allocation81_spill] sm:$0xff] }
 0x623   :  { %2604 = vmatpush1.msra.mxu0 %v10166_v61  ;;  %2675 = vmatpush1.msra.mxu1 %v10167_v63  ;;  %v10208_v61 = vld [vmem:[#allocation82_spill] sm:$0xff]  ;;  %v10209_v63 = vld [vmem:[#allocation83_spill] sm:$0xff] }
 0x624   :  { %2605 = vmatprep.subr.mxu0 %v10168_v62  ;;  %2676 = vmatprep.subr.mxu1 %v10169_v3  ;;  %v10210_v62 = vld [vmem:[#allocation84_spill] sm:$0xff]  ;;  %v10211_v3 = vld [vmem:[#allocation85_spill] sm:$0xff] }
 0x625   :  { %2606 = vmatpush1.msra.mxu0 %v10170_v4  ;;  %2677 = vmatpush1.msra.mxu1 %v10171_v5  ;;  %v10212_v4 = vld [vmem:[#allocation86_spill] sm:$0xff]  ;;  %v10213_v5 = vld [vmem:[#allocation87_spill] sm:$0xff] }
 0x626   :  { %2607 = vmatprep.subr.mxu0 %v10172_v7  ;;  %2678 = vmatprep.subr.mxu1 %v10173_v8  ;;  %v10214_v7 = vld [vmem:[#allocation88_spill] sm:$0xff]  ;;  %v10215_v8 = vld [vmem:[#allocation89_spill] sm:$0xff] }
 0x627   :  { %2608 = vmatpush1.msra.mxu0 %v10174_v9  ;;  %2679 = vmatpush1.msra.mxu1 %v10175_v10  ;;  %v10216_v9 = vld [vmem:[#allocation90_spill] sm:$0xff]  ;;  %v10217_v10 = vld [vmem:[#allocation91_spill] sm:$0xff] }
 0x628   :  { %2609 = vmatprep.subr.mxu0 %v10176_v11  ;;  %2680 = vmatprep.subr.mxu1 %v10177_v13  ;;  %v10218_v11 = vld [vmem:[#allocation92_spill] sm:$0xff]  ;;  %v10219_v13 = vld [vmem:[#allocation93_spill] sm:$0xff] }
 0x629   :  { %2610 = vmatpush1.msra.mxu0 %v10178_v14  ;;  %2681 = vmatpush1.msra.mxu1 %v10179_v18  ;;  %v10220_v14 = vld [vmem:[#allocation94_spill] sm:$0xff]  ;;  %v10221_v18 = vld [vmem:[#allocation95_spill] sm:$0xff] }
 0x62a   :  { %2611 = vmatprep.subr.mxu0 %v10180_v44  ;;  %2682 = vmatprep.subr.mxu1 %v10181_v50  ;;  %v10222_v44 = vld [vmem:[#allocation96_spill] sm:$0xff]  ;;  %v10223_v50 = vld [vmem:[#allocation97_spill] sm:$0xff] }
 0x62b   :  { %2612 = vmatpush1.msra.mxu0 %v10182_v43  ;;  %2683 = vmatpush1.msra.mxu1 %v10183_v42  ;;  %v10224_v43 = vld [vmem:[#allocation98_spill] sm:$0xff]  ;;  %v10225_v42 = vld [vmem:[#allocation99_spill] sm:$0xff] }
 0x62c   :  { %2613 = vmatprep.subr.mxu0 %v10184_v53  ;;  %2684 = vmatprep.subr.mxu1 %v10185_v0  ;;  %v10226_v53 = vld [vmem:[#allocation100_spill] sm:$0xff]  ;;  %v10227_v0 = vld [vmem:[#allocation101_spill] sm:$0xff] }
 0x62d   :  { %2614 = vmatpush1.msra.mxu0 %v10186_v49  ;;  %2685 = vmatpush1.msra.mxu1 %v10187_v41  ;;  %v10228_v49 = vld [vmem:[#allocation102_spill] sm:$0xff]  ;;  %v10229_v41 = vld [vmem:[#allocation103_spill] sm:$0xff] }
 0x62e   :  { %2615 = vmatprep.subr.mxu0 %v10188_v21  ;;  %2686 = vmatprep.subr.mxu1 %v10189_v51  ;;  %v10230_v21 = vld [vmem:[#allocation104_spill] sm:$0xff]  ;;  %v10231_v51 = vld [vmem:[#allocation105_spill] sm:$0xff] }
 0x62f   :  { %2616 = vmatpush1.msra.mxu0 %v10190_v46  ;;  %2687 = vmatpush1.msra.mxu1 %v10191_v19  ;;  %v10232_v46 = vld [vmem:[#allocation106_spill] sm:$0xff]  ;;  %v10233_v19 = vld [vmem:[#allocation107_spill] sm:$0xff] }
 0x630   :  { %2617 = vmatprep.subr.mxu0 %v10192_v17  ;;  %2688 = vmatprep.subr.mxu1 %v10193_v28  ;;  %v10234_v17 = vld [vmem:[#allocation108_spill] sm:$0xff]  ;;  %v10235_v28 = vld [vmem:[#allocation109_spill] sm:$0xff] }
 0x631   :  { %2618 = vmatpush1.msra.mxu0 %v10194_v27  ;;  %2689 = vmatpush1.msra.mxu1 %v10195_v1  ;;  %v10236_v27 = vld [vmem:[#allocation110_spill] sm:$0xff]  ;;  %v10237_v1 = vld [vmem:[#allocation111_spill] sm:$0xff] }
 0x632   :  { %2619 = vmatprep.subr.mxu0 %v10196_v35  ;;  %2690 = vmatprep.subr.mxu1 %v10197_v56  ;;  %v10238_v35 = vld [vmem:[#allocation112_spill] sm:$0xff]  ;;  %v10239_v56 = vld [vmem:[#allocation113_spill] sm:$0xff] }
 0x633   :  { %2620 = vmatpush1.msra.mxu0 %v10198_v2  ;;  %2691 = vmatpush1.msra.mxu1 %v10199_v58  ;;  %v10240_v2 = vld [vmem:[#allocation114_spill] sm:$0xff]  ;;  %v10241_v58 = vld [vmem:[#allocation115_spill] sm:$0xff] }
 0x634   :  { %2621 = vmatprep.subr.mxu0 %v10200_v12  ;;  %2692 = vmatprep.subr.mxu1 %v10201_v26  ;;  %v10242_v12 = vld [vmem:[#allocation116_spill] sm:$0xff]  ;;  %v10243_v26 = vld [vmem:[#allocation117_spill] sm:$0xff] }
 0x635   :  { %2622 = vmatpush1.msra.mxu0 %v10202_v23  ;;  %2693 = vmatpush1.msra.mxu1 %v10203_v29  ;;  %v10244_v23 = vld [vmem:[#allocation118_spill] sm:$0xff]  ;;  %v10245_v29 = vld [vmem:[#allocation119_spill] sm:$0xff] }
 0x636   :  { %2623 = vmatprep.subr.mxu0 %v10204_v22  ;;  %2694 = vmatprep.subr.mxu1 %v10205_v30  ;;  %v10246_v22 = vld [vmem:[#allocation120_spill] sm:$0xff]  ;;  %v10247_v30 = vld [vmem:[#allocation121_spill] sm:$0xff] }
 0x637   :  { %2624 = vmatpush1.msra.mxu0 %v10206_v20  ;;  %2695 = vmatpush1.msra.mxu1 %v10207_v59  ;;  %v10248_v20 = vld [vmem:[#allocation122_spill] sm:$0xff]  ;;  %v10249_v59 = vld [vmem:[#allocation123_spill] sm:$0xff] }
 0x638   :  { %2625 = vmatprep.subr.mxu0 %v10208_v61  ;;  %2696 = vmatprep.subr.mxu1 %v10209_v63  ;;  %v10250_v61 = vld [vmem:[#allocation124_spill] sm:$0xff]  ;;  %v10251_v63 = vld [vmem:[#allocation125_spill] sm:$0xff] }
 0x639   :  { %2626 = vmatpush1.msra.mxu0 %v10210_v62  ;;  %2697 = vmatpush1.msra.mxu1 %v10211_v3  ;;  %v10252_v62 = vld [vmem:[#allocation126_spill] sm:$0xff]  ;;  %v10253_v3 = vld [vmem:[#allocation127_spill] sm:$0xff] }
 0x63a   :  { %2627 = vmatprep.subr.mxu0 %v10212_v4  ;;  %2698 = vmatprep.subr.mxu1 %v10213_v5  ;;  %v10254_v4 = vld [vmem:[#allocation128_spill] sm:$0xff]  ;;  %v10255_v5 = vld [vmem:[#allocation129_spill] sm:$0xff] }
 0x63b   :  { %2628 = vmatpush1.msra.mxu0 %v10214_v7  ;;  %2699 = vmatpush1.msra.mxu1 %v10215_v8  ;;  %v10256_v7 = vld [vmem:[#allocation130_spill] sm:$0xff]  ;;  %v10257_v8 = vld [vmem:[#allocation131_spill] sm:$0xff] }
 0x63c   :  { %2629 = vmatprep.subr.mxu0 %v10216_v9  ;;  %2700 = vmatprep.subr.mxu1 %v10217_v10  ;;  %v10258_v9 = vld [vmem:[#allocation132_spill] sm:$0xff]  ;;  %v10259_v10 = vld [vmem:[#allocation133_spill] sm:$0xff] }
 0x63d   :  { %2630 = vmatpush2.msra.mxu0 %v10218_v11  ;;  %2701 = vmatpush2.msra.mxu1 %v10219_v13  ;;  %v10260_v11 = vld [vmem:[#allocation134_spill] sm:$0xff]  ;;  %v10261_v13 = vld [vmem:[#allocation135_spill] sm:$0xff] }
 0x63e   :  { %2631 = vmatprep.subr.mxu0 %v10220_v14  ;;  %2702 = vmatprep.subr.mxu1 %v10221_v18  ;;  %v10262_v14 = vld [vmem:[#allocation136_spill] sm:$0xff]  ;;  %v10263_v18 = vld [vmem:[#allocation137_spill] sm:$0xff] }
 0x63f   :  { %2632 = vmatpush2.msra.mxu0 %v10222_v44  ;;  %2703 = vmatpush2.msra.mxu1 %v10223_v50  ;;  %v10264_v44 = vld [vmem:[#allocation138_spill] sm:$0xff]  ;;  %v10265_v50 = vld [vmem:[#allocation139_spill] sm:$0xff] }
 0x640   :  { %2633 = vmatprep.subr.mxu0 %v10224_v43  ;;  %2704 = vmatprep.subr.mxu1 %v10225_v42  ;;  %v10266_v43 = vld [vmem:[#allocation140_spill] sm:$0xff]  ;;  %v10267_v42 = vld [vmem:[#allocation141_spill] sm:$0xff] }
 0x641   :  { %2634 = vmatpush2.msra.mxu0 %v10226_v53  ;;  %2705 = vmatpush2.msra.mxu1 %v10227_v0  ;;  %v10268_v53 = vld [vmem:[#allocation142_spill] sm:$0xff]  ;;  %v10269_v0 = vld [vmem:[#allocation143_spill] sm:$0xff] }
 0x642   :  { %2635 = vmatprep.subr.mxu0 %v10228_v49  ;;  %2706 = vmatprep.subr.mxu1 %v10229_v41  ;;  %v10270_v49 = vld [vmem:[#allocation144_spill] sm:$0xff]  ;;  %v10271_v41 = vld [vmem:[#allocation145_spill] sm:$0xff] }
 0x643   :  { %2636 = vmatpush2.msra.mxu0 %v10230_v21  ;;  %2707 = vmatpush2.msra.mxu1 %v10231_v51  ;;  %v10272_v21 = vld [vmem:[#allocation146_spill] sm:$0xff]  ;;  %v10273_v51 = vld [vmem:[#allocation147_spill] sm:$0xff] }
 0x644   :  { %2637 = vmatprep.subr.mxu0 %v10232_v46  ;;  %2708 = vmatprep.subr.mxu1 %v10233_v19  ;;  %v10274_v46 = vld [vmem:[#allocation148_spill] sm:$0xff]  ;;  %v10275_v19 = vld [vmem:[#allocation149_spill] sm:$0xff] }
 0x645   :  { %2638 = vmatpush2.msra.mxu0 %v10234_v17  ;;  %2709 = vmatpush2.msra.mxu1 %v10235_v28  ;;  %v10276_v17 = vld [vmem:[#allocation150_spill] sm:$0xff]  ;;  %v10277_v28 = vld [vmem:[#allocation151_spill] sm:$0xff] }
 0x646   :  { %2639 = vmatprep.subr.mxu0 %v10236_v27  ;;  %2710 = vmatprep.subr.mxu1 %v10237_v1  ;;  %v10278_v27 = vld [vmem:[#allocation152_spill] sm:$0xff]  ;;  %v10279_v1 = vld [vmem:[#allocation153_spill] sm:$0xff] }
 0x647   :  { %2640 = vmatpush2.msra.mxu0 %v10238_v35  ;;  %2711 = vmatpush2.msra.mxu1 %v10239_v56  ;;  %v7980_v35 = vld [vmem:[#allocation9 + $0x1e8] sm:$0xff]  ;;  %v7983_v56 = vld [vmem:[#allocation9 + $0x1f8] sm:$0xff] }
 0x648   :  { %2641 = vmatprep.subr.mxu0 %v10240_v2  ;;  %2712 = vmatprep.subr.mxu1 %v10241_v58  ;;  %v10280_v58 = vld [vmem:[#allocation22_spill] sm:$0xff] }
 0x649   :  { %2642 = vmatpush2.msra.mxu0 %v10242_v12  ;;  %2713 = vmatpush2.msra.mxu1 %v10243_v26 }
 0x64a   :  { %2643 = vmatprep.subr.mxu0 %v10244_v23  ;;  %2714 = vmatprep.subr.mxu1 %v10245_v29  ;;  %v10281_v29 = vld [vmem:[#allocation23_spill] sm:$0xff] }
 0x64b   :  { %2644 = vmatpush2.msra.mxu0 %v10246_v22  ;;  %2715 = vmatpush2.msra.mxu1 %v10247_v30 }
 0x64c   :  { %2645 = vmatprep.subr.mxu0 %v10248_v20  ;;  %2716 = vmatprep.subr.mxu1 %v10249_v59  ;;  %v10282_v59 = vld [vmem:[#allocation24_spill] sm:$0xff] }
 0x64d   :  { %2646 = vmatpush2.msra.mxu0 %v10250_v61  ;;  %2717 = vmatpush2.msra.mxu1 %v10251_v63 }
 0x64e   :  { %2647 = vmatprep.subr.mxu0 %v10252_v62  ;;  %2718 = vmatprep.subr.mxu1 %v10253_v3 }
 0x64f   :  { %2648 = vmatpush2.msra.mxu0 %v10254_v4  ;;  %2719 = vmatpush2.msra.mxu1 %v10255_v5  ;;  %v10283_v4 = vld [vmem:[#allocation25_spill] sm:$0xff] }
 0x650   :  { %2649 = vmatprep.subr.mxu0 %v10256_v7  ;;  %2720 = vmatprep.subr.mxu1 %v10257_v8 }
 0x651   :  { %2650 = vmatpush2.msra.mxu0 %v10258_v9  ;;  %2721 = vmatpush2.msra.mxu1 %v10259_v10 }
 0x652   :  { %2651 = vmatprep.subr.mxu0 %v10260_v11  ;;  %2722 = vmatprep.subr.mxu1 %v10261_v13 }
 0x653   :  { %2652 = vmatpush2.msra.mxu0 %v10262_v14  ;;  %2723 = vmatpush2.msra.mxu1 %v10263_v18  ;;  %v10284_v14 = vld [vmem:[#allocation172_spill] sm:$0xff] }
 0x654   :  { %2653 = vmatprep.subr.mxu0 %v10264_v44  ;;  %2724 = vmatprep.subr.mxu1 %v10265_v50 }
 0x655   :  { %2654 = vmatpush2.msra.mxu0 %v10266_v43  ;;  %2725 = vmatpush2.msra.mxu1 %v10267_v42 }
 0x656   :  { %2655 = vmatprep.subr.mxu0 %v10268_v53  ;;  %2726 = vmatprep.subr.mxu1 %v10269_v0  ;;  %v10285_v53 = vld [vmem:[#allocation174_spill] sm:$0xff] }
 0x657   :  { %2656 = vmatpush2.msra.mxu0 %v10270_v49  ;;  %2727 = vmatpush2.msra.mxu1 %v10271_v41 }
 0x658   :  { %2657 = vmatprep.subr.mxu0 %v10272_v21  ;;  %2728 = vmatprep.subr.mxu1 %v10273_v51 }
 0x659   :  { %2658 = vmatpush2.msra.mxu0 %v10274_v46  ;;  %2729 = vmatpush2.msra.mxu1 %v10275_v19 }
 0x65a   :  { %2659 = vmatprep.subr.mxu0 %v10276_v17  ;;  %2730 = vmatprep.subr.mxu1 %v10277_v28  ;;  %v10286_v17 = vld [vmem:[#allocation173_spill] sm:$0xff] }
 0x65b   :  { %2660 = vmatpush2.msra.mxu0 %v10278_v27  ;;  %2731 = vmatpush2.msra.mxu1 %v10279_v1 }
 0x65c   :  { %2772 = vmatprep.subr.mxu0 %v7980_v35  ;;  %2843 = vmatprep.subr.mxu1 %v7983_v56 }
 0x6ba   :  { %v2318_v2 = vpop.f32.mrf.mxu0  ;;  %v2389_v20 = vpop.f32.mrf.mxu1 }
 0x6bb   :  { %v2319_v12 = vadd.f32 %v2318_v2, %v10280_v58  ;;  %v2390_v61 = vadd.f32 %v2389_v20, %v10282_v59  ;;  %v10287_v2 = vld [vmem:[#allocation175_spill] sm:$0xff] }
 0x6bc   :  { %v2320_v26 = vpop.f32.mrf.mxu0  ;;  %v2391_v63 = vpop.f32.mrf.mxu1 }
 0x6bd   :  { %v4143_v23 = vmul.f32 -1.442695, %v2319_v12  ;;  %v2321_v22 = vadd.f32 %v2320_v26, %v10281_v29  ;;  %v4145_v62 = vmul.f32 -1.442695, %v2390_v61  ;;  %v2392_v5 = vadd.f32 %v2391_v63, %v10283_v4 }
 0x6bf   :  { %4380 = vpow2.f32 %v4143_v23  ;;  %v4144_v30 = vmul.f32 -1.442695, %v2321_v22 }
 0x6c1   :  { %4382 = vpow2.f32 %v4144_v30 }
 0x6c2   :  { %4384 = vpow2.f32 %v4145_v62 }
 0x6cc   :  { %v4381_v3 = vpop.eup %4380 }
 0x6cd   :  { %v2403_v7 = vadd.f32 1.0, %v4381_v3 }
 0x6ce   :  { %v4383_v8 = vpop.eup %4382 }
 0x6cf   :  { %4386 = vrcp.f32 %v2403_v7  ;;  %v2404_v9 = vadd.f32 1.0, %v4383_v8  ;;  %v4385_v10 = vpop.eup %4384 }
 0x6d0   :  { %4388 = vtanh.f32 %v2392_v5  ;;  %v2405_v49 = vadd.f32 1.0, %v4385_v10 }
 0x6d1   :  { %4390 = vrcp.f32 %v2404_v9 }
 0x6db   :  { %v2493_v11 = vpop.f32.mrf.mxu0  ;;  %v2564_v19 = vpop.f32.mrf.mxu1 }
 0x6dc   :  { %v4387_v13 = vpop.eup %4386  ;;  %v2569_v18 = vadd.f32 %v2493_v11, %v10284_v14  ;;  %v2571_v28 = vadd.f32 %v2564_v19, %v10286_v17  ;;  %v8118_v19 = vld [vmem:[#allocation9 + $0x60] sm:$0xff]  ;;  %v8121_v17 = vld [vmem:[#allocation9 + $0x70] sm:$0xff] }
 0x6dd   :  { %v4389_v44 = vpop.eup %4388  ;;  %v2495_v50 = vpop.f32.mrf.mxu0 }
 0x6de   :  { %v4391_v43 = vpop.eup %4390  ;;  %v4146_v42 = vmul.f32 -1.442695, %v2569_v18  ;;  %v2570_v0 = vadd.f32 %v2495_v50, %v10285_v53  ;;  %v2414_v21 = vmul.f32 %v4389_v44, %v4387_v13  ;;  %v2566_v27 = vpop.f32.mrf.mxu1  ;;  %v4148_v1 = vmul.f32 -1.442695, %v2571_v28  ;;  %v8085_v18 = vld [vmem:[#allocation9 + $0xd0] sm:$0xff]  ;;  %v8088_v44 = vld [vmem:[#allocation9 + $0xa8] sm:$0xff] }
 0x6df   :  { %v2413_v41 = vmul.f32 %v4391_v43, %v7733_v31  ;;  %v2572_v12 = vadd.f32 %v2566_v27, %v10287_v2  ;;  %v8091_v50 = vld [vmem:[#allocation9 + $0xb8] sm:$0xff]  ;;  %v8094_v43 = vld [vmem:[#allocation9 + $0xa0] sm:$0xff]  ;;  %v8100_v53 = vld [vmem:[#allocation9 + $0x88] sm:$0xff] }
 0x6e0   :  { %4392 = vpow2.f32 %v4146_v42  ;;  %v4147_v51 = vmul.f32 -1.442695, %v2570_v0  ;;  %v8097_v42 = vld [vmem:[#allocation9 + $0xb0] sm:$0xff]  ;;  %v8103_v0 = vld [vmem:[#allocation9 + $0x98] sm:$0xff]  ;;  %v8124_v28 = vld [vmem:[#allocation9 + $0x48] sm:$0xff] }
 0x6e1   :  { %v7993_v46 = vadd.f32 %v2414_v21, %v2413_v41  ;;  %v8109_v41 = vld [vmem:[#allocation9 + $0x90] sm:$0xff]  ;;  %v8112_v21 = vld [vmem:[#allocation9 + $0x68] sm:$0xff]  ;;  %v8127_v27 = vld [vmem:[#allocation9 + $0x58] sm:$0xff] }
 0x6e2   :  { %4394 = vpow2.f32 %v4147_v51  ;;  %v8115_v51 = vld [vmem:[#allocation9 + $0x78] sm:$0xff]  ;;  %v8133_v2 = vld [vmem:[#allocation9 + $0x50] sm:$0xff] }
 0x6e3   :  { %4396 = vrcp.f32 %v2405_v49  ;;  %v8106_v49 = vld [vmem:[#allocation9 + $0x80] sm:$0xff] }
 0x6e4   :  { %4398 = vtanh.f32 %v7993_v46 }
 0x6e5   :  { %4400 = vpow2.f32 %v4148_v1  ;;  %v8130_v1 = vld [vmem:[#allocation9 + $0x40] sm:$0xff] }
 0x6e6   :  { %4402 = vtanh.f32 %v2572_v12  ;;  %v8136_v12 = vld [vmem:[#allocation9 + $0x28] sm:$0xff] }
 0x6ed   :  { %v4393_v26 = vpop.eup %4392 }
 0x6ee   :  { %v2582_v23 = vadd.f32 1.0, %v4393_v26  ;;  %v8139_v26 = vld [vmem:[#allocation9 + $0x38] sm:$0xff] }
 0x6ef   :  { %v4395_v31 = vpop.eup %4394 }
 0x6f0   :  { %v4397_v22 = vpop.eup %4396  ;;  %4404 = vrcp.f32 %v2582_v23  ;;  %v2583_v30 = vadd.f32 1.0, %v4395_v31  ;;  %v8142_v23 = vld [vmem:[#allocation9 + $0x20] sm:$0xff]  ;;  %v8145_v31 = vld [vmem:[#allocation9 + $0x30] sm:$0xff] }
 0x6f1   :  { %v4399_v20 = vpop.eup %4398 }
 0x6f2   :  { %4406 = vrcp.f32 %v2583_v30  ;;  %v7998_v61 = vmul.f32 %v4399_v20, %v4397_v22  ;;  %v4401_v63 = vpop.eup %4400  ;;  %v8148_v22 = vld [vmem:[#allocation9 + $0x8] sm:$0xff]  ;;  %v8151_v30 = vld [vmem:[#allocation9 + $0x18] sm:$0xff]  ;;  %v8154_v20 = vld [vmem:[#allocation9] sm:$0xff] }
 0x6f3   :  { %v4403_v62 = vpop.eup %4402  ;;  %v2584_v8 = vadd.f32 1.0, %v4401_v63  ;;  %10289 = vst [vmem:[#allocation157_spill] sm:$0xff] %v8154_v20  ;;  %v8158_v63 = vld [vmem:[#allocation9 + $0x10] sm:$0xff] }
 0x6f4   :  { %10288 = vst [vmem:[#allocation158_spill] sm:$0xff] %v7998_v61  ;;  %2661 = vmatprep.mubr.f32.mxu0 %v7998_v61  ;;  %2732 = vmatprep.mubr.f32.mxu1 %v7998_v61  ;;  %10290 = vst [vmem:[#allocation164_spill] sm:$0xff] %v8158_v63  ;;  %v8191_v61 = vld [vmem:[#allocation10 + $0x1b8] sm:$0xff] }
 0x6f5   :  { %4408 = vrcp.f32 %v2584_v8  ;;  %v8176_v8 = vld [vmem:[#allocation10 + $0x1c8] sm:$0xff]  ;;  %10300 = vst [vmem:[#allocation163_spill] sm:$0xff] %v8191_v61 }
 0x6f6   :  { %10295 = vst [vmem:[#allocation170_spill] sm:$0xff] %v8176_v8 }
 0x6fd   :  { %v4405_v3 = vpop.eup %4404 }
 0x6fe   :  { %v2593_v5 = vmul.f32 %v4405_v3, %v4403_v62  ;;  %v8164_v62 = vld [vmem:[#allocation10 + $0x1e8] sm:$0xff]  ;;  %v8167_v3 = vld [vmem:[#allocation10 + $0x1f8] sm:$0xff] }
 0x6ff   :  { %v4407_v7 = vpop.eup %4406  ;;  %10291 = vst [vmem:[#allocation166_spill] sm:$0xff] %v8164_v62  ;;  %10292 = vst [vmem:[#allocation165_spill] sm:$0xff] %v8167_v3 }
 0x700   :  { %v2592_v9 = vmul.f32 %v4407_v7, %v7743_v36  ;;  %v8028_v36 = vld [vmem:[#allocation9 + $0x148] sm:$0xff]  ;;  %v8173_v7 = vld [vmem:[#allocation10 + $0x1f0] sm:$0xff] }
 0x701   :  { %10294 = vst [vmem:[#allocation168_spill] sm:$0xff] %v8173_v7 }
 0x702   :  { %v8003_v10 = vadd.f32 %v2593_v5, %v2592_v9  ;;  %v4409_v11 = vpop.eup %4408  ;;  %v8170_v5 = vld [vmem:[#allocation10 + $0x1e0] sm:$0xff]  ;;  %v8179_v9 = vld [vmem:[#allocation10 + $0x1d8] sm:$0xff] }
 0x703   :  { %10293 = vst [vmem:[#allocation167_spill] sm:$0xff] %v8170_v5  ;;  %10296 = vst [vmem:[#allocation169_spill] sm:$0xff] %v8179_v9 }
 0x704   :  { %4410 = vtanh.f32 %v8003_v10 }
 0x711   :  { %v4411_v13 = vpop.eup %4410 }
 0x712   :  { %v8006_v14 = vmul.f32 %v4411_v13, %v4409_v11  ;;  %v8182_v11 = vld [vmem:[#allocation10 + $0x1c0] sm:$0xff]  ;;  %v8185_v13 = vld [vmem:[#allocation10 + $0x1d0] sm:$0xff] }
 0x713   :  { %10297 = vst [vmem:[#allocation171_spill] sm:$0xff] %v8182_v11  ;;  %10298 = vst [vmem:[#allocation162_spill] sm:$0xff] %v8185_v13 }
 0x714   :  { %2662 = vmatmul.mubr.f32.vlgmr.msra.gmra.mxu0 %v8006_v14  ;;  %2733 = vmatmul.mubr.f32.vlgmr.msra.gmra.mxu1 %v8006_v14 }
 0x715   :  { %2773 = vmatpush1.msra.mxu0 %v7750_v38  ;;  %2844 = vmatpush1.msra.mxu1 %v7753_v40  ;;  %v8031_v38 = vld [vmem:[#allocation9 + $0x158] sm:$0xff]  ;;  %v8034_v40 = vld [vmem:[#allocation9 + $0x140] sm:$0xff] }
 0x716   :  { %2774 = vmatprep.subr.mxu0 %v7756_v48  ;;  %2845 = vmatprep.subr.mxu1 %v7759_v15  ;;  %v8037_v48 = vld [vmem:[#allocation9 + $0x150] sm:$0xff]  ;;  %v8040_v15 = vld [vmem:[#allocation9 + $0x128] sm:$0xff] }
 0x717   :  { %2775 = vmatpush1.msra.mxu0 %v7762_v57  ;;  %2846 = vmatpush1.msra.mxu1 %v7765_v16  ;;  %v8043_v57 = vld [vmem:[#allocation9 + $0x138] sm:$0xff]  ;;  %v8046_v16 = vld [vmem:[#allocation9 + $0x120] sm:$0xff] }
 0x718   :  { %2776 = vmatprep.subr.mxu0 %v7768_v47  ;;  %2847 = vmatprep.subr.mxu1 %v7771_v60  ;;  %v8049_v47 = vld [vmem:[#allocation9 + $0x130] sm:$0xff]  ;;  %v8052_v60 = vld [vmem:[#allocation9 + $0x108] sm:$0xff] }
 0x719   :  { %2777 = vmatpush1.msra.mxu0 %v7774_v54  ;;  %2848 = vmatpush1.msra.mxu1 %v7777_v39  ;;  %v8055_v54 = vld [vmem:[#allocation9 + $0x118] sm:$0xff]  ;;  %v8058_v39 = vld [vmem:[#allocation9 + $0x100] sm:$0xff] }
 0x71a   :  { %2778 = vmatprep.subr.mxu0 %v7780_v37  ;;  %2849 = vmatprep.subr.mxu1 %v7783_v24  ;;  %v8061_v37 = vld [vmem:[#allocation9 + $0x110] sm:$0xff]  ;;  %v8064_v24 = vld [vmem:[#allocation9 + $0xe8] sm:$0xff] }
 0x71b   :  { %2779 = vmatpush1.msra.mxu0 %v7786_v32  ;;  %2850 = vmatpush1.msra.mxu1 %v7789_v34  ;;  %v8067_v32 = vld [vmem:[#allocation9 + $0xf8] sm:$0xff]  ;;  %v8070_v34 = vld [vmem:[#allocation9 + $0xe0] sm:$0xff] }
 0x71c   :  { %2780 = vmatprep.subr.mxu0 %v7792_v45  ;;  %2851 = vmatprep.subr.mxu1 %v7795_v52  ;;  %v8073_v45 = vld [vmem:[#allocation9 + $0xf0] sm:$0xff]  ;;  %v8076_v52 = vld [vmem:[#allocation9 + $0xc8] sm:$0xff] }
 0x71d   :  { %2781 = vmatpush1.msra.mxu0 %v7798_v6  ;;  %2852 = vmatpush1.msra.mxu1 %v7801_v33  ;;  %v8079_v6 = vld [vmem:[#allocation9 + $0xd8] sm:$0xff]  ;;  %v8082_v33 = vld [vmem:[#allocation9 + $0xc0] sm:$0xff] }
 0x71e   :  { %2782 = vmatprep.subr.mxu0 %v8028_v36  ;;  %2853 = vmatprep.subr.mxu1 %v8031_v38 }
 0x71f   :  { %2783 = vmatpush1.msra.mxu0 %v8034_v40  ;;  %2854 = vmatpush1.msra.mxu1 %v8037_v48 }
 0x720   :  { %2784 = vmatprep.subr.mxu0 %v8040_v15  ;;  %2855 = vmatprep.subr.mxu1 %v8043_v57 }
 0x721   :  { %2785 = vmatpush1.msra.mxu0 %v8046_v16  ;;  %2856 = vmatpush1.msra.mxu1 %v8049_v47 }
 0x722   :  { %2786 = vmatprep.subr.mxu0 %v8052_v60  ;;  %2857 = vmatprep.subr.mxu1 %v8055_v54 }
 0x723   :  { %2787 = vmatpush1.msra.mxu0 %v8058_v39  ;;  %2858 = vmatpush1.msra.mxu1 %v8061_v37 }
 0x724   :  { %2788 = vmatprep.subr.mxu0 %v8064_v24  ;;  %2859 = vmatprep.subr.mxu1 %v8067_v32 }
 0x725   :  { %2789 = vmatpush1.msra.mxu0 %v8070_v34  ;;  %2860 = vmatpush1.msra.mxu1 %v8073_v45 }
 0x726   :  { %2790 = vmatprep.subr.mxu0 %v8076_v52  ;;  %2861 = vmatprep.subr.mxu1 %v8079_v6 }
 0x727   :  { %2791 = vmatpush1.msra.mxu0 %v8082_v33  ;;  %2862 = vmatpush1.msra.mxu1 %v8085_v18 }
 0x728   :  { %2792 = vmatprep.subr.mxu0 %v8088_v44  ;;  %2863 = vmatprep.subr.mxu1 %v8091_v50 }
 0x729   :  { %2793 = vmatpush1.msra.mxu0 %v8094_v43  ;;  %2864 = vmatpush1.msra.mxu1 %v8097_v42 }
 0x72a   :  { %2794 = vmatprep.subr.mxu0 %v8100_v53  ;;  %2865 = vmatprep.subr.mxu1 %v8103_v0 }
 0x72b   :  { %2795 = vmatpush1.msra.mxu0 %v8106_v49  ;;  %2866 = vmatpush1.msra.mxu1 %v8109_v41 }
 0x72c   :  { %2796 = vmatprep.subr.mxu0 %v8112_v21  ;;  %2867 = vmatprep.subr.mxu1 %v8115_v51 }
 0x72d   :  { %2797 = vmatpush1.msra.mxu0 %v8118_v19  ;;  %2868 = vmatpush1.msra.mxu1 %v8121_v17 }
 0x72e   :  { %2798 = vmatprep.subr.mxu0 %v8124_v28  ;;  %2869 = vmatprep.subr.mxu1 %v8127_v27 }
 0x72f   :  { %2799 = vmatpush1.msra.mxu0 %v8130_v1  ;;  %2870 = vmatpush1.msra.mxu1 %v8133_v2 }
 0x730   :  { %2800 = vmatprep.subr.mxu0 %v8136_v12  ;;  %2871 = vmatprep.subr.mxu1 %v8139_v26 }
 0x731   :  { %2801 = vmatpush1.msra.mxu0 %v8142_v23  ;;  %2872 = vmatpush1.msra.mxu1 %v8145_v31 }
 0x732   :  { %2802 = vmatprep.subr.mxu0 %v8148_v22  ;;  %2873 = vmatprep.subr.mxu1 %v8151_v30 }
 0x733   :  { %2803 = vmatpush1.msra.mxu0 %v8154_v20  ;;  %2836 = vmatprep.mubr.f32.mxu0 %v10150_v25 }
 0x734   :  { %2874 = vmatpush1.msra.mxu1 %v8158_v63  ;;  %2907 = vmatprep.mubr.f32.mxu1 %v10150_v25 }
 0x735   :  { %2837 = vmatmul.mubr.f32.vlgmr.msra.gmra.mxu0 %v8006_v14  ;;  %2908 = vmatmul.mubr.f32.vlgmr.msra.gmra.mxu1 %v8006_v14  ;;  %v8188_v14 = vld [vmem:[#allocation10 + $0x1a8] sm:$0xff] }
 0x736   :  { %2942 = vmatprep.subr.mxu0 %v8164_v62  ;;  %3013 = vmatprep.subr.mxu1 %v8167_v3  ;;  %10299 = vst [vmem:[#allocation161_spill] sm:$0xff] %v8188_v14 }
 0x737   :  { %2943 = vmatpush1.msra.mxu0 %v8170_v5  ;;  %3014 = vmatpush1.msra.mxu1 %v8173_v7 }
 0x738   :  { %2944 = vmatprep.subr.mxu0 %v8176_v8  ;;  %3015 = vmatprep.subr.mxu1 %v8179_v9  ;;  %v8197_v9 = vld [vmem:[#allocation10 + $0x1b0] sm:$0xff] }
 0x739   :  { %2945 = vmatpush1.msra.mxu0 %v8182_v11  ;;  %3016 = vmatpush1.msra.mxu1 %v8185_v13  ;;  %10302 = vst [vmem:[#allocation28_spill] sm:$0xff] %v8197_v9  ;;  %v8200_v11 = vld [vmem:[#allocation10 + $0x188] sm:$0xff]  ;;  %v8203_v13 = vld [vmem:[#allocation10 + $0x198] sm:$0xff] }
 0x73a   :  { %2946 = vmatprep.subr.mxu0 %v8188_v14  ;;  %3017 = vmatprep.subr.mxu1 %v8191_v61  ;;  %10303 = vst [vmem:[#allocation29_spill] sm:$0xff] %v8200_v11  ;;  %10304 = vst [vmem:[#allocation30_spill] sm:$0xff] %v8203_v13  ;;  %v8206_v14 = vld [vmem:[#allocation10 + $0x180] sm:$0xff]  ;;  %v8209_v61 = vld [vmem:[#allocation10 + $0x190] sm:$0xff] }
 0x73b   :  { %2947 = vmatpush1.msra.mxu0 %v8194_v55  ;;  %3018 = vmatpush1.msra.mxu1 %v8197_v9  ;;  %10305 = vst [vmem:[#allocation31_spill] sm:$0xff] %v8206_v14  ;;  %10306 = vst [vmem:[#allocation32_spill] sm:$0xff] %v8209_v61  ;;  %v8212_v55 = vld [vmem:[#allocation10 + $0x168] sm:$0xff]  ;;  %v8215_v9 = vld [vmem:[#allocation10 + $0x178] sm:$0xff] }
 0x73c   :  { %2948 = vmatprep.subr.mxu0 %v8200_v11  ;;  %3019 = vmatprep.subr.mxu1 %v8203_v13  ;;  %10307 = vst [vmem:[#allocation33_spill] sm:$0xff] %v8212_v55  ;;  %10308 = vst [vmem:[#allocation34_spill] sm:$0xff] %v8215_v9  ;;  %v8218_v11 = vld [vmem:[#allocation10 + $0x160] sm:$0xff]  ;;  %v8221_v13 = vld [vmem:[#allocation10 + $0x170] sm:$0xff] }
 0x73d   :  { %2949 = vmatpush1.msra.mxu0 %v8206_v14  ;;  %3020 = vmatpush1.msra.mxu1 %v8209_v61  ;;  %10309 = vst [vmem:[#allocation35_spill] sm:$0xff] %v8218_v11  ;;  %10310 = vst [vmem:[#allocation36_spill] sm:$0xff] %v8221_v13  ;;  %v8224_v14 = vld [vmem:[#allocation10 + $0x148] sm:$0xff]  ;;  %v8227_v61 = vld [vmem:[#allocation10 + $0x158] sm:$0xff] }
 0x73e   :  { %2950 = vmatprep.subr.mxu0 %v8212_v55  ;;  %3021 = vmatprep.subr.mxu1 %v8215_v9  ;;  %10311 = vst [vmem:[#allocation37_spill] sm:$0xff] %v8224_v14  ;;  %10312 = vst [vmem:[#allocation38_spill] sm:$0xff] %v8227_v61  ;;  %v8230_v55 = vld [vmem:[#allocation10 + $0x140] sm:$0xff]  ;;  %v8233_v9 = vld [vmem:[#allocation10 + $0x150] sm:$0xff] }
 0x73f   :  { %2951 = vmatpush1.msra.mxu0 %v8218_v11  ;;  %3022 = vmatpush1.msra.mxu1 %v8221_v13  ;;  %10313 = vst [vmem:[#allocation39_spill] sm:$0xff] %v8230_v55  ;;  %10314 = vst [vmem:[#allocation40_spill] sm:$0xff] %v8233_v9  ;;  %v8236_v11 = vld [vmem:[#allocation10 + $0x128] sm:$0xff]  ;;  %v8239_v13 = vld [vmem:[#allocation10 + $0x138] sm:$0xff] }
 0x740   :  { %2952 = vmatprep.subr.mxu0 %v8224_v14  ;;  %3023 = vmatprep.subr.mxu1 %v8227_v61  ;;  %10315 = vst [vmem:[#allocation41_spill] sm:$0xff] %v8236_v11  ;;  %10316 = vst [vmem:[#allocation42_spill] sm:$0xff] %v8239_v13  ;;  %v8242_v14 = vld [vmem:[#allocation10 + $0x120] sm:$0xff]  ;;  %v8245_v61 = vld [vmem:[#allocation10 + $0x130] sm:$0xff] }
 0x741   :  { %2953 = vmatpush1.msra.mxu0 %v8230_v55  ;;  %3024 = vmatpush1.msra.mxu1 %v8233_v9  ;;  %10317 = vst [vmem:[#allocation43_spill] sm:$0xff] %v8242_v14  ;;  %10318 = vst [vmem:[#allocation44_spill] sm:$0xff] %v8245_v61  ;;  %v8248_v55 = vld [vmem:[#allocation10 + $0x108] sm:$0xff]  ;;  %v8251_v9 = vld [vmem:[#allocation10 + $0x118] sm:$0xff] }
 0x742   :  { %2954 = vmatprep.subr.mxu0 %v8236_v11  ;;  %3025 = vmatprep.subr.mxu1 %v8239_v13  ;;  %10319 = vst [vmem:[#allocation45_spill] sm:$0xff] %v8248_v55  ;;  %10320 = vst [vmem:[#allocation46_spill] sm:$0xff] %v8251_v9  ;;  %v8254_v11 = vld [vmem:[#allocation10 + $0x100] sm:$0xff]  ;;  %v8257_v13 = vld [vmem:[#allocation10 + $0x110] sm:$0xff] }
 0x743   :  { %2955 = vmatpush1.msra.mxu0 %v8242_v14  ;;  %3026 = vmatpush1.msra.mxu1 %v8245_v61  ;;  %10321 = vst [vmem:[#allocation47_spill] sm:$0xff] %v8254_v11  ;;  %10322 = vst [vmem:[#allocation48_spill] sm:$0xff] %v8257_v13  ;;  %v8260_v14 = vld [vmem:[#allocation10 + $0xe8] sm:$0xff]  ;;  %v8263_v61 = vld [vmem:[#allocation10 + $0xf8] sm:$0xff] }
 0x744   :  { %2956 = vmatprep.subr.mxu0 %v8248_v55  ;;  %3027 = vmatprep.subr.mxu1 %v8251_v9  ;;  %10323 = vst [vmem:[#allocation49_spill] sm:$0xff] %v8260_v14  ;;  %10324 = vst [vmem:[#allocation50_spill] sm:$0xff] %v8263_v61  ;;  %v8266_v55 = vld [vmem:[#allocation10 + $0xe0] sm:$0xff]  ;;  %v8269_v9 = vld [vmem:[#allocation10 + $0xf0] sm:$0xff] }
 0x745   :  { %2957 = vmatpush1.msra.mxu0 %v8254_v11  ;;  %3028 = vmatpush1.msra.mxu1 %v8257_v13  ;;  %10325 = vst [vmem:[#allocation51_spill] sm:$0xff] %v8266_v55  ;;  %10326 = vst [vmem:[#allocation52_spill] sm:$0xff] %v8269_v9  ;;  %v8272_v11 = vld [vmem:[#allocation10 + $0xc8] sm:$0xff]  ;;  %v8275_v13 = vld [vmem:[#allocation10 + $0xd8] sm:$0xff] }
 0x746   :  { %2958 = vmatprep.subr.mxu0 %v8260_v14  ;;  %3029 = vmatprep.subr.mxu1 %v8263_v61  ;;  %10327 = vst [vmem:[#allocation53_spill] sm:$0xff] %v8272_v11  ;;  %10328 = vst [vmem:[#allocation54_spill] sm:$0xff] %v8275_v13  ;;  %v8278_v14 = vld [vmem:[#allocation10 + $0xc0] sm:$0xff]  ;;  %v8281_v61 = vld [vmem:[#allocation10 + $0xd0] sm:$0xff] }
 0x747   :  { %2959 = vmatpush1.msra.mxu0 %v8266_v55  ;;  %3030 = vmatpush1.msra.mxu1 %v8269_v9  ;;  %10329 = vst [vmem:[#allocation55_spill] sm:$0xff] %v8278_v14  ;;  %10330 = vst [vmem:[#allocation56_spill] sm:$0xff] %v8281_v61  ;;  %v8284_v55 = vld [vmem:[#allocation10 + $0xa8] sm:$0xff]  ;;  %v8287_v9 = vld [vmem:[#allocation10 + $0xb8] sm:$0xff] }
 0x748   :  { %2960 = vmatprep.subr.mxu0 %v8272_v11  ;;  %3031 = vmatprep.subr.mxu1 %v8275_v13  ;;  %10331 = vst [vmem:[#allocation57_spill] sm:$0xff] %v8284_v55  ;;  %10332 = vst [vmem:[#allocation58_spill] sm:$0xff] %v8287_v9  ;;  %v8290_v11 = vld [vmem:[#allocation10 + $0xa0] sm:$0xff]  ;;  %v8293_v13 = vld [vmem:[#allocation10 + $0xb0] sm:$0xff] }
 0x749   :  { %2961 = vmatpush1.msra.mxu0 %v8278_v14  ;;  %3032 = vmatpush1.msra.mxu1 %v8281_v61  ;;  %10333 = vst [vmem:[#allocation59_spill] sm:$0xff] %v8290_v11  ;;  %10334 = vst [vmem:[#allocation60_spill] sm:$0xff] %v8293_v13  ;;  %v8296_v14 = vld [vmem:[#allocation10 + $0x88] sm:$0xff]  ;;  %v8299_v61 = vld [vmem:[#allocation10 + $0x98] sm:$0xff] }
 0x74a   :  { %2962 = vmatprep.subr.mxu0 %v8284_v55  ;;  %3033 = vmatprep.subr.mxu1 %v8287_v9  ;;  %10335 = vst [vmem:[#allocation61_spill] sm:$0xff] %v8296_v14  ;;  %10336 = vst [vmem:[#allocation62_spill] sm:$0xff] %v8299_v61  ;;  %v8302_v55 = vld [vmem:[#allocation10 + $0x80] sm:$0xff]  ;;  %v8305_v9 = vld [vmem:[#allocation10 + $0x90] sm:$0xff] }
 0x74b   :  { %2963 = vmatpush1.msra.mxu0 %v8290_v11  ;;  %3034 = vmatpush1.msra.mxu1 %v8293_v13  ;;  %10337 = vst [vmem:[#allocation63_spill] sm:$0xff] %v8302_v55  ;;  %10338 = vst [vmem:[#allocation64_spill] sm:$0xff] %v8305_v9  ;;  %v8308_v11 = vld [vmem:[#allocation10 + $0x68] sm:$0xff]  ;;  %v8311_v13 = vld [vmem:[#allocation10 + $0x78] sm:$0xff] }
 0x74c   :  { %2964 = vmatprep.subr.mxu0 %v8296_v14  ;;  %3035 = vmatprep.subr.mxu1 %v8299_v61  ;;  %10339 = vst [vmem:[#allocation65_spill] sm:$0xff] %v8308_v11  ;;  %10340 = vst [vmem:[#allocation66_spill] sm:$0xff] %v8311_v13  ;;  %v8314_v14 = vld [vmem:[#allocation10 + $0x60] sm:$0xff]  ;;  %v8317_v61 = vld [vmem:[#allocation10 + $0x70] sm:$0xff] }
 0x74d   :  { %2965 = vmatpush1.msra.mxu0 %v8302_v55  ;;  %3036 = vmatpush1.msra.mxu1 %v8305_v9  ;;  %10341 = vst [vmem:[#allocation67_spill] sm:$0xff] %v8314_v14  ;;  %10342 = vst [vmem:[#allocation68_spill] sm:$0xff] %v8317_v61  ;;  %v8320_v55 = vld [vmem:[#allocation10 + $0x48] sm:$0xff]  ;;  %v8323_v9 = vld [vmem:[#allocation10 + $0x58] sm:$0xff] }
 0x74e   :  { %2966 = vmatprep.subr.mxu0 %v8308_v11  ;;  %3037 = vmatprep.subr.mxu1 %v8311_v13  ;;  %10343 = vst [vmem:[#allocation69_spill] sm:$0xff] %v8320_v55  ;;  %10344 = vst [vmem:[#allocation70_spill] sm:$0xff] %v8323_v9  ;;  %v8326_v11 = vld [vmem:[#allocation10 + $0x40] sm:$0xff]  ;;  %v8329_v13 = vld [vmem:[#allocation10 + $0x50] sm:$0xff] }
 0x74f   :  { %2967 = vmatpush1.msra.mxu0 %v8314_v14  ;;  %3038 = vmatpush1.msra.mxu1 %v8317_v61  ;;  %10345 = vst [vmem:[#allocation71_spill] sm:$0xff] %v8326_v11  ;;  %10346 = vst [vmem:[#allocation72_spill] sm:$0xff] %v8329_v13  ;;  %v8332_v14 = vld [vmem:[#allocation10 + $0x28] sm:$0xff]  ;;  %v8335_v61 = vld [vmem:[#allocation10 + $0x38] sm:$0xff] }
 0x750   :  { %2968 = vmatprep.subr.mxu0 %v8320_v55  ;;  %3039 = vmatprep.subr.mxu1 %v8323_v9  ;;  %10347 = vst [vmem:[#allocation73_spill] sm:$0xff] %v8332_v14  ;;  %10348 = vst [vmem:[#allocation74_spill] sm:$0xff] %v8335_v61  ;;  %v8338_v55 = vld [vmem:[#allocation10 + $0x20] sm:$0xff]  ;;  %v8341_v9 = vld [vmem:[#allocation10 + $0x30] sm:$0xff] }
 0x751   :  { %2969 = vmatpush1.msra.mxu0 %v8326_v11  ;;  %3040 = vmatpush1.msra.mxu1 %v8329_v13  ;;  %10349 = vst [vmem:[#allocation75_spill] sm:$0xff] %v8338_v55  ;;  %10350 = vst [vmem:[#allocation76_spill] sm:$0xff] %v8341_v9  ;;  %v8344_v11 = vld [vmem:[#allocation10 + $0x8] sm:$0xff]  ;;  %v8347_v13 = vld [vmem:[#allocation10 + $0x18] sm:$0xff] }
 0x752   :  { %2970 = vmatprep.subr.mxu0 %v8332_v14  ;;  %3041 = vmatprep.subr.mxu1 %v8335_v61  ;;  %10351 = vst [vmem:[#allocation77_spill] sm:$0xff] %v8344_v11  ;;  %10352 = vst [vmem:[#allocation78_spill] sm:$0xff] %v8347_v13  ;;  %v8350_v14 = vld [vmem:[#allocation10] sm:$0xff]  ;;  %v8353_v61 = vld [vmem:[#allocation10 + $0x10] sm:$0xff] }
 0x753   :  { %2971 = vmatpush1.msra.mxu0 %v8338_v55  ;;  %3042 = vmatpush1.msra.mxu1 %v8341_v9  ;;  %10353 = vst [vmem:[#allocation79_spill] sm:$0xff] %v8350_v14  ;;  %10354 = vst [vmem:[#allocation80_spill] sm:$0xff] %v8353_v61  ;;  %v8356_v55 = vld [vmem:[#allocation10 + $0x3e8] sm:$0xff]  ;;  %v8359_v9 = vld [vmem:[#allocation10 + $0x3f8] sm:$0xff] }
 0x754   :  { %2972 = vmatprep.subr.mxu0 %v8344_v11  ;;  %3043 = vmatprep.subr.mxu1 %v8347_v13  ;;  %10355 = vst [vmem:[#allocation81_spill] sm:$0xff] %v8356_v55  ;;  %10356 = vst [vmem:[#allocation82_spill] sm:$0xff] %v8359_v9  ;;  %v8362_v11 = vld [vmem:[#allocation10 + $0x3e0] sm:$0xff]  ;;  %v8365_v13 = vld [vmem:[#allocation10 + $0x3f0] sm:$0xff] }
 0x755   :  { %2973 = vmatpush1.msra.mxu0 %v8350_v14  ;;  %3044 = vmatpush1.msra.mxu1 %v8353_v61  ;;  %10357 = vst [vmem:[#allocation83_spill] sm:$0xff] %v8362_v11  ;;  %10358 = vst [vmem:[#allocation84_spill] sm:$0xff] %v8365_v13  ;;  %v8368_v14 = vld [vmem:[#allocation10 + $0x3c8] sm:$0xff]  ;;  %v8371_v61 = vld [vmem:[#allocation10 + $0x3d8] sm:$0xff] }
 0x756   :  { %2974 = vmatprep.subr.mxu0 %v8356_v55  ;;  %3045 = vmatprep.subr.mxu1 %v8359_v9  ;;  %10359 = vst [vmem:[#allocation85_spill] sm:$0xff] %v8368_v14  ;;  %10360 = vst [vmem:[#allocation86_spill] sm:$0xff] %v8371_v61  ;;  %v8374_v55 = vld [vmem:[#allocation10 + $0x3c0] sm:$0xff]  ;;  %v8377_v9 = vld [vmem:[#allocation10 + $0x3d0] sm:$0xff] }
 0x757   :  { %2975 = vmatpush2.msra.mxu0 %v8362_v11  ;;  %3046 = vmatpush2.msra.mxu1 %v8365_v13  ;;  %10361 = vst [vmem:[#allocation87_spill] sm:$0xff] %v8374_v55  ;;  %10362 = vst [vmem:[#allocation88_spill] sm:$0xff] %v8377_v9  ;;  %v8380_v11 = vld [vmem:[#allocation10 + $0x3a8] sm:$0xff]  ;;  %v8383_v13 = vld [vmem:[#allocation10 + $0x3b8] sm:$0xff] }
 0x758   :  { %2976 = vmatprep.subr.mxu0 %v8368_v14  ;;  %3047 = vmatprep.subr.mxu1 %v8371_v61  ;;  %10363 = vst [vmem:[#allocation89_spill] sm:$0xff] %v8380_v11  ;;  %10364 = vst [vmem:[#allocation90_spill] sm:$0xff] %v8383_v13  ;;  %v8386_v14 = vld [vmem:[#allocation10 + $0x3a0] sm:$0xff]  ;;  %v8389_v61 = vld [vmem:[#allocation10 + $0x3b0] sm:$0xff] }
 0x759   :  { %2977 = vmatpush2.msra.mxu0 %v8374_v55  ;;  %3048 = vmatpush2.msra.mxu1 %v8377_v9  ;;  %10365 = vst [vmem:[#allocation91_spill] sm:$0xff] %v8386_v14  ;;  %10366 = vst [vmem:[#allocation92_spill] sm:$0xff] %v8389_v61  ;;  %v8392_v55 = vld [vmem:[#allocation10 + $0x388] sm:$0xff]  ;;  %v8395_v9 = vld [vmem:[#allocation10 + $0x398] sm:$0xff] }
 0x75a   :  { %2978 = vmatprep.subr.mxu0 %v8380_v11  ;;  %3049 = vmatprep.subr.mxu1 %v8383_v13  ;;  %10367 = vst [vmem:[#allocation93_spill] sm:$0xff] %v8392_v55  ;;  %10368 = vst [vmem:[#allocation94_spill] sm:$0xff] %v8395_v9  ;;  %v8398_v11 = vld [vmem:[#allocation10 + $0x380] sm:$0xff]  ;;  %v8401_v13 = vld [vmem:[#allocation10 + $0x390] sm:$0xff] }
 0x75b   :  { %2979 = vmatpush2.msra.mxu0 %v8386_v14  ;;  %3050 = vmatpush2.msra.mxu1 %v8389_v61  ;;  %10369 = vst [vmem:[#allocation95_spill] sm:$0xff] %v8398_v11  ;;  %10370 = vst [vmem:[#allocation96_spill] sm:$0xff] %v8401_v13  ;;  %v8404_v14 = vld [vmem:[#allocation10 + $0x368] sm:$0xff]  ;;  %v8407_v61 = vld [vmem:[#allocation10 + $0x378] sm:$0xff] }
 0x75c   :  { %2980 = vmatprep.subr.mxu0 %v8392_v55  ;;  %3051 = vmatprep.subr.mxu1 %v8395_v9  ;;  %10371 = vst [vmem:[#allocation97_spill] sm:$0xff] %v8404_v14  ;;  %10372 = vst [vmem:[#allocation98_spill] sm:$0xff] %v8407_v61  ;;  %v8410_v55 = vld [vmem:[#allocation10 + $0x360] sm:$0xff]  ;;  %v8413_v9 = vld [vmem:[#allocation10 + $0x370] sm:$0xff] }
 0x75d   :  { %2981 = vmatpush2.msra.mxu0 %v8398_v11  ;;  %3052 = vmatpush2.msra.mxu1 %v8401_v13  ;;  %10373 = vst [vmem:[#allocation99_spill] sm:$0xff] %v8410_v55  ;;  %10374 = vst [vmem:[#allocation100_spill] sm:$0xff] %v8413_v9  ;;  %v8416_v11 = vld [vmem:[#allocation10 + $0x348] sm:$0xff]  ;;  %v8419_v13 = vld [vmem:[#allocation10 + $0x358] sm:$0xff] }
 0x75e   :  { %2982 = vmatprep.subr.mxu0 %v8404_v14  ;;  %3053 = vmatprep.subr.mxu1 %v8407_v61  ;;  %10375 = vst [vmem:[#allocation101_spill] sm:$0xff] %v8416_v11  ;;  %10376 = vst [vmem:[#allocation102_spill] sm:$0xff] %v8419_v13  ;;  %v8422_v14 = vld [vmem:[#allocation10 + $0x340] sm:$0xff]  ;;  %v8425_v61 = vld [vmem:[#allocation10 + $0x350] sm:$0xff] }
 0x75f   :  { %2983 = vmatpush2.msra.mxu0 %v8410_v55  ;;  %3054 = vmatpush2.msra.mxu1 %v8413_v9  ;;  %10377 = vst [vmem:[#allocation103_spill] sm:$0xff] %v8422_v14  ;;  %10378 = vst [vmem:[#allocation104_spill] sm:$0xff] %v8425_v61  ;;  %v8428_v55 = vld [vmem:[#allocation10 + $0x328] sm:$0xff]  ;;  %v8431_v9 = vld [vmem:[#allocation10 + $0x338] sm:$0xff] }
 0x760   :  { %2984 = vmatprep.subr.mxu0 %v8416_v11  ;;  %3055 = vmatprep.subr.mxu1 %v8419_v13  ;;  %10379 = vst [vmem:[#allocation105_spill] sm:$0xff] %v8428_v55  ;;  %10380 = vst [vmem:[#allocation106_spill] sm:$0xff] %v8431_v9  ;;  %v8434_v11 = vld [vmem:[#allocation10 + $0x320] sm:$0xff]  ;;  %v8437_v13 = vld [vmem:[#allocation10 + $0x330] sm:$0xff] }
 0x761   :  { %2985 = vmatpush2.msra.mxu0 %v8422_v14  ;;  %3056 = vmatpush2.msra.mxu1 %v8425_v61  ;;  %10381 = vst [vmem:[#allocation107_spill] sm:$0xff] %v8434_v11  ;;  %10382 = vst [vmem:[#allocation108_spill] sm:$0xff] %v8437_v13  ;;  %v8440_v14 = vld [vmem:[#allocation10 + $0x308] sm:$0xff]  ;;  %v8443_v61 = vld [vmem:[#allocation10 + $0x318] sm:$0xff] }
 0x762   :  { %2986 = vmatprep.subr.mxu0 %v8428_v55  ;;  %3057 = vmatprep.subr.mxu1 %v8431_v9  ;;  %10383 = vst [vmem:[#allocation109_spill] sm:$0xff] %v8440_v14  ;;  %10384 = vst [vmem:[#allocation110_spill] sm:$0xff] %v8443_v61  ;;  %v8446_v55 = vld [vmem:[#allocation10 + $0x300] sm:$0xff]  ;;  %v8449_v9 = vld [vmem:[#allocation10 + $0x310] sm:$0xff] }
 0x763   :  { %2987 = vmatpush2.msra.mxu0 %v8434_v11  ;;  %3058 = vmatpush2.msra.mxu1 %v8437_v13  ;;  %10385 = vst [vmem:[#allocation111_spill] sm:$0xff] %v8446_v55  ;;  %10386 = vst [vmem:[#allocation112_spill] sm:$0xff] %v8449_v9  ;;  %v8452_v11 = vld [vmem:[#allocation10 + $0x2e8] sm:$0xff]  ;;  %v8455_v13 = vld [vmem:[#allocation10 + $0x2f8] sm:$0xff] }
 0x764   :  { %2988 = vmatprep.subr.mxu0 %v8440_v14  ;;  %3059 = vmatprep.subr.mxu1 %v8443_v61  ;;  %10387 = vst [vmem:[#allocation113_spill] sm:$0xff] %v8452_v11  ;;  %10388 = vst [vmem:[#allocation114_spill] sm:$0xff] %v8455_v13  ;;  %v8458_v14 = vld [vmem:[#allocation10 + $0x2e0] sm:$0xff]  ;;  %v8461_v61 = vld [vmem:[#allocation10 + $0x2f0] sm:$0xff] }
 0x765   :  { %2989 = vmatpush2.msra.mxu0 %v8446_v55  ;;  %3060 = vmatpush2.msra.mxu1 %v8449_v9  ;;  %10389 = vst [vmem:[#allocation115_spill] sm:$0xff] %v8458_v14  ;;  %10390 = vst [vmem:[#allocation116_spill] sm:$0xff] %v8461_v61  ;;  %v8464_v55 = vld [vmem:[#allocation10 + $0x2c8] sm:$0xff]  ;;  %v8467_v9 = vld [vmem:[#allocation10 + $0x2d8] sm:$0xff] }
 0x766   :  { %2990 = vmatprep.subr.mxu0 %v8452_v11  ;;  %3061 = vmatprep.subr.mxu1 %v8455_v13  ;;  %10391 = vst [vmem:[#allocation117_spill] sm:$0xff] %v8464_v55  ;;  %10392 = vst [vmem:[#allocation118_spill] sm:$0xff] %v8467_v9  ;;  %v8470_v11 = vld [vmem:[#allocation10 + $0x2c0] sm:$0xff]  ;;  %v8473_v13 = vld [vmem:[#allocation10 + $0x2d0] sm:$0xff] }
 0x767   :  { %2991 = vmatpush2.msra.mxu0 %v8458_v14  ;;  %3062 = vmatpush2.msra.mxu1 %v8461_v61  ;;  %10393 = vst [vmem:[#allocation119_spill] sm:$0xff] %v8470_v11  ;;  %10394 = vst [vmem:[#allocation120_spill] sm:$0xff] %v8473_v13  ;;  %v8476_v14 = vld [vmem:[#allocation10 + $0x2a8] sm:$0xff]  ;;  %v8479_v61 = vld [vmem:[#allocation10 + $0x2b8] sm:$0xff] }
 0x768   :  { %2992 = vmatprep.subr.mxu0 %v8464_v55  ;;  %3063 = vmatprep.subr.mxu1 %v8467_v9  ;;  %10395 = vst [vmem:[#allocation121_spill] sm:$0xff] %v8476_v14  ;;  %10396 = vst [vmem:[#allocation122_spill] sm:$0xff] %v8479_v61  ;;  %v8482_v55 = vld [vmem:[#allocation10 + $0x2a0] sm:$0xff]  ;;  %v8485_v9 = vld [vmem:[#allocation10 + $0x2b0] sm:$0xff] }
 0x769   :  { %2993 = vmatpush2.msra.mxu0 %v8470_v11  ;;  %3064 = vmatpush2.msra.mxu1 %v8473_v13  ;;  %10397 = vst [vmem:[#allocation123_spill] sm:$0xff] %v8482_v55  ;;  %10398 = vst [vmem:[#allocation124_spill] sm:$0xff] %v8485_v9  ;;  %v8488_v11 = vld [vmem:[#allocation10 + $0x288] sm:$0xff]  ;;  %v8491_v13 = vld [vmem:[#allocation10 + $0x298] sm:$0xff] }
 0x76a   :  { %2994 = vmatprep.subr.mxu0 %v8476_v14  ;;  %3065 = vmatprep.subr.mxu1 %v8479_v61  ;;  %10399 = vst [vmem:[#allocation125_spill] sm:$0xff] %v8488_v11  ;;  %10400 = vst [vmem:[#allocation126_spill] sm:$0xff] %v8491_v13  ;;  %v8494_v14 = vld [vmem:[#allocation10 + $0x280] sm:$0xff]  ;;  %v8497_v61 = vld [vmem:[#allocation10 + $0x290] sm:$0xff] }
 0x76b   :  { %2995 = vmatpush2.msra.mxu0 %v8482_v55  ;;  %3066 = vmatpush2.msra.mxu1 %v8485_v9  ;;  %10401 = vst [vmem:[#allocation127_spill] sm:$0xff] %v8494_v14  ;;  %10402 = vst [vmem:[#allocation128_spill] sm:$0xff] %v8497_v61  ;;  %v8500_v55 = vld [vmem:[#allocation10 + $0x268] sm:$0xff]  ;;  %v8503_v9 = vld [vmem:[#allocation10 + $0x278] sm:$0xff] }
 0x76c   :  { %2996 = vmatprep.subr.mxu0 %v8488_v11  ;;  %3067 = vmatprep.subr.mxu1 %v8491_v13  ;;  %10403 = vst [vmem:[#allocation129_spill] sm:$0xff] %v8500_v55  ;;  %10404 = vst [vmem:[#allocation130_spill] sm:$0xff] %v8503_v9  ;;  %v8506_v11 = vld [vmem:[#allocation10 + $0x260] sm:$0xff]  ;;  %v8509_v13 = vld [vmem:[#allocation10 + $0x270] sm:$0xff] }
 0x76d   :  { %2997 = vmatpush2.msra.mxu0 %v8494_v14  ;;  %3068 = vmatpush2.msra.mxu1 %v8497_v61  ;;  %10405 = vst [vmem:[#allocation131_spill] sm:$0xff] %v8506_v11  ;;  %10406 = vst [vmem:[#allocation132_spill] sm:$0xff] %v8509_v13  ;;  %v8512_v14 = vld [vmem:[#allocation10 + $0x248] sm:$0xff]  ;;  %v8515_v61 = vld [vmem:[#allocation10 + $0x258] sm:$0xff] }
 0x76e   :  { %2998 = vmatprep.subr.mxu0 %v8500_v55  ;;  %3069 = vmatprep.subr.mxu1 %v8503_v9  ;;  %10407 = vst [vmem:[#allocation133_spill] sm:$0xff] %v8512_v14  ;;  %10408 = vst [vmem:[#allocation134_spill] sm:$0xff] %v8515_v61  ;;  %v8518_v55 = vld [vmem:[#allocation10 + $0x240] sm:$0xff]  ;;  %v8521_v9 = vld [vmem:[#allocation10 + $0x250] sm:$0xff] }
 0x76f   :  { %2999 = vmatpush2.msra.mxu0 %v8506_v11  ;;  %3070 = vmatpush2.msra.mxu1 %v8509_v13  ;;  %10409 = vst [vmem:[#allocation135_spill] sm:$0xff] %v8518_v55  ;;  %10410 = vst [vmem:[#allocation136_spill] sm:$0xff] %v8521_v9  ;;  %v8524_v11 = vld [vmem:[#allocation10 + $0x228] sm:$0xff]  ;;  %v8527_v13 = vld [vmem:[#allocation10 + $0x238] sm:$0xff] }
 0x770   :  { %3000 = vmatprep.subr.mxu0 %v8512_v14  ;;  %3071 = vmatprep.subr.mxu1 %v8515_v61  ;;  %10411 = vst [vmem:[#allocation137_spill] sm:$0xff] %v8524_v11  ;;  %10412 = vst [vmem:[#allocation138_spill] sm:$0xff] %v8527_v13  ;;  %v8530_v14 = vld [vmem:[#allocation10 + $0x220] sm:$0xff]  ;;  %v8533_v61 = vld [vmem:[#allocation10 + $0x230] sm:$0xff] }
 0x771   :  { %3001 = vmatpush2.msra.mxu0 %v8518_v55  ;;  %3072 = vmatpush2.msra.mxu1 %v8521_v9  ;;  %10413 = vst [vmem:[#allocation139_spill] sm:$0xff] %v8530_v14  ;;  %10414 = vst [vmem:[#allocation140_spill] sm:$0xff] %v8533_v61  ;;  %v8536_v55 = vld [vmem:[#allocation10 + $0x208] sm:$0xff]  ;;  %v8539_v9 = vld [vmem:[#allocation10 + $0x218] sm:$0xff] }
 0x772   :  { %3002 = vmatprep.subr.mxu0 %v8524_v11  ;;  %3073 = vmatprep.subr.mxu1 %v8527_v13  ;;  %10415 = vst [vmem:[#allocation141_spill] sm:$0xff] %v8536_v55  ;;  %10416 = vst [vmem:[#allocation142_spill] sm:$0xff] %v8539_v9  ;;  %v8542_v11 = vld [vmem:[#allocation10 + $0x200] sm:$0xff]  ;;  %v8545_v13 = vld [vmem:[#allocation10 + $0x210] sm:$0xff] }
 0x773   :  { %3003 = vmatpush2.msra.mxu0 %v8530_v14  ;;  %3074 = vmatpush2.msra.mxu1 %v8533_v61  ;;  %10417 = vst [vmem:[#allocation143_spill] sm:$0xff] %v8542_v11  ;;  %10418 = vst [vmem:[#allocation144_spill] sm:$0xff] %v8545_v13 }
 0x774   :  { %3004 = vmatprep.subr.mxu0 %v8536_v55  ;;  %3075 = vmatprep.subr.mxu1 %v8539_v9 }
 0x775   :  { %3005 = vmatpush2.msra.mxu0 %v8542_v11  ;;  %3076 = vmatpush2.msra.mxu1 %v8545_v13 }
 0x776   :  { %3117 = vmatprep.subr.mxu0 %v7980_v35  ;;  %3188 = vmatprep.subr.mxu1 %v7983_v56 }
 0x7d4   :  { %v2663_v61 = vpop.f32.mrf.mxu0  ;;  %v2734_v5 = vpop.f32.mrf.mxu1 }
 0x7d5   :  { %v2664_v14 = vadd.f32 %v2663_v61, %v10280_v58  ;;  %v2735_v11 = vadd.f32 %v2734_v5, %v10282_v59 }
 0x7d6   :  { %v2665_v55 = vpop.f32.mrf.mxu0  ;;  %v2736_v3 = vpop.f32.mrf.mxu1 }
 0x7d7   :  { %v4149_v8 = vmul.f32 -1.442695, %v2664_v14  ;;  %v2666_v7 = vadd.f32 %v2665_v55, %v10281_v29  ;;  %v4151_v62 = vmul.f32 -1.442695, %v2735_v11  ;;  %v2737_v35 = vadd.f32 %v2736_v3, %v10283_v4  ;;  %v10420_v11 = vld [vmem:[#allocation178_spill] sm:$0xff] }
 0x7d9   :  { %4412 = vpow2.f32 %v4149_v8  ;;  %v4150_v9 = vmul.f32 -1.442695, %v2666_v7  ;;  %v10419_v7 = vld [vmem:[#allocation176_spill] sm:$0xff] }
 0x7db   :  { %4414 = vpow2.f32 %v4150_v9 }
 0x7dc   :  { %4416 = vpow2.f32 %v4151_v62 }
 0x7e6   :  { %v4413_v13 = vpop.eup %4412 }
 0x7e7   :  { %v2748_v63 = vadd.f32 1.0, %v4413_v13 }
 0x7e8   :  { %v4415_v56 = vpop.eup %4414 }
 0x7e9   :  { %4418 = vrcp.f32 %v2748_v63  ;;  %v2749_v61 = vadd.f32 1.0, %v4415_v56  ;;  %v4417_v14 = vpop.eup %4416  ;;  %v10421_v56 = vld [vmem:[#allocation177_spill] sm:$0xff] }
 0x7ea   :  { %4420 = vtanh.f32 %v2737_v35  ;;  %v2750_v20 = vadd.f32 1.0, %v4417_v14 }
 0x7eb   :  { %4422 = vrcp.f32 %v2749_v61 }
 0x7f5   :  { %v2838_v55 = vpop.f32.mrf.mxu0  ;;  %v2909_v35 = vpop.f32.mrf.mxu1 }
 0x7f6   :  { %v4419_v8 = vpop.eup %4418  ;;  %v2914_v9 = vadd.f32 %v2838_v55, %v10419_v7  ;;  %v2916_v61 = vadd.f32 %v2909_v35, %v10421_v56 }
 0x7f7   :  { %v4421_v29 = vpop.eup %4420  ;;  %v2840_v58 = vpop.f32.mrf.mxu0 }
 0x7f8   :  { %v4423_v5 = vpop.eup %4422  ;;  %v4152_v59 = vmul.f32 -1.442695, %v2914_v9  ;;  %v2915_v25 = vadd.f32 %v2840_v58, %v10420_v11  ;;  %v2759_v13 = vmul.f32 %v4421_v29, %v4419_v8  ;;  %v2911_v55 = vpop.f32.mrf.mxu1  ;;  %v4154_v7 = vmul.f32 -1.442695, %v2916_v61  ;;  %v10422_v9 = vld [vmem:[#allocation179_spill] sm:$0xff] }
 0x7f9   :  { %v2758_v3 = vmul.f32 %v4423_v5, %v7993_v46  ;;  %v2917_v4 = vadd.f32 %v2911_v55, %v10422_v9  ;;  %v5101_v9 = vld [vmem:[#allocation9 + $0x1f0] sm:$0xff] }
 0x7fa   :  { %4424 = vpow2.f32 %v4152_v59  ;;  %v4153_v63 = vmul.f32 -1.442695, %v2915_v25 }
 0x7fb   :  { %v8557_v62 = vadd.f32 %v2759_v13, %v2758_v3 }
 0x7fc   :  { %4426 = vpow2.f32 %v4153_v63 }
 0x7fd   :  { %4428 = vrcp.f32 %v2750_v20 }
 0x7fe   :  { %4430 = vtanh.f32 %v8557_v62 }
 0x7ff   :  { %4432 = vpow2.f32 %v4154_v7  ;;  %v5100_v7 = vld [vmem:[#allocation9 + $0x1e0] sm:$0xff] }
 0x800   :  { %4434 = vtanh.f32 %v2917_v4 }
 0x807   :  { %v4425_v58 = vpop.eup %4424 }
 0x808   :  { %v2927_v14 = vadd.f32 1.0, %v4425_v58  ;;  %v5102_v58 = vld [vmem:[#allocation9 + $0x1c8] sm:$0xff] }
 0x809   :  { %v4427_v46 = vpop.eup %4426 }
 0x80a   :  { %v4429_v29 = vpop.eup %4428  ;;  %4436 = vrcp.f32 %v2927_v14  ;;  %v2928_v25 = vadd.f32 1.0, %v4427_v46  ;;  %v5104_v14 = vld [vmem:[#allocation9 + $0x1c0] sm:$0xff]  ;;  %v5105_v46 = vld [vmem:[#allocation9 + $0x1d0] sm:$0xff] }
 0x80b   :  { %v4431_v59 = vpop.eup %4430 }
 0x80c   :  { %4438 = vrcp.f32 %v2928_v25  ;;  %v8562_v20 = vmul.f32 %v4431_v59, %v4429_v29  ;;  %v4433_v8 = vpop.eup %4432  ;;  %v5106_v29 = vld [vmem:[#allocation9 + $0x1a8] sm:$0xff]  ;;  %v5107_v25 = vld [vmem:[#allocation9 + $0x1b8] sm:$0xff]  ;;  %v5108_v59 = vld [vmem:[#allocation9 + $0x1a0] sm:$0xff] }
 0x80d   :  { %v4435_v5 = vpop.eup %4434  ;;  %v2929_v63 = vadd.f32 1.0, %v4433_v8  ;;  %v5109_v8 = vld [vmem:[#allocation9 + $0x1b0] sm:$0xff] }
 0x80e   :  { %3006 = vmatprep.mubr.f32.mxu0 %v8562_v20  ;;  %3077 = vmatprep.mubr.f32.mxu1 %v8562_v20 }
 0x80f   :  { %4440 = vrcp.f32 %v2929_v63  ;;  %v5114_v63 = vld [vmem:[#allocation9 + $0x168] sm:$0xff] }
 0x817   :  { %v4437_v11 = vpop.eup %4436 }
 0x818   :  { %v2938_v3 = vmul.f32 %v4437_v11, %v4435_v5  ;;  %v5110_v5 = vld [vmem:[#allocation9 + $0x188] sm:$0xff]  ;;  %v5111_v11 = vld [vmem:[#allocation9 + $0x198] sm:$0xff] }
 0x819   :  { %v4439_v13 = vpop.eup %4438 }
 0x81a   :  { %v2937_v35 = vmul.f32 %v4439_v13, %v8003_v10  ;;  %v5103_v10 = vld [vmem:[#allocation9 + $0x1d8] sm:$0xff]  ;;  %v5113_v13 = vld [vmem:[#allocation9 + $0x190] sm:$0xff] }
 0x81c   :  { %v8567_v4 = vadd.f32 %v2938_v3, %v2937_v35  ;;  %v4441_v56 = vpop.eup %4440  ;;  %v5112_v3 = vld [vmem:[#allocation9 + $0x180] sm:$0xff]  ;;  %v5115_v35 = vld [vmem:[#allocation9 + $0x178] sm:$0xff] }
 0x81e   :  { %4442 = vtanh.f32 %v8567_v4 }
 0x82b   :  { %v4443_v61 = vpop.eup %4442 }
 0x82c   :  { %v8570_v55 = vmul.f32 %v4443_v61, %v4441_v56  ;;  %v5116_v56 = vld [vmem:[#allocation9 + $0x160] sm:$0xff]  ;;  %v5117_v61 = vld [vmem:[#allocation9 + $0x170] sm:$0xff] }
 0x82e   :  { %3007 = vmatmul.mubr.f32.vlgmr.msra.gmra.mxu0 %v8570_v55  ;;  %3078 = vmatmul.mubr.f32.vlgmr.msra.gmra.mxu1 %v8570_v55 }
 0x82f   :  { %3118 = vmatpush1.msra.mxu0 %v5100_v7  ;;  %3189 = vmatpush1.msra.mxu1 %v5101_v9  ;;  %v10466_v7 = vld [vmem:[#allocation57_spill] sm:$0xff]  ;;  %v10467_v9 = vld [vmem:[#allocation58_spill] sm:$0xff] }
 0x830   :  { %3119 = vmatprep.subr.mxu0 %v5102_v58  ;;  %3190 = vmatprep.subr.mxu1 %v5103_v10  ;;  %v10468_v58 = vld [vmem:[#allocation59_spill] sm:$0xff]  ;;  %v10469_v10 = vld [vmem:[#allocation60_spill] sm:$0xff] }
 0x831   :  { %3120 = vmatpush1.msra.mxu0 %v5104_v14  ;;  %3191 = vmatpush1.msra.mxu1 %v5105_v46  ;;  %v10470_v14 = vld [vmem:[#allocation61_spill] sm:$0xff]  ;;  %v10471_v46 = vld [vmem:[#allocation62_spill] sm:$0xff] }
 0x832   :  { %3121 = vmatprep.subr.mxu0 %v5106_v29  ;;  %3192 = vmatprep.subr.mxu1 %v5107_v25  ;;  %v10472_v29 = vld [vmem:[#allocation63_spill] sm:$0xff]  ;;  %v10473_v25 = vld [vmem:[#allocation64_spill] sm:$0xff] }
 0x833   :  { %3122 = vmatpush1.msra.mxu0 %v5108_v59  ;;  %3193 = vmatpush1.msra.mxu1 %v5109_v8  ;;  %v10474_v59 = vld [vmem:[#allocation65_spill] sm:$0xff]  ;;  %v10475_v8 = vld [vmem:[#allocation66_spill] sm:$0xff] }
 0x834   :  { %3123 = vmatprep.subr.mxu0 %v5110_v5  ;;  %3194 = vmatprep.subr.mxu1 %v5111_v11  ;;  %v10476_v5 = vld [vmem:[#allocation67_spill] sm:$0xff]  ;;  %v10477_v11 = vld [vmem:[#allocation68_spill] sm:$0xff] }
 0x835   :  { %3124 = vmatpush1.msra.mxu0 %v5112_v3  ;;  %3195 = vmatpush1.msra.mxu1 %v5113_v13  ;;  %v10478_v3 = vld [vmem:[#allocation69_spill] sm:$0xff]  ;;  %v10479_v13 = vld [vmem:[#allocation70_spill] sm:$0xff] }
 0x836   :  { %3125 = vmatprep.subr.mxu0 %v5114_v63  ;;  %3196 = vmatprep.subr.mxu1 %v5115_v35  ;;  %v10480_v63 = vld [vmem:[#allocation71_spill] sm:$0xff]  ;;  %v10481_v35 = vld [vmem:[#allocation72_spill] sm:$0xff] }
 0x837   :  { %3126 = vmatpush1.msra.mxu0 %v5116_v56  ;;  %3197 = vmatpush1.msra.mxu1 %v5117_v61  ;;  %v10482_v56 = vld [vmem:[#allocation73_spill] sm:$0xff]  ;;  %v10483_v61 = vld [vmem:[#allocation74_spill] sm:$0xff] }
 0x838   :  { %3127 = vmatprep.subr.mxu0 %v8028_v36  ;;  %3198 = vmatprep.subr.mxu1 %v8031_v38  ;;  %v10423_v36 = vld [vmem:[#allocation157_spill] sm:$0xff]  ;;  %v10424_v38 = vmov 0.0  }
 0x839   :  { %3128 = vmatpush1.msra.mxu0 %v8034_v40  ;;  %3199 = vmatpush1.msra.mxu1 %v8037_v48  ;;  %v10425_v40 = vld [vmem:[#allocation164_spill] sm:$0xff]  ;;  %v10426_v48 = vld [vmem:[#allocation166_spill] sm:$0xff] }
 0x83a   :  { %3129 = vmatprep.subr.mxu0 %v8040_v15  ;;  %3200 = vmatprep.subr.mxu1 %v8043_v57  ;;  %v10427_v15 = vld [vmem:[#allocation165_spill] sm:$0xff]  ;;  %v10428_v57 = vld [vmem:[#allocation167_spill] sm:$0xff] }
 0x83b   :  { %3130 = vmatpush1.msra.mxu0 %v8046_v16  ;;  %3201 = vmatpush1.msra.mxu1 %v8049_v47  ;;  %v10429_v16 = vld [vmem:[#allocation168_spill] sm:$0xff]  ;;  %v10430_v47 = vld [vmem:[#allocation170_spill] sm:$0xff] }
 0x83c   :  { %3131 = vmatprep.subr.mxu0 %v8052_v60  ;;  %3202 = vmatprep.subr.mxu1 %v8055_v54  ;;  %v10431_v60 = vld [vmem:[#allocation169_spill] sm:$0xff]  ;;  %v10432_v54 = vld [vmem:[#allocation171_spill] sm:$0xff] }
 0x83d   :  { %3132 = vmatpush1.msra.mxu0 %v8058_v39  ;;  %3203 = vmatpush1.msra.mxu1 %v8061_v37  ;;  %v10433_v39 = vld [vmem:[#allocation162_spill] sm:$0xff]  ;;  %v10434_v37 = vld [vmem:[#allocation161_spill] sm:$0xff] }
 0x83e   :  { %3133 = vmatprep.subr.mxu0 %v8064_v24  ;;  %3204 = vmatprep.subr.mxu1 %v8067_v32  ;;  %v10435_v24 = vld [vmem:[#allocation163_spill] sm:$0xff] }
 0x83f   :  { %3134 = vmatpush1.msra.mxu0 %v8070_v34  ;;  %3205 = vmatpush1.msra.mxu1 %v8073_v45  ;;  %v10436_v32 = vld [vmem:[#allocation27_spill] sm:$0xff]  ;;  %v10437_v34 = vld [vmem:[#allocation28_spill] sm:$0xff]  ;;  %v10438_v45 = vld [vmem:[#allocation29_spill] sm:$0xff] }
 0x840   :  { %3135 = vmatprep.subr.mxu0 %v8076_v52  ;;  %3206 = vmatprep.subr.mxu1 %v8079_v6  ;;  %v10439_v52 = vld [vmem:[#allocation30_spill] sm:$0xff]  ;;  %v10440_v6 = vld [vmem:[#allocation31_spill] sm:$0xff] }
 0x841   :  { %3136 = vmatpush1.msra.mxu0 %v8082_v33  ;;  %3207 = vmatpush1.msra.mxu1 %v8085_v18  ;;  %v10441_v33 = vld [vmem:[#allocation32_spill] sm:$0xff]  ;;  %v10442_v18 = vld [vmem:[#allocation33_spill] sm:$0xff] }
 0x842   :  { %3137 = vmatprep.subr.mxu0 %v8088_v44  ;;  %3208 = vmatprep.subr.mxu1 %v8091_v50  ;;  %v10443_v44 = vld [vmem:[#allocation34_spill] sm:$0xff]  ;;  %v10444_v50 = vld [vmem:[#allocation35_spill] sm:$0xff] }
 0x843   :  { %3138 = vmatpush1.msra.mxu0 %v8094_v43  ;;  %3209 = vmatpush1.msra.mxu1 %v8097_v42  ;;  %v10445_v43 = vld [vmem:[#allocation36_spill] sm:$0xff]  ;;  %v10446_v42 = vld [vmem:[#allocation37_spill] sm:$0xff] }
 0x844   :  { %3139 = vmatprep.subr.mxu0 %v8100_v53  ;;  %3210 = vmatprep.subr.mxu1 %v8103_v0  ;;  %v10447_v53 = vld [vmem:[#allocation38_spill] sm:$0xff]  ;;  %v10448_v0 = vld [vmem:[#allocation39_spill] sm:$0xff] }
 0x845   :  { %3140 = vmatpush1.msra.mxu0 %v8106_v49  ;;  %3211 = vmatpush1.msra.mxu1 %v8109_v41  ;;  %v10449_v49 = vld [vmem:[#allocation40_spill] sm:$0xff]  ;;  %v10450_v41 = vld [vmem:[#allocation41_spill] sm:$0xff] }
 0x846   :  { %3141 = vmatprep.subr.mxu0 %v8112_v21  ;;  %3212 = vmatprep.subr.mxu1 %v8115_v51  ;;  %v10451_v21 = vld [vmem:[#allocation42_spill] sm:$0xff]  ;;  %v10452_v51 = vld [vmem:[#allocation43_spill] sm:$0xff] }
 0x847   :  { %3142 = vmatpush1.msra.mxu0 %v8118_v19  ;;  %3213 = vmatpush1.msra.mxu1 %v8121_v17  ;;  %v10453_v19 = vld [vmem:[#allocation44_spill] sm:$0xff]  ;;  %v10454_v17 = vld [vmem:[#allocation45_spill] sm:$0xff] }
 0x848   :  { %3143 = vmatprep.subr.mxu0 %v8124_v28  ;;  %3214 = vmatprep.subr.mxu1 %v8127_v27  ;;  %v10455_v28 = vld [vmem:[#allocation46_spill] sm:$0xff]  ;;  %v10456_v27 = vld [vmem:[#allocation47_spill] sm:$0xff] }
 0x849   :  { %3144 = vmatpush1.msra.mxu0 %v8130_v1  ;;  %3215 = vmatpush1.msra.mxu1 %v8133_v2  ;;  %v10457_v1 = vld [vmem:[#allocation48_spill] sm:$0xff]  ;;  %v10458_v2 = vld [vmem:[#allocation49_spill] sm:$0xff] }
 0x84a   :  { %3145 = vmatprep.subr.mxu0 %v8136_v12  ;;  %3216 = vmatprep.subr.mxu1 %v8139_v26  ;;  %v10459_v12 = vld [vmem:[#allocation50_spill] sm:$0xff]  ;;  %v10460_v26 = vld [vmem:[#allocation51_spill] sm:$0xff] }
 0x84b   :  { %3146 = vmatpush1.msra.mxu0 %v8142_v23  ;;  %3217 = vmatpush1.msra.mxu1 %v8145_v31  ;;  %v10461_v23 = vld [vmem:[#allocation52_spill] sm:$0xff]  ;;  %v10462_v31 = vld [vmem:[#allocation53_spill] sm:$0xff] }
 0x84c   :  { %3147 = vmatprep.subr.mxu0 %v8148_v22  ;;  %3218 = vmatprep.subr.mxu1 %v8151_v30  ;;  %v10463_v22 = vld [vmem:[#allocation54_spill] sm:$0xff]  ;;  %v10464_v30 = vld [vmem:[#allocation55_spill] sm:$0xff] }
 0x84d   :  { %3148 = vmatpush1.msra.mxu0 %v10423_v36  ;;  %3181 = vmatprep.mubr.f32.mxu0 %v10424_v38  ;;  %v10484_v36 = vld [vmem:[#allocation75_spill] sm:$0xff] }
 0x84e   :  { %3219 = vmatpush1.msra.mxu1 %v10425_v40  ;;  %3252 = vmatprep.mubr.f32.mxu1 %v10424_v38  ;;  %v10485_v40 = vld [vmem:[#allocation76_spill] sm:$0xff] }
 0x84f   :  { %3182 = vmatmul.mubr.f32.vlgmr.msra.gmra.mxu0 %v8570_v55  ;;  %3253 = vmatmul.mubr.f32.vlgmr.msra.gmra.mxu1 %v8570_v55  ;;  %v10465_v55 = vld [vmem:[#allocation56_spill] sm:$0xff] }
 0x850   :  { %3287 = vmatprep.subr.mxu0 %v10426_v48  ;;  %3358 = vmatprep.subr.mxu1 %v10427_v15  ;;  %v10486_v48 = vld [vmem:[#allocation77_spill] sm:$0xff]  ;;  %v10487_v15 = vld [vmem:[#allocation78_spill] sm:$0xff] }
 0x851   :  { %3288 = vmatpush1.msra.mxu0 %v10428_v57  ;;  %3359 = vmatpush1.msra.mxu1 %v10429_v16  ;;  %v10488_v57 = vld [vmem:[#allocation79_spill] sm:$0xff]  ;;  %v10489_v16 = vld [vmem:[#allocation80_spill] sm:$0xff] }
 0x852   :  { %3289 = vmatprep.subr.mxu0 %v10430_v47  ;;  %3360 = vmatprep.subr.mxu1 %v10431_v60  ;;  %v10490_v47 = vld [vmem:[#allocation81_spill] sm:$0xff]  ;;  %v10491_v60 = vld [vmem:[#allocation82_spill] sm:$0xff] }
 0x853   :  { %3290 = vmatpush1.msra.mxu0 %v10432_v54  ;;  %3361 = vmatpush1.msra.mxu1 %v10433_v39  ;;  %v10492_v54 = vld [vmem:[#allocation83_spill] sm:$0xff]  ;;  %v10493_v39 = vld [vmem:[#allocation84_spill] sm:$0xff] }
 0x854   :  { %3291 = vmatprep.subr.mxu0 %v10434_v37  ;;  %3362 = vmatprep.subr.mxu1 %v10435_v24  ;;  %v10494_v37 = vld [vmem:[#allocation85_spill] sm:$0xff]  ;;  %v10495_v24 = vld [vmem:[#allocation86_spill] sm:$0xff] }
 0x855   :  { %3292 = vmatpush1.msra.mxu0 %v10436_v32  ;;  %3363 = vmatpush1.msra.mxu1 %v10437_v34  ;;  %v10496_v32 = vld [vmem:[#allocation87_spill] sm:$0xff]  ;;  %v10497_v34 = vld [vmem:[#allocation88_spill] sm:$0xff] }
 0x856   :  { %3293 = vmatprep.subr.mxu0 %v10438_v45  ;;  %3364 = vmatprep.subr.mxu1 %v10439_v52  ;;  %v10498_v45 = vld [vmem:[#allocation89_spill] sm:$0xff]  ;;  %v10499_v52 = vld [vmem:[#allocation90_spill] sm:$0xff] }
 0x857   :  { %3294 = vmatpush1.msra.mxu0 %v10440_v6  ;;  %3365 = vmatpush1.msra.mxu1 %v10441_v33  ;;  %v10500_v6 = vld [vmem:[#allocation91_spill] sm:$0xff]  ;;  %v10501_v33 = vld [vmem:[#allocation92_spill] sm:$0xff] }
 0x858   :  { %3295 = vmatprep.subr.mxu0 %v10442_v18  ;;  %3366 = vmatprep.subr.mxu1 %v10443_v44  ;;  %v10502_v18 = vld [vmem:[#allocation93_spill] sm:$0xff]  ;;  %v10503_v44 = vld [vmem:[#allocation94_spill] sm:$0xff] }
 0x859   :  { %3296 = vmatpush1.msra.mxu0 %v10444_v50  ;;  %3367 = vmatpush1.msra.mxu1 %v10445_v43  ;;  %v10504_v50 = vld [vmem:[#allocation95_spill] sm:$0xff]  ;;  %v10505_v43 = vld [vmem:[#allocation96_spill] sm:$0xff] }
 0x85a   :  { %3297 = vmatprep.subr.mxu0 %v10446_v42  ;;  %3368 = vmatprep.subr.mxu1 %v10447_v53  ;;  %v10506_v42 = vld [vmem:[#allocation97_spill] sm:$0xff]  ;;  %v10507_v53 = vld [vmem:[#allocation98_spill] sm:$0xff] }
 0x85b   :  { %3298 = vmatpush1.msra.mxu0 %v10448_v0  ;;  %3369 = vmatpush1.msra.mxu1 %v10449_v49  ;;  %v10508_v0 = vld [vmem:[#allocation99_spill] sm:$0xff]  ;;  %v10509_v49 = vld [vmem:[#allocation100_spill] sm:$0xff] }
 0x85c   :  { %3299 = vmatprep.subr.mxu0 %v10450_v41  ;;  %3370 = vmatprep.subr.mxu1 %v10451_v21  ;;  %v10510_v41 = vld [vmem:[#allocation101_spill] sm:$0xff]  ;;  %v10511_v21 = vld [vmem:[#allocation102_spill] sm:$0xff] }
 0x85d   :  { %3300 = vmatpush1.msra.mxu0 %v10452_v51  ;;  %3371 = vmatpush1.msra.mxu1 %v10453_v19  ;;  %v10512_v51 = vld [vmem:[#allocation103_spill] sm:$0xff]  ;;  %v10513_v19 = vld [vmem:[#allocation104_spill] sm:$0xff] }
 0x85e   :  { %3301 = vmatprep.subr.mxu0 %v10454_v17  ;;  %3372 = vmatprep.subr.mxu1 %v10455_v28  ;;  %v10514_v17 = vld [vmem:[#allocation105_spill] sm:$0xff]  ;;  %v10515_v28 = vld [vmem:[#allocation106_spill] sm:$0xff] }
 0x85f   :  { %3302 = vmatpush1.msra.mxu0 %v10456_v27  ;;  %3373 = vmatpush1.msra.mxu1 %v10457_v1  ;;  %v10516_v27 = vld [vmem:[#allocation107_spill] sm:$0xff]  ;;  %v10517_v1 = vld [vmem:[#allocation108_spill] sm:$0xff] }
 0x860   :  { %3303 = vmatprep.subr.mxu0 %v10458_v2  ;;  %3374 = vmatprep.subr.mxu1 %v10459_v12  ;;  %v10518_v2 = vld [vmem:[#allocation109_spill] sm:$0xff]  ;;  %v10519_v12 = vld [vmem:[#allocation110_spill] sm:$0xff] }
 0x861   :  { %3304 = vmatpush1.msra.mxu0 %v10460_v26  ;;  %3375 = vmatpush1.msra.mxu1 %v10461_v23  ;;  %v10520_v26 = vld [vmem:[#allocation111_spill] sm:$0xff]  ;;  %v10521_v23 = vld [vmem:[#allocation112_spill] sm:$0xff] }
 0x862   :  { %3305 = vmatprep.subr.mxu0 %v10462_v31  ;;  %3376 = vmatprep.subr.mxu1 %v10463_v22  ;;  %v10522_v31 = vld [vmem:[#allocation113_spill] sm:$0xff]  ;;  %v10523_v22 = vld [vmem:[#allocation114_spill] sm:$0xff] }
 0x863   :  { %3306 = vmatpush1.msra.mxu0 %v10464_v30  ;;  %3377 = vmatpush1.msra.mxu1 %v10465_v55  ;;  %v10524_v30 = vld [vmem:[#allocation115_spill] sm:$0xff]  ;;  %v10525_v55 = vld [vmem:[#allocation116_spill] sm:$0xff] }
 0x864   :  { %3307 = vmatprep.subr.mxu0 %v10466_v7  ;;  %3378 = vmatprep.subr.mxu1 %v10467_v9  ;;  %v10526_v7 = vld [vmem:[#allocation117_spill] sm:$0xff]  ;;  %v10527_v9 = vld [vmem:[#allocation118_spill] sm:$0xff] }
 0x865   :  { %3308 = vmatpush1.msra.mxu0 %v10468_v58  ;;  %3379 = vmatpush1.msra.mxu1 %v10469_v10  ;;  %v10528_v58 = vld [vmem:[#allocation119_spill] sm:$0xff]  ;;  %v10529_v10 = vld [vmem:[#allocation120_spill] sm:$0xff] }
 0x866   :  { %3309 = vmatprep.subr.mxu0 %v10470_v14  ;;  %3380 = vmatprep.subr.mxu1 %v10471_v46  ;;  %v10530_v14 = vld [vmem:[#allocation121_spill] sm:$0xff]  ;;  %v10531_v46 = vld [vmem:[#allocation122_spill] sm:$0xff] }
 0x867   :  { %3310 = vmatpush1.msra.mxu0 %v10472_v29  ;;  %3381 = vmatpush1.msra.mxu1 %v10473_v25  ;;  %v10532_v29 = vld [vmem:[#allocation123_spill] sm:$0xff]  ;;  %v10533_v25 = vld [vmem:[#allocation124_spill] sm:$0xff] }
 0x868   :  { %3311 = vmatprep.subr.mxu0 %v10474_v59  ;;  %3382 = vmatprep.subr.mxu1 %v10475_v8  ;;  %v10534_v59 = vld [vmem:[#allocation125_spill] sm:$0xff]  ;;  %v10535_v8 = vld [vmem:[#allocation126_spill] sm:$0xff] }
 0x869   :  { %3312 = vmatpush1.msra.mxu0 %v10476_v5  ;;  %3383 = vmatpush1.msra.mxu1 %v10477_v11  ;;  %v10536_v5 = vld [vmem:[#allocation127_spill] sm:$0xff]  ;;  %v10537_v11 = vld [vmem:[#allocation128_spill] sm:$0xff] }
 0x86a   :  { %3313 = vmatprep.subr.mxu0 %v10478_v3  ;;  %3384 = vmatprep.subr.mxu1 %v10479_v13  ;;  %v10538_v3 = vld [vmem:[#allocation129_spill] sm:$0xff]  ;;  %v10539_v13 = vld [vmem:[#allocation130_spill] sm:$0xff] }
 0x86b   :  { %3314 = vmatpush1.msra.mxu0 %v10480_v63  ;;  %3385 = vmatpush1.msra.mxu1 %v10481_v35  ;;  %v10540_v63 = vld [vmem:[#allocation131_spill] sm:$0xff]  ;;  %v10541_v35 = vld [vmem:[#allocation132_spill] sm:$0xff] }
 0x86c   :  { %3315 = vmatprep.subr.mxu0 %v10482_v56  ;;  %3386 = vmatprep.subr.mxu1 %v10483_v61  ;;  %v10542_v56 = vld [vmem:[#allocation133_spill] sm:$0xff]  ;;  %v10543_v61 = vld [vmem:[#allocation134_spill] sm:$0xff] }
 0x86d   :  { %3316 = vmatpush1.msra.mxu0 %v10484_v36  ;;  %3387 = vmatpush1.msra.mxu1 %v10485_v40  ;;  %v10544_v36 = vld [vmem:[#allocation135_spill] sm:$0xff]  ;;  %v10545_v40 = vld [vmem:[#allocation136_spill] sm:$0xff] }
 0x86e   :  { %3317 = vmatprep.subr.mxu0 %v10486_v48  ;;  %3388 = vmatprep.subr.mxu1 %v10487_v15  ;;  %v10546_v48 = vld [vmem:[#allocation137_spill] sm:$0xff]  ;;  %v10547_v15 = vld [vmem:[#allocation138_spill] sm:$0xff] }
 0x86f   :  { %3318 = vmatpush1.msra.mxu0 %v10488_v57  ;;  %3389 = vmatpush1.msra.mxu1 %v10489_v16  ;;  %v10548_v57 = vld [vmem:[#allocation139_spill] sm:$0xff]  ;;  %v10549_v16 = vld [vmem:[#allocation140_spill] sm:$0xff] }
 0x870   :  { %3319 = vmatprep.subr.mxu0 %v10490_v47  ;;  %3390 = vmatprep.subr.mxu1 %v10491_v60  ;;  %v10550_v47 = vld [vmem:[#allocation141_spill] sm:$0xff]  ;;  %v10551_v60 = vld [vmem:[#allocation142_spill] sm:$0xff] }
 0x871   :  { %3320 = vmatpush2.msra.mxu0 %v10492_v54  ;;  %3391 = vmatpush2.msra.mxu1 %v10493_v39  ;;  %v10552_v54 = vld [vmem:[#allocation143_spill] sm:$0xff]  ;;  %v10553_v39 = vld [vmem:[#allocation144_spill] sm:$0xff] }
 0x872   :  { %3321 = vmatprep.subr.mxu0 %v10494_v37  ;;  %3392 = vmatprep.subr.mxu1 %v10495_v24  ;;  %v3494_v37 = vld [vmem:[#allocation12 + $0xf8] sm:$0xff] }
 0x873   :  { %3322 = vmatpush2.msra.mxu0 %v10496_v32  ;;  %3393 = vmatpush2.msra.mxu1 %v10497_v34  ;;  %v10554_v32 = vld [vmem:[#allocation22_spill] sm:$0xff] }
 0x874   :  { %3323 = vmatprep.subr.mxu0 %v10498_v45  ;;  %3394 = vmatprep.subr.mxu1 %v10499_v52 }
 0x875   :  { %3324 = vmatpush2.msra.mxu0 %v10500_v6  ;;  %3395 = vmatpush2.msra.mxu1 %v10501_v33  ;;  %v10555_v6 = vld [vmem:[#allocation23_spill] sm:$0xff] }
 0x876   :  { %3325 = vmatprep.subr.mxu0 %v10502_v18  ;;  %3396 = vmatprep.subr.mxu1 %v10503_v44 }
 0x877   :  { %3326 = vmatpush2.msra.mxu0 %v10504_v50  ;;  %3397 = vmatpush2.msra.mxu1 %v10505_v43  ;;  %v10556_v50 = vld [vmem:[#allocation24_spill] sm:$0xff] }
 0x878   :  { %3327 = vmatprep.subr.mxu0 %v10506_v42  ;;  %3398 = vmatprep.subr.mxu1 %v10507_v53 }
 0x879   :  { %3328 = vmatpush2.msra.mxu0 %v10508_v0  ;;  %3399 = vmatpush2.msra.mxu1 %v10509_v49  ;;  %v10557_v49 = vld [vmem:[#allocation25_spill] sm:$0xff] }
 0x87a   :  { %3329 = vmatprep.subr.mxu0 %v10510_v41  ;;  %3400 = vmatprep.subr.mxu1 %v10511_v21  ;;  %v3667_v21 = vld [vmem:[#allocation13 + $0xf8] sm:$0xff] }
 0x87b   :  { %3330 = vmatpush2.msra.mxu0 %v10512_v51  ;;  %3401 = vmatpush2.msra.mxu1 %v10513_v19 }
 0x87c   :  { %3331 = vmatprep.subr.mxu0 %v10514_v17  ;;  %3402 = vmatprep.subr.mxu1 %v10515_v28 }
 0x87d   :  { %3332 = vmatpush2.msra.mxu0 %v10516_v27  ;;  %3403 = vmatpush2.msra.mxu1 %v10517_v1 }
 0x87e   :  { %3333 = vmatprep.subr.mxu0 %v10518_v2  ;;  %3404 = vmatprep.subr.mxu1 %v10519_v12  ;;  %v10558_v2 = vld [vmem:[#allocation180_spill] sm:$0xff] }
 0x87f   :  { %3334 = vmatpush2.msra.mxu0 %v10520_v26  ;;  %3405 = vmatpush2.msra.mxu1 %v10521_v23 }
 0x880   :  { %3335 = vmatprep.subr.mxu0 %v10522_v31  ;;  %3406 = vmatprep.subr.mxu1 %v10523_v22 }
 0x881   :  { %3336 = vmatpush2.msra.mxu0 %v10524_v30  ;;  %3407 = vmatpush2.msra.mxu1 %v10525_v55  ;;  %v10559_v30 = vld [vmem:[#allocation182_spill] sm:$0xff] }
 0x882   :  { %3337 = vmatprep.subr.mxu0 %v10526_v7  ;;  %3408 = vmatprep.subr.mxu1 %v10527_v9 }
 0x883   :  { %3338 = vmatpush2.msra.mxu0 %v10528_v58  ;;  %3409 = vmatpush2.msra.mxu1 %v10529_v10 }
 0x884   :  { %3339 = vmatprep.subr.mxu0 %v10530_v14  ;;  %3410 = vmatprep.subr.mxu1 %v10531_v46 }
 0x885   :  { %3340 = vmatpush2.msra.mxu0 %v10532_v29  ;;  %3411 = vmatpush2.msra.mxu1 %v10533_v25  ;;  %v10560_v29 = vld [vmem:[#allocation181_spill] sm:$0xff] }
 0x886   :  { %3341 = vmatprep.subr.mxu0 %v10534_v59  ;;  %3412 = vmatprep.subr.mxu1 %v10535_v8 }
 0x887   :  { %3342 = vmatpush2.msra.mxu0 %v10536_v5  ;;  %3413 = vmatpush2.msra.mxu1 %v10537_v11  ;;  %v10561_v5 = vld [vmem:[#allocation183_spill] sm:$0xff] }
 0x888   :  { %3343 = vmatprep.subr.mxu0 %v10538_v3  ;;  %3414 = vmatprep.subr.mxu1 %v10539_v13 }
 0x889   :  { %3344 = vmatpush2.msra.mxu0 %v10540_v63  ;;  %3415 = vmatpush2.msra.mxu1 %v10541_v35 }
 0x88a   :  { %3345 = vmatprep.subr.mxu0 %v10542_v56  ;;  %3416 = vmatprep.subr.mxu1 %v10543_v61 }
 0x88b   :  { %3346 = vmatpush2.msra.mxu0 %v10544_v36  ;;  %3417 = vmatpush2.msra.mxu1 %v10545_v40 }
 0x88c   :  { %3347 = vmatprep.subr.mxu0 %v10546_v48  ;;  %3418 = vmatprep.subr.mxu1 %v10547_v15 }
 0x88d   :  { %3348 = vmatpush2.msra.mxu0 %v10548_v57  ;;  %3419 = vmatpush2.msra.mxu1 %v10549_v16 }
 0x88e   :  { %3349 = vmatprep.subr.mxu0 %v10550_v47  ;;  %3420 = vmatprep.subr.mxu1 %v10551_v60 }
 0x88f   :  { %3350 = vmatpush2.msra.mxu0 %v10552_v54  ;;  %3421 = vmatpush2.msra.mxu1 %v10553_v39 }
 0x890   :  { %3507 = vmatprep.subr.mxu0 %v3494_v37  ;;  %3712 = vmatprep.subr.mxu1 %v3667_v21  ;;  %v3486_v21 = vld [vmem:[#allocation12 + $0xb8] sm:$0xff] }
 0x8ee   :  { %v3008_v24 = vpop.f32.mrf.mxu0  ;;  %v3079_v44 = vpop.f32.mrf.mxu1 }
 0x8ef   :  { %v3009_v34 = vadd.f32 %v3008_v24, %v10554_v32  ;;  %v3080_v43 = vadd.f32 %v3079_v44, %v10556_v50  ;;  %v3493_v24 = vld [vmem:[#allocation12 + $0xf0] sm:$0xff]  ;;  %v3664_v44 = vld [vmem:[#allocation13 + $0xe0] sm:$0xff] }
 0x8f0   :  { %v3010_v45 = vpop.f32.mrf.mxu0  ;;  %v3081_v42 = vpop.f32.mrf.mxu1 }
 0x8f1   :  { %v4155_v52 = vmul.f32 -1.442695, %v3009_v34  ;;  %v3011_v33 = vadd.f32 %v3010_v45, %v10555_v6  ;;  %v4157_v53 = vmul.f32 -1.442695, %v3080_v43  ;;  %v3082_v41 = vadd.f32 %v3081_v42, %v10557_v49  ;;  %v3492_v34 = vld [vmem:[#allocation12 + $0xe8] sm:$0xff]  ;;  %v3666_v45 = vld [vmem:[#allocation13 + $0xf0] sm:$0xff] }
 0x8f2   :  { %v3663_v43 = vld [vmem:[#allocation13 + $0xd8] sm:$0xff]  ;;  %v3488_v42 = vld [vmem:[#allocation12 + $0xc8] sm:$0xff] }
 0x8f3   :  { %4444 = vpow2.f32 %v4155_v52  ;;  %v4156_v18 = vmul.f32 -1.442695, %v3011_v33  ;;  %v3491_v52 = vld [vmem:[#allocation12 + $0xe0] sm:$0xff]  ;;  %v3665_v33 = vld [vmem:[#allocation13 + $0xe8] sm:$0xff] }
 0x8f5   :  { %4446 = vpow2.f32 %v4156_v18  ;;  %v3490_v18 = vld [vmem:[#allocation12 + $0xd8] sm:$0xff] }
 0x8f6   :  { %4448 = vpow2.f32 %v4157_v53  ;;  %v3662_v53 = vld [vmem:[#allocation13 + $0xd0] sm:$0xff] }
 0x900   :  { %v4445_v0 = vpop.eup %4444 }
 0x901   :  { %v3093_v51 = vadd.f32 1.0, %v4445_v0  ;;  %v3487_v0 = vld [vmem:[#allocation12 + $0xc0] sm:$0xff] }
 0x902   :  { %v4447_v19 = vpop.eup %4446 }
 0x903   :  { %4450 = vrcp.f32 %v3093_v51  ;;  %v3094_v17 = vadd.f32 1.0, %v4447_v19  ;;  %v4449_v28 = vpop.eup %4448  ;;  %v3660_v51 = vld [vmem:[#allocation13 + $0xc0] sm:$0xff]  ;;  %v3485_v19 = vld [vmem:[#allocation12 + $0xb0] sm:$0xff] }
 0x904   :  { %4452 = vtanh.f32 %v3082_v41  ;;  %v3095_v7 = vadd.f32 1.0, %v4449_v28  ;;  %v3661_v41 = vld [vmem:[#allocation13 + $0xc8] sm:$0xff] }
 0x905   :  { %4454 = vrcp.f32 %v3094_v17  ;;  %v3659_v17 = vld [vmem:[#allocation13 + $0xb8] sm:$0xff]  ;;  %v3484_v28 = vld [vmem:[#allocation12 + $0xa8] sm:$0xff] }
 0x90f   :  { %v3183_v27 = vpop.f32.mrf.mxu0  ;;  %v3254_v46 = vpop.f32.mrf.mxu1 }
 0x910   :  { %v4451_v1 = vpop.eup %4450  ;;  %v3259_v12 = vadd.f32 %v3183_v27, %v10558_v2  ;;  %v3261_v25 = vadd.f32 %v3254_v46, %v10560_v29  ;;  %v3658_v27 = vld [vmem:[#allocation13 + $0xb0] sm:$0xff]  ;;  %v3657_v2 = vld [vmem:[#allocation13 + $0xa8] sm:$0xff]  ;;  %v3651_v46 = vld [vmem:[#allocation13 + $0x78] sm:$0xff] }
 0x911   :  { %v4453_v26 = vpop.eup %4452  ;;  %v3185_v23 = vpop.f32.mrf.mxu0  ;;  %v3476_v29 = vld [vmem:[#allocation12 + $0x68] sm:$0xff] }
 0x912   :  { %v4455_v31 = vpop.eup %4454  ;;  %v4158_v22 = vmul.f32 -1.442695, %v3259_v12  ;;  %v3260_v55 = vadd.f32 %v3185_v23, %v10559_v30  ;;  %v3104_v58 = vmul.f32 %v4453_v26, %v4451_v1  ;;  %v3256_v59 = vpop.f32.mrf.mxu1  ;;  %v4160_v8 = vmul.f32 -1.442695, %v3261_v25  ;;  %v3483_v1 = vld [vmem:[#allocation12 + $0xa0] sm:$0xff]  ;;  %v3482_v12 = vld [vmem:[#allocation12 + $0x98] sm:$0xff] }
 0x913   :  { %v3103_v9 = vmul.f32 %v4455_v31, %v8557_v62  ;;  %v3262_v11 = vadd.f32 %v3256_v59, %v10561_v5  ;;  %v3656_v26 = vld [vmem:[#allocation13 + $0xa0] sm:$0xff]  ;;  %v3481_v23 = vld [vmem:[#allocation12 + $0x90] sm:$0xff]  ;;  %v3655_v31 = vld [vmem:[#allocation13 + $0x98] sm:$0xff] }
 0x914   :  { %4456 = vpow2.f32 %v4158_v22  ;;  %v4159_v10 = vmul.f32 -1.442695, %v3260_v55  ;;  %v3480_v22 = vld [vmem:[#allocation12 + $0x88] sm:$0xff]  ;;  %v3654_v30 = vld [vmem:[#allocation13 + $0x90] sm:$0xff]  ;;  %v3479_v55 = vld [vmem:[#allocation12 + $0x80] sm:$0xff] }
 0x915   :  { %v8757_v14 = vadd.f32 %v3104_v58, %v3103_v9  ;;  %v3478_v9 = vld [vmem:[#allocation12 + $0x78] sm:$0xff]  ;;  %v3652_v58 = vld [vmem:[#allocation13 + $0x80] sm:$0xff]  ;;  %v3650_v25 = vld [vmem:[#allocation13 + $0x70] sm:$0xff] }
 0x916   :  { %4458 = vpow2.f32 %v4159_v10  ;;  %v3477_v10 = vld [vmem:[#allocation12 + $0x70] sm:$0xff]  ;;  %v3475_v59 = vld [vmem:[#allocation12 + $0x60] sm:$0xff]  ;;  %v3474_v5 = vld [vmem:[#allocation12 + $0x58] sm:$0xff] }
 0x917   :  { %4460 = vrcp.f32 %v3095_v7  ;;  %v3653_v7 = vld [vmem:[#allocation13 + $0x88] sm:$0xff] }
 0x918   :  { %4462 = vtanh.f32 %v8757_v14 }
 0x919   :  { %4464 = vpow2.f32 %v4160_v8  ;;  %v3649_v8 = vld [vmem:[#allocation13 + $0x68] sm:$0xff] }
 0x91a   :  { %4466 = vtanh.f32 %v3262_v11  ;;  %v3648_v11 = vld [vmem:[#allocation13 + $0x60] sm:$0xff] }
 0x921   :  { %v4457_v3 = vpop.eup %4456 }
 0x922   :  { %v3272_v13 = vadd.f32 1.0, %v4457_v3  ;;  %v3473_v3 = vld [vmem:[#allocation12 + $0x50] sm:$0xff] }
 0x923   :  { %v4459_v62 = vpop.eup %4458 }
 0x924   :  { %v4461_v63 = vpop.eup %4460  ;;  %4468 = vrcp.f32 %v3272_v13  ;;  %v3273_v35 = vadd.f32 1.0, %v4459_v62  ;;  %v3647_v13 = vld [vmem:[#allocation13 + $0x58] sm:$0xff]  ;;  %v3472_v62 = vld [vmem:[#allocation12 + $0x48] sm:$0xff] }
 0x925   :  { %v4463_v56 = vpop.eup %4462 }
 0x926   :  { %4470 = vrcp.f32 %v3273_v35  ;;  %v8762_v61 = vmul.f32 %v4463_v56, %v4461_v63  ;;  %v4465_v36 = vpop.eup %4464  ;;  %v3646_v63 = vld [vmem:[#allocation13 + $0x50] sm:$0xff]  ;;  %v3471_v35 = vld [vmem:[#allocation12 + $0x40] sm:$0xff]  ;;  %v3645_v56 = vld [vmem:[#allocation13 + $0x48] sm:$0xff] }
 0x927   :  { %v4467_v40 = vpop.eup %4466  ;;  %v3274_v16 = vadd.f32 1.0, %v4465_v36  ;;  %v3470_v36 = vld [vmem:[#allocation12 + $0x38] sm:$0xff] }
 0x928   :  { %3351 = vmatprep.mubr.f32.mxu0 %v8762_v61  ;;  %3422 = vmatprep.mubr.f32.mxu1 %v8762_v61 }
 0x929   :  { %4472 = vrcp.f32 %v3274_v16  ;;  %v3467_v16 = vld [vmem:[#allocation12 + $0x20] sm:$0xff] }
 0x931   :  { %v4469_v48 = vpop.eup %4468 }
 0x932   :  { %v3283_v15 = vmul.f32 %v4469_v48, %v4467_v40  ;;  %v3644_v40 = vld [vmem:[#allocation13 + $0x40] sm:$0xff]  ;;  %v3469_v48 = vld [vmem:[#allocation12 + $0x30] sm:$0xff] }
 0x933   :  { %v4471_v57 = vpop.eup %4470 }
 0x934   :  { %v3282_v47 = vmul.f32 %v4471_v57, %v8567_v4  ;;  %v3489_v4 = vld [vmem:[#allocation12 + $0xd0] sm:$0xff]  ;;  %v3468_v57 = vld [vmem:[#allocation12 + $0x28] sm:$0xff] }
 0x936   :  { %v3284_v60 = vadd.f32 %v3283_v15, %v3282_v47  ;;  %v4473_v54 = vpop.eup %4472  ;;  %v3643_v15 = vld [vmem:[#allocation13 + $0x38] sm:$0xff] }
 0x937   :  { %v3466_v47 = vld [vmem:[#allocation12 + $0x18] sm:$0xff] }
 0x938   :  { %4474 = vtanh.f32 %v3284_v60  ;;  %v3465_v60 = vld [vmem:[#allocation12 + $0x10] sm:$0xff] }
 0x945   :  { %v4475_v39 = vpop.eup %4474 }
 0x946   :  { %v3286_v37 = vmul.f32 %v4475_v39, %v4473_v54  ;;  %v3464_v54 = vld [vmem:[#allocation12 + $0x8] sm:$0xff]  ;;  %v3463_v39 = vld [vmem:[#allocation12] sm:$0xff] }
 0x948   :  { %3352 = vmatmul.mubr.f32.vlgmr.msra.gmra.mxu0 %v3286_v37  ;;  %3423 = vmatmul.mubr.f32.vlgmr.msra.gmra.mxu1 %v3286_v37  ;;  %v10562_v37 = vld [vmem:[#allocation26_spill] sm:$0xff] }
 0x949   :  { %3508 = vmatpush1.msra.mxu0 %v3493_v24  ;;  %3571 = vmatprep.mubr.f32.mxu0 %v10424_v38  ;;  %v10563_v24 = vld [vmem:[#allocation159_spill] sm:$0xff] }
 0x94a   :  { %3509 = vmatprep.subr.mxu0 %v3492_v34  ;;  %3713 = vmatpush1.msra.mxu1 %v3666_v45  ;;  %v10564_v34 = vld [vmem:[#allocation160_spill] sm:$0xff] }
 0x94b   :  { %3510 = vmatpush1.msra.mxu0 %v3491_v52  ;;  %3714 = vmatprep.subr.mxu1 %v3665_v33  ;;  %v10565_v45 = vld [vmem:[#allocation156_spill] sm:$0xff]  ;;  %v10566_v52 = vld [vmem:[#allocation158_spill] sm:$0xff] }
 0x94c   :  { %3511 = vmatprep.subr.mxu0 %v3490_v18  ;;  %3715 = vmatpush1.msra.mxu1 %v3664_v44  ;;  %v3642_v33 = vld [vmem:[#allocation13 + $0x30] sm:$0xff]  ;;  %v3641_v18 = vld [vmem:[#allocation13 + $0x28] sm:$0xff]  ;;  %v3640_v44 = vld [vmem:[#allocation13 + $0x20] sm:$0xff] }
 0x94d   :  { %3512 = vmatpush1.msra.mxu0 %v3489_v4  ;;  %3716 = vmatprep.subr.mxu1 %v3663_v43  ;;  %v3639_v4 = vld [vmem:[#allocation13 + $0x18] sm:$0xff]  ;;  %v3638_v43 = vld [vmem:[#allocation13 + $0x10] sm:$0xff] }
 0x94e   :  { %3513 = vmatprep.subr.mxu0 %v3488_v42  ;;  %3717 = vmatpush1.msra.mxu1 %v3662_v53  ;;  %v3637_v42 = vld [vmem:[#allocation13 + $0x8] sm:$0xff]  ;;  %v3636_v53 = vld [vmem:[#allocation13] sm:$0xff] }
 0x94f   :  { %3514 = vmatpush1.msra.mxu0 %v3487_v0  ;;  %3718 = vmatprep.subr.mxu1 %v3661_v41  ;;  %v3698_v0 = vld [vmem:[#allocation13 + $0x1f0] sm:$0xff]  ;;  %v3695_v41 = vld [vmem:[#allocation13 + $0x1d8] sm:$0xff] }
 0x950   :  { %3515 = vmatprep.subr.mxu0 %v3486_v21  ;;  %3719 = vmatpush1.msra.mxu1 %v3660_v51  ;;  %v3694_v21 = vld [vmem:[#allocation13 + $0x1d0] sm:$0xff]  ;;  %v3693_v51 = vld [vmem:[#allocation13 + $0x1c8] sm:$0xff] }
 0x951   :  { %3516 = vmatpush1.msra.mxu0 %v3485_v19  ;;  %3720 = vmatprep.subr.mxu1 %v3659_v17  ;;  %v3692_v19 = vld [vmem:[#allocation13 + $0x1c0] sm:$0xff]  ;;  %v3691_v17 = vld [vmem:[#allocation13 + $0x1b8] sm:$0xff] }
 0x952   :  { %3517 = vmatprep.subr.mxu0 %v3484_v28  ;;  %3721 = vmatpush1.msra.mxu1 %v3658_v27  ;;  %v3690_v28 = vld [vmem:[#allocation13 + $0x1b0] sm:$0xff]  ;;  %v3689_v27 = vld [vmem:[#allocation13 + $0x1a8] sm:$0xff] }
 0x953   :  { %3518 = vmatpush1.msra.mxu0 %v3483_v1  ;;  %3722 = vmatprep.subr.mxu1 %v3657_v2  ;;  %v3688_v1 = vld [vmem:[#allocation13 + $0x1a0] sm:$0xff]  ;;  %v3687_v2 = vld [vmem:[#allocation13 + $0x198] sm:$0xff] }
 0x954   :  { %3519 = vmatprep.subr.mxu0 %v3482_v12  ;;  %3723 = vmatpush1.msra.mxu1 %v3656_v26  ;;  %v3686_v12 = vld [vmem:[#allocation13 + $0x190] sm:$0xff]  ;;  %v3685_v26 = vld [vmem:[#allocation13 + $0x188] sm:$0xff] }
 0x955   :  { %3520 = vmatpush1.msra.mxu0 %v3481_v23  ;;  %3724 = vmatprep.subr.mxu1 %v3655_v31  ;;  %v3684_v23 = vld [vmem:[#allocation13 + $0x180] sm:$0xff]  ;;  %v3683_v31 = vld [vmem:[#allocation13 + $0x178] sm:$0xff] }
 0x956   :  { %3521 = vmatprep.subr.mxu0 %v3480_v22  ;;  %3725 = vmatpush1.msra.mxu1 %v3654_v30  ;;  %v3682_v22 = vld [vmem:[#allocation13 + $0x170] sm:$0xff]  ;;  %v3681_v30 = vld [vmem:[#allocation13 + $0x168] sm:$0xff] }
 0x957   :  { %3522 = vmatpush1.msra.mxu0 %v3479_v55  ;;  %3726 = vmatprep.subr.mxu1 %v3653_v7  ;;  %v3680_v55 = vld [vmem:[#allocation13 + $0x160] sm:$0xff]  ;;  %v3679_v7 = vld [vmem:[#allocation13 + $0x158] sm:$0xff] }
 0x958   :  { %3523 = vmatprep.subr.mxu0 %v3478_v9  ;;  %3727 = vmatpush1.msra.mxu1 %v3652_v58  ;;  %v3678_v9 = vld [vmem:[#allocation13 + $0x150] sm:$0xff]  ;;  %v3677_v58 = vld [vmem:[#allocation13 + $0x148] sm:$0xff] }
 0x959   :  { %3524 = vmatpush1.msra.mxu0 %v3477_v10  ;;  %3728 = vmatprep.subr.mxu1 %v3651_v46  ;;  %v3676_v10 = vld [vmem:[#allocation13 + $0x140] sm:$0xff]  ;;  %v3675_v46 = vld [vmem:[#allocation13 + $0x138] sm:$0xff] }
 0x95a   :  { %3525 = vmatprep.subr.mxu0 %v3476_v29  ;;  %3729 = vmatpush1.msra.mxu1 %v3650_v25  ;;  %v3674_v29 = vld [vmem:[#allocation13 + $0x130] sm:$0xff]  ;;  %v3673_v25 = vld [vmem:[#allocation13 + $0x128] sm:$0xff] }
 0x95b   :  { %3526 = vmatpush1.msra.mxu0 %v3475_v59  ;;  %3730 = vmatprep.subr.mxu1 %v3649_v8  ;;  %v3672_v59 = vld [vmem:[#allocation13 + $0x120] sm:$0xff]  ;;  %v3671_v8 = vld [vmem:[#allocation13 + $0x118] sm:$0xff] }
 0x95c   :  { %3527 = vmatprep.subr.mxu0 %v3474_v5  ;;  %3731 = vmatpush1.msra.mxu1 %v3648_v11  ;;  %v3670_v5 = vld [vmem:[#allocation13 + $0x110] sm:$0xff]  ;;  %v3669_v11 = vld [vmem:[#allocation13 + $0x108] sm:$0xff] }
 0x95d   :  { %3528 = vmatpush1.msra.mxu0 %v3473_v3  ;;  %3732 = vmatprep.subr.mxu1 %v3647_v13  ;;  %v3668_v3 = vld [vmem:[#allocation13 + $0x100] sm:$0xff]  ;;  %v3872_v13 = vld [vmem:[#allocation15 + $0xf8] sm:$0xff] }
 0x95e   :  { %3529 = vmatprep.subr.mxu0 %v3472_v62  ;;  %3733 = vmatpush1.msra.mxu1 %v3646_v63  ;;  %v3856_v62 = vld [vmem:[#allocation15 + $0x78] sm:$0xff]  ;;  %v3871_v63 = vld [vmem:[#allocation15 + $0xf0] sm:$0xff] }
 0x95f   :  { %3530 = vmatpush1.msra.mxu0 %v3471_v35  ;;  %3734 = vmatprep.subr.mxu1 %v3645_v56  ;;  %v3855_v35 = vld [vmem:[#allocation15 + $0x70] sm:$0xff]  ;;  %v3870_v56 = vld [vmem:[#allocation15 + $0xe8] sm:$0xff] }
 0x960   :  { %3531 = vmatprep.subr.mxu0 %v3470_v36  ;;  %3735 = vmatpush1.msra.mxu1 %v3644_v40  ;;  %v3854_v36 = vld [vmem:[#allocation15 + $0x68] sm:$0xff]  ;;  %v3869_v40 = vld [vmem:[#allocation15 + $0xe0] sm:$0xff] }
 0x961   :  { %3532 = vmatpush1.msra.mxu0 %v3469_v48  ;;  %3736 = vmatprep.subr.mxu1 %v3643_v15  ;;  %v3853_v48 = vld [vmem:[#allocation15 + $0x60] sm:$0xff]  ;;  %v3868_v15 = vld [vmem:[#allocation15 + $0xd8] sm:$0xff] }
 0x962   :  { %3533 = vmatprep.subr.mxu0 %v3468_v57  ;;  %3737 = vmatpush1.msra.mxu1 %v3642_v33  ;;  %v3852_v57 = vld [vmem:[#allocation15 + $0x58] sm:$0xff]  ;;  %v3862_v33 = vld [vmem:[#allocation15 + $0xa8] sm:$0xff] }
 0x963   :  { %3534 = vmatpush1.msra.mxu0 %v3467_v16  ;;  %3738 = vmatprep.subr.mxu1 %v3641_v18  ;;  %v3867_v16 = vld [vmem:[#allocation15 + $0xd0] sm:$0xff]  ;;  %v3846_v18 = vld [vmem:[#allocation15 + $0x28] sm:$0xff] }
 0x964   :  { %3535 = vmatprep.subr.mxu0 %v3466_v47  ;;  %3739 = vmatpush1.msra.mxu1 %v3640_v44  ;;  %v3851_v47 = vld [vmem:[#allocation15 + $0x50] sm:$0xff]  ;;  %v3861_v44 = vld [vmem:[#allocation15 + $0xa0] sm:$0xff] }
 0x965   :  { %3536 = vmatpush1.msra.mxu0 %v3465_v60  ;;  %3740 = vmatprep.subr.mxu1 %v3639_v4  ;;  %v3866_v60 = vld [vmem:[#allocation15 + $0xc8] sm:$0xff]  ;;  %v3845_v4 = vld [vmem:[#allocation15 + $0x20] sm:$0xff] }
 0x966   :  { %3537 = vmatprep.subr.mxu0 %v3464_v54  ;;  %3741 = vmatpush1.msra.mxu1 %v3638_v43  ;;  %v3850_v54 = vld [vmem:[#allocation15 + $0x48] sm:$0xff] }
 0x967   :  { %3538 = vmatpush1.msra.mxu0 %v3463_v39  ;;  %3742 = vmatprep.subr.mxu1 %v3637_v42  ;;  %v3865_v39 = vld [vmem:[#allocation15 + $0xc0] sm:$0xff] }
 0x968   :  { %3572 = vmatmul.mubr.f32.vlgmr.msra.gmra.mxu0 %v10562_v37  ;;  %3743 = vmatpush1.msra.mxu1 %v3636_v53  ;;  %v3849_v37 = vld [vmem:[#allocation15 + $0x40] sm:$0xff] }
 0x969   :  { %3577 = vmatprep.mubr.f32.mxu0 %v10424_v38  ;;  %4165 = vmatprep.subr.mxu0 %v3872_v13 }
 0x96a   :  { %4166 = vmatpush3.msra.mxu0 %v3856_v62 }
 0x96b   :  { %4167 = vmatprep.subr.mxu0 %v3871_v63 }
 0x96c   :  { %3578 = vmatmul.mubr.f32.gmra.mxu0 %v10563_v24  ;;  %v3864_v24 = vld [vmem:[#allocation15 + $0xb8] sm:$0xff] }
 0x96d   :  { %3583 = vmatprep.mubr.f32.mxu0 %v10424_v38  ;;  %4168 = vmatpush3.msra.mxu0 %v3855_v35 }
 0x96e   :  { %4169 = vmatprep.subr.mxu0 %v3870_v56 }
 0x96f   :  { %4170 = vmatpush3.msra.mxu0 %v3854_v36 }
 0x970   :  { %3584 = vmatmul.mubr.f32.gmra.mxu0 %v10564_v34  ;;  %4171 = vmatprep.subr.mxu0 %v3869_v40  ;;  %v3848_v34 = vld [vmem:[#allocation15 + $0x38] sm:$0xff] }
 0x971   :  { %3589 = vmatprep.mubr.f32.mxu0 %v10424_v38  ;;  %4172 = vmatpush3.msra.mxu0 %v3853_v48 }
 0x972   :  { %4173 = vmatprep.subr.mxu0 %v3868_v15 }
 0x973   :  { %4174 = vmatpush3.msra.mxu0 %v3852_v57 }
 0x974   :  { %3590 = vmatmul.mubr.f32.gmra.mxu0 %v10565_v45  ;;  %4175 = vmatprep.subr.mxu0 %v3867_v16  ;;  %v3863_v45 = vld [vmem:[#allocation15 + $0xb0] sm:$0xff] }
 0x975   :  { %3595 = vmatprep.mubr.f32.mxu0 %v10424_v38  ;;  %4176 = vmatpush3.msra.mxu0 %v3851_v47 }
 0x976   :  { %4177 = vmatprep.subr.mxu0 %v3866_v60 }
 0x977   :  { %4178 = vmatpush3.msra.mxu0 %v3850_v54 }
 0x978   :  { %3596 = vmatmul.mubr.f32.gmra.mxu0 %v10566_v52  ;;  %4179 = vmatprep.subr.mxu0 %v3865_v39  ;;  %v3847_v52 = vld [vmem:[#allocation15 + $0x30] sm:$0xff] }
 0x979   :  { %3601 = vmatprep.mubr.f32.mxu0 %v10424_v38  ;;  %4180 = vmatpush3.msra.mxu0 %v3849_v37 }
 0x97a   :  { %4181 = vmatprep.subr.mxu0 %v3864_v24 }
 0x97b   :  { %4182 = vmatpush3.msra.mxu0 %v3848_v34 }
 0x97c   :  { %3602 = vmatmul.mubr.f32.gmra.mxu0 %v8562_v20  ;;  %v3699_v20 = vld [vmem:[#allocation13 + $0x1f8] sm:$0xff]  ;;  %4183 = vmatprep.subr.mxu0 %v3863_v45 }
 0x97d   :  { %3607 = vmatprep.mubr.f32.mxu0 %v10424_v38  ;;  %3744 = vmatprep.subr.mxu1 %v3699_v20 }
 0x97e   :  { %3745 = vmatpush2.msra.mxu1 %v3698_v0  ;;  %4184 = vmatpush3.msra.mxu0 %v3847_v52 }
 0x97f   :  { %4185 = vmatprep.subr.mxu0 %v3862_v33 }
 0x980   :  { %3608 = vmatmul.mubr.f32.gmra.mxu0 %v8762_v61  ;;  %v3697_v61 = vld [vmem:[#allocation13 + $0x1e8] sm:$0xff] }
 0x981   :  { %3613 = vmatprep.mubr.f32.mxu0 %v10424_v38  ;;  %3746 = vmatprep.subr.mxu1 %v3697_v61  ;;  %v3696_v38 = vld [vmem:[#allocation13 + $0x1e0] sm:$0xff] }
 0x982   :  { %3747 = vmatpush2.msra.mxu1 %v3696_v38  ;;  %4186 = vmatpush3.msra.mxu0 %v3846_v18 }
 0x983   :  { %3748 = vmatprep.subr.mxu1 %v3695_v41  ;;  %4187 = vmatprep.subr.mxu0 %v3861_v44 }
 0x984   :  { %3749 = vmatpush2.msra.mxu1 %v3694_v21  ;;  %4188 = vmatpush3.msra.mxu0 %v3845_v4 }
 0x985   :  { %3750 = vmatprep.subr.mxu1 %v3693_v51 }
 0x986   :  { %3751 = vmatpush2.msra.mxu1 %v3692_v19 }
 0x987   :  { %3752 = vmatprep.subr.mxu1 %v3691_v17 }
 0x988   :  { %3753 = vmatpush2.msra.mxu1 %v3690_v28 }
 0x989   :  { %3754 = vmatprep.subr.mxu1 %v3689_v27 }
 0x98a   :  { %3755 = vmatpush2.msra.mxu1 %v3688_v1  ;;  %v10567_v1 = vld [vmem:[#allocation154_spill] sm:$0xff] }
 0x98b   :  { %3756 = vmatprep.subr.mxu1 %v3687_v2 }
 0x98c   :  { %3757 = vmatpush2.msra.mxu1 %v3686_v12 }
 0x98d   :  { %3758 = vmatprep.subr.mxu1 %v3685_v26 }
 0x98e   :  { %3759 = vmatpush2.msra.mxu1 %v3684_v23 }
 0x98f   :  { %3760 = vmatprep.subr.mxu1 %v3683_v31 }
 0x990   :  { %3761 = vmatpush2.msra.mxu1 %v3682_v22 }
 0x991   :  { %3762 = vmatprep.subr.mxu1 %v3681_v30 }
 0x992   :  { %3763 = vmatpush2.msra.mxu1 %v3680_v55 }
 0x993   :  { %3764 = vmatprep.subr.mxu1 %v3679_v7 }
 0x994   :  { %3765 = vmatpush2.msra.mxu1 %v3678_v9 }
 0x995   :  { %3766 = vmatprep.subr.mxu1 %v3677_v58 }
 0x996   :  { %3767 = vmatpush2.msra.mxu1 %v3676_v10 }
 0x997   :  { %3768 = vmatprep.subr.mxu1 %v3675_v46 }
 0x998   :  { %3769 = vmatpush2.msra.mxu1 %v3674_v29 }
 0x999   :  { %3770 = vmatprep.subr.mxu1 %v3673_v25 }
 0x99a   :  { %3771 = vmatpush2.msra.mxu1 %v3672_v59 }
 0x99b   :  { %3772 = vmatprep.subr.mxu1 %v3671_v8 }
 0x99c   :  { %3773 = vmatpush2.msra.mxu1 %v3670_v5 }
 0x99d   :  { %3774 = vmatprep.subr.mxu1 %v3669_v11 }
 0x99e   :  { %3775 = vmatpush2.msra.mxu1 %v3668_v3 }
 0xa08   :  { %v3353_v43 = vpop.f32.mrf.mxu0  ;;  %v3424_v38 = vpop.f32.mrf.mxu1 }
 0xa09   :  { %v3354_v42 = vadd.f32 %v3353_v43, %v10554_v32  ;;  %v3425_v41 = vadd.f32 %v3424_v38, %v10556_v50  ;;  %v10568_v50 = vld [vmem:[#allocation155_spill] sm:$0xff] }
 0xa0a   :  { %v3355_v53 = vpop.f32.mrf.mxu0  ;;  %v3426_v21 = vpop.f32.mrf.mxu1 }
 0xa0b   :  { %v4161_v20 = vmul.f32 -1.442695, %v3354_v42  ;;  %v3356_v0 = vadd.f32 %v3355_v53, %v10555_v6  ;;  %v4163_v51 = vmul.f32 -1.442695, %v3425_v41  ;;  %v3427_v17 = vadd.f32 %v3426_v21, %v10557_v49  ;;  %v3495_v6 = vld [vmem:[%s8871_s7] sm:$0x3] }
 0xa0c   :  { %v8790_v2 = vrot.slane %v3495_v6, %v10567_v1  ;;  %v8793_v12 = vrot.slane %v3495_v6, %v10568_v50  ;;  %v3857_v6 = vld [vmem:[#allocation15 + $0x80] sm:$0xff] }
 0xa0d   :  { %4476 = vpow2.f32 %v4161_v20  ;;  %v4162_v61 = vmul.f32 -1.442695, %v3356_v0 }
 0xa0f   :  { %4478 = vpow2.f32 %v4162_v61 }
 0xa10   :  { %4480 = vpow2.f32 %v4163_v51  ;;  %v3860_v51 = vld [vmem:[#allocation15 + $0x98] sm:$0xff] }
 0xa11   :  { %4189 = vmatprep.subr.mxu0 %v3860_v51 }
 0xa1a   :  { %v4477_v19 = vpop.eup %4476 }
 0xa1b   :  { %v3438_v28 = vadd.f32 1.0, %v4477_v19  ;;  %v3844_v19 = vld [vmem:[#allocation15 + $0x18] sm:$0xff] }
 0xa1c   :  { %v4479_v27 = vpop.eup %4478  ;;  %4190 = vmatpush3.msra.mxu0 %v3844_v19 }
 0xa1d   :  { %4482 = vrcp.f32 %v3438_v28  ;;  %v3439_v32 = vadd.f32 1.0, %v4479_v27  ;;  %v4481_v23 = vpop.eup %4480  ;;  %v3843_v28 = vld [vmem:[#allocation15 + $0x10] sm:$0xff]  ;;  %v3858_v27 = vld [vmem:[#allocation15 + $0x88] sm:$0xff] }
 0xa1e   :  { %4484 = vtanh.f32 %v3427_v17  ;;  %v3440_v9 = vadd.f32 1.0, %v4481_v23  ;;  %v3859_v17 = vld [vmem:[#allocation15 + $0x90] sm:$0xff]  ;;  %v3700_v23 = vld [vmem:[%s8873_s9] sm:$0x3] }
 0xa1f   :  { %4486 = vrcp.f32 %v3439_v32  ;;  %4191 = vmatprep.subr.mxu0 %v3859_v17  ;;  %v3842_v32 = vld [vmem:[#allocation15 + $0x8] sm:$0xff] }
 0xa20   :  { %4488 = vrcp.f32 %v3440_v9  ;;  %4192 = vmatpush3.msra.mxu0 %v3843_v28 }
 0xa21   :  { %4193 = vmatprep.subr.mxu0 %v3858_v27 }
 0xa22   :  { %4194 = vmatpush3.msra.mxu0 %v3842_v32 }
 0xa23   :  { %4195 = vmatprep.subr.mxu0 %v3857_v6 }
 0xa28   :  { %v3573_v26 = vpop.f32.mrf.mxu0 }
 0xa29   :  { %v3574_v31 = vadd.f32 %v3573_v26, %v8790_v2  ;;  %v3841_v26 = vld [vmem:[#allocation15] sm:$0xff] }
 0xa2a   :  { %v4483_v49 = vpop.eup %4482  ;;  %v3575_v22 = vpop.f32.mrf.mxu0  ;;  %4196 = vmatpush3.msra.mxu0 %v3841_v26 }
 0xa2b   :  { %v4485_v30 = vpop.eup %4484  ;;  %v3576_v55 = vadd.f32 %v3575_v22, %v8793_v12  ;;  %v3620_v25 = vmax.f32 %v3574_v31, 0.0  ;;  %v8817_v31 = vrot.slane %v3700_v23, %v10568_v50 }
 0xa2c   :  { %v4487_v7 = vpop.eup %4486  ;;  %v3579_v58 = vpop.f32.mrf.mxu0  ;;  %v3449_v46 = vmul.f32 %v4485_v30, %v4483_v49  ;;  %v8814_v49 = vrot.slane %v3700_v23, %v10567_v1 }
 0xa2d   :  { %v3448_v10 = vmul.f32 %v4487_v7, %v8757_v14  ;;  %v3621_v29 = vmax.f32 %v3576_v55, 0.0  ;;  %v3580_v59 = vadd.f32 %v3579_v58, %v8790_v2  ;;  %v4489_v34 = vpop.eup %4488 }
 0xa2e   :  { %v3581_v8 = vpop.f32.mrf.mxu0 }
 0xa2f   :  { %v3450_v5 = vadd.f32 %v3449_v46, %v3448_v10  ;;  %v3582_v11 = vadd.f32 %v3581_v8, %v8793_v12  ;;  %3776 = vmatprep.mubr.f32.mxu1 %v3621_v29  ;;  %v3622_v62 = vmax.f32 %v3580_v59, 0.0 }
 0xa30   :  { %v3585_v3 = vpop.f32.mrf.mxu0  ;;  %3777 = vmatmul.mubr.f32.vlgmr.msra.gmra.mxu1 %v3620_v25 }
 0xa31   :  { %4490 = vtanh.f32 %v3450_v5  ;;  %v3623_v13 = vmax.f32 %v3582_v11, 0.0  ;;  %v3586_v63 = vadd.f32 %v3585_v3, %v8790_v2 }
 0xa32   :  { %v3587_v35 = vpop.f32.mrf.mxu0 }
 0xa33   :  { %v3588_v14 = vadd.f32 %v3587_v35, %v8793_v12  ;;  %3782 = vmatprep.mubr.f32.mxu1 %v3623_v13  ;;  %v3624_v40 = vmax.f32 %v3586_v63, 0.0 }
 0xa34   :  { %v3591_v56 = vpop.f32.mrf.mxu0  ;;  %3783 = vmatmul.mubr.f32.gmra.mxu1 %v3622_v62 }
 0xa35   :  { %v3625_v36 = vmax.f32 %v3588_v14, 0.0  ;;  %v3592_v48 = vadd.f32 %v3591_v56, %v8790_v2 }
 0xa36   :  { %v3593_v15 = vpop.f32.mrf.mxu0 }
 0xa37   :  { %v3594_v57 = vadd.f32 %v3593_v15, %v8793_v12  ;;  %3788 = vmatprep.mubr.f32.mxu1 %v3625_v36  ;;  %v3626_v60 = vmax.f32 %v3592_v48, 0.0 }
 0xa38   :  { %v3597_v16 = vpop.f32.mrf.mxu0  ;;  %3789 = vmatmul.mubr.f32.gmra.mxu1 %v3624_v40 }
 0xa39   :  { %v3627_v47 = vmax.f32 %v3594_v57, 0.0  ;;  %v3598_v54 = vadd.f32 %v3597_v16, %v8790_v2 }
 0xa3a   :  { %v3599_v39 = vpop.f32.mrf.mxu0 }
 0xa3b   :  { %v3600_v37 = vadd.f32 %v3599_v39, %v8793_v12  ;;  %3794 = vmatprep.mubr.f32.mxu1 %v3627_v47  ;;  %v3628_v33 = vmax.f32 %v3598_v54, 0.0 }
 0xa3c   :  { %v3603_v24 = vpop.f32.mrf.mxu0  ;;  %3795 = vmatmul.mubr.f32.gmra.mxu1 %v3626_v60 }
 0xa3d   :  { %v3629_v45 = vmax.f32 %v3600_v37, 0.0  ;;  %v3604_v18 = vadd.f32 %v3603_v24, %v8790_v2 }
 0xa3e   :  { %v4491_v52 = vpop.eup %4490  ;;  %v3605_v44 = vpop.f32.mrf.mxu0 }
 0xa3f   :  { %v3606_v4 = vadd.f32 %v3605_v44, %v8793_v12  ;;  %3800 = vmatprep.mubr.f32.mxu1 %v3629_v45  ;;  %v3452_v43 = vmul.f32 %v4491_v52, %v4489_v34  ;;  %v3630_v20 = vmax.f32 %v3604_v18, 0.0 }
 0xa40   :  { %v3609_v42 = vpop.f32.mrf.mxu0  ;;  %3801 = vmatmul.mubr.f32.gmra.mxu1 %v3628_v33 }
 0xa41   :  { %v3631_v53 = vmax.f32 %v3606_v4, 0.0  ;;  %3614 = vmatmul.mubr.f32.gmra.mxu0 %v3452_v43  ;;  %v3610_v0 = vadd.f32 %v3609_v42, %v8790_v2 }
 0xa42   :  { %v3611_v61 = vpop.f32.mrf.mxu0 }
 0xa43   :  { %v3612_v38 = vadd.f32 %v3611_v61, %v8793_v12  ;;  %3806 = vmatprep.mubr.f32.mxu1 %v3631_v53  ;;  %v3632_v21 = vmax.f32 %v3610_v0, 0.0 }
 0xa44   :  { %3807 = vmatmul.mubr.f32.gmra.mxu1 %v3630_v20 }
 0xa45   :  { %v3633_v41 = vmax.f32 %v3612_v38, 0.0  ;;  %v8838_v38 = vld [vmem:[%s8875_s11] ss:$0 sm:$0xff]  ;;  %s5302_s11 = smov [#allocation16]  }
 0xa46   :  { %s4078_s27 = sshll.u32 %s5302_s11, 4  ;;  %s4079_s27 = int_to_ptr.vmem [resolvable:$true] %s4078_s27 }
 0xa47   :  { %3812 = vmatprep.mubr.f32.mxu1 %v3633_v41  ;;  %s5258_s28 = scalar_lea.vmem %s4079_s27, 1024  ;;  %p5263_p8 = scmp.lt.s32.totalorder %s4079_s27, %s4079_s27 }
 0xa48   :  { %3813 = vmatmul.mubr.f32.gmra.mxu1 %v3632_v21  ;;  %p5259_p7 = scmp.ne.s32.totalorder %s4079_s27, %s5258_s28  ;;  %p5264_p9 = scmp.lt.s32.totalorder %s5258_s28, %s5258_s28 }
 0xa4a   :  { %p5265_p10 = por %p5264_p9, %p5263_p8 }
 0xa4c   :  { %p5266_p11 = pnand %p5265_p10, %p5259_p7 }
 0xaf0   :  { %v3778_v22 = vpop.f32.mrf.mxu1 }
 0xaf1   :  { %v3779_v30 = vadd.f32 %v3778_v22, %v8814_v49 }
 0xaf2   :  { %v3780_v55 = vpop.f32.mrf.mxu1 }
 0xaf3   :  { %v3781_v7 = vadd.f32 %v3780_v55, %v8817_v31  ;;  %v3825_v10 = vmax.f32 %v3779_v30, 0.0 }
 0xaf4   :  { %v3784_v9 = vpop.f32.mrf.mxu1 }
 0xaf5   :  { %v3826_v58 = vmax.f32 %v3781_v7, 0.0  ;;  %v3785_v46 = vadd.f32 %v3784_v9, %v8814_v49 }
 0xaf6   :  { %v3786_v29 = vpop.f32.mrf.mxu1 }
 0xaf7   :  { %v3787_v25 = vadd.f32 %v3786_v29, %v8817_v31  ;;  %3944 = vmatprep.mubr.f32.mxu0 %v3826_v58  ;;  %v3827_v50 = vmax.f32 %v3785_v46, 0.0 }
 0xaf8   :  { %v3790_v1 = vpop.f32.mrf.mxu1  ;;  %3945 = vmatmul.mubr.f32.vlgmr.msra.gmra.mxu0 %v3825_v10 }
 0xaf9   :  { %v3828_v59 = vmax.f32 %v3787_v25, 0.0  ;;  %v3791_v8 = vadd.f32 %v3790_v1, %v8814_v49 }
 0xafa   :  { %v3792_v5 = vpop.f32.mrf.mxu1 }
 0xafb   :  { %v3793_v11 = vadd.f32 %v3792_v5, %v8817_v31  ;;  %3949 = vmatprep.mubr.f32.mxu0 %v3828_v59  ;;  %v3829_v62 = vmax.f32 %v3791_v8, 0.0 }
 0xafc   :  { %v3796_v3 = vpop.f32.mrf.mxu1  ;;  %3950 = vmatmul.mubr.f32.gmra.mxu0 %v3827_v50 }
 0xafd   :  { %v3830_v13 = vmax.f32 %v3793_v11, 0.0  ;;  %v3797_v63 = vadd.f32 %v3796_v3, %v8814_v49 }
 0xafe   :  { %v3798_v35 = vpop.f32.mrf.mxu1 }
 0xaff   :  { %v3799_v14 = vadd.f32 %v3798_v35, %v8817_v31  ;;  %3954 = vmatprep.mubr.f32.mxu0 %v3830_v13  ;;  %v3831_v48 = vmax.f32 %v3797_v63, 0.0 }
 0xb00   :  { %v3802_v56 = vpop.f32.mrf.mxu1  ;;  %3955 = vmatmul.mubr.f32.gmra.mxu0 %v3829_v62 }
 0xb01   :  { %v3832_v36 = vmax.f32 %v3799_v14, 0.0  ;;  %v3615_v40 = vpop.f32.mrf.mxu0  ;;  %v3803_v15 = vadd.f32 %v3802_v56, %v8814_v49 }
 0xb02   :  { %v3804_v57 = vpop.f32.mrf.mxu1  ;;  %v3616_v16 = vadd.f32 %v3615_v40, %v8790_v2 }
 0xb03   :  { %v3805_v47 = vadd.f32 %v3804_v57, %v8817_v31  ;;  %3959 = vmatprep.mubr.f32.mxu0 %v3832_v36  ;;  %v3617_v60 = vpop.f32.mrf.mxu0  ;;  %v3833_v24 = vmax.f32 %v3803_v15, 0.0 }
 0xb04   :  { %v3618_v54 = vadd.f32 %v3617_v60, %v8793_v12  ;;  %v3808_v39 = vpop.f32.mrf.mxu1  ;;  %3960 = vmatmul.mubr.f32.gmra.mxu0 %v3831_v48  ;;  %v3634_v33 = vmax.f32 %v3616_v16, 0.0 }
 0xb05   :  { %v3834_v37 = vmax.f32 %v3805_v47, 0.0  ;;  %v3809_v45 = vadd.f32 %v3808_v39, %v8814_v49 }
 0xb06   :  { %v3635_v34 = vmax.f32 %v3618_v54, 0.0  ;;  %v3810_v52 = vpop.f32.mrf.mxu1 }
 0xb07   :  { %v3811_v18 = vadd.f32 %v3810_v52, %v8817_v31  ;;  %3964 = vmatprep.mubr.f32.mxu0 %v3834_v37  ;;  %v3835_v4 = vmax.f32 %v3809_v45, 0.0 }
 0xb08   :  { %v3814_v44 = vpop.f32.mrf.mxu1  ;;  %3965 = vmatmul.mubr.f32.gmra.mxu0 %v3833_v24  ;;  %3818 = vmatprep.mubr.f32.mxu1 %v3635_v34 }
 0xb09   :  { %v3836_v2 = vmax.f32 %v3811_v18, 0.0  ;;  %3819 = vmatmul.mubr.f32.gmra.mxu1 %v3634_v33  ;;  %v3815_v12 = vadd.f32 %v3814_v44, %v8814_v49 }
 0xb0a   :  { %v3816_v43 = vpop.f32.mrf.mxu1 }
 0xb0b   :  { %v3817_v42 = vadd.f32 %v3816_v43, %v8817_v31  ;;  %3969 = vmatprep.mubr.f32.mxu0 %v3836_v2  ;;  %v3837_v20 = vmax.f32 %v3815_v12, 0.0 }
 0xb0c   :  { %3970 = vmatmul.mubr.f32.gmra.mxu0 %v3835_v4 }
 0xb0d   :  { %v3838_v53 = vmax.f32 %v3817_v42, 0.0 }
 0xb0f   :  { %3974 = vmatprep.mubr.f32.mxu0 %v3838_v53 }
 0xb10   :  { %3975 = vmatmul.mubr.f32.gmra.mxu0 %v3837_v20 }
 0xbb8   :  { %v4197_v0 = vpop.f32.mrf.mxu0 }
 0xbba   :  { %v4198_v61 = vpop.f32.mrf.mxu0 }
 0xbbb   :  { %v4199_v41 = vadd.f32 %v4198_v61, %v4197_v0 }
 0xbbc   :  { %v4200_v21 = vpop.f32.mrf.mxu0 }
 0xbbd   :  { %v3947_v51 = vadd.f32 %v4199_v41, %v8838_v38 }
 0xbbe   :  { %v4201_v19 = vpop.f32.mrf.mxu0 }
 0xbbf   :  { %v4202_v17 = vadd.f32 %v4201_v19, %v4200_v21  ;;  %3985 = vmax.xlane.f32.xlu0 %v3947_v51 }
 0xbc0   :  { %v4203_v28 = vpop.f32.mrf.mxu0 }
 0xbc1   :  { %v3952_v27 = vadd.f32 %v4202_v17, %v8838_v38 }
 0xbc2   :  { %v4204_v32 = vpop.f32.mrf.mxu0 }
 0xbc3   :  { %v4205_v6 = vadd.f32 %v4204_v32, %v4203_v28  ;;  %3987 = vmax.xlane.f32.xlu0 %v3952_v27 }
 0xbc4   :  { %v4206_v26 = vpop.f32.mrf.mxu0 }
 0xbc5   :  { %v3957_v23 = vadd.f32 %v4205_v6, %v8838_v38 }
 0xbc6   :  { %v4207_v22 = vpop.f32.mrf.mxu0 }
 0xbc7   :  { %v4208_v30 = vadd.f32 %v4207_v22, %v4206_v26  ;;  %3989 = vmax.xlane.f32.xlu1 %v3957_v23 }
 0xbc8   :  { %v4209_v55 = vpop.f32.mrf.mxu0 }
 0xbc9   :  { %v3820_v7 = vpop.f32.mrf.mxu1  ;;  %v3962_v9 = vadd.f32 %v4208_v30, %v8838_v38 }
 0xbca   :  { %v4210_v58 = vpop.f32.mrf.mxu0  ;;  %v3821_v10 = vadd.f32 %v3820_v7, %v8814_v49 }
 0xbcb   :  { %v4211_v46 = vadd.f32 %v4210_v58, %v4209_v55  ;;  %3991 = vmax.xlane.f32.xlu1 %v3962_v9  ;;  %v3822_v29 = vpop.f32.mrf.mxu1 }
 0xbcc   :  { %v3823_v25 = vadd.f32 %v3822_v29, %v8817_v31  ;;  %v4212_v1 = vpop.f32.mrf.mxu0  ;;  %v3839_v5 = vmax.f32 %v3821_v10, 0.0 }
 0xbcd   :  { %v3967_v59 = vadd.f32 %v4211_v46, %v8838_v38 }
 0xbce   :  { %v3840_v50 = vmax.f32 %v3823_v25, 0.0  ;;  %v4213_v8 = vpop.f32.mrf.mxu0 }
 0xbcf   :  { %v4214_v11 = vadd.f32 %v4213_v8, %v4212_v1  ;;  %3993 = vmax.xlane.f32.xlu0 %v3967_v59 }
 0xbd0   :  { %v4215_v3 = vpop.f32.mrf.mxu0  ;;  %3979 = vmatprep.mubr.f32.mxu0 %v3840_v50 }
 0xbd1   :  { %3980 = vmatmul.mubr.f32.gmra.mxu0 %v3839_v5  ;;  %v3972_v13 = vadd.f32 %v4214_v11, %v8838_v38 }
 0xbd2   :  { %v4216_v62 = vpop.f32.mrf.mxu0 }
 0xbd3   :  { %v4217_v49 = vadd.f32 %v4216_v62, %v4215_v3  ;;  %3995 = vmax.xlane.f32.xlu1 %v3972_v13 }
 0xbd5   :  { %v3977_v63 = vadd.f32 %v4217_v49, %v8838_v38 }
 0xbd7   :  { %3997 = vmax.xlane.f32.xlu0 %v3977_v63 }
 0xc48   :  { %v3986_v31 = vpop.xlane.xlu0 %3985 }
 0xc49   :  { %v4001_v35 = vsub.f32 %v3947_v51, %v3986_v31 }
 0xc4b   :  { %v4009_v14 = vmul.f32 1.442695, %v4001_v35 }
 0xc4c   :  { %v3988_v48 = vpop.xlane.xlu0 %3987 }
 0xc4d   :  { %4492 = vpow2.f32 %v4009_v14  ;;  %v8849_v45 = vsub.f32 %v3952_v27, %v3988_v48 }
 0xc4f   :  { %v4011_v33 = vmul.f32 1.442695, %v8849_v45 }
 0xc50   :  { %v3990_v56 = vpop.xlane.xlu1 %3989 }
 0xc51   :  { %v4003_v36 = vsub.f32 %v3957_v23, %v3990_v56 }
 0xc53   :  { %v4013_v40 = vmul.f32 1.442695, %v4003_v36 }
 0xc54   :  { %v3992_v52 = vpop.xlane.xlu1 %3991 }
 0xc55   :  { %4494 = vpow2.f32 %v4013_v40  ;;  %v8852_v18 = vsub.f32 %v3962_v9, %v3992_v52 }
 0xc57   :  { %v4015_v2 = vmul.f32 1.442695, %v8852_v18 }
 0xc58   :  { %v3994_v15 = vpop.xlane.xlu0 %3993 }
 0xc59   :  { %v4005_v57 = vsub.f32 %v3967_v59, %v3994_v15 }
 0xc5a   :  { %v4493_v16 = vpop.eup %4492 }
 0xc5b   :  { %v4017_v47 = vmul.f32 1.442695, %v4005_v57  ;;  %4025 = vadd.xlane.f32.xlu0 %v4493_v16 }
 0xc5c   :  { %v3996_v44 = vpop.xlane.xlu1 %3995 }
 0xc5d   :  { %4496 = vpow2.f32 %v4017_v47  ;;  %v4006_v4 = vsub.f32 %v3972_v13, %v3996_v44 }
 0xc5f   :  { %v4019_v43 = vmul.f32 1.442695, %v4006_v4 }
 0xc60   :  { %v3998_v60 = vpop.xlane.xlu0 %3997 }
 0xc61   :  { %v4007_v54 = vsub.f32 %v3977_v63, %v3998_v60 }
 0xc62   :  { %v4495_v39 = vpop.eup %4494 }
 0xc63   :  { %v4021_v37 = vmul.f32 1.442695, %v4007_v54  ;;  %4029 = vadd.xlane.f32.xlu0 %v4495_v39 }
 0xc65   :  { %4498 = vpow2.f32 %v4021_v37 }
 0xc66   :  { %4500 = vpow2.f32 %v4011_v33 }
 0xc67   :  { %4502 = vpow2.f32 %v4015_v2 }
 0xc68   :  { %4504 = vpow2.f32 %v4019_v43 }
 0xc6a   :  { %v4497_v24 = vpop.eup %4496 }
 0xc6b   :  { %4033 = vadd.xlane.f32.xlu0 %v4497_v24 }
 0xc72   :  { %v4499_v34 = vpop.eup %4498 }
 0xc73   :  { %4037 = vadd.xlane.f32.xlu0 %v4499_v34  ;;  %v4501_v0 = vpop.eup %4500 }
 0xc74   :  { %v4503_v61 = vpop.eup %4502 }
 0xc75   :  { %v4505_v41 = vpop.eup %4504 }
 0xc91   :  { %v4218_v12 = vpop.f32.mrf.mxu0 }
 0xc93   :  { %v4219_v42 = vpop.f32.mrf.mxu0 }
 0xc94   :  { %v4220_v53 = vadd.f32 %v4219_v42, %v4218_v12 }
 0xc96   :  { %v3982_v20 = vadd.f32 %v4220_v53, %v8838_v38 }
 0xc98   :  { %3999 = vmax.xlane.f32.xlu1 %v3982_v20 }
 0xc9c   :  { %4027 = vadd.xlane.f32.xlu1 %v4501_v0 }
 0xca0   :  { %4031 = vadd.xlane.f32.xlu1 %v4503_v61 }
 0xca4   :  { %4035 = vadd.xlane.f32.xlu1 %v4505_v41 }
 0xce4   :  { %v4026_v21 = vpop.xlane.xlu0 %4025 }
 0xce5   :  { %4506 = vlog2.f32 %v4026_v21 }
 0xcec   :  { %v4030_v51 = vpop.xlane.xlu0 %4029 }
 0xced   :  { %4508 = vlog2.f32 %v4030_v51 }
 0xcf2   :  { %v4507_v19 = vpop.eup %4506 }
 0xcf3   :  { %v4042_v17 = vmul.f32 0.6931472, %v4507_v19 }
 0xcf4   :  { %v4034_v28 = vpop.xlane.xlu0 %4033 }
 0xcf5   :  { %v4057_v27 = vsub.f32 %v4001_v35, %v4042_v17  ;;  %4510 = vlog2.f32 %v4034_v28 }
 0xcf7   :  { %4065 = vst [vmem:[#allocation16] sm:$0xff] %v4057_v27 }
 0xcfa   :  { %v4509_v32 = vpop.eup %4508 }
 0xcfb   :  { %v4046_v6 = vmul.f32 0.6931472, %v4509_v32 }
 0xcfc   :  { %v4038_v38 = vpop.xlane.xlu0 %4037 }
 0xcfd   :  { %v4059_v26 = vsub.f32 %v4003_v36, %v4046_v6  ;;  %4512 = vlog2.f32 %v4038_v38 }
 0xcff   :  { %4067 = vst [vmem:[#allocation16 + $0x10] sm:$0xff] %v4059_v26 }
 0xd02   :  { %v4511_v23 = vpop.eup %4510 }
 0xd03   :  { %v4050_v22 = vmul.f32 0.6931472, %v4511_v23 }
 0xd05   :  { %v4061_v30 = vsub.f32 %v4005_v57, %v4050_v22 }
 0xd07   :  { %4069 = vst [vmem:[#allocation16 + $0x20] sm:$0xff] %v4061_v30 }
 0xd0a   :  { %v4513_v55 = vpop.eup %4512 }
 0xd0b   :  { %v4054_v7 = vmul.f32 0.6931472, %v4513_v55 }
 0xd0d   :  { %v4063_v9 = vsub.f32 %v4007_v54, %v4054_v7 }
 0xd0f   :  { %4071 = vst [vmem:[#allocation16 + $0x30] sm:$0xff] %v4063_v9 }
 0xd21   :  { %v4000_v58 = vpop.xlane.xlu1 %3999 }
 0xd22   :  { %v4008_v10 = vsub.f32 %v3982_v20, %v4000_v58 }
 0xd24   :  { %v4023_v46 = vmul.f32 1.442695, %v4008_v10 }
 0xd25   :  { %v4028_v29 = vpop.xlane.xlu1 %4027 }
 0xd26   :  { %4514 = vpow2.f32 %v4023_v46 }
 0xd27   :  { %4516 = vlog2.f32 %v4028_v29 }
 0xd29   :  { %v4032_v25 = vpop.xlane.xlu1 %4031 }
 0xd2a   :  { %4518 = vlog2.f32 %v4032_v25 }
 0xd2d   :  { %v4036_v1 = vpop.xlane.xlu1 %4035 }
 0xd2e   :  { %4520 = vlog2.f32 %v4036_v1 }
 0xd33   :  { %v4515_v59 = vpop.eup %4514 }
 0xd34   :  { %v4517_v50 = vpop.eup %4516  ;;  %4039 = vadd.xlane.f32.xlu1 %v4515_v59 }
 0xd35   :  { %v4044_v8 = vmul.f32 0.6931472, %v4517_v50 }
 0xd37   :  { %v4519_v5 = vpop.eup %4518  ;;  %v4058_v11 = vsub.f32 %v8849_v45, %v4044_v8 }
 0xd38   :  { %v4048_v3 = vmul.f32 0.6931472, %v4519_v5 }
 0xd39   :  { %4066 = vst [vmem:[#allocation16 + $0x8] sm:$0xff] %v4058_v11 }
 0xd3a   :  { %v4060_v13 = vsub.f32 %v8852_v18, %v4048_v3 }
 0xd3b   :  { %v4521_v62 = vpop.eup %4520 }
 0xd3c   :  { %4068 = vst [vmem:[#allocation16 + $0x18] sm:$0xff] %v4060_v13  ;;  %v4052_v49 = vmul.f32 0.6931472, %v4521_v62 }
 0xd3e   :  { %v4062_v63 = vsub.f32 %v4006_v4, %v4052_v49 }
 0xd40   :  { %4070 = vst [vmem:[#allocation16 + $0x28] sm:$0xff] %v4062_v63 }
 0xdbd   :  { %v4040_v31 = vpop.xlane.xlu1 %4039 }
 0xdbe   :  { %4522 = vlog2.f32 %v4040_v31 }
 0xdcb   :  { %v4523_v35 = vpop.eup %4522 }
 0xdcc   :  { %v4056_v14 = vmul.f32 0.6931472, %v4523_v35 }
 0xdce   :  { %v4064_v56 = vsub.f32 %v4008_v10, %v4056_v14 }
 0xdd0   :  { %4072 = vst [vmem:[#allocation16 + $0x38] sm:$0xff] %v4064_v56 }
 0xdd1   :  { %5269 = shalt.err (!%p5266_p11)
}
 0xdd2   :  { %4084 = dma.vmem_to_hbm [thread:$0]  %s4079_s27, 1024, %s8876_s12, [#allocation6], %s5296_s23, %s5296_s23, %s5297_s26  }
 0xdd3   :  { %5286 = dma.done.wait [#allocation6], 1024  }
 0xdd4   :  { %5287 = vsyncadd [#allocation6], 4294966272 }
 0xdd5   :  { %4088 = vsyncpa [#allocation5], 1 }
 0xdd6   :  { %4089 = vsyncpa [#allocation8], 1 }
 0xdd7   :  { %4090 = vsyncpa [#allocation11], 1 }
 0xdd8   :  { %4091 = vsyncpa [#allocation14], 1 }
 0xdd9   :  { %4092 = vsyncpa [#allocation6], 1 }

</bundles_post_ra>
